<compile_context>
chip_gen: v7x
topology: tpu7x:2x2x1
jax: 0.10.0
libtpu: 0.0.40
codegen_flags: <defaults>
</compile_context>

<pallas_src>
import jax
import jax.numpy as jnp
from jax.experimental import pallas as pl
from jax.experimental.pallas import tpu as pltpu

D = 16          # d
NBLOCKS = 8     # DonutNet.nblocks
NCOEFS = 18     # MetaNet.ncoefs
NMETAS = 3      # MetaNet.nmetas
BN_EPS = 1e-5


def _default_nlanes():
    """Widened output width: 256 fills the v6e/v7x MXU, 128 is native on v5e."""
    try:
        kind = jax.devices()[0].device_kind.lower()
    except Exception:
        return 128
    if "v6" in kind or "v7" in kind or "7x" in kind:
        return 256
    return 128


# ---------------------------------------------------------------------------
# Kernel 1: fused (patches @ W_wide + bias) + ReLU matmul (all conv layers).
# The weight is block-diagonal-widened so both operand and output blocks are
# lane-dense; bf16 operands, f32 accumulation.
# ---------------------------------------------------------------------------
def _fused_matmul_kernel(x_ref, w_ref, b_ref, o_ref):
    acc = jnp.dot(x_ref[...], w_ref[...], preferred_element_type=jnp.float32)
    o_ref[...] = jnp.maximum(acc + b_ref[...], 0.0).astype(o_ref.dtype)


def _pick_tile(M):
    tm = min(512, M)
    while tm > 1 and M % tm:
        tm //= 2
    if tm == M and tm >= 32 and tm % 2 == 0:
        tm //= 2                      # give megacore / v7x a second grid step
    if tm < 8 and tm != M:
        tm = M                        # fall back to a single full block
    return tm


def fused_matmul(x, w, b, *, out_dtype=jnp.bfloat16):
    """x: (M, Kw) bf16, w: (Kw, N) bf16, b: (1, N) f32 -> (M, N)."""
    M, K = x.shape
    N = w.shape[1]
    tm = _pick_tile(M)
    return pl.pallas_call(
        _fused_matmul_kernel,
        out_shape=jax.ShapeDtypeStruct((M, N), out_dtype),
        grid=(M // tm,),
        in_specs=[
            pl.BlockSpec((tm, K), lambda i: (i, 0)),   # widened patch rows
            pl.BlockSpec((K, N), lambda i: (0, 0)),    # block-diag weight
            pl.BlockSpec((1, N), lambda i: (0, 0)),    # folded bias
        ],
        out_specs=pl.BlockSpec((tm, N), lambda i: (i, 0)),
        compiler_params=pltpu.CompilerParams(
            dimension_semantics=("parallel",),
            # NOTE: relies on XLA fusing the im2col producer into the operand;
            # if it materializes, the patch tensor is a few MiB/img of bf16.
            allow_input_fusion=[True, False, False],
        ),
    )(x, w, b)


# ---------------------------------------------------------------------------
# Kernel 2: head = last Conv2d(16,16,3,s2,p1)+BN+ReLU on the 2x2 map
#           + Flatten + Linear(19,18), for the whole batch in one call.
# ---------------------------------------------------------------------------
def _head_kernel(p_ref, m_ref, w8_ref, b8_ref, wr_ref, wm_ref, bl_ref, o_ref):
    rep = jnp.dot(p_ref[...], w8_ref[...], preferred_element_type=jnp.float32)
    rep = jnp.maximum(rep + b8_ref[...], 0.0).astype(jnp.bfloat16)       # (B,16)
    out = jnp.dot(rep, wr_ref[...], preferred_element_type=jnp.float32)  # (B,18)
    m = m_ref[...]                                                       # (B,3) f32
    wm = wm_ref[...]                                                     # (3,18) f32
    out = out + m[:, 0:1] * wm[0:1, :]
    out = out + m[:, 1:2] * wm[1:2, :]
    out = out + m[:, 2:3] * wm[2:3, :]
    o_ref[...] = out + bl_ref[...]


def head_net(p8, metas, w8, b8, wr, wm, bl):
    """p8: (B,144) bf16 patches of the 2x2 map, metas: (B,3) f32 -> (B,18) f32."""
    B = p8.shape[0]

    def full(arr):
        return pl.BlockSpec(arr.shape, lambda i: (0,) * arr.ndim)

    return pl.pallas_call(
        _head_kernel,
        out_shape=jax.ShapeDtypeStruct((B, NCOEFS), jnp.float32),
        grid=(1,),
        in_specs=[full(p8), full(metas), full(w8), full(b8),
                  full(wr), full(wm), full(bl)],
        out_specs=pl.BlockSpec((B, NCOEFS), lambda i: (0, 0)),
    )(p8, metas, w8, b8, wr, wm, bl)


# ---------------------------------------------------------------------------
# Wrapper-side im2col (channels-last, column order = (tap, ci)) + conv layer
# ---------------------------------------------------------------------------
def im2col(x, stride):
    """(B,H,W,C) -> (B,Ho,Wo,9C) zero-padded 3x3 patches, columns (tap, ci)."""
    B, H, W, C = x.shape
    Ho, Wo = H // stride, W // stride
    xp = jnp.pad(x, ((0, 0), (1, 1), (1, 1), (0, 0)))
    taps = [
        jax.lax.slice(
            xp, (0, dh, dw, 0),
            (B, dh + stride * (Ho - 1) + 1, dw + stride * (Wo - 1) + 1, C),
            (1, stride, stride, 1))
        for dh in range(3) for dw in range(3)
    ]
    return jnp.concatenate(taps, axis=-1)


def conv_bn_relu(x, w_wide, b_wide, *, stride):
    """Conv2d(C,cout,3,stride,p=1)+BN+ReLU via im2col + widened MXU matmul."""
    B, H, W, C = x.shape
    Ho, Wo = H // stride, W // stride
    K = 9 * C
    G = w_wide.shape[0] // K            # widening group (static, from weight shape)
    cout = w_wide.shape[1] // G
    p = im2col(x, stride)               # (B, Ho, Wo, K)
    M = B * Ho * Wo
    xw = p.reshape(M // G, G * K).astype(jnp.bfloat16)   # free reshape, lane-dense
    out = fused_matmul(xw, w_wide, b_wide)               # (M//G, G*cout)
    return out.reshape(B, Ho, Wo, cout)                  # free reshape


# ---------------------------------------------------------------------------
# Parameters (deterministic synthetic init) and kernel-ready preparation
# ---------------------------------------------------------------------------
def conv_layer_specs(d=D):
    specs = [(1, 8, 1)]                 # stem
    for i in range(NBLOCKS):            # DownBlocks (n=1 => no SkipBlocks)
        cin = min(d, 2 ** (i + 3))
        cout = min(d, 2 ** (i + 3 + 1))
        specs.append((cin, cout, 2))
    return specs


def init_params(key, d=D):
    convs = []
    for (cin, cout, stride) in conv_layer_specs(d):
        key, kw, kb = jax.random.split(key, 3)
        fan_in = 9 * cin
        w4 = jax.random.normal(kw, (3, 3, cin, cout), jnp.float32) / jnp.sqrt(fan_in)
        b = jax.random.normal(kb, (cout,), jnp.float32) * 0.01
        gamma = jnp.ones((cout,), jnp.float32)
        beta = jnp.zeros((cout,), jnp.float32)
        rmean = jnp.zeros((cout,), jnp.float32)
        rvar = jnp.ones((cout,), jnp.float32)
        scale = gamma / jnp.sqrt(rvar + BN_EPS)
        shift = beta - rmean * scale
        convs.append(dict(w4=w4, b=b, scale=scale, shift=shift, stride=stride))
    key, kw, kb = jax.random.split(key, 3)
    lin_w = jax.random.normal(kw, (d + NMETAS, NCOEFS), jnp.float32) / jnp.sqrt(d + NMETAS)
    lin_b = jax.random.normal(kb, (NCOEFS,), jnp.float32) * 0.01
    return dict(convs=convs, lin_w=lin_w, lin_b=lin_b)


def prepare_params(raw, nlanes=None):
    """Fold BN into weights/bias and build block-diag-widened matmul layouts."""
    if nlanes is None:
        nlanes = _default_nlanes()
    convs = raw["convs"]
    out_hw = [256 * 256] + [(256 // (2 ** (i + 1))) ** 2 for i in range(NBLOCKS)]

    conv_w, conv_b = [], []
    for li in range(NBLOCKS):           # stem + DownBlocks 1..7 (conv 8 -> head)
        c = convs[li]
        cin, cout = c["w4"].shape[2], c["w4"].shape[3]
        wf = (c["w4"] * c["scale"]).reshape(9 * cin, cout)    # rows (dh,dw,ci)
        bias = c["b"] * c["scale"] + c["shift"]
        hw = out_hw[li]
        if hw >= 1024:
            G = nlanes // cout          # big layers: fill the MXU width
        elif hw >= 256:
            G = min(8, nlanes // cout)  # mid layers: keep widened weight small
        else:
            G = 1                       # tiny layers: widening not worth the DMA
        conv_w.append(jnp.kron(jnp.eye(G, dtype=wf.dtype), wf).astype(jnp.bfloat16))
        conv_b.append(jnp.tile(bias, G)[None, :].astype(jnp.float32))

    c = convs[NBLOCKS]                  # last DownBlock (2x2 -> 1x1), fused in head
    head_w = (c["w4"] * c["scale"]).reshape(9 * D, D).astype(jnp.bfloat16)
    head_b = (c["b"] * c["scale"] + c["shift"])[None, :].astype(jnp.float32)

    lin_w = raw["lin_w"]
    return dict(
        conv_w=conv_w, conv_b=conv_b,
        head_w=head_w, head_b=head_b,
        lin_w_rep=lin_w[:D, :].astype(jnp.bfloat16),
        lin_w_meta=lin_w[D:, :].astype(jnp.float32),
        lin_b=raw["lin_b"][None, :].astype(jnp.float32),
    )


# ---------------------------------------------------------------------------
# Forward pass
# ---------------------------------------------------------------------------
def wavenet_forward(params, donut, fx, fy, focal):
    B = donut.shape[0]
    assert donut.shape[1:] == (1, 256, 256)
    # channels-last activations, bf16 end-to-end (f32 accumulation inside kernels)
    x = donut.reshape(B, 256, 256, 1).astype(jnp.bfloat16)

    # Stem conv (stride 1) + DownBlocks 1-7, all via the widened MXU matmul kernel.
    for li, (w, b) in enumerate(zip(params["conv_w"], params["conv_b"])):
        x = conv_bn_relu(x, w, b, stride=1 if li == 0 else 2)
    # x: (B, 2, 2, 16) bf16

    # Last DownBlock (2x2 -> 1x1) + Flatten + Linear(19,18) fused in one kernel.
    p8 = im2col(x, 2).reshape(B, 9 * D).astype(jnp.bfloat16)
    metas = jnp.concatenate([fx, fy, focal], axis=1).astype(jnp.float32)   # (B,3)
    out = head_net(p8, metas, params["head_w"], params["head_b"],
                   params["lin_w_rep"], params["lin_w_meta"], params["lin_b"])
    return out                                                             # (B,18)


if __name__ == "__main__":
    key = jax.random.PRNGKey(0)
    kp, kd, kfx, kfy, kfo = jax.random.split(key, 5)
    params = prepare_params(init_params(kp))

    B = 2
    # Spatial size 256 is required: 8 stride-2 downsamples must reach 1x1 so the
    # flattened rep has 16 features feeding Linear(19, 18).
    donut = jax.random.normal(kd, (B, 1, 256, 256), jnp.float32)
    fx = jax.random.normal(kfx, (B, 1), jnp.float32)
    fy = jax.random.normal(kfy, (B, 1), jnp.float32)
    focal = jax.random.normal(kfo, (B, 1), jnp.float32)

    fwd = jax.jit(wavenet_forward)
    out = jax.block_until_ready(fwd(params, donut, fx, fy, focal))
    assert out.shape == (B, NCOEFS), out.shape
    assert bool(jnp.all(jnp.isfinite(out)))
    print("KERNEL_OK")
</pallas_src>

<mosaic_0001>
module attributes {stable_mosaic.version = 11 : i64} {
  func.func @_fused_matmul_kernel(%arg0: i32, %arg1: memref<512x144xbf16, #tpu.memory_space<vmem>>, %arg2: memref<144x128xbf16, #tpu.memory_space<vmem>>, %arg3: memref<1x128xf32, #tpu.memory_space<vmem>>, %arg4: memref<512x128xbf16, #tpu.memory_space<vmem>>) attributes {dimension_semantics = [#tpu.dimension_semantics<parallel>], iteration_bounds = array<i64: 16>, scalar_prefetch = 0 : i64, scratch_operands = 0 : i64, tpu.core_type = #tpu.core_type<tc>, window_params = [{transform_indices = @transform_0, window_bounds = array<i64: 512, 144>}, {pipeline_mode = #tpu.pipeline_mode<synchronous>, transform_indices = @transform_1, window_bounds = array<i64: 144, 128>}, {pipeline_mode = #tpu.pipeline_mode<synchronous>, transform_indices = @transform_2, window_bounds = array<i64: 1, 128>}, {transform_indices = @transform_3, window_bounds = array<i64: 512, 128>}]} {
    %c0 = arith.constant 0 : index
    %c0_0 = arith.constant 0 : index
    %0 = vector.load %arg1[%c0, %c0_0] : memref<512x144xbf16, #tpu.memory_space<vmem>>, vector<512x144xbf16>
    %c0_1 = arith.constant 0 : index
    %c0_2 = arith.constant 0 : index
    %1 = vector.load %arg2[%c0_1, %c0_2] : memref<144x128xbf16, #tpu.memory_space<vmem>>, vector<144x128xbf16>
    %cst = arith.constant dense<0.000000e+00> : vector<512x128xf32>
    %2 = tpu.matmul %0, %1, %cst {dimension_numbers = #tpu.dot_dimension_numbers<[1], [0], [0], [1], [0, 0, 1, 1], [], []>} : vector<512x144xbf16>, vector<144x128xbf16>, vector<512x128xf32> -> vector<512x128xf32>
    %c0_3 = arith.constant 0 : index
    %c0_4 = arith.constant 0 : index
    %3 = vector.load %arg3[%c0_3, %c0_4] : memref<1x128xf32, #tpu.memory_space<vmem>>, vector<1x128xf32>
    %4 = vector.broadcast %3 : vector<1x128xf32> to vector<512x128xf32>
    %5 = arith.addf %2, %4 : vector<512x128xf32>
    %cst_5 = arith.constant 0.000000e+00 : f32
    %6 = vector.broadcast %cst_5 : f32 to vector<512x128xf32>
    %7 = arith.maximumf %5, %6 : vector<512x128xf32>
    %8 = arith.truncf %7 : vector<512x128xf32> to vector<512x128xbf16>
    %c0_6 = arith.constant 0 : index
    %c0_7 = arith.constant 0 : index
    %9 = vector.load %arg4[%c0_6, %c0_7] : memref<512x128xbf16, #tpu.memory_space<vmem>>, vector<512x128xbf16>
    tpu.vector_store %arg4[%c0_6, %c0_7], %8 {strides = array<i32>} : memref<512x128xbf16, #tpu.memory_space<vmem>>, vector<512x128xbf16>,
    return
  }
  func.func @transform_0(%arg0: i32) -> (i32, i32) {
    %c0_i32 = arith.constant 0 : i32
    %c0_i32_0 = arith.constant 0 : i32
    return %arg0, %c0_i32 : i32, i32
  }
  func.func @transform_1(%arg0: i32) -> (i32, i32) {
    %c0_i32 = arith.constant 0 : i32
    %c0_i32_0 = arith.constant 0 : i32
    %c0_i32_1 = arith.constant 0 : i32
    return %c0_i32, %c0_i32_0 : i32, i32
  }
  func.func @transform_2(%arg0: i32) -> (i32, i32) {
    %c0_i32 = arith.constant 0 : i32
    %c0_i32_0 = arith.constant 0 : i32
    %c0_i32_1 = arith.constant 0 : i32
    return %c0_i32, %c0_i32_0 : i32, i32
  }
  func.func @transform_3(%arg0: i32) -> (i32, i32) {
    %c0_i32 = arith.constant 0 : i32
    %c0_i32_0 = arith.constant 0 : i32
    return %arg0, %c0_i32 : i32, i32
  }
}

module attributes {stable_mosaic.version = 11 : i64} {
  func.func @_fused_matmul_kernel(%arg0: i32, %arg1: memref<512x576xbf16, #tpu.memory_space<vmem>>, %arg2: memref<576x128xbf16, #tpu.memory_space<vmem>>, %arg3: memref<1x128xf32, #tpu.memory_space<vmem>>, %arg4: memref<512x128xbf16, #tpu.memory_space<vmem>>) attributes {dimension_semantics = [#tpu.dimension_semantics<parallel>], iteration_bounds = array<i64: 8>, scalar_prefetch = 0 : i64, scratch_operands = 0 : i64, tpu.core_type = #tpu.core_type<tc>, window_params = [{transform_indices = @transform_0, window_bounds = array<i64: 512, 576>}, {pipeline_mode = #tpu.pipeline_mode<synchronous>, transform_indices = @transform_1, window_bounds = array<i64: 576, 128>}, {pipeline_mode = #tpu.pipeline_mode<synchronous>, transform_indices = @transform_2, window_bounds = array<i64: 1, 128>}, {transform_indices = @transform_3, window_bounds = array<i64: 512, 128>}]} {
    %c0 = arith.constant 0 : index
    %c0_0 = arith.constant 0 : index
    %0 = vector.load %arg1[%c0, %c0_0] : memref<512x576xbf16, #tpu.memory_space<vmem>>, vector<512x576xbf16>
    %c0_1 = arith.constant 0 : index
    %c0_2 = arith.constant 0 : index
    %1 = vector.load %arg2[%c0_1, %c0_2] : memref<576x128xbf16, #tpu.memory_space<vmem>>, vector<576x128xbf16>
    %cst = arith.constant dense<0.000000e+00> : vector<512x128xf32>
    %2 = tpu.matmul %0, %1, %cst {dimension_numbers = #tpu.dot_dimension_numbers<[1], [0], [0], [1], [0, 0, 1, 1], [], []>} : vector<512x576xbf16>, vector<576x128xbf16>, vector<512x128xf32> -> vector<512x128xf32>
    %c0_3 = arith.constant 0 : index
    %c0_4 = arith.constant 0 : index
    %3 = vector.load %arg3[%c0_3, %c0_4] : memref<1x128xf32, #tpu.memory_space<vmem>>, vector<1x128xf32>
    %4 = vector.broadcast %3 : vector<1x128xf32> to vector<512x128xf32>
    %5 = arith.addf %2, %4 : vector<512x128xf32>
    %cst_5 = arith.constant 0.000000e+00 : f32
    %6 = vector.broadcast %cst_5 : f32 to vector<512x128xf32>
    %7 = arith.maximumf %5, %6 : vector<512x128xf32>
    %8 = arith.truncf %7 : vector<512x128xf32> to vector<512x128xbf16>
    %c0_6 = arith.constant 0 : index
    %c0_7 = arith.constant 0 : index
    %9 = vector.load %arg4[%c0_6, %c0_7] : memref<512x128xbf16, #tpu.memory_space<vmem>>, vector<512x128xbf16>
    tpu.vector_store %arg4[%c0_6, %c0_7], %8 {strides = array<i32>} : memref<512x128xbf16, #tpu.memory_space<vmem>>, vector<512x128xbf16>,
    return
  }
  func.func @transform_0(%arg0: i32) -> (i32, i32) {
    %c0_i32 = arith.constant 0 : i32
    %c0_i32_0 = arith.constant 0 : i32
    return %arg0, %c0_i32 : i32, i32
  }
  func.func @transform_1(%arg0: i32) -> (i32, i32) {
    %c0_i32 = arith.constant 0 : i32
    %c0_i32_0 = arith.constant 0 : i32
    %c0_i32_1 = arith.constant 0 : i32
    return %c0_i32, %c0_i32_0 : i32, i32
  }
  func.func @transform_2(%arg0: i32) -> (i32, i32) {
    %c0_i32 = arith.constant 0 : i32
    %c0_i32_0 = arith.constant 0 : i32
    %c0_i32_1 = arith.constant 0 : i32
    return %c0_i32, %c0_i32_0 : i32, i32
  }
  func.func @transform_3(%arg0: i32) -> (i32, i32) {
    %c0_i32 = arith.constant 0 : i32
    %c0_i32_0 = arith.constant 0 : i32
    return %arg0, %c0_i32 : i32, i32
  }
}

module attributes {stable_mosaic.version = 11 : i64} {
  func.func @_fused_matmul_kernel(%arg0: i32, %arg1: memref<512x1152xbf16, #tpu.memory_space<vmem>>, %arg2: memref<1152x128xbf16, #tpu.memory_space<vmem>>, %arg3: memref<1x128xf32, #tpu.memory_space<vmem>>, %arg4: memref<512x128xbf16, #tpu.memory_space<vmem>>) attributes {dimension_semantics = [#tpu.dimension_semantics<parallel>], iteration_bounds = array<i64: 2>, scalar_prefetch = 0 : i64, scratch_operands = 0 : i64, tpu.core_type = #tpu.core_type<tc>, window_params = [{transform_indices = @transform_0, window_bounds = array<i64: 512, 1152>}, {pipeline_mode = #tpu.pipeline_mode<synchronous>, transform_indices = @transform_1, window_bounds = array<i64: 1152, 128>}, {pipeline_mode = #tpu.pipeline_mode<synchronous>, transform_indices = @transform_2, window_bounds = array<i64: 1, 128>}, {transform_indices = @transform_3, window_bounds = array<i64: 512, 128>}]} {
    %c0 = arith.constant 0 : index
    %c0_0 = arith.constant 0 : index
    %0 = vector.load %arg1[%c0, %c0_0] : memref<512x1152xbf16, #tpu.memory_space<vmem>>, vector<512x1152xbf16>
    %c0_1 = arith.constant 0 : index
    %c0_2 = arith.constant 0 : index
    %1 = vector.load %arg2[%c0_1, %c0_2] : memref<1152x128xbf16, #tpu.memory_space<vmem>>, vector<1152x128xbf16>
    %cst = arith.constant dense<0.000000e+00> : vector<512x128xf32>
    %2 = tpu.matmul %0, %1, %cst {dimension_numbers = #tpu.dot_dimension_numbers<[1], [0], [0], [1], [0, 0, 1, 1], [], []>} : vector<512x1152xbf16>, vector<1152x128xbf16>, vector<512x128xf32> -> vector<512x128xf32>
    %c0_3 = arith.constant 0 : index
    %c0_4 = arith.constant 0 : index
    %3 = vector.load %arg3[%c0_3, %c0_4] : memref<1x128xf32, #tpu.memory_space<vmem>>, vector<1x128xf32>
    %4 = vector.broadcast %3 : vector<1x128xf32> to vector<512x128xf32>
    %5 = arith.addf %2, %4 : vector<512x128xf32>
    %cst_5 = arith.constant 0.000000e+00 : f32
    %6 = vector.broadcast %cst_5 : f32 to vector<512x128xf32>
    %7 = arith.maximumf %5, %6 : vector<512x128xf32>
    %8 = arith.truncf %7 : vector<512x128xf32> to vector<512x128xbf16>
    %c0_6 = arith.constant 0 : index
    %c0_7 = arith.constant 0 : index
    %9 = vector.load %arg4[%c0_6, %c0_7] : memref<512x128xbf16, #tpu.memory_space<vmem>>, vector<512x128xbf16>
    tpu.vector_store %arg4[%c0_6, %c0_7], %8 {strides = array<i32>} : memref<512x128xbf16, #tpu.memory_space<vmem>>, vector<512x128xbf16>,
    return
  }
  func.func @transform_0(%arg0: i32) -> (i32, i32) {
    %c0_i32 = arith.constant 0 : i32
    %c0_i32_0 = arith.constant 0 : i32
    return %arg0, %c0_i32 : i32, i32
  }
  func.func @transform_1(%arg0: i32) -> (i32, i32) {
    %c0_i32 = arith.constant 0 : i32
    %c0_i32_0 = arith.constant 0 : i32
    %c0_i32_1 = arith.constant 0 : i32
    return %c0_i32, %c0_i32_0 : i32, i32
  }
  func.func @transform_2(%arg0: i32) -> (i32, i32) {
    %c0_i32 = arith.constant 0 : i32
    %c0_i32_0 = arith.constant 0 : i32
    %c0_i32_1 = arith.constant 0 : i32
    return %c0_i32, %c0_i32_0 : i32, i32
  }
  func.func @transform_3(%arg0: i32) -> (i32, i32) {
    %c0_i32 = arith.constant 0 : i32
    %c0_i32_0 = arith.constant 0 : i32
    return %arg0, %c0_i32 : i32, i32
  }
}

module attributes {stable_mosaic.version = 11 : i64} {
  func.func @_fused_matmul_kernel(%arg0: i32, %arg1: memref<128x1152xbf16, #tpu.memory_space<vmem>>, %arg2: memref<1152x128xbf16, #tpu.memory_space<vmem>>, %arg3: memref<1x128xf32, #tpu.memory_space<vmem>>, %arg4: memref<128x128xbf16, #tpu.memory_space<vmem>>) attributes {dimension_semantics = [#tpu.dimension_semantics<parallel>], iteration_bounds = array<i64: 2>, scalar_prefetch = 0 : i64, scratch_operands = 0 : i64, tpu.core_type = #tpu.core_type<tc>, window_params = [{transform_indices = @transform_0, window_bounds = array<i64: 128, 1152>}, {pipeline_mode = #tpu.pipeline_mode<synchronous>, transform_indices = @transform_1, window_bounds = array<i64: 1152, 128>}, {pipeline_mode = #tpu.pipeline_mode<synchronous>, transform_indices = @transform_2, window_bounds = array<i64: 1, 128>}, {transform_indices = @transform_3, window_bounds = array<i64: 128, 128>}]} {
    %c0 = arith.constant 0 : index
    %c0_0 = arith.constant 0 : index
    %0 = vector.load %arg1[%c0, %c0_0] : memref<128x1152xbf16, #tpu.memory_space<vmem>>, vector<128x1152xbf16>
    %c0_1 = arith.constant 0 : index
    %c0_2 = arith.constant 0 : index
    %1 = vector.load %arg2[%c0_1, %c0_2] : memref<1152x128xbf16, #tpu.memory_space<vmem>>, vector<1152x128xbf16>
    %cst = arith.constant dense<0.000000e+00> : vector<128x128xf32>
    %2 = tpu.matmul %0, %1, %cst {dimension_numbers = #tpu.dot_dimension_numbers<[1], [0], [0], [1], [0, 0, 1, 1], [], []>} : vector<128x1152xbf16>, vector<1152x128xbf16>, vector<128x128xf32> -> vector<128x128xf32>
    %c0_3 = arith.constant 0 : index
    %c0_4 = arith.constant 0 : index
    %3 = vector.load %arg3[%c0_3, %c0_4] : memref<1x128xf32, #tpu.memory_space<vmem>>, vector<1x128xf32>
    %4 = vector.broadcast %3 : vector<1x128xf32> to vector<128x128xf32>
    %5 = arith.addf %2, %4 : vector<128x128xf32>
    %cst_5 = arith.constant 0.000000e+00 : f32
    %6 = vector.broadcast %cst_5 : f32 to vector<128x128xf32>
    %7 = arith.maximumf %5, %6 : vector<128x128xf32>
    %8 = arith.truncf %7 : vector<128x128xf32> to vector<128x128xbf16>
    %c0_6 = arith.constant 0 : index
    %c0_7 = arith.constant 0 : index
    %9 = vector.load %arg4[%c0_6, %c0_7] : memref<128x128xbf16, #tpu.memory_space<vmem>>, vector<128x128xbf16>
    tpu.vector_store %arg4[%c0_6, %c0_7], %8 {strides = array<i32>} : memref<128x128xbf16, #tpu.memory_space<vmem>>, vector<128x128xbf16>,
    return
  }
  func.func @transform_0(%arg0: i32) -> (i32, i32) {
    %c0_i32 = arith.constant 0 : i32
    %c0_i32_0 = arith.constant 0 : i32
    return %arg0, %c0_i32 : i32, i32
  }
  func.func @transform_1(%arg0: i32) -> (i32, i32) {
    %c0_i32 = arith.constant 0 : i32
    %c0_i32_0 = arith.constant 0 : i32
    %c0_i32_1 = arith.constant 0 : i32
    return %c0_i32, %c0_i32_0 : i32, i32
  }
  func.func @transform_2(%arg0: i32) -> (i32, i32) {
    %c0_i32 = arith.constant 0 : i32
    %c0_i32_0 = arith.constant 0 : i32
    %c0_i32_1 = arith.constant 0 : i32
    return %c0_i32, %c0_i32_0 : i32, i32
  }
  func.func @transform_3(%arg0: i32) -> (i32, i32) {
    %c0_i32 = arith.constant 0 : i32
    %c0_i32_0 = arith.constant 0 : i32
    return %arg0, %c0_i32 : i32, i32
  }
}

module attributes {stable_mosaic.version = 11 : i64} {
  func.func @_fused_matmul_kernel(%arg0: i32, %arg1: memref<32x1152xbf16, #tpu.memory_space<vmem>>, %arg2: memref<1152x128xbf16, #tpu.memory_space<vmem>>, %arg3: memref<1x128xf32, #tpu.memory_space<vmem>>, %arg4: memref<32x128xbf16, #tpu.memory_space<vmem>>) attributes {dimension_semantics = [#tpu.dimension_semantics<parallel>], iteration_bounds = array<i64: 2>, scalar_prefetch = 0 : i64, scratch_operands = 0 : i64, tpu.core_type = #tpu.core_type<tc>, window_params = [{transform_indices = @transform_0, window_bounds = array<i64: 32, 1152>}, {pipeline_mode = #tpu.pipeline_mode<synchronous>, transform_indices = @transform_1, window_bounds = array<i64: 1152, 128>}, {pipeline_mode = #tpu.pipeline_mode<synchronous>, transform_indices = @transform_2, window_bounds = array<i64: 1, 128>}, {transform_indices = @transform_3, window_bounds = array<i64: 32, 128>}]} {
    %c0 = arith.constant 0 : index
    %c0_0 = arith.constant 0 : index
    %0 = vector.load %arg1[%c0, %c0_0] : memref<32x1152xbf16, #tpu.memory_space<vmem>>, vector<32x1152xbf16>
    %c0_1 = arith.constant 0 : index
    %c0_2 = arith.constant 0 : index
    %1 = vector.load %arg2[%c0_1, %c0_2] : memref<1152x128xbf16, #tpu.memory_space<vmem>>, vector<1152x128xbf16>
    %cst = arith.constant dense<0.000000e+00> : vector<32x128xf32>
    %2 = tpu.matmul %0, %1, %cst {dimension_numbers = #tpu.dot_dimension_numbers<[1], [0], [0], [1], [0, 0, 1, 1], [], []>} : vector<32x1152xbf16>, vector<1152x128xbf16>, vector<32x128xf32> -> vector<32x128xf32>
    %c0_3 = arith.constant 0 : index
    %c0_4 = arith.constant 0 : index
    %3 = vector.load %arg3[%c0_3, %c0_4] : memref<1x128xf32, #tpu.memory_space<vmem>>, vector<1x128xf32>
    %4 = vector.broadcast %3 : vector<1x128xf32> to vector<32x128xf32>
    %5 = arith.addf %2, %4 : vector<32x128xf32>
    %cst_5 = arith.constant 0.000000e+00 : f32
    %6 = vector.broadcast %cst_5 : f32 to vector<32x128xf32>
    %7 = arith.maximumf %5, %6 : vector<32x128xf32>
    %8 = arith.truncf %7 : vector<32x128xf32> to vector<32x128xbf16>
    %c0_6 = arith.constant 0 : index
    %c0_7 = arith.constant 0 : index
    %9 = vector.load %arg4[%c0_6, %c0_7] : memref<32x128xbf16, #tpu.memory_space<vmem>>, vector<32x128xbf16>
    tpu.vector_store %arg4[%c0_6, %c0_7], %8 {strides = array<i32>} : memref<32x128xbf16, #tpu.memory_space<vmem>>, vector<32x128xbf16>,
    return
  }
  func.func @transform_0(%arg0: i32) -> (i32, i32) {
    %c0_i32 = arith.constant 0 : i32
    %c0_i32_0 = arith.constant 0 : i32
    return %arg0, %c0_i32 : i32, i32
  }
  func.func @transform_1(%arg0: i32) -> (i32, i32) {
    %c0_i32 = arith.constant 0 : i32
    %c0_i32_0 = arith.constant 0 : i32
    %c0_i32_1 = arith.constant 0 : i32
    return %c0_i32, %c0_i32_0 : i32, i32
  }
  func.func @transform_2(%arg0: i32) -> (i32, i32) {
    %c0_i32 = arith.constant 0 : i32
    %c0_i32_0 = arith.constant 0 : i32
    %c0_i32_1 = arith.constant 0 : i32
    return %c0_i32, %c0_i32_0 : i32, i32
  }
  func.func @transform_3(%arg0: i32) -> (i32, i32) {
    %c0_i32 = arith.constant 0 : i32
    %c0_i32_0 = arith.constant 0 : i32
    return %arg0, %c0_i32 : i32, i32
  }
}

module attributes {stable_mosaic.version = 11 : i64} {
  func.func @_fused_matmul_kernel(%arg0: i32, %arg1: memref<64x144xbf16, #tpu.memory_space<vmem>>, %arg2: memref<144x16xbf16, #tpu.memory_space<vmem>>, %arg3: memref<1x16xf32, #tpu.memory_space<vmem>>, %arg4: memref<64x16xbf16, #tpu.memory_space<vmem>>) attributes {dimension_semantics = [#tpu.dimension_semantics<parallel>], iteration_bounds = array<i64: 2>, scalar_prefetch = 0 : i64, scratch_operands = 0 : i64, tpu.core_type = #tpu.core_type<tc>, window_params = [{transform_indices = @transform_0, window_bounds = array<i64: 64, 144>}, {pipeline_mode = #tpu.pipeline_mode<synchronous>, transform_indices = @transform_1, window_bounds = array<i64: 144, 16>}, {pipeline_mode = #tpu.pipeline_mode<synchronous>, transform_indices = @transform_2, window_bounds = array<i64: 1, 16>}, {transform_indices = @transform_3, window_bounds = array<i64: 64, 16>}]} {
    %c0 = arith.constant 0 : index
    %c0_0 = arith.constant 0 : index
    %0 = vector.load %arg1[%c0, %c0_0] : memref<64x144xbf16, #tpu.memory_space<vmem>>, vector<64x144xbf16>
    %c0_1 = arith.constant 0 : index
    %c0_2 = arith.constant 0 : index
    %1 = vector.load %arg2[%c0_1, %c0_2] : memref<144x16xbf16, #tpu.memory_space<vmem>>, vector<144x16xbf16>
    %cst = arith.constant dense<0.000000e+00> : vector<64x16xf32>
    %2 = tpu.matmul %0, %1, %cst {dimension_numbers = #tpu.dot_dimension_numbers<[1], [0], [0], [1], [0, 0, 1, 1], [], []>} : vector<64x144xbf16>, vector<144x16xbf16>, vector<64x16xf32> -> vector<64x16xf32>
    %c0_3 = arith.constant 0 : index
    %c0_4 = arith.constant 0 : index
    %3 = vector.load %arg3[%c0_3, %c0_4] : memref<1x16xf32, #tpu.memory_space<vmem>>, vector<1x16xf32>
    %4 = vector.broadcast %3 : vector<1x16xf32> to vector<64x16xf32>
    %5 = arith.addf %2, %4 : vector<64x16xf32>
    %cst_5 = arith.constant 0.000000e+00 : f32
    %6 = vector.broadcast %cst_5 : f32 to vector<64x16xf32>
    %7 = arith.maximumf %5, %6 : vector<64x16xf32>
    %8 = arith.truncf %7 : vector<64x16xf32> to vector<64x16xbf16>
    %c0_6 = arith.constant 0 : index
    %c0_7 = arith.constant 0 : index
    %9 = vector.load %arg4[%c0_6, %c0_7] : memref<64x16xbf16, #tpu.memory_space<vmem>>, vector<64x16xbf16>
    tpu.vector_store %arg4[%c0_6, %c0_7], %8 {strides = array<i32>} : memref<64x16xbf16, #tpu.memory_space<vmem>>, vector<64x16xbf16>,
    return
  }
  func.func @transform_0(%arg0: i32) -> (i32, i32) {
    %c0_i32 = arith.constant 0 : i32
    %c0_i32_0 = arith.constant 0 : i32
    return %arg0, %c0_i32 : i32, i32
  }
  func.func @transform_1(%arg0: i32) -> (i32, i32) {
    %c0_i32 = arith.constant 0 : i32
    %c0_i32_0 = arith.constant 0 : i32
    %c0_i32_1 = arith.constant 0 : i32
    return %c0_i32, %c0_i32_0 : i32, i32
  }
  func.func @transform_2(%arg0: i32) -> (i32, i32) {
    %c0_i32 = arith.constant 0 : i32
    %c0_i32_0 = arith.constant 0 : i32
    %c0_i32_1 = arith.constant 0 : i32
    return %c0_i32, %c0_i32_0 : i32, i32
  }
  func.func @transform_3(%arg0: i32) -> (i32, i32) {
    %c0_i32 = arith.constant 0 : i32
    %c0_i32_0 = arith.constant 0 : i32
    return %arg0, %c0_i32 : i32, i32
  }
}

module attributes {stable_mosaic.version = 11 : i64} {
  func.func @_fused_matmul_kernel(%arg0: i32, %arg1: memref<16x144xbf16, #tpu.memory_space<vmem>>, %arg2: memref<144x16xbf16, #tpu.memory_space<vmem>>, %arg3: memref<1x16xf32, #tpu.memory_space<vmem>>, %arg4: memref<16x16xbf16, #tpu.memory_space<vmem>>) attributes {dimension_semantics = [#tpu.dimension_semantics<parallel>], iteration_bounds = array<i64: 2>, scalar_prefetch = 0 : i64, scratch_operands = 0 : i64, tpu.core_type = #tpu.core_type<tc>, window_params = [{transform_indices = @transform_0, window_bounds = array<i64: 16, 144>}, {pipeline_mode = #tpu.pipeline_mode<synchronous>, transform_indices = @transform_1, window_bounds = array<i64: 144, 16>}, {pipeline_mode = #tpu.pipeline_mode<synchronous>, transform_indices = @transform_2, window_bounds = array<i64: 1, 16>}, {transform_indices = @transform_3, window_bounds = array<i64: 16, 16>}]} {
    %c0 = arith.constant 0 : index
    %c0_0 = arith.constant 0 : index
    %0 = vector.load %arg1[%c0, %c0_0] : memref<16x144xbf16, #tpu.memory_space<vmem>>, vector<16x144xbf16>
    %c0_1 = arith.constant 0 : index
    %c0_2 = arith.constant 0 : index
    %1 = vector.load %arg2[%c0_1, %c0_2] : memref<144x16xbf16, #tpu.memory_space<vmem>>, vector<144x16xbf16>
    %cst = arith.constant dense<0.000000e+00> : vector<16x16xf32>
    %2 = tpu.matmul %0, %1, %cst {dimension_numbers = #tpu.dot_dimension_numbers<[1], [0], [0], [1], [0, 0, 1, 1], [], []>} : vector<16x144xbf16>, vector<144x16xbf16>, vector<16x16xf32> -> vector<16x16xf32>
    %c0_3 = arith.constant 0 : index
    %c0_4 = arith.constant 0 : index
    %3 = vector.load %arg3[%c0_3, %c0_4] : memref<1x16xf32, #tpu.memory_space<vmem>>, vector<1x16xf32>
    %4 = vector.broadcast %3 : vector<1x16xf32> to vector<16x16xf32>
    %5 = arith.addf %2, %4 : vector<16x16xf32>
    %cst_5 = arith.constant 0.000000e+00 : f32
    %6 = vector.broadcast %cst_5 : f32 to vector<16x16xf32>
    %7 = arith.maximumf %5, %6 : vector<16x16xf32>
    %8 = arith.truncf %7 : vector<16x16xf32> to vector<16x16xbf16>
    %c0_6 = arith.constant 0 : index
    %c0_7 = arith.constant 0 : index
    %9 = vector.load %arg4[%c0_6, %c0_7] : memref<16x16xbf16, #tpu.memory_space<vmem>>, vector<16x16xbf16>
    tpu.vector_store %arg4[%c0_6, %c0_7], %8 {strides = array<i32>} : memref<16x16xbf16, #tpu.memory_space<vmem>>, vector<16x16xbf16>,
    return
  }
  func.func @transform_0(%arg0: i32) -> (i32, i32) {
    %c0_i32 = arith.constant 0 : i32
    %c0_i32_0 = arith.constant 0 : i32
    return %arg0, %c0_i32 : i32, i32
  }
  func.func @transform_1(%arg0: i32) -> (i32, i32) {
    %c0_i32 = arith.constant 0 : i32
    %c0_i32_0 = arith.constant 0 : i32
    %c0_i32_1 = arith.constant 0 : i32
    return %c0_i32, %c0_i32_0 : i32, i32
  }
  func.func @transform_2(%arg0: i32) -> (i32, i32) {
    %c0_i32 = arith.constant 0 : i32
    %c0_i32_0 = arith.constant 0 : i32
    %c0_i32_1 = arith.constant 0 : i32
    return %c0_i32, %c0_i32_0 : i32, i32
  }
  func.func @transform_3(%arg0: i32) -> (i32, i32) {
    %c0_i32 = arith.constant 0 : i32
    %c0_i32_0 = arith.constant 0 : i32
    return %arg0, %c0_i32 : i32, i32
  }
}

module attributes {stable_mosaic.version = 11 : i64} {
  func.func @_fused_matmul_kernel(%arg0: i32, %arg1: memref<8x144xbf16, #tpu.memory_space<vmem>>, %arg2: memref<144x16xbf16, #tpu.memory_space<vmem>>, %arg3: memref<1x16xf32, #tpu.memory_space<vmem>>, %arg4: memref<8x16xbf16, #tpu.memory_space<vmem>>) attributes {dimension_semantics = [#tpu.dimension_semantics<parallel>], iteration_bounds = array<i64: 1>, scalar_prefetch = 0 : i64, scratch_operands = 0 : i64, tpu.core_type = #tpu.core_type<tc>, window_params = [{transform_indices = @transform_0, window_bounds = array<i64: 8, 144>}, {pipeline_mode = #tpu.pipeline_mode<synchronous>, transform_indices = @transform_1, window_bounds = array<i64: 144, 16>}, {pipeline_mode = #tpu.pipeline_mode<synchronous>, transform_indices = @transform_2, window_bounds = array<i64: 1, 16>}, {transform_indices = @transform_3, window_bounds = array<i64: 8, 16>}]} {
    %c0 = arith.constant 0 : index
    %c0_0 = arith.constant 0 : index
    %0 = vector.load %arg1[%c0, %c0_0] : memref<8x144xbf16, #tpu.memory_space<vmem>>, vector<8x144xbf16>
    %c0_1 = arith.constant 0 : index
    %c0_2 = arith.constant 0 : index
    %1 = vector.load %arg2[%c0_1, %c0_2] : memref<144x16xbf16, #tpu.memory_space<vmem>>, vector<144x16xbf16>
    %cst = arith.constant dense<0.000000e+00> : vector<8x16xf32>
    %2 = tpu.matmul %0, %1, %cst {dimension_numbers = #tpu.dot_dimension_numbers<[1], [0], [0], [1], [0, 0, 1, 1], [], []>} : vector<8x144xbf16>, vector<144x16xbf16>, vector<8x16xf32> -> vector<8x16xf32>
    %c0_3 = arith.constant 0 : index
    %c0_4 = arith.constant 0 : index
    %3 = vector.load %arg3[%c0_3, %c0_4] : memref<1x16xf32, #tpu.memory_space<vmem>>, vector<1x16xf32>
    %4 = vector.broadcast %3 : vector<1x16xf32> to vector<8x16xf32>
    %5 = arith.addf %2, %4 : vector<8x16xf32>
    %cst_5 = arith.constant 0.000000e+00 : f32
    %6 = vector.broadcast %cst_5 : f32 to vector<8x16xf32>
    %7 = arith.maximumf %5, %6 : vector<8x16xf32>
    %8 = arith.truncf %7 : vector<8x16xf32> to vector<8x16xbf16>
    %c0_6 = arith.constant 0 : index
    %c0_7 = arith.constant 0 : index
    %9 = vector.load %arg4[%c0_6, %c0_7] : memref<8x16xbf16, #tpu.memory_space<vmem>>, vector<8x16xbf16>
    tpu.vector_store %arg4[%c0_6, %c0_7], %8 {strides = array<i32>} : memref<8x16xbf16, #tpu.memory_space<vmem>>, vector<8x16xbf16>,
    return
  }
  func.func @transform_0(%arg0: i32) -> (i32, i32) {
    %c0_i32 = arith.constant 0 : i32
    %c0_i32_0 = arith.constant 0 : i32
    return %arg0, %c0_i32 : i32, i32
  }
  func.func @transform_1(%arg0: i32) -> (i32, i32) {
    %c0_i32 = arith.constant 0 : i32
    %c0_i32_0 = arith.constant 0 : i32
    %c0_i32_1 = arith.constant 0 : i32
    return %c0_i32, %c0_i32_0 : i32, i32
  }
  func.func @transform_2(%arg0: i32) -> (i32, i32) {
    %c0_i32 = arith.constant 0 : i32
    %c0_i32_0 = arith.constant 0 : i32
    %c0_i32_1 = arith.constant 0 : i32
    return %c0_i32, %c0_i32_0 : i32, i32
  }
  func.func @transform_3(%arg0: i32) -> (i32, i32) {
    %c0_i32 = arith.constant 0 : i32
    %c0_i32_0 = arith.constant 0 : i32
    return %arg0, %c0_i32 : i32, i32
  }
}

module attributes {stable_mosaic.version = 11 : i64} {
  func.func @_head_kernel(%arg0: i32, %arg1: memref<2x144xbf16, #tpu.memory_space<vmem>>, %arg2: memref<2x3xf32, #tpu.memory_space<vmem>>, %arg3: memref<144x16xbf16, #tpu.memory_space<vmem>>, %arg4: memref<1x16xf32, #tpu.memory_space<vmem>>, %arg5: memref<16x18xbf16, #tpu.memory_space<vmem>>, %arg6: memref<3x18xf32, #tpu.memory_space<vmem>>, %arg7: memref<1x18xf32, #tpu.memory_space<vmem>>, %arg8: memref<2x18xf32, #tpu.memory_space<vmem>>) attributes {dimension_semantics = [#tpu.dimension_semantics<arbitrary>], iteration_bounds = array<i64: 1>, scalar_prefetch = 0 : i64, scratch_operands = 0 : i64, tpu.core_type = #tpu.core_type<tc>, window_params = [{pipeline_mode = #tpu.pipeline_mode<synchronous>, transform_indices = @transform_0, window_bounds = array<i64: 2, 144>}, {pipeline_mode = #tpu.pipeline_mode<synchronous>, transform_indices = @transform_1, window_bounds = array<i64: 2, 3>}, {pipeline_mode = #tpu.pipeline_mode<synchronous>, transform_indices = @transform_2, window_bounds = array<i64: 144, 16>}, {pipeline_mode = #tpu.pipeline_mode<synchronous>, transform_indices = @transform_3, window_bounds = array<i64: 1, 16>}, {pipeline_mode = #tpu.pipeline_mode<synchronous>, transform_indices = @transform_4, window_bounds = array<i64: 16, 18>}, {pipeline_mode = #tpu.pipeline_mode<synchronous>, transform_indices = @transform_5, window_bounds = array<i64: 3, 18>}, {pipeline_mode = #tpu.pipeline_mode<synchronous>, transform_indices = @transform_6, window_bounds = array<i64: 1, 18>}, {pipeline_mode = #tpu.pipeline_mode<synchronous>, transform_indices = @transform_7, window_bounds = array<i64: 2, 18>}]} {
    %c0 = arith.constant 0 : index
    %c0_0 = arith.constant 0 : index
    %0 = vector.load %arg1[%c0, %c0_0] : memref<2x144xbf16, #tpu.memory_space<vmem>>, vector<2x144xbf16>
    %c0_1 = arith.constant 0 : index
    %c0_2 = arith.constant 0 : index
    %1 = vector.load %arg3[%c0_1, %c0_2] : memref<144x16xbf16, #tpu.memory_space<vmem>>, vector<144x16xbf16>
    %cst = arith.constant dense<0.000000e+00> : vector<2x16xf32>
    %2 = tpu.matmul %0, %1, %cst {dimension_numbers = #tpu.dot_dimension_numbers<[1], [0], [0], [1], [0, 0, 1, 1], [], []>} : vector<2x144xbf16>, vector<144x16xbf16>, vector<2x16xf32> -> vector<2x16xf32>
    %c0_3 = arith.constant 0 : index
    %c0_4 = arith.constant 0 : index
    %3 = vector.load %arg4[%c0_3, %c0_4] : memref<1x16xf32, #tpu.memory_space<vmem>>, vector<1x16xf32>
    %4 = vector.broadcast %3 : vector<1x16xf32> to vector<2x16xf32>
    %5 = arith.addf %2, %4 : vector<2x16xf32>
    %cst_5 = arith.constant 0.000000e+00 : f32
    %6 = vector.broadcast %cst_5 : f32 to vector<2x16xf32>
    %7 = arith.maximumf %5, %6 : vector<2x16xf32>
    %8 = arith.truncf %7 : vector<2x16xf32> to vector<2x16xbf16>
    %c0_6 = arith.constant 0 : index
    %c0_7 = arith.constant 0 : index
    %9 = vector.load %arg5[%c0_6, %c0_7] : memref<16x18xbf16, #tpu.memory_space<vmem>>, vector<16x18xbf16>
    %cst_8 = arith.constant dense<0.000000e+00> : vector<2x18xf32>
    %10 = tpu.matmul %8, %9, %cst_8 {dimension_numbers = #tpu.dot_dimension_numbers<[1], [0], [0], [1], [0, 0, 1, 1], [], []>} : vector<2x16xbf16>, vector<16x18xbf16>, vector<2x18xf32> -> vector<2x18xf32>
    %c0_9 = arith.constant 0 : index
    %c0_10 = arith.constant 0 : index
    %11 = vector.load %arg2[%c0_9, %c0_10] : memref<2x3xf32, #tpu.memory_space<vmem>>, vector<2x3xf32>
    %c0_11 = arith.constant 0 : index
    %c0_12 = arith.constant 0 : index
    %12 = vector.load %arg6[%c0_11, %c0_12] : memref<3x18xf32, #tpu.memory_space<vmem>>, vector<3x18xf32>
    %13 = vector.extract_strided_slice %11 {offsets = [0, 0], sizes = [2, 1], strides = [1, 1]} : vector<2x3xf32> to vector<2x1xf32>
    %14 = vector.extract_strided_slice %12 {offsets = [0, 0], sizes = [1, 18], strides = [1, 1]} : vector<3x18xf32> to vector<1x18xf32>
    %15 = vector.broadcast %13 : vector<2x1xf32> to vector<2x18xf32>
    %16 = vector.broadcast %14 : vector<1x18xf32> to vector<2x18xf32>
    %17 = arith.mulf %15, %16 : vector<2x18xf32>
    %18 = arith.addf %10, %17 : vector<2x18xf32>
    %19 = vector.extract_strided_slice %11 {offsets = [0, 1], sizes = [2, 1], strides = [1, 1]} : vector<2x3xf32> to vector<2x1xf32>
    %20 = vector.extract_strided_slice %12 {offsets = [1, 0], sizes = [1, 18], strides = [1, 1]} : vector<3x18xf32> to vector<1x18xf32>
    %21 = vector.broadcast %19 : vector<2x1xf32> to vector<2x18xf32>
    %22 = vector.broadcast %20 : vector<1x18xf32> to vector<2x18xf32>
    %23 = arith.mulf %21, %22 : vector<2x18xf32>
    %24 = arith.addf %18, %23 : vector<2x18xf32>
    %25 = vector.extract_strided_slice %11 {offsets = [0, 2], sizes = [2, 1], strides = [1, 1]} : vector<2x3xf32> to vector<2x1xf32>
    %26 = vector.extract_strided_slice %12 {offsets = [2, 0], sizes = [1, 18], strides = [1, 1]} : vector<3x18xf32> to vector<1x18xf32>
    %27 = vector.broadcast %25 : vector<2x1xf32> to vector<2x18xf32>
    %28 = vector.broadcast %26 : vector<1x18xf32> to vector<2x18xf32>
    %29 = arith.mulf %27, %28 : vector<2x18xf32>
    %30 = arith.addf %24, %29 : vector<2x18xf32>
    %c0_13 = arith.constant 0 : index
    %c0_14 = arith.constant 0 : index
    %31 = vector.load %arg7[%c0_13, %c0_14] : memref<1x18xf32, #tpu.memory_space<vmem>>, vector<1x18xf32>
    %32 = vector.broadcast %31 : vector<1x18xf32> to vector<2x18xf32>
    %33 = arith.addf %30, %32 : vector<2x18xf32>
    %c0_15 = arith.constant 0 : index
    %c0_16 = arith.constant 0 : index
    %34 = vector.load %arg8[%c0_15, %c0_16] : memref<2x18xf32, #tpu.memory_space<vmem>>, vector<2x18xf32>
    tpu.vector_store %arg8[%c0_15, %c0_16], %33 {strides = array<i32>} : memref<2x18xf32, #tpu.memory_space<vmem>>, vector<2x18xf32>,
    return
  }
  func.func @transform_0(%arg0: i32) -> (i32, i32) {
    %c0_i32 = arith.constant 0 : i32
    %c0_i32_0 = arith.constant 0 : i32
    %c0_i32_1 = arith.constant 0 : i32
    return %c0_i32, %c0_i32_0 : i32, i32
  }
  func.func @transform_1(%arg0: i32) -> (i32, i32) {
    %c0_i32 = arith.constant 0 : i32
    %c0_i32_0 = arith.constant 0 : i32
    %c0_i32_1 = arith.constant 0 : i32
    return %c0_i32, %c0_i32_0 : i32, i32
  }
  func.func @transform_2(%arg0: i32) -> (i32, i32) {
    %c0_i32 = arith.constant 0 : i32
    %c0_i32_0 = arith.constant 0 : i32
    %c0_i32_1 = arith.constant 0 : i32
    return %c0_i32, %c0_i32_0 : i32, i32
  }
  func.func @transform_3(%arg0: i32) -> (i32, i32) {
    %c0_i32 = arith.constant 0 : i32
    %c0_i32_0 = arith.constant 0 : i32
    %c0_i32_1 = arith.constant 0 : i32
    return %c0_i32, %c0_i32_0 : i32, i32
  }
  func.func @transform_4(%arg0: i32) -> (i32, i32) {
    %c0_i32 = arith.constant 0 : i32
    %c0_i32_0 = arith.constant 0 : i32
    %c0_i32_1 = arith.constant 0 : i32
    return %c0_i32, %c0_i32_0 : i32, i32
  }
  func.func @transform_5(%arg0: i32) -> (i32, i32) {
    %c0_i32 = arith.constant 0 : i32
    %c0_i32_0 = arith.constant 0 : i32
    %c0_i32_1 = arith.constant 0 : i32
    return %c0_i32, %c0_i32_0 : i32, i32
  }
  func.func @transform_6(%arg0: i32) -> (i32, i32) {
    %c0_i32 = arith.constant 0 : i32
    %c0_i32_0 = arith.constant 0 : i32
    %c0_i32_1 = arith.constant 0 : i32
    return %c0_i32, %c0_i32_0 : i32, i32
  }
  func.func @transform_7(%arg0: i32) -> (i32, i32) {
    %c0_i32 = arith.constant 0 : i32
    %c0_i32_0 = arith.constant 0 : i32
    %c0_i32_1 = arith.constant 0 : i32
    return %c0_i32, %c0_i32_0 : i32, i32
  }
}

</mosaic_0001>

<bundles_post_ra>
// kernel: wavenet_forward.9
= control target key start
LH: loop header
LB: loop body
LE: loop exit
PB: predicated region body
PF: predicated region fallthrough
CT: control target
= control target key end

     0   :  { %8 = vsyncpa [#allocation3], 0  ;;  %s2786_s0 = inlined_call_operand.hbm [shape: bf16[8192,144], index: 0, kind: input, shape index: {}]   ;;  %s2787_s1 = inlined_call_operand.hbm [shape: bf16[144,128], index: 1, kind: input, shape index: {}]   ;;  %s2788_s2 = inlined_call_operand.hbm [shape: f32[1,128], index: 2, kind: input, shape index: {}]   ;;  %s2789_s3 = inlined_call_operand.hbm [shape: bf16[8192,128], index: 3, kind: output, shape index: {}]  }
   0x1   :  { %10 = vsyncpa [#allocation3 + $0x1], 0 }
   0x2   :  { %11 = vsyncpa [#allocation6], 0 }
   0x3   :  { %12 = vsyncpa [#allocation4], 0 }
   0x4   :  { %14 = vsyncpa [#allocation4 + $0x1], 0  ;;  %s2360_s12 = smov 0   ;;  %s2362_s13 = smov 0  }
   0x5   :  { %s2364_s14 = smov 0   ;;  %s2366_s15 = smov 0  }
   0x6 LB: > { %s2381_s16 = sadd.s32 4294967295, %s2327_s15   ;;  %s1527_s17 = sadd.s32 4294967294, %s2327_s15   ;;  %s2327_s15 = sphi %s2366_s15, %s2808_s15   ;;  %s2323_s14 = sphi %s2364_s14, %s2807_s14   ;;  %s2319_s13 = sphi %s2362_s13, %s2806_s13   ;;  %s2315_s12 = sphi %s2360_s12, %s2805_s12  }
   0x7   : > { %p40_p0 = scmp.ne.s32.totalorder %s2319_s13, %s2315_s12  ;;  %p2790_p1 = scmp.eq.s32.totalorder %s2381_s16, 0 }
   0x8   : > { %p112_p3 = scmp.eq.s32.totalorder %s1527_s17, 15  ;;  %p1528_p5 = scmp.ge.s32.totalorder %s2327_s15, 1 }
   0x9   : > { %p2390_p4 = por %p2790_p1, %p40_p0  ;;  %p119_p7 = scmp.lt.s32.totalorder %s2327_s15, 17 }
   0xa   : > { %p2395_p6 = por %p112_p3, %p40_p0  ;;  %s2329_s21 = smov [#allocation5]  }
   0xb   : > { %s2793_s18 = scalar_select %p2390_p4, 1, 0 }
   0xc   : > { %s2794_s19 = scalar_select %p2395_p6, 1, 0 }
   0xd   : > { %p2400_p8 = pnand %p1528_p5, %p119_p7  ;;  %s131_s22 = sshll.u32 %s2329_s21, 4  ;;  %s132_s22 = int_to_ptr.vmem [resolvable:$true] %s131_s22 }
   0xe   : > { %s2330_s24 = smov [#allocation7]   ;;  %s2171_s28 = scalar_lea.hbm %s2787_s1, 1152 }
   0xf   : > { %s2795_s20 = scalar_select %p2400_p8, 1, 0 }
  0x10   : > { %p2004_p9 = pneg %p2400_p8  ;;  %s145_s25 = sshll.u32 %s2330_s24, 4  ;;  %s2412_s25 = int_to_ptr.vmem [resolvable:$true] %s145_s25 }
  0x11   : > { %p2172_p11 = scmp.ne.s32.totalorder %s2787_s1, %s2171_s28  ;;  %p2178_p3 = scmp.lt.u32.totalorder %s2171_s28, %s2787_s1 }
  0x12   : > { %p2408_p10 = pnand %p2004_p9, %p2790_p1 }
  0x14   : > { %p2173_p12 = pneg %p2408_p10 }
  0x16   : > { %p2174_p13 = pnand %p2173_p12, %p2172_p11 }
  0x18   : > { %p2175_p0 = pneg %p2174_p13 }
  0x1a   : > { %p2180_p5 = pnand %p2178_p3, %p2175_p0 }
  0x1c   : > { %2183 = shalt.err (!%p2180_p5)
}
  0x1d   : > { %s2184_s6 = scalar_lea.vmem %s132_s22, 1152  ;;  %p2192_p2 = scmp.lt.s32.totalorder %s132_s22, %s132_s22 }
  0x1e   : > { %p2185_p7 = scmp.ne.s32.totalorder %s132_s22, %s2184_s6  ;;  %p2193_p6 = scmp.lt.s32.totalorder %s2184_s6, %s2184_s6 }
  0x20   : > { %p2187_p9 = pnand %p2185_p7, %p2173_p12  ;;  %p2194_p4 = por %p2193_p6, %p2192_p2 }
  0x22   : > { %p2188_p1 = pneg %p2187_p9 }
  0x24   : > { %p2195_p8 = pnand %p2194_p4, %p2188_p1 }
  0x26   : > { %2198 = shalt.err (!%p2195_p8)
}
  0x27   : > { %s2331_s7 = smov 64   ;;  %s2332_s8 = smov 4  }
  0x28   : > { %2007 = dma.hbm_to_vmem [thread:$0]  (!%p2408_p10), %s2787_s1, 1152, %s132_s22, [#allocation6], %s2331_s7, %s2331_s7, %s2332_s8  }
  0x29   : > { %s2199_s21 = scalar_lea.hbm %s2788_s2, 16 }
  0x2a   : > { %p2200_p11 = scmp.ne.s32.totalorder %s2788_s2, %s2199_s21  ;;  %p2206_p4 = scmp.lt.u32.totalorder %s2199_s21, %s2788_s2 }
  0x2c   : > { %p2202_p1 = pnand %p2200_p11, %p2173_p12 }
  0x2e   : > { %p2203_p2 = pneg %p2202_p1 }
  0x30   : > { %p2208_p6 = pnand %p2206_p4, %p2203_p2 }
  0x32   : > { %2211 = shalt.err (!%p2208_p6)
}
  0x33   : > { %s2212_s22 = scalar_lea.vmem %s2412_s25, 16  ;;  %s2219_s29 = scalar_lea.vmem %s2412_s25, 32 }
  0x34   : > { %p2213_p8 = scmp.ne.s32.totalorder %s2412_s25, %s2212_s22  ;;  %p2220_p3 = scmp.lt.s32.totalorder %s2412_s25, %s2412_s25 }
  0x35   : > { %p2221_p5 = scmp.lt.s32.totalorder %s2219_s29, %s2212_s22 }
  0x36   : > { %p2215_p13 = pnand %p2213_p8, %p2173_p12 }
  0x37   : > { %p2222_p7 = por %p2221_p5, %p2220_p3 }
  0x38   : > { %p2216_p0 = pneg %p2215_p13 }
  0x3a   : > { %p2223_p9 = pnand %p2222_p7, %p2216_p0 }
  0x3c   : > { %2226 = shalt.err (!%p2223_p9)
}
  0x3d   : > { %2010 = dma.hbm_to_vmem [thread:$0]  (!%p2408_p10), %s2788_s2, 16, %s2412_s25, [#allocation6]  }
  0x3e   : > { %s2463_s5 = sadd.s32 1, %s2327_s15   ;;  %s27_s23 = sadd.s32 1, %s2323_s14 }
  0x3f   : > { %s24_s6 = ssub.s32 %s2327_s15, %s2463_s5  ;;  %p34_p12 = scmp.ne.s32.totalorder %s2323_s14, %s2319_s13 }
  0x40   : > { %p25_p11 = scmp.eq.s32.totalorder %s24_s6, 0  ;;  %p35_p1 = scmp.eq.s32.totalorder %s2327_s15, 0 }
  0x41   : > { %p2797_p2 = scmp.eq.s32.totalorder %s2381_s16, 15  ;;  %p2021_p6 = scmp.lt.s32.totalorder %s2327_s15, 16 }
  0x42   : > { %s2479_s8 = scalar_select %p25_p11, %s2323_s14, %s27_s23  }
  0x43   : > { %p2473_p4 = por %p2797_p2, %p34_p12  ;;  %p36_p8 = por %p35_p1, %p34_p12 }
  0x44   : > { %s156_s9 = sand.u32 1, %s2323_s14   ;;  %s1717_s25 = sshll.u32 %s2327_s15, 13 }
  0x45   : > { %s1532_s10 = sshll.u32 %s156_s9, 9  ;;  %s2486_s21 = scalar_lea.hbm %s2786_s0, %s1717_s25 }
  0x46   : > { %s160_s24 = scalar_lea.vmem [#allocation2], %s1532_s10  ;;  %p2490_p10 = pnand %p2021_p6, %p36_p8 }
  0x47   : > { %s168_s26 = sshll.u32 %s160_s24, 4  ;;  %s2494_s28 = scalar_lea.sflag [#allocation3], %s156_s9  ;;  %s2488_s26 = int_to_ptr.vmem [resolvable:$true] %s168_s26 }
  0x48   : > { %s2227_s22 = scalar_lea.hbm %s2486_s21, 8192  ;;  %p2229_p0 = pneg %p2490_p10 }
  0x49   : > { %p2228_p13 = scmp.ne.s32.totalorder %s2486_s21, %s2227_s22  ;;  %s2232_s4 = scalar_lea.hbm %s2786_s0, 131072 }
  0x4a   : > { %p2233_p7 = scmp.lt.u32.totalorder %s2486_s21, %s2786_s0  ;;  %p2234_p9 = scmp.lt.u32.totalorder %s2232_s4, %s2227_s22 }
  0x4b   : > { %p2230_p3 = pnand %p2229_p0, %p2228_p13  ;;  %p2236_p11 = scmp.lt.u32.totalorder %s2227_s22, %s2486_s21 }
  0x4c   : > { %p2235_p12 = por %p2234_p9, %p2233_p7 }
  0x4d   : > { %p2231_p5 = pneg %p2230_p3 }
  0x4e   : > { %p2237_p1 = por %p2236_p11, %p2235_p12 }
  0x50   : > { %p2238_p2 = pnand %p2237_p1, %p2231_p5 }
  0x52   : > { %2241 = shalt.err (!%p2238_p2)
}
  0x53   : > { %s2242_s9 = scalar_lea.vmem %s2488_s26, 8192  ;;  %s2333_s10 = smov [#allocation2]  }
  0x54   : > { %p2243_p6 = scmp.ne.s32.totalorder %s2488_s26, %s2242_s9  ;;  %s2247_s25 = sshll.u32 %s2333_s10, 4  ;;  %s2248_s25 = int_to_ptr.vmem [resolvable:$false] %s2247_s25 }
  0x55   : > { %s2249_s11 = scalar_lea.vmem %s2248_s25, 16384  ;;  %p2250_p3 = scmp.lt.s32.totalorder %s2488_s26, %s2248_s25 }
  0x56   : > { %p2245_p8 = pnand %p2243_p6, %p2229_p0  ;;  %p2251_p7 = scmp.lt.s32.totalorder %s2249_s11, %s2242_s9 }
  0x58   : > { %p2246_p13 = pneg %p2245_p8  ;;  %p2252_p9 = por %p2251_p7, %p2250_p3 }
  0x5a   : > { %p2253_p12 = pnand %p2252_p9, %p2246_p13 }
  0x5c   : > { %2256 = shalt.err (!%p2253_p12)
}
  0x5d   : > { %s2334_s17 = smov 128   ;;  %s2335_s24 = smov 8  }
  0x5e   : > { %2014 = dma.hbm_to_vmem [thread:$0]  (!%p2490_p10), %s2486_s21, 8192, %s2488_s26, %s2494_s28, %s2334_s17, %s2334_s17, %s2335_s24  }
  0x5f   : > { %p2800_p0 = scmp.ne.s32.totalorder %s2795_s20, 0 }
  0x60   : > { %s2525_s22 = sand.u32 (!%p2800_p0), 1, %s2319_s13   ;;  %p2801_p5 = scmp.ne.s32.totalorder (!%p2800_p0), %s2793_s18, 0 }
  0x61   : > { %180 = sbr.rel (%p2800_p0) target bundleno = 500 (0x1f4), region = 32  ;;  %s1537_s29 = sshll.u32 (!%p2800_p0), %s2525_s22, 9 }
  0x62   : > { %s183_s30 = scalar_lea.sflag (!%p2800_p0), [#allocation3], %s2525_s22  ;;  %s2529_s4 = scalar_lea.vmem (!%p2800_p0), [#allocation2], %s1537_s29 }
  0x68   : > { %2302 = dma.done.wait (%p2801_p5), %s183_s30, 8192  }
  0x69   : > { %2304 = vsyncadd (%p2801_p5), %s183_s30, 4294959104  ;;  %p2802_p10 = scmp.eq.s32.totalorder %s2381_s16, 0 }
  0x6b   : > { %2306 = dma.done.wait (%p2802_p10), [#allocation6], 1168   ;;  %p2803_p11 = pmov %p2802_p10 }
  0x6c   : > { %v2336_v0 = vmov 0   ;;  %v2066_v1 = vld [vmem:[#allocation5] sm:$0xff]   ;;  %v2067_v2 = vld [vmem:[#allocation5 + $0x8] sm:$0xff]   ;;  %v2068_v3 = vld [vmem:[#allocation5 + $0x10] sm:$0xff]   ;;  %vm651_vm0 = vcmask 130048   ;;  %s1540_s18 = sshll.u32 %s2525_s22, 8 }
  0x6d   : > { %2308 = vsyncadd (%p2803_p11), [#allocation6], 4294966128  ;;  %748 = vmatprep.subr.bf16.mxu0 %v2336_v0  ;;  %1974 = vmatprep.subr.bf16.mxu1 %v2336_v0  ;;  %v2069_v4 = vld [vmem:[#allocation5 + $0x18] sm:$0xff]   ;;  %v2077_v5 = vld [vmem:[%s2529_s4 + $0x4] ss:$8 sps:$4 sm:$0xff]   ;;  %s2642_s20 = scalar_lea.vmem [#allocation8], %s1540_s18 }
  0x6e   : > { %749 = vmatpush1.bf16.msra.mxu0 %v2066_v1  ;;  %1983 = vmatpush1.bf16.msra.mxu1 %v2066_v1  ;;  %v2080_v6 = vld [vmem:[%s2529_s4 + $0x104] ss:$8 sps:$4 sm:$0xff]   ;;  %v2072_v9 = vld [vmem:[#allocation5 + $0x30] sm:$0xff]   ;;  %v2073_v10 = vld [vmem:[#allocation5 + $0x38] sm:$0xff]   ;;  %s1782_s21 = sshll.u32 %s2381_s16, 12  ;;  %s1435_s26 = sshll.u32 %s2642_s20, 4  ;;  %s2741_s26 = int_to_ptr.vmem [resolvable:$true] %s1435_s26 }
  0x6f   : > { %750 = vmatprep.subr.bf16.mxu0 %v2336_v0  ;;  %1975 = vmatprep.subr.bf16.mxu1 %v2336_v0  ;;  %v2070_v7 = vld [vmem:[#allocation5 + $0x20] sm:$0xff]   ;;  %v2071_v8 = vld [vmem:[#allocation5 + $0x28] sm:$0xff]   ;;  %v2081_v14 = vld [vmem:[%s2529_s4 + $0x14] ss:$8 sps:$4 sm:$0xff]   ;;  %s2739_s23 = scalar_lea.hbm %s2789_s3, %s1782_s21  ;;  %s1422_s16 = scalar_lea.sflag [#allocation4], %s2525_s22 }
  0x70   : > { %1615 = vmatprep.mubr.msk.bf16.mxu0 %vm651_vm0, %v2077_v5  ;;  %1631 = vmatprep.mubr.msk.bf16.mxu1 %vm651_vm0, %v2080_v6  ;;  %v2074_v11 = vld [vmem:[#allocation5 + $0x40] sm:$0xff]   ;;  %v2083_v15 = vld [vmem:[%s2529_s4 + $0x114] ss:$8 sps:$4 sm:$0xff]   ;;  %v2085_v16 = vld [vmem:[%s2529_s4 + $0x10] ss:$8 sps:$4 sm:$0xff]   ;;  %s2257_s6 = scalar_lea.vmem %s2741_s26, 4096 }
  0x71   : > { %v2075_v12 = vld [vmem:[%s2529_s4] ss:$8 sps:$4 sm:$0xff]   ;;  %v2086_v17 = vld [vmem:[%s2529_s4 + $0x110] ss:$8 sps:$4 sm:$0xff]   ;;  %v2087_v18 = vld [vmem:[%s2529_s4 + $0x24] ss:$8 sps:$4 sm:$0xff]   ;;  %p2258_p1 = scmp.ne.s32.totalorder %s2741_s26, %s2257_s6 }
  0x72   : > { %751 = vmatpush1.bf16.msra.mxu0 %v2067_v2  ;;  %1984 = vmatpush1.bf16.msra.mxu1 %v2067_v2  ;;  %v2078_v13 = vld [vmem:[%s2529_s4 + $0x100] ss:$8 sps:$4 sm:$0xff]   ;;  %v2089_v19 = vld [vmem:[%s2529_s4 + $0x124] ss:$8 sps:$4 sm:$0xff]   ;;  %v2093_v22 = vld [vmem:[%s2529_s4 + $0x34] ss:$8 sps:$4 sm:$0xff]  }
  0x73   : > { %752 = vmatprep.subr.bf16.mxu0 %v2336_v0  ;;  %1976 = vmatprep.subr.bf16.mxu1 %v2336_v0  ;;  %v2091_v20 = vld [vmem:[%s2529_s4 + $0x20] ss:$8 sps:$4 sm:$0xff]   ;;  %v2095_v23 = vld [vmem:[%s2529_s4 + $0x134] ss:$8 sps:$4 sm:$0xff]   ;;  %v2097_v24 = vld [vmem:[%s2529_s4 + $0x30] ss:$8 sps:$4 sm:$0xff]   ;;  %p2259_p2 = pnand %p2258_p1, %p2473_p4 }
  0x74   : > { %v2092_v21 = vld [vmem:[%s2529_s4 + $0x120] ss:$8 sps:$4 sm:$0xff]   ;;  %v2098_v25 = vld [vmem:[%s2529_s4 + $0x130] ss:$8 sps:$4 sm:$0xff]   ;;  %v2099_v26 = vld [vmem:[%s2529_s4 + $0x44] ss:$8 sps:$4 sm:$0xff]  }
  0x75   : > { %v2101_v27 = vld [vmem:[%s2529_s4 + $0x144] ss:$8 sps:$4 sm:$0xff]   ;;  %v2103_v28 = vld [vmem:[%s2529_s4 + $0x40] ss:$8 sps:$4 sm:$0xff]   ;;  %v2105_v30 = vld [vmem:[%s2529_s4 + $0x54] ss:$8 sps:$4 sm:$0xff]   ;;  %p2260_p6 = pneg %p2259_p2 }
  0x76   : > { %753 = vmatpush1.bf16.msra.mxu0 %v2068_v3  ;;  %1985 = vmatpush1.bf16.msra.mxu1 %v2068_v3  ;;  %v2104_v29 = vld [vmem:[%s2529_s4 + $0x140] ss:$8 sps:$4 sm:$0xff]   ;;  %v2107_v31 = vld [vmem:[%s2529_s4 + $0x154] ss:$8 sps:$4 sm:$0xff]   ;;  %v2109_v32 = vld [vmem:[%s2529_s4 + $0x50] ss:$8 sps:$4 sm:$0xff]  }
  0x77   : > { %754 = vmatprep.subr.bf16.mxu0 %v2336_v0  ;;  %1977 = vmatprep.subr.bf16.mxu1 %v2336_v0  ;;  %v2110_v33 = vld [vmem:[%s2529_s4 + $0x150] ss:$8 sps:$4 sm:$0xff]   ;;  %v2111_v34 = vld [vmem:[%s2529_s4 + $0x64] ss:$8 sps:$4 sm:$0xff]   ;;  %v2115_v36 = vld [vmem:[%s2529_s4 + $0x60] ss:$8 sps:$4 sm:$0xff]  }
  0x78   : > { %v2113_v35 = vld [vmem:[%s2529_s4 + $0x164] ss:$8 sps:$4 sm:$0xff]   ;;  %v2116_v37 = vld [vmem:[%s2529_s4 + $0x160] ss:$8 sps:$4 sm:$0xff]   ;;  %v2117_v38 = vld [vmem:[%s2529_s4 + $0x74] ss:$8 sps:$4 sm:$0xff]  }
  0x79   : > { %v2119_v39 = vld [vmem:[%s2529_s4 + $0x174] ss:$8 sps:$4 sm:$0xff]   ;;  %v2121_v40 = vld [vmem:[%s2529_s4 + $0x70] ss:$8 sps:$4 sm:$0xff]   ;;  %v2123_v42 = vld [vmem:[%s2529_s4 + $0x84] ss:$8 sps:$4 sm:$0xff]  }
  0x7a   : > { %755 = vmatpush1.bf16.msra.mxu0 %v2069_v4  ;;  %1986 = vmatpush1.bf16.msra.mxu1 %v2069_v4  ;;  %v2122_v41 = vld [vmem:[%s2529_s4 + $0x170] ss:$8 sps:$4 sm:$0xff]   ;;  %v2125_v43 = vld [vmem:[%s2529_s4 + $0x184] ss:$8 sps:$4 sm:$0xff]   ;;  %v2127_v44 = vld [vmem:[%s2529_s4 + $0x80] ss:$8 sps:$4 sm:$0xff]  }
  0x7b   : > { %756 = vmatprep.subr.bf16.mxu0 %v2336_v0  ;;  %1978 = vmatprep.subr.bf16.mxu1 %v2336_v0  ;;  %v2128_v45 = vld [vmem:[%s2529_s4 + $0x180] ss:$8 sps:$4 sm:$0xff]   ;;  %v2129_v46 = vld [vmem:[%s2529_s4 + $0x94] ss:$8 sps:$4 sm:$0xff]   ;;  %v2133_v48 = vld [vmem:[%s2529_s4 + $0x90] ss:$8 sps:$4 sm:$0xff]  }
  0x7c   : > { %v2131_v47 = vld [vmem:[%s2529_s4 + $0x194] ss:$8 sps:$4 sm:$0xff]   ;;  %v2134_v49 = vld [vmem:[%s2529_s4 + $0x190] ss:$8 sps:$4 sm:$0xff]   ;;  %v2135_v50 = vld [vmem:[%s2529_s4 + $0xa4] ss:$8 sps:$4 sm:$0xff]  }
  0x7d   : > { %v2137_v51 = vld [vmem:[%s2529_s4 + $0x1a4] ss:$8 sps:$4 sm:$0xff]   ;;  %v2139_v52 = vld [vmem:[%s2529_s4 + $0xa0] ss:$8 sps:$4 sm:$0xff]   ;;  %v2141_v54 = vld [vmem:[%s2529_s4 + $0xb4] ss:$8 sps:$4 sm:$0xff]  }
  0x7e   : > { %757 = vmatpush1.bf16.msra.mxu0 %v2070_v7  ;;  %1987 = vmatpush1.bf16.msra.mxu1 %v2070_v7  ;;  %v2140_v53 = vld [vmem:[%s2529_s4 + $0x1a0] ss:$8 sps:$4 sm:$0xff]   ;;  %v2143_v55 = vld [vmem:[%s2529_s4 + $0x1b4] ss:$8 sps:$4 sm:$0xff]   ;;  %v2145_v56 = vld [vmem:[%s2529_s4 + $0xb0] ss:$8 sps:$4 sm:$0xff]  }
  0x7f   : > { %758 = vmatprep.subr.bf16.mxu0 %v2336_v0  ;;  %1979 = vmatprep.subr.bf16.mxu1 %v2336_v0  ;;  %v2146_v57 = vld [vmem:[%s2529_s4 + $0x1b0] ss:$8 sps:$4 sm:$0xff]   ;;  %v2147_v58 = vld [vmem:[%s2529_s4 + $0xc4] ss:$8 sps:$4 sm:$0xff]   ;;  %v2151_v60 = vld [vmem:[%s2529_s4 + $0xc0] ss:$8 sps:$4 sm:$0xff]  }
  0x80   : > { %v2149_v59 = vld [vmem:[%s2529_s4 + $0x1c4] ss:$8 sps:$4 sm:$0xff]   ;;  %v2152_v61 = vld [vmem:[%s2529_s4 + $0x1c0] ss:$8 sps:$4 sm:$0xff]   ;;  %v2153_v62 = vld [vmem:[%s2529_s4 + $0xd4] ss:$8 sps:$4 sm:$0xff]  }
  0x81   : > { %v2155_v63 = vld [vmem:[%s2529_s4 + $0x1d4] ss:$8 sps:$4 sm:$0xff]   ;;  %v2158_v1 = vld [vmem:[%s2529_s4 + $0x1d0] ss:$8 sps:$4 sm:$0xff]   ;;  %v2159_v2 = vld [vmem:[%s2529_s4 + $0xe4] ss:$8 sps:$4 sm:$0xff]  }
  0x82   : > { %759 = vmatpush1.bf16.msra.mxu0 %v2071_v8  ;;  %1988 = vmatpush1.bf16.msra.mxu1 %v2071_v8  ;;  %v2161_v3 = vld [vmem:[%s2529_s4 + $0x1e4] ss:$8 sps:$4 sm:$0xff]   ;;  %v2163_v4 = vld [vmem:[%s2529_s4 + $0xe0] ss:$8 sps:$4 sm:$0xff]   ;;  %v2165_v6 = vld [vmem:[%s2529_s4 + $0xf4] ss:$8 sps:$4 sm:$0xff]  }
  0x83   : > { %760 = vmatprep.subr.bf16.mxu0 %v2336_v0  ;;  %1980 = vmatprep.subr.bf16.mxu1 %v2336_v0  ;;  %v2164_v5 = vld [vmem:[%s2529_s4 + $0x1e0] ss:$8 sps:$4 sm:$0xff]   ;;  %v2167_v7 = vld [vmem:[%s2529_s4 + $0x1f4] ss:$8 sps:$4 sm:$0xff]   ;;  %v2169_v8 = vld [vmem:[%s2529_s4 + $0xf0] ss:$8 sps:$4 sm:$0xff]  }
  0x84   : > { %s2337_s9 = smov [#allocation8]  }
  0x85   : > { %s2261_s10 = sshll.u32 %s2337_s9, 4  ;;  %s2262_s10 = int_to_ptr.vmem [resolvable:$false] %s2261_s10 }
  0x86   : > { %761 = vmatpush1.bf16.msra.mxu0 %v2072_v9  ;;  %1989 = vmatpush1.bf16.msra.mxu1 %v2072_v9  ;;  %v2170_v9 = vld [vmem:[%s2529_s4 + $0x1f0] ss:$8 sps:$4 sm:$0xff]   ;;  %s2263_s25 = scalar_lea.vmem %s2262_s10, 8192  ;;  %p2264_p8 = scmp.lt.s32.totalorder %s2741_s26, %s2262_s10 }
  0x87   : > { %762 = vmatprep.subr.bf16.mxu0 %v2336_v0  ;;  %1981 = vmatprep.subr.bf16.mxu1 %v2336_v0  ;;  %p2265_p13 = scmp.lt.s32.totalorder %s2263_s25, %s2257_s6 }
  0x89   : > { %p2266_p3 = por %p2265_p13, %p2264_p8 }
  0x8a   : > { %763 = vmatpush1.bf16.msra.mxu0 %v2073_v10  ;;  %1990 = vmatpush1.bf16.msra.mxu1 %v2073_v10  ;;  %v2635_v10 = vld [vmem:[#allocation7] ss:$0 sm:$0xff] }
  0x8b   : > { %764 = vmatprep.subr.bf16.mxu0 %v2336_v0  ;;  %1982 = vmatprep.subr.bf16.mxu1 %v2336_v0  ;;  %v2157_v0 = vld [vmem:[%s2529_s4 + $0xd0] ss:$8 sps:$4 sm:$0xff]   ;;  %p2267_p7 = pnand %p2266_p3, %p2260_p6 }
  0x8e   : > { %765 = vmatpush1.bf16.msra.mxu0 %v2074_v11  ;;  %1991 = vmatpush1.bf16.msra.mxu1 %v2074_v11 }
  0x91   : > { %781 = vmatmul.mubr.bf16.vlgmr.msra.gmra.mrb[0].mxu0 %v2075_v12  ;;  %909 = vmatmul.mubr.bf16.vlgmr.msra.gmra.mrb[0].mxu1 %v2078_v13 }
  0x92   : > { %1616 = vmatprep.mubr.msk.bf16.mxu0 %vm651_vm0, %v2081_v14  ;;  %1632 = vmatprep.mubr.msk.bf16.mxu1 %vm651_vm0, %v2083_v15 }
  0x99   : > { %789 = vmatmul.mubr.bf16.gmra.mrb[4].mxu0 %v2085_v16  ;;  %917 = vmatmul.mubr.bf16.gmra.mrb[4].mxu1 %v2086_v17 }
  0x9a   : > { %1617 = vmatprep.mubr.msk.bf16.mxu0 %vm651_vm0, %v2087_v18  ;;  %1633 = vmatprep.mubr.msk.bf16.mxu1 %vm651_vm0, %v2089_v19 }
  0xa1   : > { %797 = vmatmul.mubr.bf16.gmra.mrb[8].mxu0 %v2091_v20  ;;  %925 = vmatmul.mubr.bf16.gmra.mrb[8].mxu1 %v2092_v21 }
  0xa2   : > { %1618 = vmatprep.mubr.msk.bf16.mxu0 %vm651_vm0, %v2093_v22  ;;  %1634 = vmatprep.mubr.msk.bf16.mxu1 %vm651_vm0, %v2095_v23 }
  0xa9   : > { %805 = vmatmul.mubr.bf16.gmra.mrb[12].mxu0 %v2097_v24  ;;  %933 = vmatmul.mubr.bf16.gmra.mrb[12].mxu1 %v2098_v25 }
  0xaa   : > { %1619 = vmatprep.mubr.msk.bf16.mxu0 %vm651_vm0, %v2099_v26  ;;  %1635 = vmatprep.mubr.msk.bf16.mxu1 %vm651_vm0, %v2101_v27 }
  0xb1   : > { %813 = vmatmul.mubr.bf16.gmra.mrb[16].mxu0 %v2103_v28  ;;  %941 = vmatmul.mubr.bf16.gmra.mrb[16].mxu1 %v2104_v29 }
  0xb2   : > { %1620 = vmatprep.mubr.msk.bf16.mxu0 %vm651_vm0, %v2105_v30  ;;  %1636 = vmatprep.mubr.msk.bf16.mxu1 %vm651_vm0, %v2107_v31 }
  0xb9   : > { %821 = vmatmul.mubr.bf16.gmra.mrb[20].mxu0 %v2109_v32  ;;  %949 = vmatmul.mubr.bf16.gmra.mrb[20].mxu1 %v2110_v33 }
  0xba   : > { %1621 = vmatprep.mubr.msk.bf16.mxu0 %vm651_vm0, %v2111_v34  ;;  %1637 = vmatprep.mubr.msk.bf16.mxu1 %vm651_vm0, %v2113_v35 }
  0xc1   : > { %829 = vmatmul.mubr.bf16.gmra.mrb[24].mxu0 %v2115_v36  ;;  %957 = vmatmul.mubr.bf16.gmra.mrb[24].mxu1 %v2116_v37 }
  0xc2   : > { %1622 = vmatprep.mubr.msk.bf16.mxu0 %vm651_vm0, %v2117_v38  ;;  %1638 = vmatprep.mubr.msk.bf16.mxu1 %vm651_vm0, %v2119_v39 }
  0xc9   : > { %837 = vmatmul.mubr.bf16.gmra.mrb[28].mxu0 %v2121_v40  ;;  %965 = vmatmul.mubr.bf16.gmra.mrb[28].mxu1 %v2122_v41 }
  0xca   : > { %1623 = vmatprep.mubr.msk.bf16.mxu0 %vm651_vm0, %v2123_v42  ;;  %1639 = vmatprep.mubr.msk.bf16.mxu1 %vm651_vm0, %v2125_v43 }
  0xd1   : > { %845 = vmatmul.mubr.bf16.gmra.mrb[32].mxu0 %v2127_v44  ;;  %973 = vmatmul.mubr.bf16.gmra.mrb[32].mxu1 %v2128_v45 }
  0xd2   : > { %1624 = vmatprep.mubr.msk.bf16.mxu0 %vm651_vm0, %v2129_v46  ;;  %1640 = vmatprep.mubr.msk.bf16.mxu1 %vm651_vm0, %v2131_v47 }
  0xd9   : > { %853 = vmatmul.mubr.bf16.gmra.mrb[36].mxu0 %v2133_v48  ;;  %981 = vmatmul.mubr.bf16.gmra.mrb[36].mxu1 %v2134_v49 }
  0xda   : > { %1625 = vmatprep.mubr.msk.bf16.mxu0 %vm651_vm0, %v2135_v50  ;;  %1641 = vmatprep.mubr.msk.bf16.mxu1 %vm651_vm0, %v2137_v51 }
  0xe1   : > { %861 = vmatmul.mubr.bf16.gmra.mrb[40].mxu0 %v2139_v52  ;;  %989 = vmatmul.mubr.bf16.gmra.mrb[40].mxu1 %v2140_v53 }
  0xe2   : > { %1626 = vmatprep.mubr.msk.bf16.mxu0 %vm651_vm0, %v2141_v54  ;;  %1642 = vmatprep.mubr.msk.bf16.mxu1 %vm651_vm0, %v2143_v55 }
  0xe9   : > { %869 = vmatmul.mubr.bf16.gmra.mrb[44].mxu0 %v2145_v56  ;;  %997 = vmatmul.mubr.bf16.gmra.mrb[44].mxu1 %v2146_v57 }
  0xea   : > { %1627 = vmatprep.mubr.msk.bf16.mxu0 %vm651_vm0, %v2147_v58  ;;  %1643 = vmatprep.mubr.msk.bf16.mxu1 %vm651_vm0, %v2149_v59 }
  0xf1   : > { %877 = vmatmul.mubr.bf16.gmra.mrb[48].mxu0 %v2151_v60  ;;  %1005 = vmatmul.mubr.bf16.gmra.mrb[48].mxu1 %v2152_v61 }
  0xf2   : > { %1628 = vmatprep.mubr.msk.bf16.mxu0 %vm651_vm0, %v2153_v62  ;;  %1644 = vmatprep.mubr.msk.bf16.mxu1 %vm651_vm0, %v2155_v63 }
  0xf9   : > { %885 = vmatmul.mubr.bf16.gmra.mrb[52].mxu0 %v2157_v0  ;;  %1013 = vmatmul.mubr.bf16.gmra.mrb[52].mxu1 %v2158_v1 }
  0xfa   : > { %1629 = vmatprep.mubr.msk.bf16.mxu0 %vm651_vm0, %v2159_v2  ;;  %1645 = vmatprep.mubr.msk.bf16.mxu1 %vm651_vm0, %v2161_v3 }
 0x101   : > { %893 = vmatmul.mubr.bf16.gmra.mrb[56].mxu0 %v2163_v4  ;;  %1021 = vmatmul.mubr.bf16.gmra.mrb[56].mxu1 %v2164_v5 }
 0x102   : > { %1630 = vmatprep.mubr.msk.bf16.mxu0 %vm651_vm0, %v2165_v6  ;;  %1646 = vmatprep.mubr.msk.bf16.mxu1 %vm651_vm0, %v2167_v7 }
 0x109   : > { %901 = vmatmul.mubr.bf16.gmra.mrb[60].mxu0 %v2169_v8  ;;  %1029 = vmatmul.mubr.bf16.gmra.mrb[60].mxu1 %v2170_v9 }
 0x164   : > { %v782_v11 = vpop.f32.mrb[0].mxu0  ;;  %v910_v12 = vpop.f32.mrb[0].mxu1 }
 0x165   : > { %v783_v13 = vadd.f32 %v2635_v10, %v782_v11  ;;  %v911_v14 = vadd.f32 %v2635_v10, %v910_v12  ;;  %v784_v15 = vpop.f32.mrb[1].mxu0  ;;  %v912_v16 = vpop.f32.mrb[1].mxu1 }
 0x166   : > { %v785_v17 = vpop.f32.mrb[2].mxu0  ;;  %v913_v18 = vpop.f32.mrb[2].mxu1 }
 0x167   : > { %v786_v19 = vadd.f32 %v2635_v10, %v785_v17  ;;  %v914_v20 = vadd.f32 %v2635_v10, %v913_v18  ;;  %v787_v21 = vpop.f32.mrb[3].mxu0  ;;  %v915_v22 = vpop.f32.mrb[3].mxu1  ;;  %v1037_v23 = vmax.f32 %v783_v13, 0.0  ;;  %v1069_v24 = vmax.f32 %v911_v14, 0.0 }
 0x169   : > { %v1038_v25 = vmax.f32 %v786_v19, 0.0  ;;  %v1070_v26 = vmax.f32 %v914_v20, 0.0 }
 0x16b   : > { %v1786_v27 = vpack.c.bf16 %v1038_v25, %v1037_v23  ;;  %v1866_v28 = vpack.c.bf16 %v1070_v26, %v1069_v24 }
 0x16c   : > { %v790_v29 = vpop.f32.mrb[4].mxu0  ;;  %v918_v30 = vpop.f32.mrb[4].mxu1 }
 0x16d   : > { %1787 = vst [vmem:[%s2642_s20] sm:$0xff] %v1786_v27   ;;  %1958 = vst [vmem:[%s2642_s20 + $0x80] sm:$0xff] %v1866_v28   ;;  %v791_v31 = vadd.f32 %v2635_v10, %v790_v29  ;;  %v919_v32 = vadd.f32 %v2635_v10, %v918_v30  ;;  %v792_v33 = vpop.f32.mrb[5].mxu0  ;;  %v920_v34 = vpop.f32.mrb[5].mxu1 }
 0x16e   : > { %v793_v35 = vpop.f32.mrb[6].mxu0  ;;  %v921_v36 = vpop.f32.mrb[6].mxu1 }
 0x16f   : > { %v794_v37 = vadd.f32 %v2635_v10, %v793_v35  ;;  %v922_v38 = vadd.f32 %v2635_v10, %v921_v36  ;;  %v795_v39 = vpop.f32.mrb[7].mxu0  ;;  %v923_v40 = vpop.f32.mrb[7].mxu1  ;;  %v1039_v41 = vmax.f32 %v791_v31, 0.0  ;;  %v1071_v42 = vmax.f32 %v919_v32, 0.0 }
 0x171   : > { %v1040_v43 = vmax.f32 %v794_v37, 0.0  ;;  %v1072_v44 = vmax.f32 %v922_v38, 0.0 }
 0x173   : > { %v1791_v45 = vpack.c.bf16 %v1040_v43, %v1039_v41  ;;  %v1871_v46 = vpack.c.bf16 %v1072_v44, %v1071_v42 }
 0x174   : > { %v798_v47 = vpop.f32.mrb[8].mxu0  ;;  %v926_v48 = vpop.f32.mrb[8].mxu1 }
 0x175   : > { %1943 = vst [vmem:[%s2642_s20 + $0x8] sm:$0xff] %v1791_v45   ;;  %1959 = vst [vmem:[%s2642_s20 + $0x88] sm:$0xff] %v1871_v46   ;;  %v799_v49 = vadd.f32 %v2635_v10, %v798_v47  ;;  %v927_v50 = vadd.f32 %v2635_v10, %v926_v48  ;;  %v800_v51 = vpop.f32.mrb[9].mxu0  ;;  %v928_v52 = vpop.f32.mrb[9].mxu1 }
 0x176   : > { %v801_v53 = vpop.f32.mrb[10].mxu0  ;;  %v929_v54 = vpop.f32.mrb[10].mxu1 }
 0x177   : > { %v802_v55 = vadd.f32 %v2635_v10, %v801_v53  ;;  %v930_v56 = vadd.f32 %v2635_v10, %v929_v54  ;;  %v803_v57 = vpop.f32.mrb[11].mxu0  ;;  %v931_v58 = vpop.f32.mrb[11].mxu1  ;;  %v1041_v59 = vmax.f32 %v799_v49, 0.0  ;;  %v1073_v60 = vmax.f32 %v927_v50, 0.0 }
 0x179   : > { %v1042_v61 = vmax.f32 %v802_v55, 0.0  ;;  %v1074_v62 = vmax.f32 %v930_v56, 0.0 }
 0x17b   : > { %v1796_v63 = vpack.c.bf16 %v1042_v61, %v1041_v59  ;;  %v1876_v0 = vpack.c.bf16 %v1074_v62, %v1073_v60 }
 0x17c   : > { %v806_v1 = vpop.f32.mrb[12].mxu0  ;;  %v934_v2 = vpop.f32.mrb[12].mxu1 }
 0x17d   : > { %1944 = vst [vmem:[%s2642_s20 + $0x10] sm:$0xff] %v1796_v63   ;;  %1960 = vst [vmem:[%s2642_s20 + $0x90] sm:$0xff] %v1876_v0   ;;  %v807_v3 = vadd.f32 %v2635_v10, %v806_v1  ;;  %v935_v4 = vadd.f32 %v2635_v10, %v934_v2  ;;  %v808_v5 = vpop.f32.mrb[13].mxu0  ;;  %v936_v6 = vpop.f32.mrb[13].mxu1 }
 0x17e   : > { %v809_v7 = vpop.f32.mrb[14].mxu0  ;;  %v937_v8 = vpop.f32.mrb[14].mxu1 }
 0x17f   : > { %v810_v9 = vadd.f32 %v2635_v10, %v809_v7  ;;  %v938_v11 = vadd.f32 %v2635_v10, %v937_v8  ;;  %v811_v12 = vpop.f32.mrb[15].mxu0  ;;  %v939_v13 = vpop.f32.mrb[15].mxu1  ;;  %v1043_v14 = vmax.f32 %v807_v3, 0.0  ;;  %v1075_v15 = vmax.f32 %v935_v4, 0.0 }
 0x181   : > { %v1044_v16 = vmax.f32 %v810_v9, 0.0  ;;  %v1076_v17 = vmax.f32 %v938_v11, 0.0 }
 0x183   : > { %v1801_v18 = vpack.c.bf16 %v1044_v16, %v1043_v14  ;;  %v1881_v19 = vpack.c.bf16 %v1076_v17, %v1075_v15 }
 0x184   : > { %v814_v20 = vpop.f32.mrb[16].mxu0  ;;  %v942_v21 = vpop.f32.mrb[16].mxu1 }
 0x185   : > { %1945 = vst [vmem:[%s2642_s20 + $0x18] sm:$0xff] %v1801_v18   ;;  %1961 = vst [vmem:[%s2642_s20 + $0x98] sm:$0xff] %v1881_v19   ;;  %v815_v22 = vadd.f32 %v2635_v10, %v814_v20  ;;  %v943_v23 = vadd.f32 %v2635_v10, %v942_v21  ;;  %v816_v24 = vpop.f32.mrb[17].mxu0  ;;  %v944_v25 = vpop.f32.mrb[17].mxu1 }
 0x186   : > { %v817_v26 = vpop.f32.mrb[18].mxu0  ;;  %v945_v27 = vpop.f32.mrb[18].mxu1 }
 0x187   : > { %v818_v28 = vadd.f32 %v2635_v10, %v817_v26  ;;  %v946_v29 = vadd.f32 %v2635_v10, %v945_v27  ;;  %v819_v30 = vpop.f32.mrb[19].mxu0  ;;  %v947_v31 = vpop.f32.mrb[19].mxu1  ;;  %v1045_v32 = vmax.f32 %v815_v22, 0.0  ;;  %v1077_v33 = vmax.f32 %v943_v23, 0.0 }
 0x189   : > { %v1046_v34 = vmax.f32 %v818_v28, 0.0  ;;  %v1078_v35 = vmax.f32 %v946_v29, 0.0 }
 0x18b   : > { %v1806_v36 = vpack.c.bf16 %v1046_v34, %v1045_v32  ;;  %v1886_v37 = vpack.c.bf16 %v1078_v35, %v1077_v33 }
 0x18c   : > { %v822_v38 = vpop.f32.mrb[20].mxu0  ;;  %v950_v39 = vpop.f32.mrb[20].mxu1 }
 0x18d   : > { %1946 = vst [vmem:[%s2642_s20 + $0x20] sm:$0xff] %v1806_v36   ;;  %1962 = vst [vmem:[%s2642_s20 + $0xa0] sm:$0xff] %v1886_v37   ;;  %v823_v40 = vadd.f32 %v2635_v10, %v822_v38  ;;  %v951_v41 = vadd.f32 %v2635_v10, %v950_v39  ;;  %v824_v42 = vpop.f32.mrb[21].mxu0  ;;  %v952_v43 = vpop.f32.mrb[21].mxu1 }
 0x18e   : > { %v825_v44 = vpop.f32.mrb[22].mxu0  ;;  %v953_v45 = vpop.f32.mrb[22].mxu1 }
 0x18f   : > { %v826_v46 = vadd.f32 %v2635_v10, %v825_v44  ;;  %v954_v47 = vadd.f32 %v2635_v10, %v953_v45  ;;  %v827_v48 = vpop.f32.mrb[23].mxu0  ;;  %v955_v49 = vpop.f32.mrb[23].mxu1  ;;  %v1047_v50 = vmax.f32 %v823_v40, 0.0  ;;  %v1079_v51 = vmax.f32 %v951_v41, 0.0 }
 0x191   : > { %v1048_v52 = vmax.f32 %v826_v46, 0.0  ;;  %v1080_v53 = vmax.f32 %v954_v47, 0.0 }
 0x193   : > { %v1811_v54 = vpack.c.bf16 %v1048_v52, %v1047_v50  ;;  %v1891_v55 = vpack.c.bf16 %v1080_v53, %v1079_v51 }
 0x194   : > { %v830_v56 = vpop.f32.mrb[24].mxu0  ;;  %v958_v57 = vpop.f32.mrb[24].mxu1 }
 0x195   : > { %1947 = vst [vmem:[%s2642_s20 + $0x28] sm:$0xff] %v1811_v54   ;;  %1963 = vst [vmem:[%s2642_s20 + $0xa8] sm:$0xff] %v1891_v55   ;;  %v831_v58 = vadd.f32 %v2635_v10, %v830_v56  ;;  %v959_v59 = vadd.f32 %v2635_v10, %v958_v57  ;;  %v832_v60 = vpop.f32.mrb[25].mxu0  ;;  %v960_v61 = vpop.f32.mrb[25].mxu1 }
 0x196   : > { %v833_v62 = vpop.f32.mrb[26].mxu0  ;;  %v961_v63 = vpop.f32.mrb[26].mxu1 }
 0x197   : > { %v834_v0 = vadd.f32 %v2635_v10, %v833_v62  ;;  %v962_v1 = vadd.f32 %v2635_v10, %v961_v63  ;;  %v835_v2 = vpop.f32.mrb[27].mxu0  ;;  %v963_v3 = vpop.f32.mrb[27].mxu1  ;;  %v1049_v4 = vmax.f32 %v831_v58, 0.0  ;;  %v1081_v5 = vmax.f32 %v959_v59, 0.0 }
 0x199   : > { %v1050_v6 = vmax.f32 %v834_v0, 0.0  ;;  %v1082_v7 = vmax.f32 %v962_v1, 0.0 }
 0x19b   : > { %v1816_v8 = vpack.c.bf16 %v1050_v6, %v1049_v4  ;;  %v1896_v9 = vpack.c.bf16 %v1082_v7, %v1081_v5 }
 0x19c   : > { %v838_v11 = vpop.f32.mrb[28].mxu0  ;;  %v966_v12 = vpop.f32.mrb[28].mxu1 }
 0x19d   : > { %1948 = vst [vmem:[%s2642_s20 + $0x30] sm:$0xff] %v1816_v8   ;;  %1964 = vst [vmem:[%s2642_s20 + $0xb0] sm:$0xff] %v1896_v9   ;;  %v839_v13 = vadd.f32 %v2635_v10, %v838_v11  ;;  %v967_v14 = vadd.f32 %v2635_v10, %v966_v12  ;;  %v840_v15 = vpop.f32.mrb[29].mxu0  ;;  %v968_v16 = vpop.f32.mrb[29].mxu1 }
 0x19e   : > { %v841_v17 = vpop.f32.mrb[30].mxu0  ;;  %v969_v18 = vpop.f32.mrb[30].mxu1 }
 0x19f   : > { %v842_v19 = vadd.f32 %v2635_v10, %v841_v17  ;;  %v970_v20 = vadd.f32 %v2635_v10, %v969_v18  ;;  %v843_v21 = vpop.f32.mrb[31].mxu0  ;;  %v971_v22 = vpop.f32.mrb[31].mxu1  ;;  %v1051_v23 = vmax.f32 %v839_v13, 0.0  ;;  %v1083_v24 = vmax.f32 %v967_v14, 0.0 }
 0x1a1   : > { %v1052_v25 = vmax.f32 %v842_v19, 0.0  ;;  %v1084_v26 = vmax.f32 %v970_v20, 0.0 }
 0x1a3   : > { %v1821_v27 = vpack.c.bf16 %v1052_v25, %v1051_v23  ;;  %v1901_v28 = vpack.c.bf16 %v1084_v26, %v1083_v24 }
 0x1a4   : > { %v846_v29 = vpop.f32.mrb[32].mxu0  ;;  %v974_v30 = vpop.f32.mrb[32].mxu1 }
 0x1a5   : > { %1949 = vst [vmem:[%s2642_s20 + $0x38] sm:$0xff] %v1821_v27   ;;  %1965 = vst [vmem:[%s2642_s20 + $0xb8] sm:$0xff] %v1901_v28   ;;  %v847_v31 = vadd.f32 %v2635_v10, %v846_v29  ;;  %v975_v32 = vadd.f32 %v2635_v10, %v974_v30  ;;  %v848_v33 = vpop.f32.mrb[33].mxu0  ;;  %v976_v34 = vpop.f32.mrb[33].mxu1 }
 0x1a6   : > { %v849_v35 = vpop.f32.mrb[34].mxu0  ;;  %v977_v36 = vpop.f32.mrb[34].mxu1 }
 0x1a7   : > { %v850_v37 = vadd.f32 %v2635_v10, %v849_v35  ;;  %v978_v38 = vadd.f32 %v2635_v10, %v977_v36  ;;  %v851_v39 = vpop.f32.mrb[35].mxu0  ;;  %v979_v40 = vpop.f32.mrb[35].mxu1  ;;  %v1053_v41 = vmax.f32 %v847_v31, 0.0  ;;  %v1085_v42 = vmax.f32 %v975_v32, 0.0 }
 0x1a9   : > { %v1054_v43 = vmax.f32 %v850_v37, 0.0  ;;  %v1086_v44 = vmax.f32 %v978_v38, 0.0 }
 0x1ab   : > { %v1826_v45 = vpack.c.bf16 %v1054_v43, %v1053_v41  ;;  %v1906_v46 = vpack.c.bf16 %v1086_v44, %v1085_v42 }
 0x1ac   : > { %v854_v47 = vpop.f32.mrb[36].mxu0  ;;  %v982_v48 = vpop.f32.mrb[36].mxu1 }
 0x1ad   : > { %1950 = vst [vmem:[%s2642_s20 + $0x40] sm:$0xff] %v1826_v45   ;;  %1966 = vst [vmem:[%s2642_s20 + $0xc0] sm:$0xff] %v1906_v46   ;;  %v855_v49 = vadd.f32 %v2635_v10, %v854_v47  ;;  %v983_v50 = vadd.f32 %v2635_v10, %v982_v48  ;;  %v856_v51 = vpop.f32.mrb[37].mxu0  ;;  %v984_v52 = vpop.f32.mrb[37].mxu1 }
 0x1ae   : > { %v857_v53 = vpop.f32.mrb[38].mxu0  ;;  %v985_v54 = vpop.f32.mrb[38].mxu1 }
 0x1af   : > { %v858_v55 = vadd.f32 %v2635_v10, %v857_v53  ;;  %v986_v56 = vadd.f32 %v2635_v10, %v985_v54  ;;  %v859_v57 = vpop.f32.mrb[39].mxu0  ;;  %v987_v58 = vpop.f32.mrb[39].mxu1  ;;  %v1055_v59 = vmax.f32 %v855_v49, 0.0  ;;  %v1087_v60 = vmax.f32 %v983_v50, 0.0 }
 0x1b1   : > { %v1056_v61 = vmax.f32 %v858_v55, 0.0  ;;  %v1088_v62 = vmax.f32 %v986_v56, 0.0 }
 0x1b3   : > { %v1831_v63 = vpack.c.bf16 %v1056_v61, %v1055_v59  ;;  %v1911_v0 = vpack.c.bf16 %v1088_v62, %v1087_v60 }
 0x1b4   : > { %v862_v1 = vpop.f32.mrb[40].mxu0  ;;  %v990_v2 = vpop.f32.mrb[40].mxu1 }
 0x1b5   : > { %1951 = vst [vmem:[%s2642_s20 + $0x48] sm:$0xff] %v1831_v63   ;;  %1967 = vst [vmem:[%s2642_s20 + $0xc8] sm:$0xff] %v1911_v0   ;;  %v863_v3 = vadd.f32 %v2635_v10, %v862_v1  ;;  %v991_v4 = vadd.f32 %v2635_v10, %v990_v2  ;;  %v864_v5 = vpop.f32.mrb[41].mxu0  ;;  %v992_v6 = vpop.f32.mrb[41].mxu1 }
 0x1b6   : > { %v865_v7 = vpop.f32.mrb[42].mxu0  ;;  %v993_v8 = vpop.f32.mrb[42].mxu1 }
 0x1b7   : > { %v866_v9 = vadd.f32 %v2635_v10, %v865_v7  ;;  %v994_v11 = vadd.f32 %v2635_v10, %v993_v8  ;;  %v867_v12 = vpop.f32.mrb[43].mxu0  ;;  %v995_v13 = vpop.f32.mrb[43].mxu1  ;;  %v1057_v14 = vmax.f32 %v863_v3, 0.0  ;;  %v1089_v15 = vmax.f32 %v991_v4, 0.0 }
 0x1b9   : > { %v1058_v16 = vmax.f32 %v866_v9, 0.0  ;;  %v1090_v17 = vmax.f32 %v994_v11, 0.0 }
 0x1bb   : > { %v1836_v18 = vpack.c.bf16 %v1058_v16, %v1057_v14  ;;  %v1916_v19 = vpack.c.bf16 %v1090_v17, %v1089_v15 }
 0x1bc   : > { %v870_v20 = vpop.f32.mrb[44].mxu0  ;;  %v998_v21 = vpop.f32.mrb[44].mxu1 }
 0x1bd   : > { %1952 = vst [vmem:[%s2642_s20 + $0x50] sm:$0xff] %v1836_v18   ;;  %1968 = vst [vmem:[%s2642_s20 + $0xd0] sm:$0xff] %v1916_v19   ;;  %v871_v22 = vadd.f32 %v2635_v10, %v870_v20  ;;  %v999_v23 = vadd.f32 %v2635_v10, %v998_v21  ;;  %v872_v24 = vpop.f32.mrb[45].mxu0  ;;  %v1000_v25 = vpop.f32.mrb[45].mxu1 }
 0x1be   : > { %v873_v26 = vpop.f32.mrb[46].mxu0  ;;  %v1001_v27 = vpop.f32.mrb[46].mxu1 }
 0x1bf   : > { %v874_v28 = vadd.f32 %v2635_v10, %v873_v26  ;;  %v1002_v29 = vadd.f32 %v2635_v10, %v1001_v27  ;;  %v875_v30 = vpop.f32.mrb[47].mxu0  ;;  %v1003_v31 = vpop.f32.mrb[47].mxu1  ;;  %v1059_v32 = vmax.f32 %v871_v22, 0.0  ;;  %v1091_v33 = vmax.f32 %v999_v23, 0.0 }
 0x1c1   : > { %v1060_v34 = vmax.f32 %v874_v28, 0.0  ;;  %v1092_v35 = vmax.f32 %v1002_v29, 0.0 }
 0x1c3   : > { %v1841_v36 = vpack.c.bf16 %v1060_v34, %v1059_v32  ;;  %v1921_v37 = vpack.c.bf16 %v1092_v35, %v1091_v33 }
 0x1c4   : > { %v878_v38 = vpop.f32.mrb[48].mxu0  ;;  %v1006_v39 = vpop.f32.mrb[48].mxu1 }
 0x1c5   : > { %1953 = vst [vmem:[%s2642_s20 + $0x58] sm:$0xff] %v1841_v36   ;;  %1969 = vst [vmem:[%s2642_s20 + $0xd8] sm:$0xff] %v1921_v37   ;;  %v879_v40 = vadd.f32 %v2635_v10, %v878_v38  ;;  %v1007_v41 = vadd.f32 %v2635_v10, %v1006_v39  ;;  %v880_v42 = vpop.f32.mrb[49].mxu0  ;;  %v1008_v43 = vpop.f32.mrb[49].mxu1 }
 0x1c6   : > { %v881_v44 = vpop.f32.mrb[50].mxu0  ;;  %v1009_v45 = vpop.f32.mrb[50].mxu1 }
 0x1c7   : > { %v882_v46 = vadd.f32 %v2635_v10, %v881_v44  ;;  %v1010_v47 = vadd.f32 %v2635_v10, %v1009_v45  ;;  %v883_v48 = vpop.f32.mrb[51].mxu0  ;;  %v1011_v49 = vpop.f32.mrb[51].mxu1  ;;  %v1061_v50 = vmax.f32 %v879_v40, 0.0  ;;  %v1093_v51 = vmax.f32 %v1007_v41, 0.0 }
 0x1c9   : > { %v1062_v52 = vmax.f32 %v882_v46, 0.0  ;;  %v1094_v53 = vmax.f32 %v1010_v47, 0.0 }
 0x1cb   : > { %v1846_v54 = vpack.c.bf16 %v1062_v52, %v1061_v50  ;;  %v1926_v55 = vpack.c.bf16 %v1094_v53, %v1093_v51 }
 0x1cc   : > { %v886_v56 = vpop.f32.mrb[52].mxu0  ;;  %v1014_v57 = vpop.f32.mrb[52].mxu1 }
 0x1cd   : > { %1954 = vst [vmem:[%s2642_s20 + $0x60] sm:$0xff] %v1846_v54   ;;  %1970 = vst [vmem:[%s2642_s20 + $0xe0] sm:$0xff] %v1926_v55   ;;  %v887_v58 = vadd.f32 %v2635_v10, %v886_v56  ;;  %v1015_v59 = vadd.f32 %v2635_v10, %v1014_v57  ;;  %v888_v60 = vpop.f32.mrb[53].mxu0  ;;  %v1016_v61 = vpop.f32.mrb[53].mxu1 }
 0x1ce   : > { %v889_v62 = vpop.f32.mrb[54].mxu0  ;;  %v1017_v63 = vpop.f32.mrb[54].mxu1 }
 0x1cf   : > { %v890_v0 = vadd.f32 %v2635_v10, %v889_v62  ;;  %v1018_v1 = vadd.f32 %v2635_v10, %v1017_v63  ;;  %v891_v2 = vpop.f32.mrb[55].mxu0  ;;  %v1019_v3 = vpop.f32.mrb[55].mxu1  ;;  %v1063_v4 = vmax.f32 %v887_v58, 0.0  ;;  %v1095_v5 = vmax.f32 %v1015_v59, 0.0 }
 0x1d1   : > { %v1064_v6 = vmax.f32 %v890_v0, 0.0  ;;  %v1096_v7 = vmax.f32 %v1018_v1, 0.0 }
 0x1d3   : > { %v1851_v8 = vpack.c.bf16 %v1064_v6, %v1063_v4  ;;  %v1931_v9 = vpack.c.bf16 %v1096_v7, %v1095_v5 }
 0x1d4   : > { %v894_v11 = vpop.f32.mrb[56].mxu0  ;;  %v1022_v12 = vpop.f32.mrb[56].mxu1 }
 0x1d5   : > { %1955 = vst [vmem:[%s2642_s20 + $0x68] sm:$0xff] %v1851_v8   ;;  %1971 = vst [vmem:[%s2642_s20 + $0xe8] sm:$0xff] %v1931_v9   ;;  %v895_v13 = vadd.f32 %v2635_v10, %v894_v11  ;;  %v1023_v14 = vadd.f32 %v2635_v10, %v1022_v12  ;;  %v896_v15 = vpop.f32.mrb[57].mxu0  ;;  %v1024_v16 = vpop.f32.mrb[57].mxu1 }
 0x1d6   : > { %v897_v17 = vpop.f32.mrb[58].mxu0  ;;  %v1025_v18 = vpop.f32.mrb[58].mxu1 }
 0x1d7   : > { %v898_v19 = vadd.f32 %v2635_v10, %v897_v17  ;;  %v1026_v20 = vadd.f32 %v2635_v10, %v1025_v18  ;;  %v899_v21 = vpop.f32.mrb[59].mxu0  ;;  %v1027_v22 = vpop.f32.mrb[59].mxu1  ;;  %v1065_v23 = vmax.f32 %v895_v13, 0.0  ;;  %v1097_v24 = vmax.f32 %v1023_v14, 0.0 }
 0x1d9   : > { %v1066_v25 = vmax.f32 %v898_v19, 0.0  ;;  %v1098_v26 = vmax.f32 %v1026_v20, 0.0 }
 0x1db   : > { %v1856_v27 = vpack.c.bf16 %v1066_v25, %v1065_v23  ;;  %v1936_v28 = vpack.c.bf16 %v1098_v26, %v1097_v24 }
 0x1dc   : > { %v902_v29 = vpop.f32.mrb[60].mxu0  ;;  %v1030_v30 = vpop.f32.mrb[60].mxu1 }
 0x1dd   : > { %1956 = vst [vmem:[%s2642_s20 + $0x70] sm:$0xff] %v1856_v27   ;;  %1972 = vst [vmem:[%s2642_s20 + $0xf0] sm:$0xff] %v1936_v28   ;;  %v903_v31 = vadd.f32 %v2635_v10, %v902_v29  ;;  %v1031_v32 = vadd.f32 %v2635_v10, %v1030_v30  ;;  %v904_v33 = vpop.f32.mrb[61].mxu0  ;;  %v1032_v34 = vpop.f32.mrb[61].mxu1 }
 0x1de   : > { %v905_v35 = vpop.f32.mrb[62].mxu0  ;;  %v1033_v36 = vpop.f32.mrb[62].mxu1 }
 0x1df   : > { %v906_v37 = vadd.f32 %v2635_v10, %v905_v35  ;;  %v1034_v38 = vadd.f32 %v2635_v10, %v1033_v36  ;;  %v907_v39 = vpop.f32.mrb[63].mxu0  ;;  %v1035_v40 = vpop.f32.mrb[63].mxu1  ;;  %v1067_v41 = vmax.f32 %v903_v31, 0.0  ;;  %v1099_v42 = vmax.f32 %v1031_v32, 0.0 }
 0x1e1   : > { %v1068_v43 = vmax.f32 %v906_v37, 0.0  ;;  %v1100_v44 = vmax.f32 %v1034_v38, 0.0 }
 0x1e3   : > { %v1861_v10 = vpack.c.bf16 %v1068_v43, %v1067_v41  ;;  %v1941_v45 = vpack.c.bf16 %v1100_v44, %v1099_v42 }
 0x1e5   : > { %1957 = vst [vmem:[%s2642_s20 + $0x78] sm:$0xff] %v1861_v10   ;;  %1973 = vst [vmem:[%s2642_s20 + $0xf8] sm:$0xff] %v1941_v45  }
 0x1e6   : > { %2270 = shalt.err (!%p2267_p7)
}
 0x1e7   : > { %s2271_s11 = scalar_lea.hbm %s2739_s23, 4096  ;;  %s2275_s29 = scalar_lea.hbm %s2789_s3, 65536 }
 0x1e8   : > { %p2272_p9 = scmp.ne.s32.totalorder %s2739_s23, %s2271_s11  ;;  %p2276_p5 = scmp.lt.u32.totalorder %s2739_s23, %s2789_s3 }
 0x1e9   : > { %p2277_p10 = scmp.lt.u32.totalorder %s2275_s29, %s2271_s11  ;;  %p2279_p1 = scmp.lt.u32.totalorder %s2271_s11, %s2739_s23 }
 0x1ea   : > { %p2273_p12 = pnand %p2272_p9, %p2473_p4 }
 0x1eb   : > { %p2278_p11 = por %p2277_p10, %p2276_p5 }
 0x1ec   : > { %p2274_p0 = pneg %p2273_p12 }
 0x1ed   : > { %p2280_p2 = por %p2279_p1, %p2278_p11 }
 0x1ef   : > { %p2281_p6 = pnand %p2280_p2, %p2274_p0 }
 0x1f1   : > { %2284 = shalt.err (!%p2281_p6)
}
 0x1f2   : > { %s2338_s18 = smov 64   ;;  %s2339_s20 = smov 4  }
 0x1f3   : > { %2002 = dma.vmem_to_hbm [thread:$0]  (%p2473_p4), %s2741_s26, 4096, %s2739_s23, %s1422_s16, %s2338_s18, %s2338_s18, %s2339_s20  }
 0x1f4 PF: > { %p2024_p8 = scmp.ge.s32.totalorder %s2327_s15, 2  ;;  %s1450_s21 = sand.u32 1, %s2315_s12  }
 0x1f5   : > { %p2804_p13 = scmp.ne.s32.totalorder %s2794_s19, 0  ;;  %s1451_s27 = scalar_lea.sflag [#allocation4], %s1450_s21 }
 0x1f7   : > { %p2016_p3 = pnand %p2024_p8, %p2804_p13 }
 0x1f9   : > { %2310 = dma.done.wait (!%p2016_p3), %s1451_s27, 4096  }
 0x1fa   : > { %2312 = vsyncadd (!%p2016_p3), %s1451_s27, 4294963200  ;;  %p17_p7 = scmp.ge.s32.totalorder %s2463_s5, 18   ;;  %s2805_s12 = smov %s2319_s13 }
 0x1fb   : > { %s2806_s13 = smov %s2323_s14  ;;  %s2807_s14 = smov %s2479_s8 }
 0x1fc   : > { %s2808_s15 = smov %s2463_s5  ;;  %19 = sbr.rel (!%p17_p7) target bundleno = 6 (0x6), region = 85 }
 0x203   :  { %1456 = vsyncpa [#allocation3], 1 }
 0x204   :  { %1458 = vsyncpa [#allocation3 + $0x1], 1 }
 0x205   :  { %1459 = vsyncpa [#allocation6], 1 }
 0x206   :  { %1460 = vsyncpa [#allocation4], 1 }
 0x207   :  { %1462 = vsyncpa [#allocation4 + $0x1], 1 }

// kernel: wavenet_forward.10
= control target key start
LH: loop header
LB: loop body
LE: loop exit
PB: predicated region body
PF: predicated region fallthrough
CT: control target
= control target key end

     0   :  { %s4011_s12 = smov 0   ;;  %s4791_s0 = inlined_call_operand.vmem [shape: bf16[4096,576], index: 0, kind: input, shape index: {}]   ;;  %s4792_s1 = inlined_call_operand.vmem [shape: bf16[576,128], index: 1, kind: input, shape index: {}]   ;;  %s4793_s2 = inlined_call_operand.vmem [shape: f32[1,128], index: 2, kind: input, shape index: {}]   ;;  %s4794_s3 = inlined_call_operand.vmem [shape: bf16[4096,128], index: 3, kind: output, shape index: {}]  }
   0x1 LB: > { %s2869_s13 = sadd.s32 4294967295, %s3988_s12   ;;  %p2873_p0 = scmp.ge.s32.totalorder %s3988_s12, 1  ;;  %s3988_s12 = sphi %s4011_s12, %s13_s12  }
   0x2   : > { %p139_p1 = scmp.lt.s32.totalorder %s3988_s12, 9 }
   0x4   : > { %p140_p2 = pnand %p2873_p0, %p139_p1 }
   0x6   : > { %143 = sbr.rel (%p140_p2) target bundleno = 613 (0x265), region = 32 }
   0xd   : > { %v3722_v0 = vld [vmem:[%s4792_s1] sm:$0xff]   ;;  %v3990_v1 = vmov 0   ;;  %s2874_s16 = sshll.u32 %s2869_s13, 6  ;;  %v3723_v2 = vld [vmem:[%s4792_s1 + $0x8] sm:$0xff]   ;;  %v3724_v3 = vld [vmem:[%s4792_s1 + $0x10] sm:$0xff]   ;;  %vm1465_vm0 = vcmask 523264  }
   0xe   : > { %1562 = vmatprep.subr.bf16.mxu0 %v3990_v1  ;;  %3536 = vmatprep.subr.bf16.mxu1 %v3990_v1  ;;  %p165_p3 = scmp.lt.s32.totalorder %s2874_s16, 511  ;;  %v3725_v4 = vld [vmem:[%s4792_s1 + $0x18] sm:$0xff]   ;;  %v3726_v5 = vld [vmem:[%s4792_s1 + $0x20] sm:$0xff]   ;;  %v3727_v7 = vld [vmem:[%s4792_s1 + $0x28] sm:$0xff]  }
   0xf   : > { %1563 = vmatpush1.bf16.msra.mxu0 %v3722_v0  ;;  %3552 = vmatpush1.bf16.msra.mxu1 %v3722_v0  ;;  %v3728_v9 = vld [vmem:[%s4792_s1 + $0x30] sm:$0xff]   ;;  %v3729_v10 = vld [vmem:[%s4792_s1 + $0x38] sm:$0xff]   ;;  %v3730_v11 = vld [vmem:[%s4792_s1 + $0x40] sm:$0xff]  }
  0x10   : > { %1564 = vmatprep.subr.bf16.mxu0 %v3990_v1  ;;  %3537 = vmatprep.subr.bf16.mxu1 %v3990_v1  ;;  %s4832_s16 = smov (!%p165_p3, %s2874_s16), 511  ;;  %v3731_v12 = vld [vmem:[%s4792_s1 + $0x48] sm:$0xff]   ;;  %v3732_v13 = vld [vmem:[%s4792_s1 + $0x50] sm:$0xff]   ;;  %v3733_v14 = vld [vmem:[%s4792_s1 + $0x58] sm:$0xff]  }
  0x11   : > { %s3712_s23 = smul.u32 20, %s4832_s16  ;;  %v3734_v15 = vld [vmem:[%s4792_s1 + $0x60] sm:$0xff]   ;;  %v3735_v16 = vld [vmem:[%s4792_s1 + $0x68] sm:$0xff]   ;;  %v3736_v17 = vld [vmem:[%s4792_s1 + $0x70] sm:$0xff]   ;;  %s2877_s19 = sshll.u32 %s4832_s16, 2 }
  0x12   : > { %v3737_v18 = vld [vmem:[%s4792_s1 + $0x78] sm:$0xff]   ;;  %v3745_v19 = vld [vmem:[%s4792_s1 + $0x100] sm:$0xff]   ;;  %v3794_v25 = vld [vmem:[%s4792_s1 + $0x108] sm:$0xff]   ;;  %s4592_s22 = scalar_lea.vmem %s4794_s3, %s2877_s19 }
  0x13   : > { %1565 = vmatpush1.bf16.msra.mxu0 %v3723_v2  ;;  %3553 = vmatpush1.bf16.msra.mxu1 %v3723_v2  ;;  %s4048_s28 = scalar_lea.vmem %s4791_s0, %s3712_s23  ;;  %v3744_v22 = vld [vmem:[%s4792_s1 + $0x80] sm:$0xff]   ;;  %v3746_v26 = vld [vmem:[%s4792_s1 + $0x88] sm:$0xff]   ;;  %v3753_v29 = vld [vmem:[%s4792_s1 + $0x90] sm:$0xff]  }
  0x14   : > { %1566 = vmatprep.subr.bf16.mxu0 %v3990_v1  ;;  %3538 = vmatprep.subr.bf16.mxu1 %v3990_v1  ;;  %v3740_v6 = vld [vmem:[%s4048_s28 + $0x4] ss:$20 sps:$4 sm:$0xff]   ;;  %v3738_v20 = vld [vmem:[%s4048_s28] ss:$20 sps:$4 sm:$0xff]   ;;  %v3751_v27 = vld [vmem:[%s4048_s28 + $0x28] ss:$20 sps:$4 sm:$0xff]  }
  0x15   : > { %v3743_v8 = vld [vmem:[%s4048_s28 + $0x144] ss:$20 sps:$4 sm:$0xff]   ;;  %1594 = vmatprep.mubr.bf16.mxu0 %v3740_v6  ;;  %v3741_v21 = vld [vmem:[%s4048_s28 + $0x140] ss:$20 sps:$4 sm:$0xff]   ;;  %v3752_v28 = vld [vmem:[%s4048_s28 + $0x168] ss:$20 sps:$4 sm:$0xff]  }
  0x16   : > { %1658 = vmatprep.mubr.bf16.mxu1 %v3743_v8  ;;  %v3747_v23 = vld [vmem:[%s4048_s28 + $0x2c] ss:$20 sps:$4 sm:$0xff]   ;;  %v3834_v30 = vld [vmem:[%s4792_s1 + $0x110] sm:$0xff]   ;;  %v3754_v33 = vld [vmem:[%s4792_s1 + $0x98] sm:$0xff]  }
  0x17   : > { %1567 = vmatpush1.bf16.msra.mxu0 %v3724_v3  ;;  %3554 = vmatpush1.bf16.msra.mxu1 %v3724_v3  ;;  %v3749_v24 = vld [vmem:[%s4048_s28 + $0x16c] ss:$20 sps:$4 sm:$0xff]   ;;  %v3755_v31 = vld [vmem:[%s4048_s28 + $0x54] ss:$20 sps:$4 sm:$0xff]   ;;  %v3759_v34 = vld [vmem:[%s4048_s28 + $0x50] ss:$20 sps:$4 sm:$0xff]  }
  0x18   : > { %1568 = vmatprep.subr.bf16.mxu0 %v3990_v1  ;;  %3539 = vmatprep.subr.bf16.mxu1 %v3990_v1  ;;  %v3757_v32 = vld [vmem:[%s4048_s28 + $0x194] ss:$20 sps:$4 sm:$0xff]   ;;  %v3760_v35 = vld [vmem:[%s4048_s28 + $0x190] ss:$20 sps:$4 sm:$0xff]   ;;  %v3767_v40 = vld [vmem:[%s4048_s28 + $0x78] ss:$20 sps:$4 sm:$0xff]  }
  0x19   : > { %v3761_v36 = vld [vmem:[%s4792_s1 + $0xa0] sm:$0xff]   ;;  %v3763_v37 = vld [vmem:[%s4048_s28 + $0x7c] ss:$20 sps:$4 sm:$0xff]   ;;  %v3762_v39 = vld [vmem:[%s4792_s1 + $0xa8] sm:$0xff]  }
  0x1a   : > { %v3765_v38 = vld [vmem:[%s4048_s28 + $0x1bc] ss:$20 sps:$4 sm:$0xff]   ;;  %v3768_v41 = vld [vmem:[%s4048_s28 + $0x1b8] ss:$20 sps:$4 sm:$0xff]   ;;  %v3775_v47 = vld [vmem:[%s4048_s28 + $0xa0] ss:$20 sps:$4 sm:$0xff]  }
  0x1b   : > { %1569 = vmatpush1.bf16.msra.mxu0 %v3725_v4  ;;  %3555 = vmatpush1.bf16.msra.mxu1 %v3725_v4  ;;  %v3769_v42 = vld [vmem:[%s4792_s1 + $0xb0] sm:$0xff]   ;;  %v3771_v43 = vld [vmem:[%s4048_s28 + $0xa4] ss:$20 sps:$4 sm:$0xff]   ;;  %v3779_v50 = vld [vmem:[%s4048_s28 + $0xcc] ss:$20 sps:$4 sm:$0xff]  }
  0x1c   : > { %1570 = vmatprep.subr.bf16.mxu0 %v3990_v1  ;;  %3540 = vmatprep.subr.bf16.mxu1 %v3990_v1  ;;  %v3871_v44 = vld [vmem:[%s4792_s1 + $0x118] sm:$0xff]   ;;  %v3776_v48 = vld [vmem:[%s4048_s28 + $0x1e0] ss:$20 sps:$4 sm:$0xff]   ;;  %v3778_v52 = vld [vmem:[%s4792_s1 + $0xc8] sm:$0xff]  }
  0x1d   : > { %v3773_v45 = vld [vmem:[%s4048_s28 + $0x1e4] ss:$20 sps:$4 sm:$0xff]   ;;  %v3781_v51 = vld [vmem:[%s4048_s28 + $0x20c] ss:$20 sps:$4 sm:$0xff]   ;;  %v3783_v53 = vld [vmem:[%s4048_s28 + $0xc8] ss:$20 sps:$4 sm:$0xff]  }
  0x1e   : > { %v3770_v46 = vld [vmem:[%s4792_s1 + $0xb8] sm:$0xff]   ;;  %v3777_v49 = vld [vmem:[%s4792_s1 + $0xc0] sm:$0xff]   ;;  %v3785_v55 = vld [vmem:[%s4792_s1 + $0xd0] sm:$0xff]  }
  0x1f   : > { %1571 = vmatpush1.bf16.msra.mxu0 %v3726_v5  ;;  %3556 = vmatpush1.bf16.msra.mxu1 %v3726_v5  ;;  %v3784_v54 = vld [vmem:[%s4048_s28 + $0x208] ss:$20 sps:$4 sm:$0xff]   ;;  %v3791_v59 = vld [vmem:[%s4048_s28 + $0xf0] ss:$20 sps:$4 sm:$0xff]   ;;  %v3800_v2 = vld [vmem:[%s4048_s28 + $0x118] ss:$20 sps:$4 sm:$0xff]  }
  0x20   : > { %1572 = vmatprep.subr.bf16.mxu0 %v3990_v1  ;;  %3541 = vmatprep.subr.bf16.mxu1 %v3990_v1  ;;  %v3787_v56 = vld [vmem:[%s4048_s28 + $0xf4] ss:$20 sps:$4 sm:$0xff]   ;;  %v3786_v58 = vld [vmem:[%s4792_s1 + $0xd8] sm:$0xff]   ;;  %v3792_v60 = vld [vmem:[%s4048_s28 + $0x230] ss:$20 sps:$4 sm:$0xff]  }
  0x21   : > { %v3789_v57 = vld [vmem:[%s4048_s28 + $0x234] ss:$20 sps:$4 sm:$0xff]   ;;  %v3793_v61 = vld [vmem:[%s4792_s1 + $0xe0] sm:$0xff]   ;;  %v3796_v62 = vld [vmem:[%s4048_s28 + $0x11c] ss:$20 sps:$4 sm:$0xff]  }
  0x22   : > { %v3798_v63 = vld [vmem:[%s4048_s28 + $0x25c] ss:$20 sps:$4 sm:$0xff]   ;;  %v3795_v0 = vld [vmem:[%s4792_s1 + $0xe8] sm:$0xff]   ;;  %v3804_v5 = vld [vmem:[%s4048_s28 + $0x284] ss:$20 sps:$4 sm:$0xff]  }
  0x23   : > { %1573 = vmatpush1.bf16.msra.mxu0 %v3727_v7  ;;  %3557 = vmatpush1.bf16.msra.mxu1 %v3727_v7  ;;  %v3801_v3 = vld [vmem:[%s4048_s28 + $0x258] ss:$20 sps:$4 sm:$0xff]   ;;  %v3802_v4 = vld [vmem:[%s4792_s1 + $0xf0] sm:$0xff]   ;;  %v3806_v8 = vld [vmem:[%s4048_s28 + $0x8] ss:$20 sps:$4 sm:$0xff]  }
  0x24   : > { %1574 = vmatprep.subr.bf16.mxu0 %v3990_v1  ;;  %3542 = vmatprep.subr.bf16.mxu1 %v3990_v1  ;;  %v3808_v6 = vld [vmem:[%s4048_s28 + $0xc] ss:$20 sps:$4 sm:$0xff]   ;;  %v3803_v7 = vld [vmem:[%s4792_s1 + $0xf8] sm:$0xff]  }
  0x27   : > { %1575 = vmatpush1.bf16.msra.mxu0 %v3728_v9  ;;  %3558 = vmatpush1.bf16.msra.mxu1 %v3728_v9  ;;  %v3809_v9 = vld [vmem:[%s4048_s28 + $0x280] ss:$20 sps:$4 sm:$0xff]  }
  0x28   : > { %1576 = vmatprep.subr.bf16.mxu0 %v3990_v1  ;;  %3543 = vmatprep.subr.bf16.mxu1 %v3990_v1 }
  0x2b   : > { %1577 = vmatpush1.bf16.msra.mxu0 %v3729_v10  ;;  %3559 = vmatpush1.bf16.msra.mxu1 %v3729_v10  ;;  %v3810_v10 = vld [vmem:[%s4048_s28 + $0x2ac] ss:$20 sps:$4 sm:$0xff]  }
  0x2c   : > { %1578 = vmatprep.subr.bf16.mxu0 %v3990_v1  ;;  %3544 = vmatprep.subr.bf16.mxu1 %v3990_v1 }
  0x2f   : > { %1579 = vmatpush1.bf16.msra.mxu0 %v3730_v11  ;;  %3560 = vmatpush1.bf16.msra.mxu1 %v3730_v11  ;;  %v3812_v11 = vld [vmem:[%s4048_s28 + $0x34] ss:$20 sps:$4 sm:$0xff]  }
  0x30   : > { %1580 = vmatprep.subr.bf16.mxu0 %v3990_v1  ;;  %3545 = vmatprep.subr.bf16.mxu1 %v3990_v1 }
  0x33   : > { %1581 = vmatpush1.bf16.msra.mxu0 %v3731_v12  ;;  %3561 = vmatpush1.bf16.msra.mxu1 %v3731_v12  ;;  %v3814_v12 = vld [vmem:[%s4048_s28 + $0x2a8] ss:$20 sps:$4 sm:$0xff]  }
  0x34   : > { %1582 = vmatprep.subr.bf16.mxu0 %v3990_v1  ;;  %3546 = vmatprep.subr.bf16.mxu1 %v3990_v1 }
  0x37   : > { %1583 = vmatpush1.bf16.msra.mxu0 %v3732_v13  ;;  %3562 = vmatpush1.bf16.msra.mxu1 %v3732_v13  ;;  %v3815_v13 = vld [vmem:[%s4048_s28 + $0x30] ss:$20 sps:$4 sm:$0xff]  }
  0x38   : > { %1584 = vmatprep.subr.bf16.mxu0 %v3990_v1  ;;  %3547 = vmatprep.subr.bf16.mxu1 %v3990_v1 }
  0x3b   : > { %1585 = vmatpush1.bf16.msra.mxu0 %v3733_v14  ;;  %3563 = vmatpush1.bf16.msra.mxu1 %v3733_v14  ;;  %v3816_v14 = vld [vmem:[%s4048_s28 + $0x2d4] ss:$20 sps:$4 sm:$0xff]  }
  0x3c   : > { %1586 = vmatprep.subr.bf16.mxu0 %v3990_v1  ;;  %3548 = vmatprep.subr.bf16.mxu1 %v3990_v1 }
  0x3f   : > { %1587 = vmatpush1.bf16.msra.mxu0 %v3734_v15  ;;  %3564 = vmatpush1.bf16.msra.mxu1 %v3734_v15  ;;  %v3820_v15 = vld [vmem:[%s4048_s28 + $0x2d0] ss:$20 sps:$4 sm:$0xff]  }
  0x40   : > { %1588 = vmatprep.subr.bf16.mxu0 %v3990_v1  ;;  %3549 = vmatprep.subr.bf16.mxu1 %v3990_v1 }
  0x43   : > { %1589 = vmatpush1.bf16.msra.mxu0 %v3735_v16  ;;  %3565 = vmatpush1.bf16.msra.mxu1 %v3735_v16  ;;  %v3821_v16 = vld [vmem:[%s4048_s28 + $0x58] ss:$20 sps:$4 sm:$0xff]  }
  0x44   : > { %1590 = vmatprep.subr.bf16.mxu0 %v3990_v1  ;;  %3550 = vmatprep.subr.bf16.mxu1 %v3990_v1 }
  0x47   : > { %1591 = vmatpush1.bf16.msra.mxu0 %v3736_v17  ;;  %3566 = vmatpush1.bf16.msra.mxu1 %v3736_v17  ;;  %v3822_v17 = vld [vmem:[%s4048_s28 + $0x2fc] ss:$20 sps:$4 sm:$0xff]  }
  0x48   : > { %1592 = vmatprep.subr.bf16.mxu0 %v3990_v1  ;;  %3551 = vmatprep.subr.bf16.mxu1 %v3990_v1 }
  0x4b   : > { %1593 = vmatpush1.bf16.msra.mxu0 %v3737_v18  ;;  %3567 = vmatpush1.bf16.msra.mxu1 %v3737_v18  ;;  %v3824_v18 = vld [vmem:[%s4048_s28 + $0x84] ss:$20 sps:$4 sm:$0xff]  }
  0x4c   : > { %1851 = vmatprep.subr.bf16.mxu0 %v3990_v1  ;;  %3464 = vmatprep.subr.bf16.mxu1 %v3745_v19 }
  0x4e   : > { %1595 = vmatmul.mubr.bf16.vlgmr.msra.gmra.mrb[0].mxu0 %v3738_v20  ;;  %1659 = vmatmul.mubr.bf16.vlgmr.msra.gmra.mrb[0].mxu1 %v3741_v21  ;;  %v3827_v20 = vld [vmem:[%s4048_s28 + $0x80] ss:$20 sps:$4 sm:$0xff]   ;;  %v3828_v21 = vld [vmem:[%s4048_s28 + $0x324] ss:$20 sps:$4 sm:$0xff]  }
  0x4f   : > { %1852 = vmatpush1.bf16.msra.mxu0 %v3744_v22  ;;  %3465 = vmatpush3.bf16.msra.mxu1 %v3745_v19  ;;  %v3826_v19 = vld [vmem:[%s4048_s28 + $0x2f8] ss:$20 sps:$4 sm:$0xff]  }
  0x50   : > { %1853 = vmatprep.subr.bf16.mxu0 %v3990_v1  ;;  %1602 = vmatprep.mubr.bf16.mxu0 %v3747_v23  ;;  %v3830_v22 = vld [vmem:[%s4048_s28 + $0xac] ss:$20 sps:$4 sm:$0xff]  }
  0x51   : > { %1666 = vmatprep.mubr.bf16.mxu1 %v3749_v24  ;;  %3466 = vmatprep.subr.bf16.mxu1 %v3794_v25  ;;  %v3832_v23 = vld [vmem:[%s4048_s28 + $0x320] ss:$20 sps:$4 sm:$0xff]   ;;  %v3833_v24 = vld [vmem:[%s4048_s28 + $0xa8] ss:$20 sps:$4 sm:$0xff]  }
  0x53   : > { %1854 = vmatpush1.bf16.msra.mxu0 %v3746_v26  ;;  %3467 = vmatpush3.bf16.msra.mxu1 %v3794_v25  ;;  %v3835_v25 = vld [vmem:[%s4048_s28 + $0x34c] ss:$20 sps:$4 sm:$0xff]   ;;  %v3837_v26 = vld [vmem:[%s4048_s28 + $0xd4] ss:$20 sps:$4 sm:$0xff]  }
  0x54   : > { %1855 = vmatprep.subr.bf16.mxu0 %v3990_v1  ;;  %3468 = vmatprep.subr.bf16.mxu1 %v3834_v30 }
  0x56   : > { %1603 = vmatmul.mubr.bf16.gmra.mrb[4].mxu0 %v3751_v27  ;;  %1667 = vmatmul.mubr.bf16.gmra.mrb[4].mxu1 %v3752_v28  ;;  %v3839_v27 = vld [vmem:[%s4048_s28 + $0x348] ss:$20 sps:$4 sm:$0xff]   ;;  %v3840_v28 = vld [vmem:[%s4048_s28 + $0xd0] ss:$20 sps:$4 sm:$0xff]  }
  0x57   : > { %1856 = vmatpush1.bf16.msra.mxu0 %v3753_v29  ;;  %1610 = vmatprep.mubr.bf16.mxu0 %v3755_v31  ;;  %v3841_v29 = vld [vmem:[%s4048_s28 + $0x374] ss:$20 sps:$4 sm:$0xff]   ;;  %v3845_v31 = vld [vmem:[%s4048_s28 + $0x370] ss:$20 sps:$4 sm:$0xff]  }
  0x58   : > { %1857 = vmatprep.subr.bf16.mxu0 %v3990_v1  ;;  %1674 = vmatprep.mubr.bf16.mxu1 %v3757_v32  ;;  %v3846_v32 = vld [vmem:[%s4048_s28 + $0xf8] ss:$20 sps:$4 sm:$0xff]  }
  0x59   : > { %3469 = vmatpush3.bf16.msra.mxu1 %v3834_v30  ;;  %v3843_v30 = vld [vmem:[%s4048_s28 + $0xfc] ss:$20 sps:$4 sm:$0xff]  }
  0x5a   : > { %3470 = vmatprep.subr.bf16.mxu1 %v3871_v44 }
  0x5b   : > { %1858 = vmatpush1.bf16.msra.mxu0 %v3754_v33  ;;  %v3847_v33 = vld [vmem:[%s4048_s28 + $0x39c] ss:$20 sps:$4 sm:$0xff]  }
  0x5c   : > { %1859 = vmatprep.subr.bf16.mxu0 %v3990_v1 }
  0x5d   : > { %3471 = vmatpush3.bf16.msra.mxu1 %v3871_v44  ;;  %v3864_v44 = vld [vmem:[%s4048_s28 + $0x170] ss:$20 sps:$4 sm:$0xff]  }
  0x5e   : > { %1611 = vmatmul.mubr.bf16.gmra.mrb[8].mxu0 %v3759_v34  ;;  %1675 = vmatmul.mubr.bf16.gmra.mrb[8].mxu1 %v3760_v35  ;;  %v3849_v34 = vld [vmem:[%s4048_s28 + $0x124] ss:$20 sps:$4 sm:$0xff]  }
  0x5f   : > { %1860 = vmatpush1.bf16.msra.mxu0 %v3761_v36  ;;  %1618 = vmatprep.mubr.bf16.mxu0 %v3763_v37  ;;  %v3851_v35 = vld [vmem:[%s4048_s28 + $0x398] ss:$20 sps:$4 sm:$0xff]   ;;  %v3852_v36 = vld [vmem:[%s4048_s28 + $0x120] ss:$20 sps:$4 sm:$0xff]  }
  0x60   : > { %1861 = vmatprep.subr.bf16.mxu0 %v3990_v1  ;;  %1682 = vmatprep.mubr.bf16.mxu1 %v3765_v38  ;;  %v3853_v37 = vld [vmem:[%s4048_s28 + $0x3c4] ss:$20 sps:$4 sm:$0xff]   ;;  %v3855_v38 = vld [vmem:[%s4048_s28 + $0x14c] ss:$20 sps:$4 sm:$0xff]  }
  0x63   : > { %1862 = vmatpush1.bf16.msra.mxu0 %v3762_v39  ;;  %v3857_v39 = vld [vmem:[%s4048_s28 + $0x3c0] ss:$20 sps:$4 sm:$0xff]  }
  0x64   : > { %1863 = vmatprep.subr.bf16.mxu0 %v3990_v1 }
  0x66   : > { %1619 = vmatmul.mubr.bf16.gmra.mrb[12].mxu0 %v3767_v40  ;;  %1683 = vmatmul.mubr.bf16.gmra.mrb[12].mxu1 %v3768_v41  ;;  %v3858_v40 = vld [vmem:[%s4048_s28 + $0x148] ss:$20 sps:$4 sm:$0xff]   ;;  %v3859_v41 = vld [vmem:[%s4048_s28 + $0x3ec] ss:$20 sps:$4 sm:$0xff]  }
  0x67   : > { %1864 = vmatpush1.bf16.msra.mxu0 %v3769_v42  ;;  %1626 = vmatprep.mubr.bf16.mxu0 %v3771_v43  ;;  %v3861_v42 = vld [vmem:[%s4048_s28 + $0x174] ss:$20 sps:$4 sm:$0xff]  }
  0x68   : > { %1865 = vmatprep.subr.bf16.mxu0 %v3990_v1  ;;  %1690 = vmatprep.mubr.bf16.mxu1 %v3773_v45  ;;  %v3863_v43 = vld [vmem:[%s4048_s28 + $0x3e8] ss:$20 sps:$4 sm:$0xff]  }
  0x69   : > { %v3865_v45 = vld [vmem:[%s4048_s28 + $0x414] ss:$20 sps:$4 sm:$0xff]  }
  0x6b   : > { %1866 = vmatpush1.bf16.msra.mxu0 %v3770_v46  ;;  %v3867_v46 = vld [vmem:[%s4048_s28 + $0x19c] ss:$20 sps:$4 sm:$0xff]  }
  0x6c   : > { %1867 = vmatprep.subr.bf16.mxu0 %v3990_v1 }
  0x6e   : > { %1627 = vmatmul.mubr.bf16.gmra.mrb[16].mxu0 %v3775_v47  ;;  %1691 = vmatmul.mubr.bf16.gmra.mrb[16].mxu1 %v3776_v48  ;;  %v3869_v47 = vld [vmem:[%s4048_s28 + $0x410] ss:$20 sps:$4 sm:$0xff]   ;;  %v3870_v48 = vld [vmem:[%s4048_s28 + $0x198] ss:$20 sps:$4 sm:$0xff]  }
  0x6f   : > { %1868 = vmatpush1.bf16.msra.mxu0 %v3777_v49  ;;  %1634 = vmatprep.mubr.bf16.mxu0 %v3779_v50  ;;  %v3872_v49 = vld [vmem:[%s4048_s28 + $0x43c] ss:$20 sps:$4 sm:$0xff]   ;;  %v3874_v50 = vld [vmem:[%s4048_s28 + $0x1c4] ss:$20 sps:$4 sm:$0xff]  }
  0x70   : > { %1869 = vmatprep.subr.bf16.mxu0 %v3990_v1  ;;  %1698 = vmatprep.mubr.bf16.mxu1 %v3781_v51  ;;  %v3876_v51 = vld [vmem:[%s4048_s28 + $0x438] ss:$20 sps:$4 sm:$0xff]  }
  0x73   : > { %1870 = vmatpush1.bf16.msra.mxu0 %v3778_v52  ;;  %v3877_v52 = vld [vmem:[%s4048_s28 + $0x1c0] ss:$20 sps:$4 sm:$0xff]  }
  0x74   : > { %1871 = vmatprep.subr.bf16.mxu0 %v3990_v1 }
  0x76   : > { %1635 = vmatmul.mubr.bf16.gmra.mrb[20].mxu0 %v3783_v53  ;;  %1699 = vmatmul.mubr.bf16.gmra.mrb[20].mxu1 %v3784_v54  ;;  %v3878_v53 = vld [vmem:[%s4048_s28 + $0x464] ss:$20 sps:$4 sm:$0xff]   ;;  %v3880_v54 = vld [vmem:[%s4048_s28 + $0x1ec] ss:$20 sps:$4 sm:$0xff]  }
  0x77   : > { %1872 = vmatpush1.bf16.msra.mxu0 %v3785_v55  ;;  %1642 = vmatprep.mubr.bf16.mxu0 %v3787_v56  ;;  %v3882_v55 = vld [vmem:[%s4048_s28 + $0x460] ss:$20 sps:$4 sm:$0xff]   ;;  %v3883_v56 = vld [vmem:[%s4048_s28 + $0x1e8] ss:$20 sps:$4 sm:$0xff]  }
  0x78   : > { %1873 = vmatprep.subr.bf16.mxu0 %v3990_v1  ;;  %1706 = vmatprep.mubr.bf16.mxu1 %v3789_v57  ;;  %v3884_v57 = vld [vmem:[%s4048_s28 + $0x48c] ss:$20 sps:$4 sm:$0xff]  }
  0x7b   : > { %1874 = vmatpush1.bf16.msra.mxu0 %v3786_v58  ;;  %v3886_v58 = vld [vmem:[%s4048_s28 + $0x214] ss:$20 sps:$4 sm:$0xff]  }
  0x7c   : > { %1875 = vmatprep.subr.bf16.mxu0 %v3990_v1 }
  0x7e   : > { %1643 = vmatmul.mubr.bf16.gmra.mrb[24].mxu0 %v3791_v59  ;;  %1707 = vmatmul.mubr.bf16.gmra.mrb[24].mxu1 %v3792_v60  ;;  %v3888_v59 = vld [vmem:[%s4048_s28 + $0x488] ss:$20 sps:$4 sm:$0xff]   ;;  %v3889_v60 = vld [vmem:[%s4048_s28 + $0x210] ss:$20 sps:$4 sm:$0xff]  }
  0x7f   : > { %1876 = vmatpush1.bf16.msra.mxu0 %v3793_v61  ;;  %1650 = vmatprep.mubr.bf16.mxu0 %v3796_v62  ;;  %v3890_v61 = vld [vmem:[%s4048_s28 + $0x4b4] ss:$20 sps:$4 sm:$0xff]   ;;  %v3892_v62 = vld [vmem:[%s4048_s28 + $0x23c] ss:$20 sps:$4 sm:$0xff]  }
  0x80   : > { %1877 = vmatprep.subr.bf16.mxu0 %v3990_v1  ;;  %1714 = vmatprep.mubr.bf16.mxu1 %v3798_v63  ;;  %v3894_v63 = vld [vmem:[%s4048_s28 + $0x4b0] ss:$20 sps:$4 sm:$0xff]  }
  0x83   : > { %1878 = vmatpush1.bf16.msra.mxu0 %v3795_v0  ;;  %v3895_v0 = vld [vmem:[%s4048_s28 + $0x238] ss:$20 sps:$4 sm:$0xff]  }
  0x84   : > { %1879 = vmatprep.subr.bf16.mxu0 %v3990_v1 }
  0x86   : > { %1651 = vmatmul.mubr.bf16.gmra.mrb[28].mxu0 %v3800_v2  ;;  %1715 = vmatmul.mubr.bf16.gmra.mrb[28].mxu1 %v3801_v3  ;;  %v3896_v2 = vld [vmem:[%s4048_s28 + $0x4dc] ss:$20 sps:$4 sm:$0xff]   ;;  %v3898_v3 = vld [vmem:[%s4048_s28 + $0x264] ss:$20 sps:$4 sm:$0xff]  }
  0x87   : > { %1880 = vmatpush1.bf16.msra.mxu0 %v3802_v4  ;;  %1722 = vmatprep.mubr.bf16.mxu1 %v3804_v5  ;;  %v3900_v4 = vld [vmem:[%s4048_s28 + $0x4d8] ss:$20 sps:$4 sm:$0xff]   ;;  %v3901_v5 = vld [vmem:[%s4048_s28 + $0x260] ss:$20 sps:$4 sm:$0xff]  }
  0x88   : > { %1881 = vmatprep.subr.bf16.mxu0 %v3990_v1  ;;  %1883 = vmatprep.mubr.bf16.mxu0 %v3808_v6  ;;  %v3818_v1 = vld [vmem:[%s4048_s28 + $0x5c] ss:$20 sps:$4 sm:$0xff]   ;;  %v3902_v6 = vld [vmem:[%s4048_s28 + $0x28c] ss:$20 sps:$4 sm:$0xff]  }
  0x8b   : > { %1882 = vmatpush1.bf16.msra.mxu0 %v3803_v7  ;;  %v3904_v7 = vld [vmem:[%s4048_s28 + $0x10] ss:$20 sps:$4 sm:$0xff]  }
  0x8e   : > { %1723 = vmatmul.mubr.bf16.gmra.mrb[32].mxu1 %v3809_v9  ;;  %1884 = vmatmul.mubr.bf16.vlgmr.msra.gmra.mrb[0].mxu0 %v3806_v8  ;;  %v3905_v8 = vld [vmem:[%s4048_s28 + $0x288] ss:$20 sps:$4 sm:$0xff]   ;;  %v3906_v9 = vld [vmem:[%s4048_s28 + $0x38] ss:$20 sps:$4 sm:$0xff]  }
  0x8f   : > { %1730 = vmatprep.mubr.bf16.mxu1 %v3810_v10  ;;  %1891 = vmatprep.mubr.bf16.mxu0 %v3812_v11  ;;  %v3907_v10 = vld [vmem:[%s4048_s28 + $0x2b4] ss:$20 sps:$4 sm:$0xff]  }
  0x90   : > { %v3909_v11 = vld [vmem:[%s4048_s28 + $0x60] ss:$20 sps:$4 sm:$0xff]  }
  0x96   : > { %1731 = vmatmul.mubr.bf16.gmra.mrb[36].mxu1 %v3814_v12  ;;  %1892 = vmatmul.mubr.bf16.gmra.mrb[4].mxu0 %v3815_v13  ;;  %v3910_v12 = vld [vmem:[%s4048_s28 + $0x2b0] ss:$20 sps:$4 sm:$0xff]   ;;  %v3911_v13 = vld [vmem:[%s4048_s28 + $0x88] ss:$20 sps:$4 sm:$0xff]  }
  0x97   : > { %1738 = vmatprep.mubr.bf16.mxu1 %v3816_v14  ;;  %1899 = vmatprep.mubr.bf16.mxu0 %v3818_v1  ;;  %v3912_v14 = vld [vmem:[%s4048_s28 + $0x2dc] ss:$20 sps:$4 sm:$0xff]  }
  0x98   : > { %v3914_v1 = vld [vmem:[%s4048_s28 + $0xb0] ss:$20 sps:$4 sm:$0xff]  }
  0x9e   : > { %1739 = vmatmul.mubr.bf16.gmra.mrb[40].mxu1 %v3820_v15  ;;  %1900 = vmatmul.mubr.bf16.gmra.mrb[8].mxu0 %v3821_v16  ;;  %v3915_v15 = vld [vmem:[%s4048_s28 + $0x2d8] ss:$20 sps:$4 sm:$0xff]  }
  0x9f   : > { %1746 = vmatprep.mubr.bf16.mxu1 %v3822_v17  ;;  %1907 = vmatprep.mubr.bf16.mxu0 %v3824_v18  ;;  %v3916_v16 = vld [vmem:[%s4048_s28 + $0xd8] ss:$20 sps:$4 sm:$0xff]   ;;  %v3919_v18 = vld [vmem:[%s4048_s28 + $0x100] ss:$20 sps:$4 sm:$0xff]  }
  0xa0   : > { %v3917_v17 = vld [vmem:[%s4048_s28 + $0x304] ss:$20 sps:$4 sm:$0xff]  }
  0xa6   : > { %1747 = vmatmul.mubr.bf16.gmra.mrb[44].mxu1 %v3826_v19  ;;  %1908 = vmatmul.mubr.bf16.gmra.mrb[12].mxu0 %v3827_v20 }
  0xa7   : > { %1754 = vmatprep.mubr.bf16.mxu1 %v3828_v21  ;;  %1915 = vmatprep.mubr.bf16.mxu0 %v3830_v22  ;;  %v3920_v21 = vld [vmem:[%s4048_s28 + $0x300] ss:$20 sps:$4 sm:$0xff]   ;;  %v3921_v22 = vld [vmem:[%s4048_s28 + $0x128] ss:$20 sps:$4 sm:$0xff]  }
  0xae   : > { %1755 = vmatmul.mubr.bf16.gmra.mrb[48].mxu1 %v3832_v23  ;;  %1916 = vmatmul.mubr.bf16.gmra.mrb[16].mxu0 %v3833_v24  ;;  %v3922_v24 = vld [vmem:[%s4048_s28 + $0x32c] ss:$20 sps:$4 sm:$0xff]  }
  0xaf   : > { %1762 = vmatprep.mubr.bf16.mxu1 %v3835_v25  ;;  %1923 = vmatprep.mubr.bf16.mxu0 %v3837_v26  ;;  %v3924_v25 = vld [vmem:[%s4048_s28 + $0x150] ss:$20 sps:$4 sm:$0xff]  }
  0xb6   : > { %1763 = vmatmul.mubr.bf16.gmra.mrb[52].mxu1 %v3839_v27  ;;  %1924 = vmatmul.mubr.bf16.gmra.mrb[20].mxu0 %v3840_v28 }
  0xb7   : > { %1770 = vmatprep.mubr.bf16.mxu1 %v3841_v29  ;;  %1931 = vmatprep.mubr.bf16.mxu0 %v3843_v30  ;;  %v3925_v29 = vld [vmem:[%s4048_s28 + $0x328] ss:$20 sps:$4 sm:$0xff]   ;;  %v3926_v30 = vld [vmem:[%s4048_s28 + $0x178] ss:$20 sps:$4 sm:$0xff]  }
  0xbe   : > { %1771 = vmatmul.mubr.bf16.gmra.mrb[56].mxu1 %v3845_v31  ;;  %1932 = vmatmul.mubr.bf16.gmra.mrb[24].mxu0 %v3846_v32  ;;  %v3927_v32 = vld [vmem:[%s4048_s28 + $0x354] ss:$20 sps:$4 sm:$0xff]  }
  0xbf   : > { %1778 = vmatprep.mubr.bf16.mxu1 %v3847_v33  ;;  %1939 = vmatprep.mubr.bf16.mxu0 %v3849_v34  ;;  %v3929_v33 = vld [vmem:[%s4048_s28 + $0x1a0] ss:$20 sps:$4 sm:$0xff]  }
  0xc6   : > { %1779 = vmatmul.mubr.bf16.gmra.mrb[60].mxu1 %v3851_v35  ;;  %1940 = vmatmul.mubr.bf16.gmra.mrb[28].mxu0 %v3852_v36 }
  0xc7   : > { %1786 = vmatprep.mubr.bf16.mxu1 %v3853_v37  ;;  %1947 = vmatprep.mubr.bf16.mxu0 %v3855_v38  ;;  %v3930_v37 = vld [vmem:[%s4048_s28 + $0x350] ss:$20 sps:$4 sm:$0xff]   ;;  %v3931_v38 = vld [vmem:[%s4048_s28 + $0x1c8] ss:$20 sps:$4 sm:$0xff]  }
  0xce   : > { %1787 = vmatmul.mubr.bf16.gmra.mrb[64].mxu1 %v3857_v39  ;;  %1948 = vmatmul.mubr.bf16.gmra.mrb[32].mxu0 %v3858_v40  ;;  %v3932_v40 = vld [vmem:[%s4048_s28 + $0x37c] ss:$20 sps:$4 sm:$0xff]  }
  0xcf   : > { %1794 = vmatprep.mubr.bf16.mxu1 %v3859_v41  ;;  %1955 = vmatprep.mubr.bf16.mxu0 %v3861_v42  ;;  %v3934_v41 = vld [vmem:[%s4048_s28 + $0x1f0] ss:$20 sps:$4 sm:$0xff]  }
  0xd6   : > { %1795 = vmatmul.mubr.bf16.gmra.mrb[68].mxu1 %v3863_v43  ;;  %1956 = vmatmul.mubr.bf16.gmra.mrb[36].mxu0 %v3864_v44 }
  0xd7   : > { %1802 = vmatprep.mubr.bf16.mxu1 %v3865_v45  ;;  %1963 = vmatprep.mubr.bf16.mxu0 %v3867_v46  ;;  %v3935_v45 = vld [vmem:[%s4048_s28 + $0x378] ss:$20 sps:$4 sm:$0xff]  }
  0xd8   : > { %v3936_v46 = vld [vmem:[%s4048_s28 + $0x218] ss:$20 sps:$4 sm:$0xff]  }
  0xde   : > { %1803 = vmatmul.mubr.bf16.gmra.mrb[72].mxu1 %v3869_v47  ;;  %1964 = vmatmul.mubr.bf16.gmra.mrb[40].mxu0 %v3870_v48  ;;  %v3937_v48 = vld [vmem:[%s4048_s28 + $0x3a4] ss:$20 sps:$4 sm:$0xff]  }
  0xdf   : > { %1810 = vmatprep.mubr.bf16.mxu1 %v3872_v49  ;;  %1971 = vmatprep.mubr.bf16.mxu0 %v3874_v50  ;;  %v3939_v49 = vld [vmem:[%s4048_s28 + $0x240] ss:$20 sps:$4 sm:$0xff]  }
  0xe6   : > { %1811 = vmatmul.mubr.bf16.gmra.mrb[76].mxu1 %v3876_v51  ;;  %1972 = vmatmul.mubr.bf16.gmra.mrb[44].mxu0 %v3877_v52 }
  0xe7   : > { %1818 = vmatprep.mubr.bf16.mxu1 %v3878_v53  ;;  %1979 = vmatprep.mubr.bf16.mxu0 %v3880_v54  ;;  %v3940_v53 = vld [vmem:[%s4048_s28 + $0x3a0] ss:$20 sps:$4 sm:$0xff]   ;;  %v3941_v54 = vld [vmem:[%s4048_s28 + $0x268] ss:$20 sps:$4 sm:$0xff]  }
  0xee   : > { %1819 = vmatmul.mubr.bf16.gmra.mrb[80].mxu1 %v3882_v55  ;;  %1980 = vmatmul.mubr.bf16.gmra.mrb[48].mxu0 %v3883_v56  ;;  %v3942_v56 = vld [vmem:[%s4048_s28 + $0x3cc] ss:$20 sps:$4 sm:$0xff]  }
  0xef   : > { %1826 = vmatprep.mubr.bf16.mxu1 %v3884_v57  ;;  %1987 = vmatprep.mubr.bf16.mxu0 %v3886_v58  ;;  %v3944_v57 = vld [vmem:[%s4048_s28 + $0x290] ss:$20 sps:$4 sm:$0xff]  }
  0xf6   : > { %1827 = vmatmul.mubr.bf16.gmra.mrb[84].mxu1 %v3888_v59  ;;  %1988 = vmatmul.mubr.bf16.gmra.mrb[52].mxu0 %v3889_v60 }
  0xf7   : > { %1834 = vmatprep.mubr.bf16.mxu1 %v3890_v61  ;;  %1995 = vmatprep.mubr.bf16.mxu0 %v3892_v62  ;;  %v3945_v61 = vld [vmem:[%s4048_s28 + $0x3c8] ss:$20 sps:$4 sm:$0xff]   ;;  %v3946_v62 = vld [vmem:[%s4048_s28 + $0x2b8] ss:$20 sps:$4 sm:$0xff]  }
  0xfe   : > { %1835 = vmatmul.mubr.bf16.gmra.mrb[88].mxu1 %v3894_v63  ;;  %1996 = vmatmul.mubr.bf16.gmra.mrb[56].mxu0 %v3895_v0  ;;  %v3947_v0 = vld [vmem:[%s4048_s28 + $0x3f4] ss:$20 sps:$4 sm:$0xff]  }
  0xff   : > { %1842 = vmatprep.mubr.bf16.mxu1 %v3896_v2  ;;  %2003 = vmatprep.mubr.bf16.mxu0 %v3898_v3  ;;  %v3949_v2 = vld [vmem:[%s4048_s28 + $0x2e0] ss:$20 sps:$4 sm:$0xff]  }
 0x106   : > { %1843 = vmatmul.mubr.bf16.gmra.mrb[92].mxu1 %v3900_v4  ;;  %2004 = vmatmul.mubr.bf16.gmra.mrb[60].mxu0 %v3901_v5 }
 0x107   : > { %2011 = vmatprep.mubr.bf16.mxu0 %v3902_v6  ;;  %3472 = vmatprep.mubr.msk.bf16.mxu1 %vm1465_vm0, %v3904_v7  ;;  %v3950_v6 = vld [vmem:[%s4048_s28 + $0x3f0] ss:$20 sps:$4 sm:$0xff]   ;;  %v3951_v7 = vld [vmem:[%s4048_s28 + $0x308] ss:$20 sps:$4 sm:$0xff]  }
 0x10e   : > { %2012 = vmatmul.mubr.bf16.gmra.mrb[64].mxu0 %v3905_v8  ;;  %3473 = vmatmul.mubr.msk.bf16.vlgmr.msra.gmra.mrb[96].mxu1 %vm1465_vm0, %v3906_v9  ;;  %v3952_v9 = vld [vmem:[%s4048_s28 + $0x41c] ss:$20 sps:$4 sm:$0xff]  }
 0x10f   : > { %2019 = vmatprep.mubr.bf16.mxu0 %v3907_v10  ;;  %3476 = vmatprep.mubr.msk.bf16.mxu1 %vm1465_vm0, %v3909_v11  ;;  %v3954_v10 = vld [vmem:[%s4048_s28 + $0x330] ss:$20 sps:$4 sm:$0xff]  }
 0x116   : > { %2020 = vmatmul.mubr.bf16.gmra.mrb[68].mxu0 %v3910_v12  ;;  %3477 = vmatmul.mubr.msk.bf16.gmra.mrb[100].mxu1 %vm1465_vm0, %v3911_v13 }
 0x117   : > { %2027 = vmatprep.mubr.bf16.mxu0 %v3912_v14  ;;  %3480 = vmatprep.mubr.msk.bf16.mxu1 %vm1465_vm0, %v3914_v1  ;;  %v3955_v14 = vld [vmem:[%s4048_s28 + $0x418] ss:$20 sps:$4 sm:$0xff]  }
 0x118   : > { %v3956_v1 = vld [vmem:[%s4048_s28 + $0x358] ss:$20 sps:$4 sm:$0xff]  }
 0x11e   : > { %2028 = vmatmul.mubr.bf16.gmra.mrb[72].mxu0 %v3915_v15  ;;  %3481 = vmatmul.mubr.msk.bf16.gmra.mrb[104].mxu1 %vm1465_vm0, %v3916_v16  ;;  %v3957_v16 = vld [vmem:[%s4048_s28 + $0x444] ss:$20 sps:$4 sm:$0xff]  }
 0x11f   : > { %2035 = vmatprep.mubr.bf16.mxu0 %v3917_v17  ;;  %3484 = vmatprep.mubr.msk.bf16.mxu1 %vm1465_vm0, %v3919_v18  ;;  %v3959_v17 = vld [vmem:[%s4048_s28 + $0x380] ss:$20 sps:$4 sm:$0xff]  }
 0x121   : > { %v4300_v19 = vpop.f32.mrb[0].mxu1 }
 0x122   : > { %v1662_v20 = vpop.f32.mrb[1].mxu1 }
 0x123   : > { %v4304_v23 = vpop.f32.mrb[2].mxu1 }
 0x124   : > { %v1665_v26 = vpop.f32.mrb[3].mxu1 }
 0x125   : > { %v3961_v26 = vld [vmem:[%s4048_s28 + $0x3a8] ss:$20 sps:$4 sm:$0xff]  }
 0x126   : > { %2036 = vmatmul.mubr.bf16.gmra.mrb[76].mxu0 %v3920_v21  ;;  %3485 = vmatmul.mubr.msk.bf16.gmra.mrb[108].mxu1 %vm1465_vm0, %v3921_v22 }
 0x127   : > { %2043 = vmatprep.mubr.bf16.mxu0 %v3922_v24  ;;  %3488 = vmatprep.mubr.msk.bf16.mxu1 %vm1465_vm0, %v3924_v25  ;;  %v3960_v25 = vld [vmem:[%s4048_s28 + $0x440] ss:$20 sps:$4 sm:$0xff]  }
 0x129   : > { %v4310_v27 = vpop.f32.mrb[4].mxu1 }
 0x12a   : > { %v1670_v28 = vpop.f32.mrb[5].mxu1 }
 0x12b   : > { %v4314_v31 = vpop.f32.mrb[6].mxu1 }
 0x12c   : > { %v1673_v34 = vpop.f32.mrb[7].mxu1 }
 0x12e   : > { %2044 = vmatmul.mubr.bf16.gmra.mrb[80].mxu0 %v3925_v29  ;;  %3489 = vmatmul.mubr.msk.bf16.gmra.mrb[112].mxu1 %vm1465_vm0, %v3926_v30  ;;  %v3962_v30 = vld [vmem:[%s4048_s28 + $0x46c] ss:$20 sps:$4 sm:$0xff]  }
 0x12f   : > { %2051 = vmatprep.mubr.bf16.mxu0 %v3927_v32  ;;  %3492 = vmatprep.mubr.msk.bf16.mxu1 %vm1465_vm0, %v3929_v33  ;;  %v3964_v32 = vld [vmem:[%s4048_s28 + $0x3d0] ss:$20 sps:$4 sm:$0xff]  }
 0x131   : > { %v4320_v35 = vpop.f32.mrb[8].mxu1 }
 0x132   : > { %v1678_v36 = vpop.f32.mrb[9].mxu1 }
 0x133   : > { %v4324_v39 = vpop.f32.mrb[10].mxu1 }
 0x134   : > { %v1681_v42 = vpop.f32.mrb[11].mxu1 }
 0x135   : > { %v3966_v42 = vld [vmem:[%s4048_s28 + $0x3f8] ss:$20 sps:$4 sm:$0xff]  }
 0x136   : > { %2052 = vmatmul.mubr.bf16.gmra.mrb[84].mxu0 %v3930_v37  ;;  %3493 = vmatmul.mubr.msk.bf16.gmra.mrb[116].mxu1 %vm1465_vm0, %v3931_v38 }
 0x137   : > { %2059 = vmatprep.mubr.bf16.mxu0 %v3932_v40  ;;  %3496 = vmatprep.mubr.msk.bf16.mxu1 %vm1465_vm0, %v3934_v41  ;;  %v3965_v41 = vld [vmem:[%s4048_s28 + $0x468] ss:$20 sps:$4 sm:$0xff]  }
 0x139   : > { %v4330_v43 = vpop.f32.mrb[12].mxu1 }
 0x13a   : > { %v1686_v44 = vpop.f32.mrb[13].mxu1 }
 0x13b   : > { %v4334_v47 = vpop.f32.mrb[14].mxu1 }
 0x13c   : > { %v1689_v50 = vpop.f32.mrb[15].mxu1 }
 0x13e   : > { %2060 = vmatmul.mubr.bf16.gmra.mrb[88].mxu0 %v3935_v45  ;;  %3497 = vmatmul.mubr.msk.bf16.gmra.mrb[120].mxu1 %vm1465_vm0, %v3936_v46  ;;  %v3967_v46 = vld [vmem:[%s4048_s28 + $0x494] ss:$20 sps:$4 sm:$0xff]  }
 0x13f   : > { %2067 = vmatprep.mubr.bf16.mxu0 %v3937_v48  ;;  %3500 = vmatprep.mubr.msk.bf16.mxu1 %vm1465_vm0, %v3939_v49  ;;  %v3969_v48 = vld [vmem:[%s4048_s28 + $0x420] ss:$20 sps:$4 sm:$0xff]  }
 0x141   : > { %v4340_v51 = vpop.f32.mrb[16].mxu1 }
 0x142   : > { %v1694_v52 = vpop.f32.mrb[17].mxu1 }
 0x143   : > { %v4344_v55 = vpop.f32.mrb[18].mxu1 }
 0x144   : > { %v1697_v58 = vpop.f32.mrb[19].mxu1 }
 0x145   : > { %v3971_v58 = vld [vmem:[%s4048_s28 + $0x448] ss:$20 sps:$4 sm:$0xff]  }
 0x146   : > { %2068 = vmatmul.mubr.bf16.gmra.mrb[92].mxu0 %v3940_v53  ;;  %3501 = vmatmul.mubr.msk.bf16.gmra.mrb[124].mxu1 %vm1465_vm0, %v3941_v54 }
 0x147   : > { %2075 = vmatprep.mubr.bf16.mxu0 %v3942_v56  ;;  %3504 = vmatprep.mubr.msk.bf16.mxu1 %vm1465_vm0, %v3944_v57  ;;  %v3970_v57 = vld [vmem:[%s4048_s28 + $0x490] ss:$20 sps:$4 sm:$0xff]  }
 0x149   : > { %v4350_v59 = vpop.f32.mrb[20].mxu1 }
 0x14a   : > { %v1702_v60 = vpop.f32.mrb[21].mxu1 }
 0x14b   : > { %v4354_v63 = vpop.f32.mrb[22].mxu1 }
 0x14c   : > { %v1705_v3 = vpop.f32.mrb[23].mxu1 }
 0x14e   : > { %2076 = vmatmul.mubr.bf16.gmra.mrb[96].mxu0 %v3945_v61  ;;  %3505 = vmatmul.mubr.msk.bf16.gmra.mrb[128].mxu1 %vm1465_vm0, %v3946_v62  ;;  %v3972_v62 = vld [vmem:[%s4048_s28 + $0x4bc] ss:$20 sps:$4 sm:$0xff]  }
 0x14f   : > { %2083 = vmatprep.mubr.bf16.mxu0 %v3947_v0  ;;  %3508 = vmatprep.mubr.msk.bf16.mxu1 %vm1465_vm0, %v3949_v2  ;;  %v3974_v0 = vld [vmem:[%s4048_s28 + $0x470] ss:$20 sps:$4 sm:$0xff]  }
 0x151   : > { %v4360_v4 = vpop.f32.mrb[24].mxu1 }
 0x152   : > { %v1710_v5 = vpop.f32.mrb[25].mxu1 }
 0x153   : > { %v4364_v8 = vpop.f32.mrb[26].mxu1 }
 0x154   : > { %v1713_v11 = vpop.f32.mrb[27].mxu1 }
 0x155   : > { %v3976_v11 = vld [vmem:[%s4048_s28 + $0x498] ss:$20 sps:$4 sm:$0xff]  }
 0x156   : > { %2084 = vmatmul.mubr.bf16.gmra.mrb[100].mxu0 %v3950_v6  ;;  %3509 = vmatmul.mubr.msk.bf16.gmra.mrb[132].mxu1 %vm1465_vm0, %v3951_v7 }
 0x157   : > { %2091 = vmatprep.mubr.bf16.mxu0 %v3952_v9  ;;  %3512 = vmatprep.mubr.msk.bf16.mxu1 %vm1465_vm0, %v3954_v10  ;;  %v3975_v10 = vld [vmem:[%s4048_s28 + $0x4b8] ss:$20 sps:$4 sm:$0xff]  }
 0x159   : > { %v4370_v12 = vpop.f32.mrb[28].mxu1 }
 0x15a   : > { %v1718_v13 = vpop.f32.mrb[29].mxu1 }
 0x15b   : > { %v4374_v15 = vpop.f32.mrb[30].mxu1 }
 0x15c   : > { %v1721_v18 = vpop.f32.mrb[31].mxu1 }
 0x15e   : > { %2092 = vmatmul.mubr.bf16.gmra.mrb[104].mxu0 %v3955_v14  ;;  %3513 = vmatmul.mubr.msk.bf16.gmra.mrb[136].mxu1 %vm1465_vm0, %v3956_v1  ;;  %v3977_v1 = vld [vmem:[%s4048_s28 + $0x4e4] ss:$20 sps:$4 sm:$0xff]  }
 0x15f   : > { %2099 = vmatprep.mubr.bf16.mxu0 %v3957_v16  ;;  %3516 = vmatprep.mubr.msk.bf16.mxu1 %vm1465_vm0, %v3959_v17  ;;  %v3979_v16 = vld [vmem:[%s4048_s28 + $0x4c0] ss:$20 sps:$4 sm:$0xff]  }
 0x161   : > { %v4380_v20 = vpop.f32.mrb[32].mxu1  ;;  %v4382_v21 = vpop.f32.mrb[0].mxu0 }
 0x162   : > { %v1726_v22 = vpop.f32.mrb[33].mxu1  ;;  %v1887_v24 = vpop.f32.mrb[1].mxu0 }
 0x163   : > { %v4386_v28 = vpop.f32.mrb[34].mxu1  ;;  %v4388_v29 = vpop.f32.mrb[2].mxu0 }
 0x164   : > { %v1729_v33 = vpop.f32.mrb[35].mxu1  ;;  %v1890_v34 = vpop.f32.mrb[3].mxu0 }
 0x166   : > { %2100 = vmatmul.mubr.bf16.gmra.mrb[108].mxu0 %v3960_v25  ;;  %3517 = vmatmul.mubr.msk.bf16.gmra.mrb[140].mxu1 %vm1465_vm0, %v3961_v26 }
 0x167   : > { %2107 = vmatprep.mubr.bf16.mxu0 %v3962_v30  ;;  %3520 = vmatprep.mubr.msk.bf16.mxu1 %vm1465_vm0, %v3964_v32  ;;  %v3980_v30 = vld [vmem:[%s4048_s28 + $0x4e0] ss:$20 sps:$4 sm:$0xff]   ;;  %v3981_v32 = vld [vmem:[%s4048_s28 + $0x4e8] ss:$20 sps:$4 sm:$0xff]  }
 0x169   : > { %v4394_v36 = vpop.f32.mrb[36].mxu1  ;;  %v4396_v37 = vpop.f32.mrb[4].mxu0 }
 0x16a   : > { %v1734_v38 = vpop.f32.mrb[37].mxu1  ;;  %v1895_v40 = vpop.f32.mrb[5].mxu0 }
 0x16b   : > { %v4400_v44 = vpop.f32.mrb[38].mxu1  ;;  %v4402_v45 = vpop.f32.mrb[6].mxu0 }
 0x16c   : > { %v1737_v49 = vpop.f32.mrb[39].mxu1  ;;  %v1898_v50 = vpop.f32.mrb[7].mxu0 }
 0x16e   : > { %2108 = vmatmul.mubr.bf16.gmra.mrb[112].mxu0 %v3965_v41  ;;  %3521 = vmatmul.mubr.msk.bf16.gmra.mrb[144].mxu1 %vm1465_vm0, %v3966_v42 }
 0x16f   : > { %2115 = vmatprep.mubr.bf16.mxu0 %v3967_v46  ;;  %3524 = vmatprep.mubr.msk.bf16.mxu1 %vm1465_vm0, %v3969_v48 }
 0x171   : > { %v4408_v52 = vpop.f32.mrb[40].mxu1  ;;  %v4410_v53 = vpop.f32.mrb[8].mxu0 }
 0x172   : > { %v1742_v54 = vpop.f32.mrb[41].mxu1  ;;  %v1903_v56 = vpop.f32.mrb[9].mxu0 }
 0x173   : > { %v4414_v60 = vpop.f32.mrb[42].mxu1  ;;  %v4416_v61 = vpop.f32.mrb[10].mxu0 }
 0x174   : > { %v1745_v2 = vpop.f32.mrb[43].mxu1  ;;  %v1906_v3 = vpop.f32.mrb[11].mxu0 }
 0x176   : > { %2116 = vmatmul.mubr.bf16.gmra.mrb[116].mxu0 %v3970_v57  ;;  %3525 = vmatmul.mubr.msk.bf16.gmra.mrb[148].mxu1 %vm1465_vm0, %v3971_v58 }
 0x177   : > { %2123 = vmatprep.mubr.bf16.mxu0 %v3972_v62  ;;  %3528 = vmatprep.mubr.msk.bf16.mxu1 %vm1465_vm0, %v3974_v0 }
 0x179   : > { %v4422_v5 = vpop.f32.mrb[44].mxu1  ;;  %v4424_v6 = vpop.f32.mrb[12].mxu0 }
 0x17a   : > { %v1750_v7 = vpop.f32.mrb[45].mxu1  ;;  %v1911_v9 = vpop.f32.mrb[13].mxu0 }
 0x17b   : > { %v4428_v13 = vpop.f32.mrb[46].mxu1  ;;  %v4430_v14 = vpop.f32.mrb[14].mxu0 }
 0x17c   : > { %v1753_v17 = vpop.f32.mrb[47].mxu1  ;;  %v1914_v18 = vpop.f32.mrb[15].mxu0 }
 0x17e   : > { %2124 = vmatmul.mubr.bf16.gmra.mrb[120].mxu0 %v3975_v10  ;;  %3529 = vmatmul.mubr.msk.bf16.gmra.mrb[152].mxu1 %vm1465_vm0, %v3976_v11 }
 0x17f   : > { %2131 = vmatprep.mubr.bf16.mxu0 %v3977_v1  ;;  %3532 = vmatprep.mubr.msk.bf16.mxu1 %vm1465_vm0, %v3979_v16 }
 0x181   : > { %v4436_v22 = vpop.f32.mrb[48].mxu1  ;;  %v4438_v24 = vpop.f32.mrb[16].mxu0 }
 0x182   : > { %v1758_v25 = vpop.f32.mrb[49].mxu1  ;;  %v1919_v26 = vpop.f32.mrb[17].mxu0 }
 0x183   : > { %v4442_v33 = vpop.f32.mrb[50].mxu1  ;;  %v4444_v34 = vpop.f32.mrb[18].mxu0 }
 0x184   : > { %v1761_v38 = vpop.f32.mrb[51].mxu1  ;;  %v1922_v40 = vpop.f32.mrb[19].mxu0 }
 0x186   : > { %2132 = vmatmul.mubr.bf16.gmra.mrb[124].mxu0 %v3980_v30  ;;  %3533 = vmatmul.mubr.msk.bf16.gmra.mrb[156].mxu1 %vm1465_vm0, %v3981_v32  ;;  %v4474_v30 = vld [vmem:[%s4793_s2] ss:$0 sm:$0xff] }
 0x187   : > { %v1661_v32 = vadd.f32 %v4474_v30, %v4300_v19  ;;  %v1669_v19 = vadd.f32 %v4474_v30, %v4310_v27  ;;  %v1677_v27 = vadd.f32 %v4474_v30, %v4320_v35  ;;  %v1685_v35 = vadd.f32 %v4474_v30, %v4330_v43 }
 0x188   : > { %v1693_v43 = vadd.f32 %v4474_v30, %v4340_v51  ;;  %v1701_v51 = vadd.f32 %v4474_v30, %v4350_v59  ;;  %v1709_v59 = vadd.f32 %v4474_v30, %v4360_v4  ;;  %v1717_v4 = vadd.f32 %v4474_v30, %v4370_v12 }
 0x189   : > { %v4447_v41 = vpop.f32.mrb[52].mxu1  ;;  %v4449_v42 = vpop.f32.mrb[20].mxu0  ;;  %v1725_v12 = vadd.f32 %v4474_v30, %v4380_v20 }
 0x18a   : > { %v1766_v46 = vpop.f32.mrb[53].mxu1  ;;  %v1927_v48 = vpop.f32.mrb[21].mxu0 }
 0x18b   : > { %v4451_v49 = vpop.f32.mrb[54].mxu1  ;;  %v4453_v50 = vpop.f32.mrb[22].mxu0  ;;  %v1664_v46 = vadd.f32 %v4474_v30, %v4304_v23  ;;  %v1672_v23 = vadd.f32 %v4474_v30, %v4314_v31  ;;  %v1680_v31 = vadd.f32 %v4474_v30, %v4324_v39  ;;  %v1688_v39 = vadd.f32 %v4474_v30, %v4334_v47 }
 0x18c   : > { %v1769_v54 = vpop.f32.mrb[55].mxu1  ;;  %v1930_v56 = vpop.f32.mrb[23].mxu0  ;;  %v1696_v47 = vadd.f32 %v4474_v30, %v4344_v55  ;;  %v1704_v55 = vadd.f32 %v4474_v30, %v4354_v63  ;;  %v1712_v63 = vadd.f32 %v4474_v30, %v4364_v8  ;;  %v1720_v8 = vadd.f32 %v4474_v30, %v4374_v15 }
 0x18d   : > { %v3568_v15 = vadd.f32 %v4474_v30, %v4382_v21 }
 0x191   : > { %v4455_v57 = vpop.f32.mrb[56].mxu1  ;;  %v4457_v58 = vpop.f32.mrb[24].mxu0 }
 0x192   : > { %v1774_v62 = vpop.f32.mrb[57].mxu1  ;;  %v1935_v0 = vpop.f32.mrb[25].mxu0 }
 0x193   : > { %v4459_v2 = vpop.f32.mrb[58].mxu1  ;;  %v4461_v3 = vpop.f32.mrb[26].mxu0 }
 0x194   : > { %v1777_v7 = vpop.f32.mrb[59].mxu1  ;;  %v1938_v9 = vpop.f32.mrb[27].mxu0 }
 0x199   : > { %v4463_v10 = vpop.f32.mrb[60].mxu1  ;;  %v4465_v11 = vpop.f32.mrb[28].mxu0 }
 0x19a   : > { %v1782_v1 = vpop.f32.mrb[61].mxu1  ;;  %v1943_v16 = vpop.f32.mrb[29].mxu0 }
 0x19b   : > { %v4467_v17 = vpop.f32.mrb[62].mxu1  ;;  %v4469_v18 = vpop.f32.mrb[30].mxu0 }
 0x19c   : > { %v1785_v25 = vpop.f32.mrb[63].mxu1  ;;  %v1946_v26 = vpop.f32.mrb[31].mxu0 }
 0x1a1   : > { %v4478_v38 = vpop.f32.mrb[64].mxu1  ;;  %v1949_v40 = vpop.f32.mrb[32].mxu0 }
 0x1a2   : > { %4795 = vst [vmem:[#allocation2_spill] sm:$0xff] %v4478_v38  ;;  %v4482_v48 = vadd.f32 %v1949_v40, %v1661_v32  ;;  %v1790_v54 = vpop.f32.mrb[65].mxu1  ;;  %v1951_v56 = vpop.f32.mrb[33].mxu0 }
 0x1a3   : > { %v4484_v62 = vpop.f32.mrb[66].mxu1  ;;  %v1952_v0 = vpop.f32.mrb[34].mxu0 }
 0x1a4   : > { %4796 = vst [vmem:[#allocation3_spill] sm:$0xff] %v4484_v62  ;;  %v4486_v7 = vadd.f32 %v1952_v0, %v1664_v46  ;;  %v1793_v9 = vpop.f32.mrb[67].mxu1  ;;  %v1954_v1 = vpop.f32.mrb[35].mxu0 }
 0x1a9   : > { %v4490_v16 = vpop.f32.mrb[68].mxu1  ;;  %v1957_v25 = vpop.f32.mrb[36].mxu0 }
 0x1aa   : > { %4797 = vst [vmem:[#allocation4_spill] sm:$0xff] %v4490_v16  ;;  %v4494_v26 = vadd.f32 %v1957_v25, %v1669_v19  ;;  %v1798_v32 = vpop.f32.mrb[69].mxu1  ;;  %v1959_v40 = vpop.f32.mrb[37].mxu0 }
 0x1ab   : > { %v4496_v54 = vpop.f32.mrb[70].mxu1  ;;  %v1960_v56 = vpop.f32.mrb[38].mxu0 }
 0x1ac   : > { %4798 = vst [vmem:[#allocation5_spill] sm:$0xff] %v4496_v54  ;;  %v4498_v46 = vadd.f32 %v1960_v56, %v1672_v23  ;;  %v1801_v0 = vpop.f32.mrb[71].mxu1  ;;  %v1962_v9 = vpop.f32.mrb[39].mxu0 }
 0x1b1   : > { %v4502_v1 = vpop.f32.mrb[72].mxu1  ;;  %v1965_v16 = vpop.f32.mrb[40].mxu0 }
 0x1b2   : > { %4799 = vst [vmem:[#allocation6_spill] sm:$0xff] %v4502_v1  ;;  %v4506_v19 = vadd.f32 %v1965_v16, %v1677_v27  ;;  %v1806_v25 = vpop.f32.mrb[73].mxu1  ;;  %v1967_v32 = vpop.f32.mrb[41].mxu0 }
 0x1b3   : > { %v4508_v40 = vpop.f32.mrb[74].mxu1  ;;  %v1968_v54 = vpop.f32.mrb[42].mxu0 }
 0x1b4   : > { %4800 = vst [vmem:[#allocation7_spill] sm:$0xff] %v4508_v40  ;;  %v4510_v23 = vadd.f32 %v1968_v54, %v1680_v31  ;;  %v1809_v56 = vpop.f32.mrb[75].mxu1  ;;  %v1970_v0 = vpop.f32.mrb[43].mxu0 }
 0x1b9   : > { %v4514_v9 = vpop.f32.mrb[76].mxu1  ;;  %v1973_v1 = vpop.f32.mrb[44].mxu0 }
 0x1ba   : > { %4801 = vst [vmem:[#allocation8_spill] sm:$0xff] %v4514_v9  ;;  %v4518_v16 = vadd.f32 %v1973_v1, %v1685_v35  ;;  %v1814_v27 = vpop.f32.mrb[77].mxu1  ;;  %v1975_v25 = vpop.f32.mrb[45].mxu0 }
 0x1bb   : > { %v4520_v32 = vpop.f32.mrb[78].mxu1  ;;  %v1976_v40 = vpop.f32.mrb[46].mxu0 }
 0x1bc   : > { %4802 = vst [vmem:[#allocation9_spill] sm:$0xff] %v4520_v32  ;;  %v4522_v54 = vadd.f32 %v1976_v40, %v1688_v39  ;;  %v1817_v31 = vpop.f32.mrb[79].mxu1  ;;  %v1978_v56 = vpop.f32.mrb[47].mxu0 }
 0x1c1   : > { %v4526_v0 = vpop.f32.mrb[80].mxu1  ;;  %v1981_v9 = vpop.f32.mrb[48].mxu0 }
 0x1c2   : > { %4803 = vst [vmem:[#allocation10_spill] sm:$0xff] %v4526_v0  ;;  %v4530_v1 = vadd.f32 %v1981_v9, %v1693_v43  ;;  %v1822_v35 = vpop.f32.mrb[81].mxu1  ;;  %v1983_v27 = vpop.f32.mrb[49].mxu0 }
 0x1c3   : > { %v4532_v25 = vpop.f32.mrb[82].mxu1  ;;  %v1984_v32 = vpop.f32.mrb[50].mxu0 }
 0x1c4   : > { %4804 = vst [vmem:[#allocation11_spill] sm:$0xff] %v4532_v25  ;;  %v4534_v40 = vadd.f32 %v1984_v32, %v1696_v47  ;;  %v1825_v39 = vpop.f32.mrb[83].mxu1  ;;  %v1986_v31 = vpop.f32.mrb[51].mxu0 }
 0x1c9   : > { %v4538_v56 = vpop.f32.mrb[84].mxu1  ;;  %v1989_v0 = vpop.f32.mrb[52].mxu0 }
 0x1ca   : > { %4805 = vst [vmem:[#allocation12_spill] sm:$0xff] %v4538_v56  ;;  %v4542_v9 = vadd.f32 %v1989_v0, %v1701_v51  ;;  %v1830_v43 = vpop.f32.mrb[85].mxu1  ;;  %v1991_v35 = vpop.f32.mrb[53].mxu0 }
 0x1cb   : > { %v4544_v27 = vpop.f32.mrb[86].mxu1  ;;  %v1992_v25 = vpop.f32.mrb[54].mxu0 }
 0x1cc   : > { %4806 = vst [vmem:[#allocation13_spill] sm:$0xff] %v4544_v27  ;;  %v4546_v32 = vadd.f32 %v1992_v25, %v1704_v55  ;;  %v1833_v47 = vpop.f32.mrb[87].mxu1  ;;  %v1994_v39 = vpop.f32.mrb[55].mxu0 }
 0x1d1   : > { %v4550_v31 = vpop.f32.mrb[88].mxu1  ;;  %v1997_v56 = vpop.f32.mrb[56].mxu0 }
 0x1d2   : > { %4807 = vst [vmem:[#allocation14_spill] sm:$0xff] %v4550_v31  ;;  %v4554_v0 = vadd.f32 %v1997_v56, %v1709_v59  ;;  %v1838_v51 = vpop.f32.mrb[89].mxu1  ;;  %v1999_v43 = vpop.f32.mrb[57].mxu0 }
 0x1d3   : > { %v4556_v35 = vpop.f32.mrb[90].mxu1  ;;  %v2000_v27 = vpop.f32.mrb[58].mxu0 }
 0x1d4   : > { %4808 = vst [vmem:[#allocation15_spill] sm:$0xff] %v4556_v35  ;;  %v4558_v25 = vadd.f32 %v2000_v27, %v1712_v63  ;;  %v1841_v55 = vpop.f32.mrb[91].mxu1  ;;  %v2002_v47 = vpop.f32.mrb[59].mxu0 }
 0x1d5   : > { %v3570_v47 = vadd.f32 %v4474_v30, %v4396_v37 }
 0x1d6   : > { %4809 = vst [vmem:[#allocation16_spill] sm:$0xff] %v4558_v25 }
 0x1d9   : > { %v4562_v39 = vpop.f32.mrb[92].mxu1  ;;  %v2005_v31 = vpop.f32.mrb[60].mxu0 }
 0x1da   : > { %4810 = vst [vmem:[#allocation17_spill] sm:$0xff] %v4562_v39  ;;  %v4566_v56 = vadd.f32 %v2005_v31, %v1717_v4  ;;  %v1846_v59 = vpop.f32.mrb[93].mxu1  ;;  %v2007_v51 = vpop.f32.mrb[61].mxu0 }
 0x1db   : > { %v4568_v43 = vpop.f32.mrb[94].mxu1  ;;  %v2008_v35 = vpop.f32.mrb[62].mxu0  ;;  %v1728_v59 = vadd.f32 %v4474_v30, %v4386_v28 }
 0x1dc   : > { %4811 = vst [vmem:[#allocation18_spill] sm:$0xff] %v4568_v43  ;;  %v4570_v27 = vadd.f32 %v2008_v35, %v1720_v8  ;;  %v1849_v63 = vpop.f32.mrb[95].mxu1  ;;  %v2010_v55 = vpop.f32.mrb[63].mxu0  ;;  %v3571_v35 = vadd.f32 %v4474_v30, %v4402_v45 }
 0x1dd   : > { %v3569_v55 = vadd.f32 %v4474_v30, %v4388_v29 }
 0x1de   : > { %4812 = vst [vmem:[#allocation19_spill] sm:$0xff] %v4570_v27 }
 0x1e1   : > { %v2013_v31 = vpop.f32.mrb[64].mxu0  ;;  %v3474_v4 = vpop.f32.mrb[96].mxu1 }
 0x1e2   : > { %v4582_v8 = vadd.f32 %v2013_v31, %v1725_v12  ;;  %v2183_v51 = vadd.f32 %v3570_v47, %v3474_v4  ;;  %v2015_v63 = vpop.f32.mrb[65].mxu0  ;;  %v2174_v20 = vpop.f32.mrb[97].mxu1  ;;  %v3572_v47 = vadd.f32 %v4474_v30, %v4410_v53  ;;  %v1736_v4 = vadd.f32 %v4474_v30, %v4400_v44 }
 0x1e3   : > { %v2175_v37 = vadd.f32 %v3568_v15, %v2174_v20  ;;  %v2016_v43 = vpop.f32.mrb[66].mxu0  ;;  %v3475_v39 = vpop.f32.mrb[98].mxu1 }
 0x1e4   : > { %v4586_v21 = vadd.f32 %v2016_v43, %v1728_v59  ;;  %v2186_v62 = vadd.f32 %v3571_v35, %v3475_v39  ;;  %v2018_v38 = vpop.f32.mrb[67].mxu0  ;;  %v2177_v28 = vpop.f32.mrb[99].mxu1  ;;  %v2431_v27 = vmax.f32 %v2183_v51, 0.0  ;;  %v1733_v43 = vadd.f32 %v4474_v30, %v4394_v36 }
 0x1e5   : > { %v2178_v25 = vadd.f32 %v3569_v55, %v2177_v28  ;;  %v2429_v12 = vmax.f32 %v2175_v37, 0.0  ;;  %v3574_v39 = vadd.f32 %v4474_v30, %v4424_v6  ;;  %v3573_v6 = vadd.f32 %v4474_v30, %v4416_v61 }
 0x1e6   : > { %v2432_v45 = vmax.f32 %v2186_v62, 0.0  ;;  %v3578_v61 = vadd.f32 %v4474_v30, %v4449_v42  ;;  %v3577_v42 = vadd.f32 %v4474_v30, %v4444_v34  ;;  %v3582_v34 = vadd.f32 %v4474_v30, %v4465_v11 }
 0x1e7   : > { %v2430_v29 = vmax.f32 %v2178_v25, 0.0  ;;  %v3575_v25 = vadd.f32 %v4474_v30, %v4430_v14  ;;  %v3581_v11 = vadd.f32 %v4474_v30, %v4461_v3 }
 0x1e8   : > { %v3245_v38 = vpack.c.bf16 %v2432_v45, %v2431_v27 }
 0x1e9   : > { %v3240_v62 = vpack.c.bf16 %v2430_v29, %v2429_v12  ;;  %v2021_v15 = vpop.f32.mrb[68].mxu0  ;;  %v3478_v31 = vpop.f32.mrb[100].mxu1 }
 0x1ea   : > { %3397 = vst [vmem:[%s4592_s22 + $0x8] sm:$0xff] %v3245_v38   ;;  %v4605_v59 = vadd.f32 %v2021_v15, %v1733_v43  ;;  %v2199_v36 = vadd.f32 %v3574_v39, %v3478_v31  ;;  %v2023_v35 = vpop.f32.mrb[69].mxu0  ;;  %v2190_v51 = vpop.f32.mrb[101].mxu1  ;;  %v1741_v43 = vadd.f32 %v4474_v30, %v4408_v52  ;;  %v3576_v38 = vadd.f32 %v4474_v30, %v4438_v24 }
 0x1eb   : > { %3241 = vst [vmem:[%s4592_s22] sm:$0xff] %v3240_v62   ;;  %v2191_v53 = vadd.f32 %v3572_v47, %v2190_v51  ;;  %v2024_v27 = vpop.f32.mrb[70].mxu0  ;;  %v3479_v63 = vpop.f32.mrb[102].mxu1  ;;  %v1744_v31 = vadd.f32 %v4474_v30, %v4414_v60 }
 0x1ec   : > { %v4610_v20 = vadd.f32 %v2024_v27, %v1736_v4  ;;  %v2202_v55 = vadd.f32 %v3575_v25, %v3479_v63  ;;  %v2026_v44 = vpop.f32.mrb[71].mxu0  ;;  %v2193_v37 = vpop.f32.mrb[103].mxu1  ;;  %v2435_v28 = vmax.f32 %v2199_v36, 0.0  ;;  %v3579_v4 = vadd.f32 %v4474_v30, %v4453_v50 }
 0x1ed   : > { %v2194_v14 = vadd.f32 %v3573_v6, %v2193_v37  ;;  %v2433_v12 = vmax.f32 %v2191_v53, 0.0 }
 0x1ee   : > { %v2436_v45 = vmax.f32 %v2202_v55, 0.0 }
 0x1ef   : > { %v2434_v29 = vmax.f32 %v2194_v14, 0.0 }
 0x1f0   : > { %v3255_v39 = vpack.c.bf16 %v2436_v45, %v2435_v28  ;;  %v1749_v28 = vadd.f32 %v4474_v30, %v4422_v5 }
 0x1f1   : > { %v3250_v47 = vpack.c.bf16 %v2434_v29, %v2433_v12  ;;  %v2029_v62 = vpop.f32.mrb[72].mxu0  ;;  %v3482_v15 = vpop.f32.mrb[104].mxu1  ;;  %v3580_v12 = vadd.f32 %v4474_v30, %v4457_v58 }
 0x1f2   : > { %3399 = vst [vmem:[%s4592_s22 + $0x18] sm:$0xff] %v3255_v39   ;;  %v4623_v25 = vadd.f32 %v2029_v62, %v1741_v43  ;;  %v2215_v52 = vadd.f32 %v3578_v61, %v3482_v15  ;;  %v2031_v36 = vpop.f32.mrb[73].mxu0  ;;  %v2206_v35 = vpop.f32.mrb[105].mxu1  ;;  %v1752_v39 = vadd.f32 %v4474_v30, %v4428_v13 }
 0x1f3   : > { %3398 = vst [vmem:[%s4592_s22 + $0x10] sm:$0xff] %v3250_v47   ;;  %v2207_v24 = vadd.f32 %v3576_v38, %v2206_v35  ;;  %v2032_v51 = vpop.f32.mrb[74].mxu0  ;;  %v3483_v6 = vpop.f32.mrb[106].mxu1  ;;  %v3583_v38 = vadd.f32 %v4474_v30, %v4469_v18 }
 0x1f4   : > { %v4628_v53 = vadd.f32 %v2032_v51, %v1744_v31  ;;  %v2218_v27 = vadd.f32 %v3579_v4, %v3483_v6  ;;  %v2034_v60 = vpop.f32.mrb[75].mxu0  ;;  %v2209_v63 = vpop.f32.mrb[107].mxu1  ;;  %v2439_v55 = vmax.f32 %v2215_v52, 0.0 }
 0x1f5   : > { %v2210_v50 = vadd.f32 %v3577_v42, %v2209_v63  ;;  %v2437_v37 = vmax.f32 %v2207_v24, 0.0 }
 0x1f6   : > { %v2440_v44 = vmax.f32 %v2218_v27, 0.0  ;;  %v1757_v27 = vadd.f32 %v4474_v30, %v4436_v22 }
 0x1f7   : > { %v2438_v14 = vmax.f32 %v2210_v50, 0.0 }
 0x1f8   : > { %v3265_v45 = vpack.c.bf16 %v2440_v44, %v2439_v55  ;;  %v1760_v55 = vadd.f32 %v4474_v30, %v4442_v33 }
 0x1f9   : > { %v3260_v29 = vpack.c.bf16 %v2438_v14, %v2437_v37  ;;  %v2037_v43 = vpop.f32.mrb[76].mxu0  ;;  %v3486_v61 = vpop.f32.mrb[108].mxu1 }
 0x1fa   : > { %3401 = vst [vmem:[%s4592_s22 + $0x28] sm:$0xff] %v3265_v45   ;;  %v4641_v47 = vadd.f32 %v2037_v43, %v1749_v28  ;;  %v2231_v5 = vadd.f32 %v3582_v34, %v3486_v61  ;;  %v2039_v62 = vpop.f32.mrb[77].mxu0  ;;  %v2222_v15 = vpop.f32.mrb[109].mxu1 }
 0x1fb   : > { %3400 = vst [vmem:[%s4592_s22 + $0x20] sm:$0xff] %v3260_v29   ;;  %v2223_v58 = vadd.f32 %v3580_v12, %v2222_v15  ;;  %v2040_v31 = vpop.f32.mrb[78].mxu0  ;;  %v3487_v4 = vpop.f32.mrb[110].mxu1  ;;  %v1765_v62 = vadd.f32 %v4474_v30, %v4447_v41 }
 0x1fc   : > { %v4646_v52 = vadd.f32 %v2040_v31, %v1752_v39  ;;  %v2234_v13 = vadd.f32 %v3583_v38, %v3487_v4  ;;  %v2042_v36 = vpop.f32.mrb[79].mxu0  ;;  %v2225_v35 = vpop.f32.mrb[111].mxu1  ;;  %v2443_v42 = vmax.f32 %v2231_v5, 0.0  ;;  %v1768_v31 = vadd.f32 %v4474_v30, %v4451_v49 }
 0x1fd   : > { %v2226_v18 = vadd.f32 %v3581_v11, %v2225_v35  ;;  %v2441_v51 = vmax.f32 %v2223_v58, 0.0 }
 0x1fe   : > { %v2444_v24 = vmax.f32 %v2234_v13, 0.0 }
 0x1ff   : > { %v2442_v6 = vmax.f32 %v2226_v18, 0.0 }
 0x200   : > { %v3275_v3 = vpack.c.bf16 %v2444_v24, %v2443_v42 }
 0x201   : > { %v3270_v60 = vpack.c.bf16 %v2442_v6, %v2441_v51  ;;  %v2045_v63 = vpop.f32.mrb[80].mxu0  ;;  %v3490_v50 = vpop.f32.mrb[112].mxu1 }
 0x202   : > { %3403 = vst [vmem:[%s4592_s22 + $0x38] sm:$0xff] %v3275_v3   ;;  %v4653_v44 = vadd.f32 %v2045_v63, %v1757_v27  ;;  %v2247_v37 = vadd.f32 %v3490_v50, %v4494_v26  ;;  %v2047_v14 = vpop.f32.mrb[81].mxu0  ;;  %v2238_v28 = vpop.f32.mrb[113].mxu1 }
 0x203   : > { %3402 = vst [vmem:[%s4592_s22 + $0x30] sm:$0xff] %v3270_v60   ;;  %v2239_v34 = vadd.f32 %v2238_v28, %v4482_v48  ;;  %v2048_v45 = vpop.f32.mrb[82].mxu0  ;;  %v3491_v12 = vpop.f32.mrb[114].mxu1  ;;  %v1773_v60 = vadd.f32 %v4474_v30, %v4455_v57 }
 0x204   : > { %v4658_v22 = vadd.f32 %v2048_v45, %v1760_v55  ;;  %v2250_v29 = vadd.f32 %v3491_v12, %v4498_v46  ;;  %v2050_v43 = vpop.f32.mrb[83].mxu0  ;;  %v2241_v61 = vpop.f32.mrb[115].mxu1  ;;  %v2447_v39 = vmax.f32 %v2247_v37, 0.0  ;;  %v1776_v37 = vadd.f32 %v4474_v30, %v4459_v2 }
 0x205   : > { %v2242_v33 = vadd.f32 %v2241_v61, %v4486_v7  ;;  %v2445_v26 = vmax.f32 %v2239_v34, 0.0 }
 0x206   : > { %v2448_v38 = vmax.f32 %v2250_v29, 0.0 }
 0x207   : > { %v2446_v5 = vmax.f32 %v2242_v33, 0.0 }
 0x208   : > { %v3285_v48 = vpack.c.bf16 %v2448_v38, %v2447_v39 }
 0x209   : > { %v3280_v15 = vpack.c.bf16 %v2446_v5, %v2445_v26  ;;  %v2053_v11 = vpop.f32.mrb[84].mxu0  ;;  %v3494_v58 = vpop.f32.mrb[116].mxu1  ;;  %v1781_v26 = vadd.f32 %v4474_v30, %v4463_v10 }
 0x20a   : > { %3405 = vst [vmem:[%s4592_s22 + $0x48] sm:$0xff] %v3285_v48   ;;  %v4667_v46 = vadd.f32 %v2053_v11, %v1765_v62  ;;  %v2263_v7 = vadd.f32 %v3494_v58, %v4518_v16  ;;  %v2055_v4 = vpop.f32.mrb[85].mxu0  ;;  %v2254_v13 = vpop.f32.mrb[117].mxu1 }
 0x20b   : > { %3404 = vst [vmem:[%s4592_s22 + $0x40] sm:$0xff] %v3280_v15   ;;  %v2255_v36 = vadd.f32 %v2254_v13, %v4506_v19  ;;  %v2056_v35 = vpop.f32.mrb[86].mxu0  ;;  %v3495_v18 = vpop.f32.mrb[118].mxu1  ;;  %v1784_v15 = vadd.f32 %v4474_v30, %v4467_v17  ;;  %v4813_v13 = vld [vmem:[#allocation19_spill] sm:$0xff]  ;;  %v4814_v17 = vld [vmem:[#allocation16_spill] sm:$0xff] }
 0x20c   : > { %v4672_v41 = vadd.f32 %v2056_v35, %v1768_v31  ;;  %v2266_v42 = vadd.f32 %v3495_v18, %v4522_v54  ;;  %v2058_v24 = vpop.f32.mrb[87].mxu0  ;;  %v2257_v51 = vpop.f32.mrb[119].mxu1  ;;  %v2451_v6 = vmax.f32 %v2263_v7, 0.0 }
 0x20d   : > { %v2258_v49 = vadd.f32 %v2257_v51, %v4510_v23  ;;  %v2449_v16 = vmax.f32 %v2255_v36, 0.0 }
 0x20e   : > { %v2452_v27 = vmax.f32 %v2266_v42, 0.0 }
 0x20f   : > { %v2450_v3 = vmax.f32 %v2258_v49, 0.0 }
 0x210   : > { %v3295_v19 = vpack.c.bf16 %v2452_v27, %v2451_v6  ;;  %v4815_v6 = vld [vmem:[#allocation2_spill] sm:$0xff] }
 0x211   : > { %v3290_v63 = vpack.c.bf16 %v2450_v3, %v2449_v16  ;;  %v2061_v50 = vpop.f32.mrb[88].mxu0  ;;  %v3498_v55 = vpop.f32.mrb[120].mxu1  ;;  %v1789_v27 = vadd.f32 %v4474_v30, %v4815_v6 }
 0x212   : > { %3407 = vst [vmem:[%s4592_s22 + $0x58] sm:$0xff] %v3295_v19   ;;  %v4681_v54 = vadd.f32 %v2061_v50, %v1773_v60  ;;  %v2279_v23 = vadd.f32 %v3498_v55, %v4542_v9  ;;  %v2063_v14 = vpop.f32.mrb[89].mxu0  ;;  %v2270_v28 = vpop.f32.mrb[121].mxu1  ;;  %v4816_v19 = vld [vmem:[#allocation3_spill] sm:$0xff] }
 0x213   : > { %3406 = vst [vmem:[%s4592_s22 + $0x50] sm:$0xff] %v3290_v63   ;;  %v2271_v34 = vadd.f32 %v2270_v28, %v4530_v1  ;;  %v2064_v45 = vpop.f32.mrb[90].mxu0  ;;  %v3499_v12 = vpop.f32.mrb[122].mxu1  ;;  %v1792_v63 = vadd.f32 %v4474_v30, %v4816_v19 }
 0x214   : > { %v4686_v57 = vadd.f32 %v2064_v45, %v1776_v37  ;;  %v2282_v29 = vadd.f32 %v3499_v12, %v4546_v32  ;;  %v2066_v43 = vpop.f32.mrb[91].mxu0  ;;  %v2273_v61 = vpop.f32.mrb[123].mxu1  ;;  %v2455_v33 = vmax.f32 %v2279_v23, 0.0 }
 0x215   : > { %v2274_v2 = vadd.f32 %v2273_v61, %v4534_v40  ;;  %v2453_v9 = vmax.f32 %v2271_v34, 0.0 }
 0x216   : > { %v2456_v39 = vmax.f32 %v2282_v29, 0.0 }
 0x217   : > { %v2454_v38 = vmax.f32 %v2274_v2, 0.0 }
 0x218   : > { %v3305_v1 = vpack.c.bf16 %v2456_v39, %v2455_v33 }
 0x219   : > { %v3300_v5 = vpack.c.bf16 %v2454_v38, %v2453_v9  ;;  %v2069_v62 = vpop.f32.mrb[92].mxu0  ;;  %v3502_v48 = vpop.f32.mrb[124].mxu1  ;;  %v4817_v9 = vld [vmem:[#allocation4_spill] sm:$0xff] }
 0x21a   : > { %3409 = vst [vmem:[%s4592_s22 + $0x68] sm:$0xff] %v3305_v1   ;;  %v4695_v32 = vadd.f32 %v2069_v62, %v1781_v26  ;;  %v2295_v40 = vadd.f32 %v3502_v48, %v4566_v56  ;;  %v2071_v11 = vpop.f32.mrb[93].mxu0  ;;  %v2286_v58 = vpop.f32.mrb[125].mxu1  ;;  %v1797_v38 = vadd.f32 %v4474_v30, %v4817_v9  ;;  %v4818_v62 = vld [vmem:[#allocation5_spill] sm:$0xff] }
 0x21b   : > { %3408 = vst [vmem:[%s4592_s22 + $0x60] sm:$0xff] %v3300_v5   ;;  %v2287_v31 = vadd.f32 %v2286_v58, %v4554_v0  ;;  %v2072_v7 = vpop.f32.mrb[94].mxu0  ;;  %v3503_v4 = vpop.f32.mrb[126].mxu1  ;;  %v1800_v48 = vadd.f32 %v4474_v30, %v4818_v62 }
 0x21c   : > { %v4700_v10 = vadd.f32 %v2072_v7, %v1784_v15  ;;  %v2298_v36 = vadd.f32 %v3503_v4, %v4813_v13  ;;  %v2074_v35 = vpop.f32.mrb[95].mxu0  ;;  %v2289_v18 = vpop.f32.mrb[127].mxu1  ;;  %v2459_v24 = vmax.f32 %v2295_v40, 0.0 }
 0x21d   : > { %v2290_v42 = vadd.f32 %v2289_v18, %v4814_v17  ;;  %v2457_v56 = vmax.f32 %v2287_v31, 0.0 }
 0x21e   : > { %v2460_v51 = vmax.f32 %v2298_v36, 0.0 }
 0x21f   : > { %v2458_v49 = vmax.f32 %v2290_v42, 0.0 }
 0x220   : > { %v3315_v0 = vpack.c.bf16 %v2460_v51, %v2459_v24  ;;  %v4819_v24 = vld [vmem:[#allocation6_spill] sm:$0xff] }
 0x221   : > { %v3310_v16 = vpack.c.bf16 %v2458_v49, %v2457_v56  ;;  %v2077_v3 = vpop.f32.mrb[96].mxu0  ;;  %v3506_v60 = vpop.f32.mrb[128].mxu1  ;;  %v1805_v51 = vadd.f32 %v4474_v30, %v4819_v24 }
 0x222   : > { %3411 = vst [vmem:[%s4592_s22 + $0x78] sm:$0xff] %v3315_v0   ;;  %v4709_v50 = vadd.f32 %v2077_v3, %v1789_v27  ;;  %v2311_v55 = vadd.f32 %v3506_v60, %v4605_v59  ;;  %v2079_v37 = vpop.f32.mrb[97].mxu0  ;;  %v2302_v23 = vpop.f32.mrb[129].mxu1  ;;  %v4820_v27 = vld [vmem:[#allocation7_spill] sm:$0xff] }
 0x223   : > { %3410 = vst [vmem:[%s4592_s22 + $0x70] sm:$0xff] %v3310_v16   ;;  %v2303_v14 = vadd.f32 %v2302_v23, %v4582_v8  ;;  %v2080_v28 = vpop.f32.mrb[98].mxu0  ;;  %v3507_v34 = vpop.f32.mrb[130].mxu1  ;;  %v1808_v0 = vadd.f32 %v4474_v30, %v4820_v27 }
 0x224   : > { %v4714_v45 = vadd.f32 %v2080_v28, %v1792_v63  ;;  %v2314_v12 = vadd.f32 %v3507_v34, %v4610_v20  ;;  %v2082_v29 = vpop.f32.mrb[99].mxu0  ;;  %v2305_v43 = vpop.f32.mrb[131].mxu1  ;;  %v2463_v2 = vmax.f32 %v2311_v55, 0.0 }
 0x225   : > { %v2306_v61 = vadd.f32 %v2305_v43, %v4586_v21  ;;  %v2461_v59 = vmax.f32 %v2303_v14, 0.0  ;;  %v4821_v43 = vld [vmem:[#allocation8_spill] sm:$0xff] }
 0x226   : > { %v2464_v33 = vmax.f32 %v2314_v12, 0.0 }
 0x227   : > { %v2462_v39 = vmax.f32 %v2306_v61, 0.0  ;;  %v1813_v61 = vadd.f32 %v4474_v30, %v4821_v43 }
 0x228   : > { %v3325_v8 = vpack.c.bf16 %v2464_v33, %v2463_v2 }
 0x229   : > { %v3320_v26 = vpack.c.bf16 %v2462_v39, %v2461_v59  ;;  %v2085_v1 = vpop.f32.mrb[100].mxu0  ;;  %v3510_v5 = vpop.f32.mrb[132].mxu1  ;;  %v4822_v39 = vld [vmem:[#allocation9_spill] sm:$0xff] }
 0x22a   : > { %3413 = vst [vmem:[%s4592_s22 + $0x88] sm:$0xff] %v3325_v8   ;;  %v4723_v20 = vadd.f32 %v2085_v1, %v1797_v38  ;;  %v2327_v21 = vadd.f32 %v3510_v5, %v4641_v47  ;;  %v2087_v15 = vpop.f32.mrb[101].mxu0  ;;  %v2318_v40 = vpop.f32.mrb[133].mxu1  ;;  %v1816_v9 = vadd.f32 %v4474_v30, %v4822_v39 }
 0x22b   : > { %3412 = vst [vmem:[%s4592_s22 + $0x80] sm:$0xff] %v3320_v26   ;;  %v2319_v11 = vadd.f32 %v2318_v40, %v4623_v25  ;;  %v2088_v58 = vpop.f32.mrb[102].mxu0  ;;  %v3511_v31 = vpop.f32.mrb[134].mxu1 }
 0x22c   : > { %v4728_v7 = vadd.f32 %v2088_v58, %v1800_v48  ;;  %v2330_v4 = vadd.f32 %v3511_v31, %v4646_v52  ;;  %v2090_v13 = vpop.f32.mrb[103].mxu0  ;;  %v2321_v36 = vpop.f32.mrb[135].mxu1  ;;  %v2467_v18 = vmax.f32 %v2327_v21, 0.0 }
 0x22d   : > { %v2322_v35 = vadd.f32 %v2321_v36, %v4628_v53  ;;  %v2465_v47 = vmax.f32 %v2319_v11, 0.0 }
 0x22e   : > { %v2468_v17 = vmax.f32 %v2330_v4, 0.0  ;;  %v4823_v4 = vld [vmem:[#allocation10_spill] sm:$0xff] }
 0x22f   : > { %v2466_v42 = vmax.f32 %v2322_v35, 0.0  ;;  %v1821_v13 = vadd.f32 %v4474_v30, %v4823_v4 }
 0x230   : > { %v3335_v25 = vpack.c.bf16 %v2468_v17, %v2467_v18  ;;  %v4824_v17 = vld [vmem:[#allocation11_spill] sm:$0xff] }
 0x231   : > { %v3330_v56 = vpack.c.bf16 %v2466_v42, %v2465_v47  ;;  %v2093_v49 = vpop.f32.mrb[104].mxu0  ;;  %v3514_v6 = vpop.f32.mrb[136].mxu1  ;;  %v1824_v47 = vadd.f32 %v4474_v30, %v4824_v17 }
 0x232   : > { %3415 = vst [vmem:[%s4592_s22 + $0x98] sm:$0xff] %v3335_v25   ;;  %v4737_v52 = vadd.f32 %v2093_v49, %v1805_v51  ;;  %v2343_v53 = vadd.f32 %v3514_v6, %v4667_v46  ;;  %v2095_v16 = vpop.f32.mrb[105].mxu0  ;;  %v2334_v3 = vpop.f32.mrb[137].mxu1 }
 0x233   : > { %3414 = vst [vmem:[%s4592_s22 + $0x90] sm:$0xff] %v3330_v56   ;;  %v2335_v60 = vadd.f32 %v2334_v3, %v4653_v44  ;;  %v2096_v19 = vpop.f32.mrb[106].mxu0  ;;  %v3515_v63 = vpop.f32.mrb[138].mxu1 }
 0x234   : > { %v4742_v55 = vadd.f32 %v2096_v19, %v1808_v0  ;;  %v2346_v37 = vadd.f32 %v3515_v63, %v4672_v41  ;;  %v2098_v23 = vpop.f32.mrb[107].mxu0  ;;  %v2337_v14 = vpop.f32.mrb[139].mxu1  ;;  %v2471_v34 = vmax.f32 %v2343_v53, 0.0  ;;  %v4825_v19 = vld [vmem:[#allocation12_spill] sm:$0xff] }
 0x235   : > { %v2338_v28 = vadd.f32 %v2337_v14, %v4658_v22  ;;  %v2469_v46 = vmax.f32 %v2335_v60, 0.0  ;;  %v1829_v63 = vadd.f32 %v4474_v30, %v4825_v19 }
 0x236   : > { %v2472_v12 = vmax.f32 %v2346_v37, 0.0 }
 0x237   : > { %v2470_v29 = vmax.f32 %v2338_v28, 0.0  ;;  %v4826_v28 = vld [vmem:[#allocation13_spill] sm:$0xff] }
 0x238   : > { %v3345_v44 = vpack.c.bf16 %v2472_v12, %v2471_v34  ;;  %v1832_v34 = vadd.f32 %v4474_v30, %v4826_v28 }
 0x239   : > { %v3340_v2 = vpack.c.bf16 %v2470_v29, %v2469_v46  ;;  %v2101_v33 = vpop.f32.mrb[108].mxu0  ;;  %v3518_v59 = vpop.f32.mrb[140].mxu1 }
 0x23a   : > { %3417 = vst [vmem:[%s4592_s22 + $0xa8] sm:$0xff] %v3345_v44   ;;  %v2102_v41 = vadd.f32 %v2101_v33, %v1813_v61  ;;  %v2359_v38 = vadd.f32 %v3518_v59, %v4695_v32  ;;  %v2103_v22 = vpop.f32.mrb[109].mxu0  ;;  %v2350_v8 = vpop.f32.mrb[141].mxu1 }
 0x23b   : > { %3416 = vst [vmem:[%s4592_s22 + $0xa0] sm:$0xff] %v3340_v2   ;;  %v2351_v26 = vadd.f32 %v2350_v8, %v4681_v54  ;;  %v2104_v1 = vpop.f32.mrb[110].mxu0  ;;  %v3519_v5 = vpop.f32.mrb[142].mxu1 }
 0x23c   : > { %v2105_v62 = vadd.f32 %v2104_v1, %v1816_v9  ;;  %v2362_v48 = vadd.f32 %v3519_v5, %v4700_v10  ;;  %v2106_v21 = vpop.f32.mrb[111].mxu0  ;;  %v2353_v15 = vpop.f32.mrb[143].mxu1  ;;  %v2475_v11 = vmax.f32 %v2359_v38, 0.0 }
 0x23d   : > { %v2354_v40 = vadd.f32 %v2353_v15, %v4686_v57  ;;  %v2473_v31 = vmax.f32 %v2351_v26, 0.0  ;;  %v4828_v21 = vld [vmem:[#allocation15_spill] sm:$0xff] }
 0x23e   : > { %v2476_v58 = vmax.f32 %v2362_v48, 0.0  ;;  %v1840_v15 = vadd.f32 %v4474_v30, %v4828_v21 }
 0x23f   : > { %v2474_v32 = vmax.f32 %v2354_v40, 0.0 }
 0x240   : > { %v3355_v36 = vpack.c.bf16 %v2476_v58, %v2475_v11 }
 0x241   : > { %v3350_v54 = vpack.c.bf16 %v2474_v32, %v2473_v31  ;;  %v2109_v35 = vpop.f32.mrb[112].mxu0  ;;  %v3522_v18 = vpop.f32.mrb[144].mxu1 }
 0x242   : > { %3419 = vst [vmem:[%s4592_s22 + $0xb8] sm:$0xff] %v3355_v36   ;;  %v2110_v10 = vadd.f32 %v2109_v35, %v1821_v13  ;;  %v2375_v42 = vadd.f32 %v3522_v18, %v4723_v20  ;;  %v2111_v57 = vpop.f32.mrb[113].mxu0  ;;  %v2366_v24 = vpop.f32.mrb[145].mxu1 }
 0x243   : > { %3418 = vst [vmem:[%s4592_s22 + $0xb0] sm:$0xff] %v3350_v54   ;;  %v2367_v51 = vadd.f32 %v2366_v24, %v4709_v50  ;;  %v2112_v25 = vpop.f32.mrb[114].mxu0  ;;  %v3523_v56 = vpop.f32.mrb[146].mxu1  ;;  %v4829_v57 = vld [vmem:[#allocation17_spill] sm:$0xff] }
 0x244   : > { %v2113_v49 = vadd.f32 %v2112_v25, %v1824_v47  ;;  %v2378_v6 = vadd.f32 %v3523_v56, %v4728_v7  ;;  %v2114_v27 = vpop.f32.mrb[115].mxu0  ;;  %v2369_v0 = vpop.f32.mrb[147].mxu1  ;;  %v2479_v16 = vmax.f32 %v2375_v42, 0.0  ;;  %v1845_v24 = vadd.f32 %v4474_v30, %v4829_v57 }
 0x245   : > { %v2370_v53 = vadd.f32 %v2369_v0, %v4714_v45  ;;  %v2477_v60 = vmax.f32 %v2367_v51, 0.0 }
 0x246   : > { %v2480_v3 = vmax.f32 %v2378_v6, 0.0  ;;  %v4830_v6 = vld [vmem:[#allocation18_spill] sm:$0xff] }
 0x247   : > { %v2478_v20 = vmax.f32 %v2370_v53, 0.0  ;;  %v1848_v27 = vadd.f32 %v4474_v30, %v4830_v6 }
 0x248   : > { %v3365_v37 = vpack.c.bf16 %v2480_v3, %v2479_v16 }
 0x249   : > { %v3360_v50 = vpack.c.bf16 %v2478_v20, %v2477_v60  ;;  %v2117_v23 = vpop.f32.mrb[116].mxu0  ;;  %v3526_v14 = vpop.f32.mrb[148].mxu1 }
 0x24a   : > { %3421 = vst [vmem:[%s4592_s22 + $0xc8] sm:$0xff] %v3365_v37   ;;  %v2118_v7 = vadd.f32 %v2117_v23, %v1829_v63  ;;  %v2391_v12 = vadd.f32 %v3526_v14, %v2102_v41  ;;  %v2119_v46 = vpop.f32.mrb[117].mxu0  ;;  %v2382_v45 = vpop.f32.mrb[149].mxu1  ;;  %v4827_v41 = vld [vmem:[#allocation14_spill] sm:$0xff] }
 0x24b   : > { %3420 = vst [vmem:[%s4592_s22 + $0xc0] sm:$0xff] %v3360_v50   ;;  %v2383_v29 = vadd.f32 %v2382_v45, %v4737_v52  ;;  %v2120_v43 = vpop.f32.mrb[118].mxu0  ;;  %v3527_v61 = vpop.f32.mrb[150].mxu1  ;;  %v1837_v26 = vadd.f32 %v4474_v30, %v4827_v41 }
 0x24c   : > { %v2121_v44 = vadd.f32 %v2120_v43, %v1832_v34  ;;  %v2394_v2 = vadd.f32 %v3527_v61, %v2105_v62  ;;  %v2122_v33 = vpop.f32.mrb[119].mxu0  ;;  %v2385_v59 = vpop.f32.mrb[151].mxu1  ;;  %v2483_v9 = vmax.f32 %v2391_v12, 0.0 }
 0x24d   : > { %v2386_v39 = vadd.f32 %v2385_v59, %v4742_v55  ;;  %v2481_v22 = vmax.f32 %v2383_v29, 0.0 }
 0x24e   : > { %v2484_v38 = vmax.f32 %v2394_v2, 0.0 }
 0x24f   : > { %v2482_v8 = vmax.f32 %v2386_v39, 0.0 }
 0x250   : > { %v3375_v1 = vpack.c.bf16 %v2484_v38, %v2483_v9 }
 0x251   : > { %v3370_v5 = vpack.c.bf16 %v2482_v8, %v2481_v22  ;;  %v2125_v52 = vpop.f32.mrb[120].mxu0  ;;  %v3530_v48 = vpop.f32.mrb[152].mxu1 }
 0x252   : > { %3423 = vst [vmem:[%s4592_s22 + $0xd8] sm:$0xff] %v3375_v1   ;;  %v2126_v62 = vadd.f32 %v2125_v52, %v1837_v26  ;;  %v2407_v40 = vadd.f32 %v3530_v48, %v2118_v7  ;;  %v2127_v11 = vpop.f32.mrb[121].mxu0  ;;  %v2398_v55 = vpop.f32.mrb[153].mxu1 }
 0x253   : > { %3422 = vst [vmem:[%s4592_s22 + $0xd0] sm:$0xff] %v3370_v5   ;;  %v2399_v58 = vadd.f32 %v2398_v55, %v2110_v10  ;;  %v2128_v31 = vpop.f32.mrb[122].mxu0  ;;  %v3531_v32 = vpop.f32.mrb[154].mxu1 }
 0x254   : > { %v2129_v4 = vadd.f32 %v2128_v31, %v1840_v15  ;;  %v2410_v13 = vadd.f32 %v3531_v32, %v2121_v44  ;;  %v2130_v36 = vpop.f32.mrb[123].mxu0  ;;  %v2401_v54 = vpop.f32.mrb[155].mxu1  ;;  %v2487_v18 = vmax.f32 %v2407_v40, 0.0 }
 0x255   : > { %v2402_v35 = vadd.f32 %v2401_v54, %v2113_v49  ;;  %v2485_v47 = vmax.f32 %v2399_v58, 0.0 }
 0x256   : > { %v2488_v17 = vmax.f32 %v2410_v13, 0.0 }
 0x257   : > { %v2486_v42 = vmax.f32 %v2402_v35, 0.0 }
 0x258   : > { %v3385_v51 = vpack.c.bf16 %v2488_v17, %v2487_v18 }
 0x259   : > { %v3380_v25 = vpack.c.bf16 %v2486_v42, %v2485_v47  ;;  %v2133_v56 = vpop.f32.mrb[124].mxu0  ;;  %v3534_v10 = vpop.f32.mrb[156].mxu1 }
 0x25a   : > { %3425 = vst [vmem:[%s4592_s22 + $0xe8] sm:$0xff] %v3385_v51   ;;  %v2134_v0 = vadd.f32 %v2133_v56, %v1845_v24  ;;  %v2135_v53 = vpop.f32.mrb[125].mxu0  ;;  %v2414_v16 = vpop.f32.mrb[157].mxu1 }
 0x25b   : > { %3424 = vst [vmem:[%s4592_s22 + $0xe0] sm:$0xff] %v3380_v25   ;;  %v2415_v49 = vadd.f32 %v2414_v16, %v2126_v62  ;;  %v2136_v3 = vpop.f32.mrb[126].mxu0  ;;  %v3535_v60 = vpop.f32.mrb[158].mxu1 }
 0x25c   : > { %v2423_v20 = vadd.f32 %v3534_v10, %v2134_v0  ;;  %v2137_v19 = vadd.f32 %v2136_v3, %v1848_v27  ;;  %v2138_v63 = vpop.f32.mrb[127].mxu0  ;;  %v2417_v37 = vpop.f32.mrb[159].mxu1 }
 0x25d   : > { %v2418_v50 = vadd.f32 %v2417_v37, %v2129_v4  ;;  %v2489_v14 = vmax.f32 %v2415_v49, 0.0 }
 0x25e   : > { %v2426_v23 = vadd.f32 %v3535_v60, %v2137_v19  ;;  %v2491_v34 = vmax.f32 %v2423_v20, 0.0 }
 0x25f   : > { %v2490_v28 = vmax.f32 %v2418_v50, 0.0 }
 0x260   : > { %v2492_v30 = vmax.f32 %v2426_v23, 0.0 }
 0x261   : > { %v3390_v7 = vpack.c.bf16 %v2490_v28, %v2489_v14 }
 0x262   : > { %v3395_v12 = vpack.c.bf16 %v2492_v30, %v2491_v34 }
 0x263   : > { %3426 = vst [vmem:[%s4592_s22 + $0xf0] sm:$0xff] %v3390_v7  }
 0x264   : > { %3427 = vst [vmem:[%s4592_s22 + $0xf8] sm:$0xff] %v3395_v12  }
 0x265 PF: > { %s13_s12 = sadd.s32 1, %s3988_s12  }
 0x266   : > { %p10_p4 = scmp.ge.s32.totalorder %s13_s12, 10  }
 0x268   :  { %12 = sbr.rel (!%p10_p4) target bundleno = 1 (0x1), region = 62 }

// kernel: wavenet_forward.11
= control target key start
LH: loop header
LB: loop body
LE: loop exit
PB: predicated region body
PF: predicated region fallthrough
CT: control target
= control target key end

     0   :  { %s6193_s12 = smov 0   ;;  %s7332_s0 = inlined_call_operand.vmem [shape: bf16[1024,1152], index: 0, kind: input, shape index: {}]   ;;  %s7333_s1 = inlined_call_operand.vmem [shape: bf16[1152,128], index: 1, kind: input, shape index: {}]   ;;  %s7334_s2 = inlined_call_operand.vmem [shape: f32[1,128], index: 2, kind: input, shape index: {}]   ;;  %s7335_s3 = inlined_call_operand.vmem [shape: bf16[1024,128], index: 3, kind: output, shape index: {}]  }
   0x1 LB: > { %s4438_s13 = sadd.s32 4294967295, %s6170_s12   ;;  %p4442_p0 = scmp.ge.s32.totalorder %s6170_s12, 1  ;;  %s6170_s12 = sphi %s6193_s12, %s13_s12  }
   0x2   : > { %p139_p1 = scmp.lt.s32.totalorder %s6170_s12, 3 }
   0x4   : > { %p140_p2 = pnand %p4442_p0, %p139_p1 }
   0x6   : > { %143 = sbr.rel (%p140_p2) target bundleno = 870 (0x366), region = 32 }
   0xd   : > { %v5675_v0 = vld [vmem:[%s7333_s1] sm:$0xff]   ;;  %v6172_v1 = vmov 0   ;;  %v5677_v3 = vld [vmem:[%s7333_s1 + $0x8] sm:$0xff]   ;;  %v5679_v5 = vld [vmem:[%s7333_s1 + $0x10] sm:$0xff]   ;;  %s4443_s7 = sshll.u32 %s4438_s13, 6 }
   0xe   : > { %2553 = vmatprep.subr.bf16.mxu1 %v6172_v1  ;;  %2842 = vmatprep.subr.bf16.mxu0 %v6172_v1  ;;  %v6209_v2 = vld [vmem:[%s7333_s1 + $0x80] sm:$0xff]   ;;  %v6219_v4 = vld [vmem:[%s7333_s1 + $0x88] sm:$0xff]   ;;  %v6230_v6 = vld [vmem:[%s7333_s1 + $0x90] sm:$0xff]   ;;  %p165_p3 = scmp.lt.s32.totalorder %s4443_s7, 127 }
   0xf   : > { %2554 = vmatpush1.bf16.msra.mxu1 %v5675_v0  ;;  %2843 = vmatpush1.bf16.msra.mxu0 %v6209_v2  ;;  %v5681_v7 = vld [vmem:[%s7333_s1 + $0x18] sm:$0xff]   ;;  %v5683_v9 = vld [vmem:[%s7333_s1 + $0x20] sm:$0xff]   ;;  %v5685_v11 = vld [vmem:[%s7333_s1 + $0x28] sm:$0xff]  }
  0x10   : > { %2555 = vmatprep.subr.bf16.mxu1 %v6172_v1  ;;  %2844 = vmatprep.subr.bf16.mxu0 %v6172_v1  ;;  %v6241_v8 = vld [vmem:[%s7333_s1 + $0x98] sm:$0xff]   ;;  %v6252_v10 = vld [vmem:[%s7333_s1 + $0xa0] sm:$0xff]   ;;  %v6265_v12 = vld [vmem:[%s7333_s1 + $0xa8] sm:$0xff]   ;;  %s7371_s7 = smov (!%p165_p3, %s4443_s7), 127 }
  0x11   : > { %v5687_v13 = vld [vmem:[%s7333_s1 + $0x30] sm:$0xff]   ;;  %v5689_v15 = vld [vmem:[%s7333_s1 + $0x38] sm:$0xff]   ;;  %s5665_s19 = smul.u32 36, %s7371_s7  ;;  %v5691_v17 = vld [vmem:[%s7333_s1 + $0x40] sm:$0xff]  }
  0x12   : > { %v6278_v14 = vld [vmem:[%s7333_s1 + $0xb0] sm:$0xff]   ;;  %v6290_v16 = vld [vmem:[%s7333_s1 + $0xb8] sm:$0xff]   ;;  %v6306_v18 = vld [vmem:[%s7333_s1 + $0xc0] sm:$0xff]  }
  0x13   : > { %2556 = vmatpush1.bf16.msra.mxu1 %v5677_v3  ;;  %2845 = vmatpush1.bf16.msra.mxu0 %v6219_v4  ;;  %s6299_s26 = scalar_lea.vmem %s7332_s0, %s5665_s19  ;;  %v5693_v20 = vld [vmem:[%s7333_s1 + $0x48] sm:$0xff]   ;;  %v5695_v23 = vld [vmem:[%s7333_s1 + $0x50] sm:$0xff]   ;;  %v5697_v25 = vld [vmem:[%s7333_s1 + $0x58] sm:$0xff]  }
  0x14   : > { %2557 = vmatprep.subr.bf16.mxu1 %v6172_v1  ;;  %2846 = vmatprep.subr.bf16.mxu0 %v6172_v1  ;;  %v5709_v19 = vld [vmem:[%s6299_s26 + $0x4] ss:$36 sps:$4 sm:$0xff]   ;;  %v5712_v21 = vld [vmem:[%s6299_s26 + $0xc] ss:$36 sps:$4 sm:$0xff]   ;;  %v6341_v26 = vld [vmem:[%s7333_s1 + $0xd8] sm:$0xff]  }
  0x15   : > { %v6319_v22 = vld [vmem:[%s7333_s1 + $0xc8] sm:$0xff]   ;;  %2585 = vmatprep.mubr.bf16.mxu1 %v5709_v19  ;;  %2874 = vmatprep.mubr.bf16.mxu0 %v5712_v21  ;;  %v6330_v24 = vld [vmem:[%s7333_s1 + $0xd0] sm:$0xff]   ;;  %v5699_v27 = vld [vmem:[%s7333_s1 + $0x60] sm:$0xff]  }
  0x16   : > { %v6352_v28 = vld [vmem:[%s7333_s1 + $0xe0] sm:$0xff]   ;;  %v5701_v29 = vld [vmem:[%s7333_s1 + $0x68] sm:$0xff]   ;;  %v5703_v31 = vld [vmem:[%s7333_s1 + $0x70] sm:$0xff]  }
  0x17   : > { %2558 = vmatpush1.bf16.msra.mxu1 %v5679_v5  ;;  %2847 = vmatpush1.bf16.msra.mxu0 %v6230_v6  ;;  %v6363_v30 = vld [vmem:[%s7333_s1 + $0xe8] sm:$0xff]   ;;  %v6374_v32 = vld [vmem:[%s7333_s1 + $0xf0] sm:$0xff]   ;;  %v5705_v33 = vld [vmem:[%s7333_s1 + $0x78] sm:$0xff]  }
  0x18   : > { %2559 = vmatprep.subr.bf16.mxu1 %v6172_v1  ;;  %2848 = vmatprep.subr.bf16.mxu0 %v6172_v1  ;;  %v6385_v34 = vld [vmem:[%s7333_s1 + $0xf8] sm:$0xff]   ;;  %v5707_v35 = vld [vmem:[%s6299_s26] ss:$36 sps:$4 sm:$0xff]   ;;  %v5710_v36 = vld [vmem:[%s6299_s26 + $0x8] ss:$36 sps:$4 sm:$0xff]  }
  0x19   : > { %v5713_v37 = vld [vmem:[%s7333_s1 + $0x100] sm:$0xff]   ;;  %v5715_v38 = vld [vmem:[%s6299_s26 + $0x4c] ss:$36 sps:$4 sm:$0xff]   ;;  %v5717_v39 = vld [vmem:[%s6299_s26 + $0x54] ss:$36 sps:$4 sm:$0xff]  }
  0x1a   : > { %v5714_v40 = vld [vmem:[%s7333_s1 + $0x108] sm:$0xff]   ;;  %v5720_v42 = vld [vmem:[%s6299_s26 + $0x50] ss:$36 sps:$4 sm:$0xff]   ;;  %v5725_v45 = vld [vmem:[%s6299_s26 + $0x9c] ss:$36 sps:$4 sm:$0xff]  }
  0x1b   : > { %2560 = vmatpush1.bf16.msra.mxu1 %v5681_v7  ;;  %2849 = vmatpush1.bf16.msra.mxu0 %v6241_v8  ;;  %v5719_v41 = vld [vmem:[%s6299_s26 + $0x48] ss:$36 sps:$4 sm:$0xff]   ;;  %v5723_v43 = vld [vmem:[%s6299_s26 + $0x94] ss:$36 sps:$4 sm:$0xff]   ;;  %v5729_v49 = vld [vmem:[%s7333_s1 + $0x120] sm:$0xff]  }
  0x1c   : > { %2561 = vmatprep.subr.bf16.mxu1 %v6172_v1  ;;  %2850 = vmatprep.subr.bf16.mxu0 %v6172_v1  ;;  %v5721_v44 = vld [vmem:[%s7333_s1 + $0x110] sm:$0xff]   ;;  %v5722_v46 = vld [vmem:[%s7333_s1 + $0x118] sm:$0xff]   ;;  %v5733_v51 = vld [vmem:[%s6299_s26 + $0xe4] ss:$36 sps:$4 sm:$0xff]  }
  0x1d   : > { %v5727_v47 = vld [vmem:[%s6299_s26 + $0x90] ss:$36 sps:$4 sm:$0xff]   ;;  %v5728_v48 = vld [vmem:[%s6299_s26 + $0x98] ss:$36 sps:$4 sm:$0xff]   ;;  %v5730_v52 = vld [vmem:[%s7333_s1 + $0x128] sm:$0xff]  }
  0x1e   : > { %v5731_v50 = vld [vmem:[%s6299_s26 + $0xdc] ss:$36 sps:$4 sm:$0xff]   ;;  %v5739_v55 = vld [vmem:[%s6299_s26 + $0x124] ss:$36 sps:$4 sm:$0xff]   ;;  %v5737_v56 = vld [vmem:[%s7333_s1 + $0x130] sm:$0xff]  }
  0x1f   : > { %2562 = vmatpush1.bf16.msra.mxu1 %v5683_v9  ;;  %2851 = vmatpush1.bf16.msra.mxu0 %v6252_v10  ;;  %v5735_v53 = vld [vmem:[%s6299_s26 + $0xd8] ss:$36 sps:$4 sm:$0xff]   ;;  %v5736_v54 = vld [vmem:[%s6299_s26 + $0xe0] ss:$36 sps:$4 sm:$0xff]   ;;  %v5741_v57 = vld [vmem:[%s6299_s26 + $0x12c] ss:$36 sps:$4 sm:$0xff]  }
  0x20   : > { %2563 = vmatprep.subr.bf16.mxu1 %v6172_v1  ;;  %2852 = vmatprep.subr.bf16.mxu0 %v6172_v1  ;;  %v5738_v58 = vld [vmem:[%s7333_s1 + $0x138] sm:$0xff]   ;;  %v5743_v59 = vld [vmem:[%s6299_s26 + $0x120] ss:$36 sps:$4 sm:$0xff]   ;;  %v5744_v60 = vld [vmem:[%s6299_s26 + $0x128] ss:$36 sps:$4 sm:$0xff]  }
  0x21   : > { %v5745_v61 = vld [vmem:[%s7333_s1 + $0x140] sm:$0xff]   ;;  %v5747_v62 = vld [vmem:[%s6299_s26 + $0x16c] ss:$36 sps:$4 sm:$0xff]   ;;  %v5749_v63 = vld [vmem:[%s6299_s26 + $0x174] ss:$36 sps:$4 sm:$0xff]  }
  0x22   : > { %v5746_v0 = vld [vmem:[%s7333_s1 + $0x148] sm:$0xff]   ;;  %v5752_v3 = vld [vmem:[%s6299_s26 + $0x170] ss:$36 sps:$4 sm:$0xff]   ;;  %v5754_v7 = vld [vmem:[%s7333_s1 + $0x158] sm:$0xff]  }
  0x23   : > { %2564 = vmatpush1.bf16.msra.mxu1 %v5685_v11  ;;  %2853 = vmatpush1.bf16.msra.mxu0 %v6265_v12  ;;  %v5753_v5 = vld [vmem:[%s7333_s1 + $0x150] sm:$0xff]   ;;  %v5760_v9 = vld [vmem:[%s6299_s26 + $0x1b8] ss:$36 sps:$4 sm:$0xff]  }
  0x24   : > { %2565 = vmatprep.subr.bf16.mxu1 %v6172_v1  ;;  %2854 = vmatprep.subr.bf16.mxu0 %v6172_v1  ;;  %v5763_v11 = vld [vmem:[%s6299_s26 + $0x1fc] ss:$36 sps:$4 sm:$0xff]   ;;  %v5773_v21 = vld [vmem:[%s6299_s26 + $0x10] ss:$36 sps:$4 sm:$0xff]  }
  0x25   : > { %v5770_v19 = vld [vmem:[%s7333_s1 + $0x178] sm:$0xff]  }
  0x27   : > { %2566 = vmatpush1.bf16.msra.mxu1 %v5687_v13  ;;  %2855 = vmatpush1.bf16.msra.mxu0 %v6278_v14  ;;  %v5762_v13 = vld [vmem:[%s7333_s1 + $0x168] sm:$0xff]  }
  0x28   : > { %2567 = vmatprep.subr.bf16.mxu1 %v6172_v1  ;;  %2856 = vmatprep.subr.bf16.mxu0 %v6172_v1 }
  0x2b   : > { %2568 = vmatpush1.bf16.msra.mxu1 %v5689_v15  ;;  %2857 = vmatpush1.bf16.msra.mxu0 %v6290_v16  ;;  %v5768_v15 = vld [vmem:[%s6299_s26 + $0x200] ss:$36 sps:$4 sm:$0xff]  }
  0x2c   : > { %2569 = vmatprep.subr.bf16.mxu1 %v6172_v1  ;;  %2858 = vmatprep.subr.bf16.mxu0 %v6172_v1 }
  0x2f   : > { %2570 = vmatpush1.bf16.msra.mxu1 %v5691_v17  ;;  %2859 = vmatpush1.bf16.msra.mxu0 %v6306_v18  ;;  %v5769_v17 = vld [vmem:[%s7333_s1 + $0x170] sm:$0xff]  }
  0x30   : > { %2571 = vmatprep.subr.bf16.mxu1 %v6172_v1  ;;  %2860 = vmatprep.subr.bf16.mxu0 %v6172_v1 }
  0x33   : > { %2572 = vmatpush1.bf16.msra.mxu1 %v5693_v20  ;;  %2861 = vmatpush1.bf16.msra.mxu0 %v6319_v22  ;;  %v5776_v20 = vld [vmem:[%s6299_s26 + $0x240] ss:$36 sps:$4 sm:$0xff]  }
  0x34   : > { %2573 = vmatprep.subr.bf16.mxu1 %v6172_v1  ;;  %2862 = vmatprep.subr.bf16.mxu0 %v6172_v1 }
  0x37   : > { %2574 = vmatpush1.bf16.msra.mxu1 %v5695_v23  ;;  %2863 = vmatpush1.bf16.msra.mxu0 %v6330_v24  ;;  %v5777_v23 = vld [vmem:[%s7333_s1 + $0x180] sm:$0xff]  }
  0x38   : > { %2575 = vmatprep.subr.bf16.mxu1 %v6172_v1  ;;  %2864 = vmatprep.subr.bf16.mxu0 %v6172_v1 }
  0x3b   : > { %2576 = vmatpush1.bf16.msra.mxu1 %v5697_v25  ;;  %2865 = vmatpush1.bf16.msra.mxu0 %v6341_v26  ;;  %v5782_v25 = vld [vmem:[%s6299_s26 + $0x288] ss:$36 sps:$4 sm:$0xff]  }
  0x3c   : > { %2577 = vmatprep.subr.bf16.mxu1 %v6172_v1  ;;  %2866 = vmatprep.subr.bf16.mxu0 %v6172_v1 }
  0x3f   : > { %2578 = vmatpush1.bf16.msra.mxu1 %v5699_v27  ;;  %2867 = vmatpush1.bf16.msra.mxu0 %v6352_v28  ;;  %v5783_v27 = vld [vmem:[%s6299_s26 + $0x58] ss:$36 sps:$4 sm:$0xff]  }
  0x40   : > { %2579 = vmatprep.subr.bf16.mxu1 %v6172_v1  ;;  %2868 = vmatprep.subr.bf16.mxu0 %v6172_v1 }
  0x43   : > { %2580 = vmatpush1.bf16.msra.mxu1 %v5701_v29  ;;  %2869 = vmatpush1.bf16.msra.mxu0 %v6363_v30  ;;  %v5786_v29 = vld [vmem:[%s6299_s26 + $0xa4] ss:$36 sps:$4 sm:$0xff]  }
  0x44   : > { %2581 = vmatprep.subr.bf16.mxu1 %v6172_v1  ;;  %2870 = vmatprep.subr.bf16.mxu0 %v6172_v1 }
  0x47   : > { %2582 = vmatpush1.bf16.msra.mxu1 %v5703_v31  ;;  %2871 = vmatpush1.bf16.msra.mxu0 %v6374_v32  ;;  %v5788_v31 = vld [vmem:[%s6299_s26 + $0x2d0] ss:$36 sps:$4 sm:$0xff]  }
  0x48   : > { %2583 = vmatprep.subr.bf16.mxu1 %v6172_v1  ;;  %2872 = vmatprep.subr.bf16.mxu0 %v6172_v1 }
  0x4b   : > { %2584 = vmatpush1.bf16.msra.mxu1 %v5705_v33  ;;  %2873 = vmatpush1.bf16.msra.mxu0 %v6385_v34  ;;  %v5789_v33 = vld [vmem:[%s6299_s26 + $0xa0] ss:$36 sps:$4 sm:$0xff]  }
  0x4c   : > { %5249 = vmatprep.subr.bf16.mxu1 %v6172_v1  ;;  %3131 = vmatprep.subr.bf16.mxu0 %v6172_v1 }
  0x4e   : > { %2586 = vmatmul.mubr.bf16.vlgmr.msra.gmra.mrb[0].mxu1 %v5707_v35  ;;  %2875 = vmatmul.mubr.bf16.vlgmr.msra.gmra.mrb[0].mxu0 %v5710_v36  ;;  %v5793_v35 = vld [vmem:[%s6299_s26 + $0xec] ss:$36 sps:$4 sm:$0xff]   ;;  %v5829_v36 = vld [vmem:[%s7333_s1 + $0x1a0] sm:$0xff]  }
  0x4f   : > { %5265 = vmatpush1.bf16.msra.mxu1 %v6209_v2  ;;  %3132 = vmatpush1.bf16.msra.mxu0 %v5713_v37  ;;  %v5751_v2 = vld [vmem:[%s6299_s26 + $0x168] ss:$36 sps:$4 sm:$0xff]  }
  0x50   : > { %2593 = vmatprep.mubr.bf16.mxu1 %v5715_v38  ;;  %3133 = vmatprep.subr.bf16.mxu0 %v6172_v1  ;;  %v5842_v37 = vld [vmem:[%s7333_s1 + $0x1a8] sm:$0xff]   ;;  %v5795_v38 = vld [vmem:[%s6299_s26 + $0x318] ss:$36 sps:$4 sm:$0xff]  }
  0x51   : > { %2882 = vmatprep.mubr.bf16.mxu0 %v5717_v39  ;;  %5250 = vmatprep.subr.bf16.mxu1 %v6172_v1  ;;  %v5796_v39 = vld [vmem:[%s6299_s26 + $0xe8] ss:$36 sps:$4 sm:$0xff]  }
  0x53   : > { %5266 = vmatpush1.bf16.msra.mxu1 %v6219_v4  ;;  %3134 = vmatpush1.bf16.msra.mxu0 %v5714_v40  ;;  %v5755_v4 = vld [vmem:[%s6299_s26 + $0x1b4] ss:$36 sps:$4 sm:$0xff]   ;;  %v5797_v40 = vld [vmem:[%s6299_s26 + $0x364] ss:$36 sps:$4 sm:$0xff]  }
  0x54   : > { %5251 = vmatprep.subr.bf16.mxu1 %v6172_v1  ;;  %3135 = vmatprep.subr.bf16.mxu0 %v6172_v1 }
  0x56   : > { %2594 = vmatmul.mubr.bf16.gmra.mrb[4].mxu1 %v5719_v41  ;;  %2883 = vmatmul.mubr.bf16.gmra.mrb[4].mxu0 %v5720_v42  ;;  %v5799_v41 = vld [vmem:[%s6299_s26 + $0x134] ss:$36 sps:$4 sm:$0xff]  }
  0x57   : > { %2601 = vmatprep.mubr.bf16.mxu1 %v5723_v43  ;;  %3136 = vmatpush1.bf16.msra.mxu0 %v5721_v44  ;;  %v5855_v42 = vld [vmem:[%s7333_s1 + $0x1b0] sm:$0xff]   ;;  %v5868_v43 = vld [vmem:[%s7333_s1 + $0x1b8] sm:$0xff]   ;;  %v5801_v44 = vld [vmem:[%s6299_s26 + $0x360] ss:$36 sps:$4 sm:$0xff]  }
  0x58   : > { %2890 = vmatprep.mubr.bf16.mxu0 %v5725_v45  ;;  %3137 = vmatprep.subr.bf16.mxu0 %v6172_v1  ;;  %v5802_v45 = vld [vmem:[%s6299_s26 + $0x130] ss:$36 sps:$4 sm:$0xff]  }
  0x59   : > { %5267 = vmatpush1.bf16.msra.mxu1 %v6230_v6  ;;  %v5757_v6 = vld [vmem:[%s6299_s26 + $0x1bc] ss:$36 sps:$4 sm:$0xff]  }
  0x5a   : > { %5252 = vmatprep.subr.bf16.mxu1 %v6172_v1 }
  0x5b   : > { %3138 = vmatpush1.bf16.msra.mxu0 %v5722_v46  ;;  %v5804_v46 = vld [vmem:[%s6299_s26 + $0x3ac] ss:$36 sps:$4 sm:$0xff]  }
  0x5c   : > { %3139 = vmatprep.subr.bf16.mxu0 %v6172_v1 }
  0x5d   : > { %5268 = vmatpush1.bf16.msra.mxu1 %v6241_v8  ;;  %v5759_v8 = vld [vmem:[%s6299_s26 + $0x1b0] ss:$36 sps:$4 sm:$0xff]  }
  0x5e   : > { %2602 = vmatmul.mubr.bf16.gmra.mrb[8].mxu1 %v5727_v47  ;;  %5253 = vmatprep.subr.bf16.mxu1 %v6172_v1  ;;  %v5806_v47 = vld [vmem:[%s6299_s26 + $0x17c] ss:$36 sps:$4 sm:$0xff]  }
  0x5f   : > { %2891 = vmatmul.mubr.bf16.gmra.mrb[8].mxu0 %v5728_v48  ;;  %2609 = vmatprep.mubr.bf16.mxu1 %v5731_v50  ;;  %v5881_v48 = vld [vmem:[%s7333_s1 + $0x1c0] sm:$0xff]   ;;  %v5808_v50 = vld [vmem:[%s6299_s26 + $0x3a8] ss:$36 sps:$4 sm:$0xff]  }
  0x60   : > { %3140 = vmatpush1.bf16.msra.mxu0 %v5729_v49  ;;  %2898 = vmatprep.mubr.bf16.mxu0 %v5733_v51  ;;  %v5894_v49 = vld [vmem:[%s7333_s1 + $0x1c8] sm:$0xff]   ;;  %v5809_v51 = vld [vmem:[%s6299_s26 + $0x178] ss:$36 sps:$4 sm:$0xff]  }
  0x61   : > { %3141 = vmatprep.subr.bf16.mxu0 %v6172_v1  ;;  %5269 = vmatpush1.bf16.msra.mxu1 %v6252_v10  ;;  %v5761_v10 = vld [vmem:[%s7333_s1 + $0x160] sm:$0xff]  }
  0x62   : > { %5254 = vmatprep.subr.bf16.mxu1 %v6172_v1 }
  0x64   : > { %3142 = vmatpush1.bf16.msra.mxu0 %v5730_v52  ;;  %v5810_v52 = vld [vmem:[%s6299_s26 + $0x3f4] ss:$36 sps:$4 sm:$0xff]  }
  0x65   : > { %3143 = vmatprep.subr.bf16.mxu0 %v6172_v1  ;;  %5270 = vmatpush1.bf16.msra.mxu1 %v6265_v12  ;;  %v5765_v12 = vld [vmem:[%s6299_s26 + $0x204] ss:$36 sps:$4 sm:$0xff]  }
  0x66   : > { %2610 = vmatmul.mubr.bf16.gmra.mrb[12].mxu1 %v5735_v53  ;;  %5255 = vmatprep.subr.bf16.mxu1 %v6172_v1  ;;  %v5812_v53 = vld [vmem:[%s6299_s26 + $0x1c4] ss:$36 sps:$4 sm:$0xff]  }
  0x67   : > { %2899 = vmatmul.mubr.bf16.gmra.mrb[12].mxu0 %v5736_v54  ;;  %2617 = vmatprep.mubr.bf16.mxu1 %v5739_v55  ;;  %v5907_v54 = vld [vmem:[%s7333_s1 + $0x1d0] sm:$0xff]  }
  0x68   : > { %3144 = vmatpush1.bf16.msra.mxu0 %v5737_v56  ;;  %2906 = vmatprep.mubr.bf16.mxu0 %v5741_v57  ;;  %v5814_v55 = vld [vmem:[%s6299_s26 + $0x3f0] ss:$36 sps:$4 sm:$0xff]   ;;  %v5815_v56 = vld [vmem:[%s6299_s26 + $0x1c0] ss:$36 sps:$4 sm:$0xff]  }
  0x69   : > { %3145 = vmatprep.subr.bf16.mxu0 %v6172_v1  ;;  %5271 = vmatpush1.bf16.msra.mxu1 %v6278_v14  ;;  %v5767_v14 = vld [vmem:[%s6299_s26 + $0x1f8] ss:$36 sps:$4 sm:$0xff]  }
  0x6a   : > { %5256 = vmatprep.subr.bf16.mxu1 %v6172_v1  ;;  %v5817_v57 = vld [vmem:[%s6299_s26 + $0x43c] ss:$36 sps:$4 sm:$0xff]  }
  0x6c   : > { %3146 = vmatpush1.bf16.msra.mxu0 %v5738_v58  ;;  %v5819_v58 = vld [vmem:[%s6299_s26 + $0x20c] ss:$36 sps:$4 sm:$0xff]  }
  0x6d   : > { %3147 = vmatprep.subr.bf16.mxu0 %v6172_v1  ;;  %5272 = vmatpush1.bf16.msra.mxu1 %v6290_v16  ;;  %v5771_v16 = vld [vmem:[%s6299_s26 + $0x244] ss:$36 sps:$4 sm:$0xff]  }
  0x6e   : > { %2618 = vmatmul.mubr.bf16.gmra.mrb[16].mxu1 %v5743_v59  ;;  %5257 = vmatprep.subr.bf16.mxu1 %v6172_v1  ;;  %v5920_v59 = vld [vmem:[%s7333_s1 + $0x1d8] sm:$0xff]  }
  0x6f   : > { %2907 = vmatmul.mubr.bf16.gmra.mrb[16].mxu0 %v5744_v60  ;;  %2625 = vmatprep.mubr.bf16.mxu1 %v5747_v62  ;;  %v5821_v60 = vld [vmem:[%s6299_s26 + $0x438] ss:$36 sps:$4 sm:$0xff]   ;;  %v5823_v62 = vld [vmem:[%s6299_s26 + $0x484] ss:$36 sps:$4 sm:$0xff]  }
  0x70   : > { %3148 = vmatpush1.bf16.msra.mxu0 %v5745_v61  ;;  %2914 = vmatprep.mubr.bf16.mxu0 %v5749_v63  ;;  %v5822_v61 = vld [vmem:[%s6299_s26 + $0x208] ss:$36 sps:$4 sm:$0xff]   ;;  %v5825_v63 = vld [vmem:[%s6299_s26 + $0x254] ss:$36 sps:$4 sm:$0xff]  }
  0x71   : > { %3149 = vmatprep.subr.bf16.mxu0 %v6172_v1  ;;  %5273 = vmatpush1.bf16.msra.mxu1 %v6306_v18  ;;  %v5775_v18 = vld [vmem:[%s6299_s26 + $0x14] ss:$36 sps:$4 sm:$0xff]  }
  0x72   : > { %5258 = vmatprep.subr.bf16.mxu1 %v6172_v1 }
  0x74   : > { %3150 = vmatpush1.bf16.msra.mxu0 %v5746_v0  ;;  %v5827_v0 = vld [vmem:[%s6299_s26 + $0x480] ss:$36 sps:$4 sm:$0xff]  }
  0x75   : > { %3151 = vmatprep.subr.bf16.mxu0 %v6172_v1  ;;  %5274 = vmatpush1.bf16.msra.mxu1 %v6319_v22  ;;  %v5778_v22 = vld [vmem:[%s6299_s26 + $0x28c] ss:$36 sps:$4 sm:$0xff]  }
  0x76   : > { %2626 = vmatmul.mubr.bf16.gmra.mrb[20].mxu1 %v5751_v2  ;;  %5259 = vmatprep.subr.bf16.mxu1 %v6172_v1  ;;  %v5828_v2 = vld [vmem:[%s6299_s26 + $0x250] ss:$36 sps:$4 sm:$0xff]  }
  0x77   : > { %2915 = vmatmul.mubr.bf16.gmra.mrb[20].mxu0 %v5752_v3  ;;  %2633 = vmatprep.mubr.bf16.mxu1 %v5755_v4  ;;  %v5830_v3 = vld [vmem:[%s6299_s26 + $0x4cc] ss:$36 sps:$4 sm:$0xff]   ;;  %v5832_v4 = vld [vmem:[%s6299_s26 + $0x29c] ss:$36 sps:$4 sm:$0xff]  }
  0x78   : > { %3152 = vmatpush1.bf16.msra.mxu0 %v5753_v5  ;;  %2922 = vmatprep.mubr.bf16.mxu0 %v5757_v6  ;;  %v5933_v5 = vld [vmem:[%s7333_s1 + $0x1e0] sm:$0xff]  }
  0x79   : > { %3153 = vmatprep.subr.bf16.mxu0 %v6172_v1  ;;  %5275 = vmatpush1.bf16.msra.mxu1 %v6330_v24  ;;  %v5780_v24 = vld [vmem:[%s6299_s26 + $0x5c] ss:$36 sps:$4 sm:$0xff]  }
  0x7a   : > { %5260 = vmatprep.subr.bf16.mxu1 %v6172_v1  ;;  %v6608_v6 = vld [vmem:[%s7333_s1 + $0x200] sm:$0xff]  }
  0x7c   : > { %3154 = vmatpush1.bf16.msra.mxu0 %v5754_v7  ;;  %v5834_v7 = vld [vmem:[%s6299_s26 + $0x4c8] ss:$36 sps:$4 sm:$0xff]  }
  0x7d   : > { %3155 = vmatprep.subr.bf16.mxu0 %v6172_v1  ;;  %5276 = vmatpush1.bf16.msra.mxu1 %v6341_v26  ;;  %v5790_v26 = vld [vmem:[%s7333_s1 + $0x188] sm:$0xff]  }
  0x7e   : > { %2634 = vmatmul.mubr.bf16.gmra.mrb[24].mxu1 %v5759_v8  ;;  %5261 = vmatprep.subr.bf16.mxu1 %v6172_v1  ;;  %v5835_v8 = vld [vmem:[%s6299_s26 + $0x298] ss:$36 sps:$4 sm:$0xff]  }
  0x7f   : > { %2923 = vmatmul.mubr.bf16.gmra.mrb[24].mxu0 %v5760_v9  ;;  %2641 = vmatprep.mubr.bf16.mxu1 %v5763_v11  ;;  %v5836_v9 = vld [vmem:[%s6299_s26 + $0x514] ss:$36 sps:$4 sm:$0xff]  }
  0x80   : > { %3156 = vmatpush1.bf16.msra.mxu0 %v5761_v10  ;;  %2930 = vmatprep.mubr.bf16.mxu0 %v5765_v12  ;;  %v5838_v10 = vld [vmem:[%s6299_s26 + $0x2e4] ss:$36 sps:$4 sm:$0xff]   ;;  %v5840_v11 = vld [vmem:[%s6299_s26 + $0x510] ss:$36 sps:$4 sm:$0xff]  }
  0x81   : > { %3157 = vmatprep.subr.bf16.mxu0 %v6172_v1  ;;  %5277 = vmatpush1.bf16.msra.mxu1 %v6352_v28  ;;  %v5784_v28 = vld [vmem:[%s6299_s26 + $0x2d4] ss:$36 sps:$4 sm:$0xff]   ;;  %v5841_v12 = vld [vmem:[%s6299_s26 + $0x2e0] ss:$36 sps:$4 sm:$0xff]  }
  0x82   : > { %5262 = vmatprep.subr.bf16.mxu1 %v6172_v1 }
  0x84   : > { %3158 = vmatpush1.bf16.msra.mxu0 %v5762_v13  ;;  %v5843_v13 = vld [vmem:[%s6299_s26 + $0x55c] ss:$36 sps:$4 sm:$0xff]  }
  0x85   : > { %3159 = vmatprep.subr.bf16.mxu0 %v6172_v1  ;;  %5278 = vmatpush1.bf16.msra.mxu1 %v6363_v30  ;;  %v5803_v30 = vld [vmem:[%s7333_s1 + $0x190] sm:$0xff]  }
  0x86   : > { %2642 = vmatmul.mubr.bf16.gmra.mrb[28].mxu1 %v5767_v14  ;;  %5263 = vmatprep.subr.bf16.mxu1 %v6172_v1  ;;  %v5845_v14 = vld [vmem:[%s6299_s26 + $0x32c] ss:$36 sps:$4 sm:$0xff]  }
  0x87   : > { %2931 = vmatmul.mubr.bf16.gmra.mrb[28].mxu0 %v5768_v15  ;;  %2649 = vmatprep.mubr.bf16.mxu1 %v5771_v16  ;;  %v5947_v15 = vld [vmem:[%s7333_s1 + $0x1e8] sm:$0xff]   ;;  %v5847_v16 = vld [vmem:[%s6299_s26 + $0x558] ss:$36 sps:$4 sm:$0xff]  }
  0x88   : > { %3160 = vmatpush1.bf16.msra.mxu0 %v5769_v17  ;;  %3163 = vmatprep.mubr.bf16.mxu0 %v5775_v18  ;;  %v5848_v17 = vld [vmem:[%s6299_s26 + $0x328] ss:$36 sps:$4 sm:$0xff]  }
  0x89   : > { %3161 = vmatprep.subr.bf16.mxu0 %v6172_v1  ;;  %5279 = vmatpush1.bf16.msra.mxu1 %v6374_v32  ;;  %v5816_v32 = vld [vmem:[%s7333_s1 + $0x198] sm:$0xff]   ;;  %v5849_v18 = vld [vmem:[%s6299_s26 + $0x5a4] ss:$36 sps:$4 sm:$0xff]  }
  0x8a   : > { %5264 = vmatprep.subr.bf16.mxu1 %v6172_v1 }
  0x8c   : > { %3162 = vmatpush1.bf16.msra.mxu0 %v5770_v19  ;;  %v5851_v19 = vld [vmem:[%s6299_s26 + $0x374] ss:$36 sps:$4 sm:$0xff]  }
  0x8d   : > { %3420 = vmatprep.subr.bf16.mxu0 %v6172_v1  ;;  %5280 = vmatpush1.bf16.msra.mxu1 %v6385_v34  ;;  %v5791_v34 = vld [vmem:[%s6299_s26 + $0x31c] ss:$36 sps:$4 sm:$0xff]  }
  0x8e   : > { %2650 = vmatmul.mubr.bf16.gmra.mrb[32].mxu1 %v5776_v20  ;;  %5169 = vmatprep.subr.bf16.mxu1 %v6608_v6  ;;  %v5853_v20 = vld [vmem:[%s6299_s26 + $0x5a0] ss:$36 sps:$4 sm:$0xff]  }
  0x8f   : > { %3164 = vmatmul.mubr.bf16.vlgmr.msra.gmra.mrb[0].mxu0 %v5773_v21  ;;  %2657 = vmatprep.mubr.bf16.mxu1 %v5778_v22  ;;  %v5854_v21 = vld [vmem:[%s6299_s26 + $0x370] ss:$36 sps:$4 sm:$0xff]  }
  0x90   : > { %3421 = vmatpush1.bf16.msra.mxu0 %v5777_v23  ;;  %3171 = vmatprep.mubr.bf16.mxu0 %v5780_v24  ;;  %v5856_v22 = vld [vmem:[%s6299_s26 + $0x5ec] ss:$36 sps:$4 sm:$0xff]   ;;  %v5858_v23 = vld [vmem:[%s6299_s26 + $0x3bc] ss:$36 sps:$4 sm:$0xff]  }
  0x91   : > { %3422 = vmatprep.subr.bf16.mxu0 %v6172_v1  ;;  %v5961_v24 = vld [vmem:[%s7333_s1 + $0x1f0] sm:$0xff]  }
  0x94   : > { %3423 = vmatpush1.bf16.msra.mxu0 %v5790_v26  ;;  %v5861_v26 = vld [vmem:[%s6299_s26 + $0x3b8] ss:$36 sps:$4 sm:$0xff]  }
  0x95   : > { %3424 = vmatprep.subr.bf16.mxu0 %v6172_v1 }
  0x96   : > { %2658 = vmatmul.mubr.bf16.gmra.mrb[36].mxu1 %v5782_v25  ;;  %v5860_v25 = vld [vmem:[%s6299_s26 + $0x5e8] ss:$36 sps:$4 sm:$0xff]  }
  0x97   : > { %3172 = vmatmul.mubr.bf16.gmra.mrb[4].mxu0 %v5783_v27  ;;  %2665 = vmatprep.mubr.bf16.mxu1 %v5784_v28  ;;  %v5862_v27 = vld [vmem:[%s6299_s26 + $0x634] ss:$36 sps:$4 sm:$0xff]   ;;  %v5864_v28 = vld [vmem:[%s6299_s26 + $0x404] ss:$36 sps:$4 sm:$0xff]  }
  0x98   : > { %3179 = vmatprep.mubr.bf16.mxu0 %v5786_v29  ;;  %3425 = vmatpush1.bf16.msra.mxu0 %v5803_v30  ;;  %v5866_v29 = vld [vmem:[%s6299_s26 + $0x630] ss:$36 sps:$4 sm:$0xff]   ;;  %v5867_v30 = vld [vmem:[%s6299_s26 + $0x400] ss:$36 sps:$4 sm:$0xff]  }
  0x99   : > { %3426 = vmatprep.subr.bf16.mxu0 %v6172_v1 }
  0x9c   : > { %3427 = vmatpush1.bf16.msra.mxu0 %v5816_v32  ;;  %v5871_v32 = vld [vmem:[%s6299_s26 + $0x44c] ss:$36 sps:$4 sm:$0xff]  }
  0x9d   : > { %3428 = vmatprep.subr.bf16.mxu0 %v6172_v1 }
  0x9e   : > { %2666 = vmatmul.mubr.bf16.gmra.mrb[40].mxu1 %v5788_v31  ;;  %v5869_v31 = vld [vmem:[%s6299_s26 + $0x67c] ss:$36 sps:$4 sm:$0xff]  }
  0x9f   : > { %3180 = vmatmul.mubr.bf16.gmra.mrb[8].mxu0 %v5789_v33  ;;  %2673 = vmatprep.mubr.bf16.mxu1 %v5791_v34  ;;  %v5873_v33 = vld [vmem:[%s6299_s26 + $0x678] ss:$36 sps:$4 sm:$0xff]   ;;  %v5874_v34 = vld [vmem:[%s6299_s26 + $0x448] ss:$36 sps:$4 sm:$0xff]  }
  0xa0   : > { %3187 = vmatprep.mubr.bf16.mxu0 %v5793_v35  ;;  %3429 = vmatpush1.bf16.msra.mxu0 %v5829_v36  ;;  %v5875_v35 = vld [vmem:[%s6299_s26 + $0x6c4] ss:$36 sps:$4 sm:$0xff]   ;;  %v5877_v36 = vld [vmem:[%s6299_s26 + $0x494] ss:$36 sps:$4 sm:$0xff]  }
  0xa1   : > { %3430 = vmatprep.subr.bf16.mxu0 %v6172_v1 }
  0xa4   : > { %3431 = vmatpush1.bf16.msra.mxu0 %v5842_v37  ;;  %v5879_v37 = vld [vmem:[%s6299_s26 + $0x6c0] ss:$36 sps:$4 sm:$0xff]  }
  0xa5   : > { %3432 = vmatprep.subr.bf16.mxu0 %v6172_v1 }
  0xa6   : > { %2674 = vmatmul.mubr.bf16.gmra.mrb[44].mxu1 %v5795_v38  ;;  %v5880_v38 = vld [vmem:[%s6299_s26 + $0x490] ss:$36 sps:$4 sm:$0xff]  }
  0xa7   : > { %3188 = vmatmul.mubr.bf16.gmra.mrb[12].mxu0 %v5796_v39  ;;  %2681 = vmatprep.mubr.bf16.mxu1 %v5797_v40  ;;  %v5882_v39 = vld [vmem:[%s6299_s26 + $0x70c] ss:$36 sps:$4 sm:$0xff]   ;;  %v5884_v40 = vld [vmem:[%s6299_s26 + $0x4dc] ss:$36 sps:$4 sm:$0xff]  }
  0xa8   : > { %3195 = vmatprep.mubr.bf16.mxu0 %v5799_v41  ;;  %3433 = vmatpush1.bf16.msra.mxu0 %v5855_v42  ;;  %v5886_v41 = vld [vmem:[%s6299_s26 + $0x708] ss:$36 sps:$4 sm:$0xff]   ;;  %v5887_v42 = vld [vmem:[%s6299_s26 + $0x4d8] ss:$36 sps:$4 sm:$0xff]  }
  0xa9   : > { %3434 = vmatprep.subr.bf16.mxu0 %v6172_v1 }
  0xac   : > { %3435 = vmatpush1.bf16.msra.mxu0 %v5868_v43  ;;  %v5888_v43 = vld [vmem:[%s6299_s26 + $0x754] ss:$36 sps:$4 sm:$0xff]  }
  0xad   : > { %3436 = vmatprep.subr.bf16.mxu0 %v6172_v1 }
  0xae   : > { %2682 = vmatmul.mubr.bf16.gmra.mrb[48].mxu1 %v5801_v44  ;;  %v5890_v44 = vld [vmem:[%s6299_s26 + $0x524] ss:$36 sps:$4 sm:$0xff]  }
  0xaf   : > { %3196 = vmatmul.mubr.bf16.gmra.mrb[16].mxu0 %v5802_v45  ;;  %2689 = vmatprep.mubr.bf16.mxu1 %v5804_v46  ;;  %v5892_v45 = vld [vmem:[%s6299_s26 + $0x750] ss:$36 sps:$4 sm:$0xff]   ;;  %v5893_v46 = vld [vmem:[%s6299_s26 + $0x520] ss:$36 sps:$4 sm:$0xff]  }
  0xb0   : > { %3203 = vmatprep.mubr.bf16.mxu0 %v5806_v47  ;;  %3437 = vmatpush1.bf16.msra.mxu0 %v5881_v48  ;;  %v5895_v47 = vld [vmem:[%s6299_s26 + $0x79c] ss:$36 sps:$4 sm:$0xff]   ;;  %v5897_v48 = vld [vmem:[%s6299_s26 + $0x56c] ss:$36 sps:$4 sm:$0xff]  }
  0xb1   : > { %3438 = vmatprep.subr.bf16.mxu0 %v6172_v1 }
  0xb4   : > { %3439 = vmatpush1.bf16.msra.mxu0 %v5894_v49 }
  0xb5   : > { %3440 = vmatprep.subr.bf16.mxu0 %v6172_v1 }
  0xb6   : > { %2690 = vmatmul.mubr.bf16.gmra.mrb[52].mxu1 %v5808_v50 }
  0xb7   : > { %3204 = vmatmul.mubr.bf16.gmra.mrb[20].mxu0 %v5809_v51  ;;  %2697 = vmatprep.mubr.bf16.mxu1 %v5810_v52  ;;  %v5899_v51 = vld [vmem:[%s6299_s26 + $0x798] ss:$36 sps:$4 sm:$0xff]  }
  0xb8   : > { %3211 = vmatprep.mubr.bf16.mxu0 %v5812_v53  ;;  %3441 = vmatpush1.bf16.msra.mxu0 %v5907_v54  ;;  %v5900_v53 = vld [vmem:[%s6299_s26 + $0x568] ss:$36 sps:$4 sm:$0xff]  }
  0xb9   : > { %3442 = vmatprep.subr.bf16.mxu0 %v6172_v1  ;;  %v5901_v54 = vld [vmem:[%s6299_s26 + $0x7e4] ss:$36 sps:$4 sm:$0xff]  }
  0xbc   : > { %3443 = vmatpush1.bf16.msra.mxu0 %v5920_v59  ;;  %v5905_v59 = vld [vmem:[%s6299_s26 + $0x7e0] ss:$36 sps:$4 sm:$0xff]  }
  0xbd   : > { %3444 = vmatprep.subr.bf16.mxu0 %v6172_v1 }
  0xbe   : > { %2698 = vmatmul.mubr.bf16.gmra.mrb[56].mxu1 %v5814_v55 }
  0xbf   : > { %3212 = vmatmul.mubr.bf16.gmra.mrb[24].mxu0 %v5815_v56  ;;  %2705 = vmatprep.mubr.bf16.mxu1 %v5817_v57  ;;  %v5903_v56 = vld [vmem:[%s6299_s26 + $0x5b4] ss:$36 sps:$4 sm:$0xff]  }
  0xc0   : > { %3219 = vmatprep.mubr.bf16.mxu0 %v5819_v58  ;;  %3445 = vmatpush1.bf16.msra.mxu0 %v5933_v5 }
  0xc1   : > { %3446 = vmatprep.subr.bf16.mxu0 %v6172_v1 }
  0xc4   : > { %3447 = vmatpush1.bf16.msra.mxu0 %v5947_v15  ;;  %v5919_v15 = vld [vmem:[%s6299_s26 + $0x640] ss:$36 sps:$4 sm:$0xff]  }
  0xc5   : > { %3448 = vmatprep.subr.bf16.mxu0 %v6172_v1 }
  0xc6   : > { %2706 = vmatmul.mubr.bf16.gmra.mrb[60].mxu1 %v5821_v60 }
  0xc7   : > { %3220 = vmatmul.mubr.bf16.gmra.mrb[28].mxu0 %v5822_v61  ;;  %2713 = vmatprep.mubr.bf16.mxu1 %v5823_v62  ;;  %v5906_v61 = vld [vmem:[%s6299_s26 + $0x5b0] ss:$36 sps:$4 sm:$0xff]  }
  0xc8   : > { %3227 = vmatprep.mubr.bf16.mxu0 %v5825_v63  ;;  %3449 = vmatpush1.bf16.msra.mxu0 %v5961_v24  ;;  %v5908_v62 = vld [vmem:[%s6299_s26 + $0x82c] ss:$36 sps:$4 sm:$0xff]  }
  0xc9   : > { %3450 = vmatprep.subr.bf16.mxu0 %v6172_v1  ;;  %v5974_v1 = vld [vmem:[%s7333_s1 + $0x1f8] sm:$0xff]   ;;  %v5929_v24 = vld [vmem:[%s6299_s26 + $0x24c] ss:$36 sps:$4 sm:$0xff]  }
  0xcc   : > { %3451 = vmatpush1.bf16.msra.mxu0 %v5974_v1  ;;  %v5935_v1 = vld [vmem:[%s6299_s26 + $0x294] ss:$36 sps:$4 sm:$0xff]  }
  0xce   : > { %2714 = vmatmul.mubr.bf16.gmra.mrb[64].mxu1 %v5827_v0  ;;  %v5910_v0 = vld [vmem:[%s6299_s26 + $0x5fc] ss:$36 sps:$4 sm:$0xff]  }
  0xcf   : > { %3228 = vmatmul.mubr.bf16.gmra.mrb[32].mxu0 %v5828_v2  ;;  %2721 = vmatprep.mubr.bf16.mxu1 %v5830_v3 }
  0xd0   : > { %3235 = vmatprep.mubr.bf16.mxu0 %v5832_v4  ;;  %v5912_v4 = vld [vmem:[%s6299_s26 + $0x828] ss:$36 sps:$4 sm:$0xff]  }
  0xd6   : > { %2722 = vmatmul.mubr.bf16.gmra.mrb[68].mxu1 %v5834_v7  ;;  %v5913_v7 = vld [vmem:[%s6299_s26 + $0x5f8] ss:$36 sps:$4 sm:$0xff]  }
  0xd7   : > { %3236 = vmatmul.mubr.bf16.gmra.mrb[36].mxu0 %v5835_v8  ;;  %2729 = vmatprep.mubr.bf16.mxu1 %v5836_v9  ;;  %v5914_v8 = vld [vmem:[%s6299_s26 + $0x874] ss:$36 sps:$4 sm:$0xff]  }
  0xd8   : > { %3243 = vmatprep.mubr.bf16.mxu0 %v5838_v10  ;;  %v5916_v10 = vld [vmem:[%s6299_s26 + $0x644] ss:$36 sps:$4 sm:$0xff]  }
  0xde   : > { %2730 = vmatmul.mubr.bf16.gmra.mrb[72].mxu1 %v5840_v11 }
  0xdf   : > { %3244 = vmatmul.mubr.bf16.gmra.mrb[40].mxu0 %v5841_v12  ;;  %2737 = vmatprep.mubr.bf16.mxu1 %v5843_v13  ;;  %v5918_v13 = vld [vmem:[%s6299_s26 + $0x870] ss:$36 sps:$4 sm:$0xff]  }
  0xe0   : > { %3251 = vmatprep.mubr.bf16.mxu0 %v5845_v14 }
  0xe6   : > { %2738 = vmatmul.mubr.bf16.gmra.mrb[76].mxu1 %v5847_v16  ;;  %v5921_v16 = vld [vmem:[%s6299_s26 + $0x8bc] ss:$36 sps:$4 sm:$0xff]  }
  0xe7   : > { %3252 = vmatmul.mubr.bf16.gmra.mrb[44].mxu0 %v5848_v17  ;;  %2745 = vmatprep.mubr.bf16.mxu1 %v5849_v18  ;;  %v5923_v18 = vld [vmem:[%s6299_s26 + $0x68c] ss:$36 sps:$4 sm:$0xff]  }
  0xe8   : > { %3259 = vmatprep.mubr.bf16.mxu0 %v5851_v19 }
  0xee   : > { %2746 = vmatmul.mubr.bf16.gmra.mrb[80].mxu1 %v5853_v20 }
  0xef   : > { %3260 = vmatmul.mubr.bf16.gmra.mrb[48].mxu0 %v5854_v21  ;;  %2753 = vmatprep.mubr.bf16.mxu1 %v5856_v22  ;;  %v5925_v21 = vld [vmem:[%s6299_s26 + $0x8b8] ss:$36 sps:$4 sm:$0xff]  }
  0xf0   : > { %3267 = vmatprep.mubr.bf16.mxu0 %v5858_v23  ;;  %v5926_v23 = vld [vmem:[%s6299_s26 + $0x688] ss:$36 sps:$4 sm:$0xff]  }
  0xf6   : > { %2754 = vmatmul.mubr.bf16.gmra.mrb[84].mxu1 %v5860_v25 }
  0xf7   : > { %3268 = vmatmul.mubr.bf16.gmra.mrb[52].mxu0 %v5861_v26  ;;  %2761 = vmatprep.mubr.bf16.mxu1 %v5862_v27  ;;  %v5930_v26 = vld [vmem:[%s6299_s26 + $0x6d4] ss:$36 sps:$4 sm:$0xff]  }
  0xf8   : > { %3275 = vmatprep.mubr.bf16.mxu0 %v5864_v28 }
  0xfe   : > { %2762 = vmatmul.mubr.bf16.gmra.mrb[88].mxu1 %v5866_v29  ;;  %v5927_v29 = vld [vmem:[%s6299_s26 + $0x248] ss:$36 sps:$4 sm:$0xff]  }
  0xff   : > { %3276 = vmatmul.mubr.bf16.gmra.mrb[56].mxu0 %v5867_v30  ;;  %2769 = vmatprep.mubr.bf16.mxu1 %v5869_v31  ;;  %v5932_v31 = vld [vmem:[%s6299_s26 + $0x6d0] ss:$36 sps:$4 sm:$0xff]  }
 0x100   : > { %3283 = vmatprep.mubr.bf16.mxu0 %v5871_v32 }
 0x106   : > { %2770 = vmatmul.mubr.bf16.gmra.mrb[92].mxu1 %v5873_v33  ;;  %v5937_v33 = vld [vmem:[%s6299_s26 + $0x71c] ss:$36 sps:$4 sm:$0xff]  }
 0x107   : > { %3284 = vmatmul.mubr.bf16.gmra.mrb[60].mxu0 %v5874_v34  ;;  %2777 = vmatprep.mubr.bf16.mxu1 %v5875_v35  ;;  %v5954_v34 = vld [vmem:[%s7333_s1 + $0x208] sm:$0xff]   ;;  %v5975_v35 = vld [vmem:[%s7333_s1 + $0x210] sm:$0xff]  }
 0x108   : > { %3291 = vmatprep.mubr.bf16.mxu0 %v5877_v36 }
 0x10e   : > { %2778 = vmatmul.mubr.bf16.gmra.mrb[96].mxu1 %v5879_v37 }
 0x10f   : > { %3292 = vmatmul.mubr.bf16.gmra.mrb[64].mxu0 %v5880_v38  ;;  %2785 = vmatprep.mubr.bf16.mxu1 %v5882_v39  ;;  %v5939_v38 = vld [vmem:[%s6299_s26 + $0x290] ss:$36 sps:$4 sm:$0xff]  }
 0x110   : > { %3299 = vmatprep.mubr.bf16.mxu0 %v5884_v40  ;;  %v5940_v40 = vld [vmem:[%s6299_s26 + $0x718] ss:$36 sps:$4 sm:$0xff]  }
 0x116   : > { %2786 = vmatmul.mubr.bf16.gmra.mrb[100].mxu1 %v5886_v41  ;;  %v5941_v41 = vld [vmem:[%s6299_s26 + $0x2dc] ss:$36 sps:$4 sm:$0xff]  }
 0x117   : > { %3300 = vmatmul.mubr.bf16.gmra.mrb[68].mxu0 %v5887_v42  ;;  %2793 = vmatprep.mubr.bf16.mxu1 %v5888_v43  ;;  %v5994_v43 = vld [vmem:[%s7333_s1 + $0x218] sm:$0xff]  }
 0x118   : > { %3307 = vmatprep.mubr.bf16.mxu0 %v5890_v44 }
 0x11e   : > { %2794 = vmatmul.mubr.bf16.gmra.mrb[104].mxu1 %v5892_v45  ;;  %v6013_v45 = vld [vmem:[%s7333_s1 + $0x220] sm:$0xff]  }
 0x11f   : > { %3308 = vmatmul.mubr.bf16.gmra.mrb[72].mxu0 %v5893_v46  ;;  %2801 = vmatprep.mubr.bf16.mxu1 %v5895_v47  ;;  %v5945_v47 = vld [vmem:[%s6299_s26 + $0x2d8] ss:$36 sps:$4 sm:$0xff]  }
 0x120   : > { %3315 = vmatprep.mubr.bf16.mxu0 %v5897_v48 }
 0x121   : > { %v6663_v49 = vpop.f32.mrb[0].mxu1 }
 0x122   : > { %v2589_v50 = vpop.f32.mrb[1].mxu1 }
 0x123   : > { %v6666_v52 = vpop.f32.mrb[2].mxu1  ;;  %v5946_v50 = vld [vmem:[%s6299_s26 + $0x760] ss:$36 sps:$4 sm:$0xff]  }
 0x124   : > { %v2592_v55 = vpop.f32.mrb[3].mxu1 }
 0x125   : > { %v6032_v55 = vld [vmem:[%s7333_s1 + $0x228] sm:$0xff]  }
 0x126   : > { %2802 = vmatmul.mubr.bf16.gmra.mrb[108].mxu1 %v5899_v51  ;;  %v5948_v51 = vld [vmem:[%s6299_s26 + $0x324] ss:$36 sps:$4 sm:$0xff]  }
 0x127   : > { %3316 = vmatmul.mubr.bf16.gmra.mrb[76].mxu0 %v5900_v53  ;;  %2809 = vmatprep.mubr.bf16.mxu1 %v5901_v54  ;;  %v5950_v54 = vld [vmem:[%s6299_s26 + $0x7ac] ss:$36 sps:$4 sm:$0xff]  }
 0x128   : > { %3323 = vmatprep.mubr.bf16.mxu0 %v5903_v56  ;;  %v6051_v56 = vld [vmem:[%s7333_s1 + $0x230] sm:$0xff]  }
 0x129   : > { %v6671_v57 = vpop.f32.mrb[4].mxu1 }
 0x12a   : > { %v2597_v58 = vpop.f32.mrb[5].mxu1 }
 0x12b   : > { %v6674_v60 = vpop.f32.mrb[6].mxu1  ;;  %v5952_v58 = vld [vmem:[%s6299_s26 + $0x320] ss:$36 sps:$4 sm:$0xff]  }
 0x12c   : > { %v2600_v63 = vpop.f32.mrb[7].mxu1 }
 0x12d   : > { %v5959_v63 = vld [vmem:[%s6299_s26 + $0x368] ss:$36 sps:$4 sm:$0xff]  }
 0x12e   : > { %2810 = vmatmul.mubr.bf16.gmra.mrb[112].mxu1 %v5905_v59  ;;  %v5953_v59 = vld [vmem:[%s6299_s26 + $0x7a8] ss:$36 sps:$4 sm:$0xff]  }
 0x12f   : > { %3324 = vmatmul.mubr.bf16.gmra.mrb[80].mxu0 %v5906_v61  ;;  %2817 = vmatprep.mubr.bf16.mxu1 %v5908_v62  ;;  %v5955_v61 = vld [vmem:[%s6299_s26 + $0x36c] ss:$36 sps:$4 sm:$0xff]   ;;  %v5957_v62 = vld [vmem:[%s6299_s26 + $0x7f4] ss:$36 sps:$4 sm:$0xff]  }
 0x130   : > { %3331 = vmatprep.mubr.bf16.mxu0 %v5910_v0  ;;  %v5960_v0 = vld [vmem:[%s6299_s26 + $0x7f0] ss:$36 sps:$4 sm:$0xff]  }
 0x131   : > { %v6679_v2 = vpop.f32.mrb[8].mxu1 }
 0x132   : > { %v2605_v3 = vpop.f32.mrb[9].mxu1 }
 0x133   : > { %v6682_v5 = vpop.f32.mrb[10].mxu1  ;;  %v5962_v3 = vld [vmem:[%s6299_s26 + $0x3b4] ss:$36 sps:$4 sm:$0xff]  }
 0x134   : > { %v2608_v9 = vpop.f32.mrb[11].mxu1 }
 0x135   : > { %v5968_v9 = vld [vmem:[%s6299_s26 + $0x3fc] ss:$36 sps:$4 sm:$0xff]  }
 0x136   : > { %2818 = vmatmul.mubr.bf16.gmra.mrb[116].mxu1 %v5912_v4  ;;  %v5964_v4 = vld [vmem:[%s6299_s26 + $0x83c] ss:$36 sps:$4 sm:$0xff]  }
 0x137   : > { %3332 = vmatmul.mubr.bf16.gmra.mrb[84].mxu0 %v5913_v7  ;;  %2825 = vmatprep.mubr.bf16.mxu1 %v5914_v8  ;;  %v5966_v7 = vld [vmem:[%s6299_s26 + $0x3b0] ss:$36 sps:$4 sm:$0xff]   ;;  %v5967_v8 = vld [vmem:[%s6299_s26 + $0x838] ss:$36 sps:$4 sm:$0xff]  }
 0x138   : > { %3339 = vmatprep.mubr.bf16.mxu0 %v5916_v10  ;;  %v5970_v10 = vld [vmem:[%s6299_s26 + $0x884] ss:$36 sps:$4 sm:$0xff]  }
 0x139   : > { %v6687_v11 = vpop.f32.mrb[12].mxu1 }
 0x13a   : > { %v2613_v12 = vpop.f32.mrb[13].mxu1 }
 0x13b   : > { %v6690_v14 = vpop.f32.mrb[14].mxu1  ;;  %v6070_v12 = vld [vmem:[%s7333_s1 + $0x238] sm:$0xff]  }
 0x13c   : > { %v2616_v17 = vpop.f32.mrb[15].mxu1 }
 0x13d   : > { %v5978_v17 = vld [vmem:[%s6299_s26 + $0x8cc] ss:$36 sps:$4 sm:$0xff]  }
 0x13e   : > { %2826 = vmatmul.mubr.bf16.gmra.mrb[120].mxu1 %v5918_v13  ;;  %v5972_v13 = vld [vmem:[%s6299_s26 + $0x3f8] ss:$36 sps:$4 sm:$0xff]  }
 0x13f   : > { %3340 = vmatmul.mubr.bf16.gmra.mrb[88].mxu0 %v5919_v15  ;;  %2833 = vmatprep.mubr.bf16.mxu1 %v5921_v16  ;;  %v5973_v15 = vld [vmem:[%s6299_s26 + $0x880] ss:$36 sps:$4 sm:$0xff]  }
 0x140   : > { %3347 = vmatprep.mubr.bf16.mxu0 %v5923_v18  ;;  %v5976_v16 = vld [vmem:[%s6299_s26 + $0x444] ss:$36 sps:$4 sm:$0xff]  }
 0x141   : > { %v6695_v19 = vpop.f32.mrb[16].mxu1  ;;  %v5980_v18 = vld [vmem:[%s6299_s26 + $0x440] ss:$36 sps:$4 sm:$0xff]  }
 0x142   : > { %v2621_v20 = vpop.f32.mrb[17].mxu1 }
 0x143   : > { %v6698_v22 = vpop.f32.mrb[18].mxu1  ;;  %v5981_v20 = vld [vmem:[%s6299_s26 + $0x8c8] ss:$36 sps:$4 sm:$0xff]  }
 0x144   : > { %v2624_v25 = vpop.f32.mrb[19].mxu1 }
 0x145   : > { %v5984_v25 = vld [vmem:[%s6299_s26 + $0x18] ss:$36 sps:$4 sm:$0xff]  }
 0x146   : > { %2834 = vmatmul.mubr.bf16.gmra.mrb[124].mxu1 %v5925_v21  ;;  %v5982_v21 = vld [vmem:[%s6299_s26 + $0x48c] ss:$36 sps:$4 sm:$0xff]  }
 0x147   : > { %3348 = vmatmul.mubr.bf16.gmra.mrb[92].mxu0 %v5926_v23  ;;  %2938 = vmatprep.mubr.bf16.mxu1 %v5929_v24  ;;  %v5986_v23 = vld [vmem:[%s6299_s26 + $0x1c] ss:$36 sps:$4 sm:$0xff]   ;;  %v5987_v24 = vld [vmem:[%s6299_s26 + $0x488] ss:$36 sps:$4 sm:$0xff]  }
 0x148   : > { %3355 = vmatprep.mubr.bf16.mxu0 %v5930_v26  ;;  %v5988_v26 = vld [vmem:[%s6299_s26 + $0x4d4] ss:$36 sps:$4 sm:$0xff]  }
 0x149   : > { %v6703_v27 = vpop.f32.mrb[20].mxu1 }
 0x14a   : > { %v2629_v28 = vpop.f32.mrb[21].mxu1 }
 0x14b   : > { %v6706_v30 = vpop.f32.mrb[22].mxu1  ;;  %v5990_v28 = vld [vmem:[%s6299_s26 + $0x64] ss:$36 sps:$4 sm:$0xff]  }
 0x14c   : > { %v2632_v32 = vpop.f32.mrb[23].mxu1 }
 0x14d   : > { %v5995_v32 = vld [vmem:[%s6299_s26 + $0x51c] ss:$36 sps:$4 sm:$0xff]  }
 0x14e   : > { %2939 = vmatmul.mubr.bf16.vlgmr.msra.gmra.mrb[32].mxu1 %v5927_v29  ;;  %v5992_v29 = vld [vmem:[%s6299_s26 + $0x4d0] ss:$36 sps:$4 sm:$0xff]  }
 0x14f   : > { %3356 = vmatmul.mubr.bf16.gmra.mrb[96].mxu0 %v5932_v31  ;;  %5170 = vmatpush3.bf16.msra.mxu1 %v6608_v6  ;;  %v5943_v6 = vld [vmem:[%s6299_s26 + $0x764] ss:$36 sps:$4 sm:$0xff]  }
 0x150   : > { %2946 = vmatprep.mubr.bf16.mxu1 %v5935_v1  ;;  %3363 = vmatprep.mubr.bf16.mxu0 %v5937_v33  ;;  %v5993_v31 = vld [vmem:[%s6299_s26 + $0x60] ss:$36 sps:$4 sm:$0xff]   ;;  %v5997_v1 = vld [vmem:[%s6299_s26 + $0xac] ss:$36 sps:$4 sm:$0xff]   ;;  %v5999_v33 = vld [vmem:[%s6299_s26 + $0x518] ss:$36 sps:$4 sm:$0xff]  }
 0x151   : > { %v6718_v36 = vpop.f32.mrb[24].mxu1  ;;  %5171 = vmatprep.subr.bf16.mxu1 %v5954_v34 }
 0x152   : > { %v2637_v37 = vpop.f32.mrb[25].mxu1 }
 0x153   : > { %v6721_v39 = vpop.f32.mrb[26].mxu1  ;;  %5172 = vmatpush3.bf16.msra.mxu1 %v5954_v34  ;;  %v6000_v34 = vld [vmem:[%s6299_s26 + $0xa8] ss:$36 sps:$4 sm:$0xff]   ;;  %v6003_v37 = vld [vmem:[%s6299_s26 + $0xf4] ss:$36 sps:$4 sm:$0xff]  }
 0x154   : > { %v2640_v42 = vpop.f32.mrb[27].mxu1  ;;  %5173 = vmatprep.subr.bf16.mxu1 %v5975_v35 }
 0x155   : > { %v6009_v42 = vld [vmem:[%s6299_s26 + $0x13c] ss:$36 sps:$4 sm:$0xff]  }
 0x156   : > { %2947 = vmatmul.mubr.bf16.gmra.mrb[36].mxu1 %v5939_v38  ;;  %v6005_v38 = vld [vmem:[%s6299_s26 + $0x560] ss:$36 sps:$4 sm:$0xff]  }
 0x157   : > { %3364 = vmatmul.mubr.bf16.gmra.mrb[100].mxu0 %v5940_v40  ;;  %2954 = vmatprep.mubr.bf16.mxu1 %v5941_v41  ;;  %v6006_v40 = vld [vmem:[%s6299_s26 + $0xf0] ss:$36 sps:$4 sm:$0xff]  }
 0x158   : > { %3371 = vmatprep.mubr.bf16.mxu0 %v5943_v6  ;;  %5174 = vmatpush3.bf16.msra.mxu1 %v5975_v35  ;;  %v6001_v35 = vld [vmem:[%s6299_s26 + $0x564] ss:$36 sps:$4 sm:$0xff]   ;;  %v6007_v41 = vld [vmem:[%s6299_s26 + $0x5ac] ss:$36 sps:$4 sm:$0xff]  }
 0x159   : > { %v6729_v44 = vpop.f32.mrb[28].mxu1  ;;  %5175 = vmatprep.subr.bf16.mxu1 %v5994_v43  ;;  %v6011_v6 = vld [vmem:[%s6299_s26 + $0x5a8] ss:$36 sps:$4 sm:$0xff]  }
 0x15a   : > { %v2645_v46 = vpop.f32.mrb[29].mxu1 }
 0x15b   : > { %v6735_v48 = vpop.f32.mrb[30].mxu1  ;;  %v6016_v46 = vld [vmem:[%s6299_s26 + $0x184] ss:$36 sps:$4 sm:$0xff]  }
 0x15c   : > { %v2648_v53 = vpop.f32.mrb[31].mxu1  ;;  %5176 = vmatpush3.bf16.msra.mxu1 %v5994_v43  ;;  %v6012_v43 = vld [vmem:[%s6299_s26 + $0x138] ss:$36 sps:$4 sm:$0xff]  }
 0x15d   : > { %5177 = vmatprep.subr.bf16.mxu1 %v6013_v45  ;;  %v6022_v53 = vld [vmem:[%s6299_s26 + $0x1cc] ss:$36 sps:$4 sm:$0xff]  }
 0x15e   : > { %2955 = vmatmul.mubr.bf16.gmra.mrb[40].mxu1 %v5945_v47  ;;  %v6018_v47 = vld [vmem:[%s6299_s26 + $0x5f0] ss:$36 sps:$4 sm:$0xff]  }
 0x15f   : > { %3372 = vmatmul.mubr.bf16.gmra.mrb[104].mxu0 %v5946_v50  ;;  %2962 = vmatprep.mubr.bf16.mxu1 %v5948_v51  ;;  %v6019_v50 = vld [vmem:[%s6299_s26 + $0x180] ss:$36 sps:$4 sm:$0xff]  }
 0x160   : > { %3379 = vmatprep.mubr.bf16.mxu0 %v5950_v54  ;;  %5178 = vmatpush3.bf16.msra.mxu1 %v6013_v45  ;;  %v6014_v45 = vld [vmem:[%s6299_s26 + $0x5f4] ss:$36 sps:$4 sm:$0xff]   ;;  %v6020_v51 = vld [vmem:[%s6299_s26 + $0x63c] ss:$36 sps:$4 sm:$0xff]  }
 0x161   : > { %5179 = vmatprep.subr.bf16.mxu1 %v6032_v55  ;;  %v6024_v54 = vld [vmem:[%s6299_s26 + $0x638] ss:$36 sps:$4 sm:$0xff]  }
 0x164   : > { %5180 = vmatpush3.bf16.msra.mxu1 %v6032_v55  ;;  %v6025_v55 = vld [vmem:[%s6299_s26 + $0x1c8] ss:$36 sps:$4 sm:$0xff]  }
 0x165   : > { %5181 = vmatprep.subr.bf16.mxu1 %v6051_v56 }
 0x166   : > { %2963 = vmatmul.mubr.bf16.gmra.mrb[44].mxu1 %v5952_v58  ;;  %v6028_v58 = vld [vmem:[%s6299_s26 + $0x214] ss:$36 sps:$4 sm:$0xff]  }
 0x167   : > { %3380 = vmatmul.mubr.bf16.gmra.mrb[108].mxu0 %v5953_v59  ;;  %2970 = vmatprep.mubr.bf16.mxu1 %v5955_v61  ;;  %v6030_v59 = vld [vmem:[%s6299_s26 + $0x680] ss:$36 sps:$4 sm:$0xff]   ;;  %v6031_v61 = vld [vmem:[%s6299_s26 + $0x210] ss:$36 sps:$4 sm:$0xff]  }
 0x168   : > { %3387 = vmatprep.mubr.bf16.mxu0 %v5957_v62  ;;  %5182 = vmatpush3.bf16.msra.mxu1 %v6051_v56  ;;  %v6026_v56 = vld [vmem:[%s6299_s26 + $0x684] ss:$36 sps:$4 sm:$0xff]   ;;  %v6033_v62 = vld [vmem:[%s6299_s26 + $0x6cc] ss:$36 sps:$4 sm:$0xff]  }
 0x169   : > { %5183 = vmatprep.subr.bf16.mxu1 %v6070_v12 }
 0x16c   : > { %5184 = vmatpush3.bf16.msra.mxu1 %v6070_v12  ;;  %v6047_v12 = vld [vmem:[%s6299_s26 + $0x2ec] ss:$36 sps:$4 sm:$0xff]  }
 0x16e   : > { %2971 = vmatmul.mubr.bf16.gmra.mrb[48].mxu1 %v5959_v63  ;;  %v6035_v63 = vld [vmem:[%s6299_s26 + $0x25c] ss:$36 sps:$4 sm:$0xff]  }
 0x16f   : > { %3388 = vmatmul.mubr.bf16.gmra.mrb[112].mxu0 %v5960_v0  ;;  %2978 = vmatprep.mubr.bf16.mxu1 %v5962_v3  ;;  %v6037_v0 = vld [vmem:[%s6299_s26 + $0x6c8] ss:$36 sps:$4 sm:$0xff]   ;;  %v6038_v3 = vld [vmem:[%s6299_s26 + $0x258] ss:$36 sps:$4 sm:$0xff]  }
 0x170   : > { %3395 = vmatprep.mubr.bf16.mxu0 %v5964_v4  ;;  %v6039_v4 = vld [vmem:[%s6299_s26 + $0x714] ss:$36 sps:$4 sm:$0xff]  }
 0x176   : > { %2979 = vmatmul.mubr.bf16.gmra.mrb[52].mxu1 %v5966_v7  ;;  %v6041_v7 = vld [vmem:[%s6299_s26 + $0x2a4] ss:$36 sps:$4 sm:$0xff]  }
 0x177   : > { %3396 = vmatmul.mubr.bf16.gmra.mrb[116].mxu0 %v5967_v8  ;;  %2986 = vmatprep.mubr.bf16.mxu1 %v5968_v9  ;;  %v6043_v8 = vld [vmem:[%s6299_s26 + $0x710] ss:$36 sps:$4 sm:$0xff]   ;;  %v6044_v9 = vld [vmem:[%s6299_s26 + $0x2a0] ss:$36 sps:$4 sm:$0xff]  }
 0x178   : > { %3403 = vmatprep.mubr.bf16.mxu0 %v5970_v10  ;;  %v6045_v10 = vld [vmem:[%s6299_s26 + $0x75c] ss:$36 sps:$4 sm:$0xff]  }
 0x17e   : > { %2987 = vmatmul.mubr.bf16.gmra.mrb[56].mxu1 %v5972_v13  ;;  %v6049_v13 = vld [vmem:[%s6299_s26 + $0x758] ss:$36 sps:$4 sm:$0xff]  }
 0x17f   : > { %3404 = vmatmul.mubr.bf16.gmra.mrb[120].mxu0 %v5973_v15  ;;  %2994 = vmatprep.mubr.bf16.mxu1 %v5976_v16  ;;  %v6050_v15 = vld [vmem:[%s6299_s26 + $0x2e8] ss:$36 sps:$4 sm:$0xff]  }
 0x180   : > { %3411 = vmatprep.mubr.bf16.mxu0 %v5978_v17  ;;  %v6052_v16 = vld [vmem:[%s6299_s26 + $0x7a4] ss:$36 sps:$4 sm:$0xff]   ;;  %v6054_v17 = vld [vmem:[%s6299_s26 + $0x334] ss:$36 sps:$4 sm:$0xff]  }
 0x186   : > { %2995 = vmatmul.mubr.bf16.gmra.mrb[60].mxu1 %v5980_v18  ;;  %v6056_v18 = vld [vmem:[%s6299_s26 + $0x7a0] ss:$36 sps:$4 sm:$0xff]  }
 0x187   : > { %3412 = vmatmul.mubr.bf16.gmra.mrb[124].mxu0 %v5981_v20  ;;  %3002 = vmatprep.mubr.bf16.mxu1 %v5982_v21  ;;  %v6057_v20 = vld [vmem:[%s6299_s26 + $0x330] ss:$36 sps:$4 sm:$0xff]  }
 0x188   : > { %3452 = vmatprep.mubr.bf16.mxu0 %v5986_v23  ;;  %v6058_v21 = vld [vmem:[%s6299_s26 + $0x7ec] ss:$36 sps:$4 sm:$0xff]   ;;  %v6060_v23 = vld [vmem:[%s6299_s26 + $0x37c] ss:$36 sps:$4 sm:$0xff]  }
 0x18e   : > { %3003 = vmatmul.mubr.bf16.gmra.mrb[64].mxu1 %v5987_v24  ;;  %v6062_v24 = vld [vmem:[%s6299_s26 + $0x7e8] ss:$36 sps:$4 sm:$0xff]  }
 0x18f   : > { %3453 = vmatmul.mubr.bf16.vlgmr.msra.gmra.mrb[0].mxu0 %v5984_v25  ;;  %3010 = vmatprep.mubr.bf16.mxu1 %v5988_v26  ;;  %v6063_v25 = vld [vmem:[%s6299_s26 + $0x378] ss:$36 sps:$4 sm:$0xff]  }
 0x190   : > { %3460 = vmatprep.mubr.bf16.mxu0 %v5990_v28  ;;  %v6064_v26 = vld [vmem:[%s6299_s26 + $0x834] ss:$36 sps:$4 sm:$0xff]   ;;  %v6066_v28 = vld [vmem:[%s6299_s26 + $0x3c4] ss:$36 sps:$4 sm:$0xff]  }
 0x196   : > { %3011 = vmatmul.mubr.bf16.gmra.mrb[68].mxu1 %v5992_v29  ;;  %v6068_v29 = vld [vmem:[%s6299_s26 + $0x830] ss:$36 sps:$4 sm:$0xff]  }
 0x197   : > { %3461 = vmatmul.mubr.bf16.gmra.mrb[4].mxu0 %v5993_v31  ;;  %3018 = vmatprep.mubr.bf16.mxu1 %v5995_v32  ;;  %v6069_v31 = vld [vmem:[%s6299_s26 + $0x3c0] ss:$36 sps:$4 sm:$0xff]  }
 0x198   : > { %3468 = vmatprep.mubr.bf16.mxu0 %v5997_v1  ;;  %v6071_v32 = vld [vmem:[%s6299_s26 + $0x87c] ss:$36 sps:$4 sm:$0xff]   ;;  %v6073_v1 = vld [vmem:[%s6299_s26 + $0x40c] ss:$36 sps:$4 sm:$0xff]  }
 0x19e   : > { %3019 = vmatmul.mubr.bf16.gmra.mrb[72].mxu1 %v5999_v33  ;;  %v6075_v33 = vld [vmem:[%s6299_s26 + $0x878] ss:$36 sps:$4 sm:$0xff]  }
 0x19f   : > { %3469 = vmatmul.mubr.bf16.gmra.mrb[8].mxu0 %v6000_v34  ;;  %3026 = vmatprep.mubr.bf16.mxu1 %v6001_v35  ;;  %v6076_v34 = vld [vmem:[%s6299_s26 + $0x408] ss:$36 sps:$4 sm:$0xff]  }
 0x1a0   : > { %3476 = vmatprep.mubr.bf16.mxu0 %v6003_v37  ;;  %v6077_v35 = vld [vmem:[%s6299_s26 + $0x8c4] ss:$36 sps:$4 sm:$0xff]   ;;  %v6079_v37 = vld [vmem:[%s6299_s26 + $0x454] ss:$36 sps:$4 sm:$0xff]  }
 0x1a6   : > { %3027 = vmatmul.mubr.bf16.gmra.mrb[76].mxu1 %v6005_v38  ;;  %v6081_v38 = vld [vmem:[%s6299_s26 + $0x8c0] ss:$36 sps:$4 sm:$0xff]  }
 0x1a7   : > { %3477 = vmatmul.mubr.bf16.gmra.mrb[12].mxu0 %v6006_v40  ;;  %3034 = vmatprep.mubr.bf16.mxu1 %v6007_v41  ;;  %v6082_v40 = vld [vmem:[%s6299_s26 + $0x450] ss:$36 sps:$4 sm:$0xff]   ;;  %v6085_v41 = vld [vmem:[%s6299_s26 + $0x20] ss:$36 sps:$4 sm:$0xff]  }
 0x1a8   : > { %3484 = vmatprep.mubr.bf16.mxu0 %v6009_v42  ;;  %v6083_v42 = vld [vmem:[%s6299_s26 + $0x49c] ss:$36 sps:$4 sm:$0xff]  }
 0x1ae   : > { %3035 = vmatmul.mubr.bf16.gmra.mrb[80].mxu1 %v6011_v6  ;;  %v6087_v6 = vld [vmem:[%s6299_s26 + $0x68] ss:$36 sps:$4 sm:$0xff]  }
 0x1af   : > { %3485 = vmatmul.mubr.bf16.gmra.mrb[16].mxu0 %v6012_v43  ;;  %3042 = vmatprep.mubr.bf16.mxu1 %v6014_v45  ;;  %v6086_v43 = vld [vmem:[%s6299_s26 + $0x498] ss:$36 sps:$4 sm:$0xff]   ;;  %v6090_v45 = vld [vmem:[%s6299_s26 + $0xb0] ss:$36 sps:$4 sm:$0xff]  }
 0x1b0   : > { %3492 = vmatprep.mubr.bf16.mxu0 %v6016_v46  ;;  %v6088_v46 = vld [vmem:[%s6299_s26 + $0x4e4] ss:$36 sps:$4 sm:$0xff]  }
 0x1b6   : > { %3043 = vmatmul.mubr.bf16.gmra.mrb[84].mxu1 %v6018_v47  ;;  %v6092_v47 = vld [vmem:[%s6299_s26 + $0xf8] ss:$36 sps:$4 sm:$0xff]  }
 0x1b7   : > { %3493 = vmatmul.mubr.bf16.gmra.mrb[20].mxu0 %v6019_v50  ;;  %3050 = vmatprep.mubr.bf16.mxu1 %v6020_v51  ;;  %v6091_v50 = vld [vmem:[%s6299_s26 + $0x4e0] ss:$36 sps:$4 sm:$0xff]  }
 0x1b8   : > { %3500 = vmatprep.mubr.bf16.mxu0 %v6022_v53  ;;  %v6095_v51 = vld [vmem:[%s6299_s26 + $0x140] ss:$36 sps:$4 sm:$0xff]   ;;  %v6093_v53 = vld [vmem:[%s6299_s26 + $0x52c] ss:$36 sps:$4 sm:$0xff]  }
 0x1be   : > { %3051 = vmatmul.mubr.bf16.gmra.mrb[88].mxu1 %v6024_v54  ;;  %v6097_v54 = vld [vmem:[%s6299_s26 + $0x188] ss:$36 sps:$4 sm:$0xff]  }
 0x1bf   : > { %3501 = vmatmul.mubr.bf16.gmra.mrb[24].mxu0 %v6025_v55  ;;  %3058 = vmatprep.mubr.bf16.mxu1 %v6026_v56  ;;  %v6096_v55 = vld [vmem:[%s6299_s26 + $0x528] ss:$36 sps:$4 sm:$0xff]   ;;  %v6100_v56 = vld [vmem:[%s6299_s26 + $0x1d0] ss:$36 sps:$4 sm:$0xff]  }
 0x1c0   : > { %3508 = vmatprep.mubr.bf16.mxu0 %v6028_v58  ;;  %v6098_v58 = vld [vmem:[%s6299_s26 + $0x574] ss:$36 sps:$4 sm:$0xff]  }
 0x1c6   : > { %3059 = vmatmul.mubr.bf16.gmra.mrb[92].mxu1 %v6030_v59 }
 0x1c7   : > { %3509 = vmatmul.mubr.bf16.gmra.mrb[28].mxu0 %v6031_v61  ;;  %3066 = vmatprep.mubr.bf16.mxu1 %v6033_v62  ;;  %v6102_v62 = vld [vmem:[%s6299_s26 + $0x218] ss:$36 sps:$4 sm:$0xff]  }
 0x1c8   : > { %3516 = vmatprep.mubr.bf16.mxu0 %v6035_v63 }
 0x1ce   : > { %3067 = vmatmul.mubr.bf16.gmra.mrb[96].mxu1 %v6037_v0  ;;  %v6101_v0 = vld [vmem:[%s6299_s26 + $0x570] ss:$36 sps:$4 sm:$0xff]  }
 0x1cf   : > { %3517 = vmatmul.mubr.bf16.gmra.mrb[32].mxu0 %v6038_v3  ;;  %3074 = vmatprep.mubr.bf16.mxu1 %v6039_v4  ;;  %v6105_v3 = vld [vmem:[%s6299_s26 + $0x260] ss:$36 sps:$4 sm:$0xff]  }
 0x1d0   : > { %3524 = vmatprep.mubr.bf16.mxu0 %v6041_v7  ;;  %v6103_v7 = vld [vmem:[%s6299_s26 + $0x5bc] ss:$36 sps:$4 sm:$0xff]  }
 0x1d6   : > { %3075 = vmatmul.mubr.bf16.gmra.mrb[100].mxu1 %v6043_v8 }
 0x1d7   : > { %3525 = vmatmul.mubr.bf16.gmra.mrb[36].mxu0 %v6044_v9  ;;  %3082 = vmatprep.mubr.bf16.mxu1 %v6045_v10  ;;  %v6107_v10 = vld [vmem:[%s6299_s26 + $0x2a8] ss:$36 sps:$4 sm:$0xff]  }
 0x1d8   : > { %3532 = vmatprep.mubr.bf16.mxu0 %v6047_v12 }
 0x1de   : > { %3083 = vmatmul.mubr.bf16.gmra.mrb[104].mxu1 %v6049_v13  ;;  %v6106_v13 = vld [vmem:[%s6299_s26 + $0x5b8] ss:$36 sps:$4 sm:$0xff]  }
 0x1df   : > { %3533 = vmatmul.mubr.bf16.gmra.mrb[40].mxu0 %v6050_v15  ;;  %3090 = vmatprep.mubr.bf16.mxu1 %v6052_v16  ;;  %v6110_v15 = vld [vmem:[%s6299_s26 + $0x2f0] ss:$36 sps:$4 sm:$0xff]  }
 0x1e0   : > { %3540 = vmatprep.mubr.bf16.mxu0 %v6054_v17  ;;  %v6108_v17 = vld [vmem:[%s6299_s26 + $0x604] ss:$36 sps:$4 sm:$0xff]  }
 0x1e6   : > { %3091 = vmatmul.mubr.bf16.gmra.mrb[108].mxu1 %v6056_v18 }
 0x1e7   : > { %3541 = vmatmul.mubr.bf16.gmra.mrb[44].mxu0 %v6057_v20  ;;  %3098 = vmatprep.mubr.bf16.mxu1 %v6058_v21  ;;  %v6112_v21 = vld [vmem:[%s6299_s26 + $0x338] ss:$36 sps:$4 sm:$0xff]  }
 0x1e8   : > { %3548 = vmatprep.mubr.bf16.mxu0 %v6060_v23 }
 0x1ee   : > { %3099 = vmatmul.mubr.bf16.gmra.mrb[112].mxu1 %v6062_v24  ;;  %v6111_v24 = vld [vmem:[%s6299_s26 + $0x600] ss:$36 sps:$4 sm:$0xff]  }
 0x1ef   : > { %3549 = vmatmul.mubr.bf16.gmra.mrb[48].mxu0 %v6063_v25  ;;  %3106 = vmatprep.mubr.bf16.mxu1 %v6064_v26  ;;  %v6115_v25 = vld [vmem:[%s6299_s26 + $0x380] ss:$36 sps:$4 sm:$0xff]  }
 0x1f0   : > { %3556 = vmatprep.mubr.bf16.mxu0 %v6066_v28  ;;  %v6113_v28 = vld [vmem:[%s6299_s26 + $0x64c] ss:$36 sps:$4 sm:$0xff]  }
 0x1f6   : > { %3107 = vmatmul.mubr.bf16.gmra.mrb[116].mxu1 %v6068_v29 }
 0x1f7   : > { %3557 = vmatmul.mubr.bf16.gmra.mrb[52].mxu0 %v6069_v31  ;;  %3114 = vmatprep.mubr.bf16.mxu1 %v6071_v32  ;;  %v6117_v32 = vld [vmem:[%s6299_s26 + $0x3c8] ss:$36 sps:$4 sm:$0xff]  }
 0x1f8   : > { %3564 = vmatprep.mubr.bf16.mxu0 %v6073_v1 }
 0x1fe   : > { %3115 = vmatmul.mubr.bf16.gmra.mrb[120].mxu1 %v6075_v33  ;;  %v6116_v33 = vld [vmem:[%s6299_s26 + $0x648] ss:$36 sps:$4 sm:$0xff]  }
 0x1ff   : > { %3565 = vmatmul.mubr.bf16.gmra.mrb[56].mxu0 %v6076_v34  ;;  %3122 = vmatprep.mubr.bf16.mxu1 %v6077_v35  ;;  %v6120_v34 = vld [vmem:[%s6299_s26 + $0x410] ss:$36 sps:$4 sm:$0xff]  }
 0x200   : > { %3572 = vmatprep.mubr.bf16.mxu0 %v6079_v37  ;;  %v6118_v37 = vld [vmem:[%s6299_s26 + $0x694] ss:$36 sps:$4 sm:$0xff]  }
 0x206   : > { %3123 = vmatmul.mubr.bf16.gmra.mrb[124].mxu1 %v6081_v38 }
 0x207   : > { %3573 = vmatmul.mubr.bf16.gmra.mrb[60].mxu0 %v6082_v40  ;;  %5185 = vmatprep.mubr.bf16.mxu1 %v6085_v41  ;;  %v6122_v41 = vld [vmem:[%s6299_s26 + $0x458] ss:$36 sps:$4 sm:$0xff]  }
 0x208   : > { %3580 = vmatprep.mubr.bf16.mxu0 %v6083_v42 }
 0x20e   : > { %5186 = vmatmul.mubr.bf16.vlgmr.msra.gmra.mrb[128].mxu1 %v6087_v6  ;;  %v6121_v6 = vld [vmem:[%s6299_s26 + $0x690] ss:$36 sps:$4 sm:$0xff]  }
 0x20f   : > { %3581 = vmatmul.mubr.bf16.gmra.mrb[64].mxu0 %v6086_v43  ;;  %5189 = vmatprep.mubr.bf16.mxu1 %v6090_v45  ;;  %v6125_v43 = vld [vmem:[%s6299_s26 + $0x4a0] ss:$36 sps:$4 sm:$0xff]  }
 0x210   : > { %3588 = vmatprep.mubr.bf16.mxu0 %v6088_v46  ;;  %v6123_v46 = vld [vmem:[%s6299_s26 + $0x6dc] ss:$36 sps:$4 sm:$0xff]  }
 0x216   : > { %5190 = vmatmul.mubr.bf16.gmra.mrb[132].mxu1 %v6092_v47 }
 0x217   : > { %3589 = vmatmul.mubr.bf16.gmra.mrb[68].mxu0 %v6091_v50  ;;  %5193 = vmatprep.mubr.bf16.mxu1 %v6095_v51  ;;  %v6127_v51 = vld [vmem:[%s6299_s26 + $0x4e8] ss:$36 sps:$4 sm:$0xff]  }
 0x218   : > { %3596 = vmatprep.mubr.bf16.mxu0 %v6093_v53 }
 0x21e   : > { %5194 = vmatmul.mubr.bf16.gmra.mrb[136].mxu1 %v6097_v54  ;;  %v6126_v54 = vld [vmem:[%s6299_s26 + $0x6d8] ss:$36 sps:$4 sm:$0xff]  }
 0x21f   : > { %3597 = vmatmul.mubr.bf16.gmra.mrb[72].mxu0 %v6096_v55  ;;  %5197 = vmatprep.mubr.bf16.mxu1 %v6100_v56  ;;  %v6130_v55 = vld [vmem:[%s6299_s26 + $0x530] ss:$36 sps:$4 sm:$0xff]  }
 0x220   : > { %3604 = vmatprep.mubr.bf16.mxu0 %v6098_v58  ;;  %v6128_v58 = vld [vmem:[%s6299_s26 + $0x724] ss:$36 sps:$4 sm:$0xff]  }
 0x221   : > { %v6845_v59 = vpop.f32.mrb[32].mxu1 }
 0x222   : > { %v2942_v61 = vpop.f32.mrb[33].mxu1 }
 0x223   : > { %v6848_v63 = vpop.f32.mrb[34].mxu1 }
 0x224   : > { %v2945_v4 = vpop.f32.mrb[35].mxu1 }
 0x225   : > { %v6131_v4 = vld [vmem:[%s6299_s26 + $0x720] ss:$36 sps:$4 sm:$0xff]  }
 0x226   : > { %5198 = vmatmul.mubr.bf16.gmra.mrb[140].mxu1 %v6102_v62 }
 0x227   : > { %3605 = vmatmul.mubr.bf16.gmra.mrb[76].mxu0 %v6101_v0  ;;  %5201 = vmatprep.mubr.bf16.mxu1 %v6105_v3  ;;  %v6132_v0 = vld [vmem:[%s6299_s26 + $0x578] ss:$36 sps:$4 sm:$0xff]  }
 0x228   : > { %3612 = vmatprep.mubr.bf16.mxu0 %v6103_v7  ;;  %v6135_v7 = vld [vmem:[%s6299_s26 + $0x5c0] ss:$36 sps:$4 sm:$0xff]  }
 0x229   : > { %v6853_v8 = vpop.f32.mrb[36].mxu1 }
 0x22a   : > { %v2950_v9 = vpop.f32.mrb[37].mxu1 }
 0x22b   : > { %v6856_v12 = vpop.f32.mrb[38].mxu1 }
 0x22c   : > { %v2953_v16 = vpop.f32.mrb[39].mxu1 }
 0x22d   : > { %v6137_v16 = vld [vmem:[%s6299_s26 + $0x608] ss:$36 sps:$4 sm:$0xff]  }
 0x22e   : > { %5202 = vmatmul.mubr.bf16.gmra.mrb[144].mxu1 %v6107_v10  ;;  %v6133_v10 = vld [vmem:[%s6299_s26 + $0x76c] ss:$36 sps:$4 sm:$0xff]  }
 0x22f   : > { %3613 = vmatmul.mubr.bf16.gmra.mrb[80].mxu0 %v6106_v13  ;;  %5205 = vmatprep.mubr.bf16.mxu1 %v6110_v15 }
 0x230   : > { %3620 = vmatprep.mubr.bf16.mxu0 %v6108_v17 }
 0x231   : > { %v6861_v18 = vpop.f32.mrb[40].mxu1 }
 0x232   : > { %v2958_v20 = vpop.f32.mrb[41].mxu1 }
 0x233   : > { %v6864_v23 = vpop.f32.mrb[42].mxu1  ;;  %v6136_v20 = vld [vmem:[%s6299_s26 + $0x768] ss:$36 sps:$4 sm:$0xff]  }
 0x234   : > { %v2961_v26 = vpop.f32.mrb[43].mxu1 }
 0x235   : > { %v6912_v26 = vld [vmem:[%s7334_s2] ss:$0 sm:$0xff] }
 0x236   : > { %5206 = vmatmul.mubr.bf16.gmra.mrb[148].mxu1 %v6112_v21  ;;  %v6140_v21 = vld [vmem:[%s6299_s26 + $0x650] ss:$36 sps:$4 sm:$0xff]  }
 0x237   : > { %3621 = vmatmul.mubr.bf16.gmra.mrb[84].mxu0 %v6111_v24  ;;  %5209 = vmatprep.mubr.bf16.mxu1 %v6115_v25  ;;  %v6138_v25 = vld [vmem:[%s6299_s26 + $0x7b4] ss:$36 sps:$4 sm:$0xff]  }
 0x238   : > { %3628 = vmatprep.mubr.bf16.mxu0 %v6113_v28  ;;  %v2588_v28 = vadd.f32 %v6912_v26, %v6663_v49 }
 0x239   : > { %v6869_v29 = vpop.f32.mrb[44].mxu1 }
 0x23a   : > { %v2966_v31 = vpop.f32.mrb[45].mxu1 }
 0x23b   : > { %v6872_v1 = vpop.f32.mrb[46].mxu1 }
 0x23c   : > { %v2969_v35 = vpop.f32.mrb[47].mxu1 }
 0x23d   : > { %v2591_v35 = vadd.f32 %v6912_v26, %v6666_v52  ;;  %v2596_v52 = vadd.f32 %v6912_v26, %v6671_v57 }
 0x23e   : > { %5210 = vmatmul.mubr.bf16.gmra.mrb[152].mxu1 %v6117_v32 }
 0x23f   : > { %3629 = vmatmul.mubr.bf16.gmra.mrb[88].mxu0 %v6116_v33  ;;  %5213 = vmatprep.mubr.bf16.mxu1 %v6120_v34  ;;  %v6142_v34 = vld [vmem:[%s6299_s26 + $0x698] ss:$36 sps:$4 sm:$0xff]  }
 0x240   : > { %3636 = vmatprep.mubr.bf16.mxu0 %v6118_v37 }
 0x241   : > { %v6877_v38 = vpop.f32.mrb[48].mxu1 }
 0x242   : > { %v2974_v40 = vpop.f32.mrb[49].mxu1 }
 0x243   : > { %v6880_v42 = vpop.f32.mrb[50].mxu1 }
 0x244   : > { %v2977_v45 = vpop.f32.mrb[51].mxu1 }
 0x246   : > { %5214 = vmatmul.mubr.bf16.gmra.mrb[156].mxu1 %v6122_v41 }
 0x247   : > { %3637 = vmatmul.mubr.bf16.gmra.mrb[92].mxu0 %v6121_v6  ;;  %5217 = vmatprep.mubr.bf16.mxu1 %v6125_v43  ;;  %v6141_v6 = vld [vmem:[%s6299_s26 + $0x7b0] ss:$36 sps:$4 sm:$0xff]   ;;  %v6145_v43 = vld [vmem:[%s6299_s26 + $0x6e0] ss:$36 sps:$4 sm:$0xff]  }
 0x248   : > { %3644 = vmatprep.mubr.bf16.mxu0 %v6123_v46 }
 0x249   : > { %v6885_v47 = vpop.f32.mrb[52].mxu1 }
 0x24a   : > { %v2982_v50 = vpop.f32.mrb[53].mxu1 }
 0x24b   : > { %v6888_v53 = vpop.f32.mrb[54].mxu1  ;;  %v6143_v50 = vld [vmem:[%s6299_s26 + $0x7fc] ss:$36 sps:$4 sm:$0xff]  }
 0x24c   : > { %v2985_v56 = vpop.f32.mrb[55].mxu1 }
 0x24e   : > { %5218 = vmatmul.mubr.bf16.gmra.mrb[160].mxu1 %v6127_v51 }
 0x24f   : > { %3645 = vmatmul.mubr.bf16.gmra.mrb[96].mxu0 %v6126_v54  ;;  %5221 = vmatprep.mubr.bf16.mxu1 %v6130_v55 }
 0x250   : > { %3652 = vmatprep.mubr.bf16.mxu0 %v6128_v58  ;;  %v6147_v58 = vld [vmem:[%s6299_s26 + $0x728] ss:$36 sps:$4 sm:$0xff]  }
 0x251   : > { %v6893_v61 = vpop.f32.mrb[56].mxu1 }
 0x252   : > { %v2990_v62 = vpop.f32.mrb[57].mxu1 }
 0x253   : > { %v6896_v3 = vpop.f32.mrb[58].mxu1  ;;  %v2599_v62 = vadd.f32 %v6912_v26, %v6674_v60  ;;  %v2604_v60 = vadd.f32 %v6912_v26, %v6679_v2 }
 0x254   : > { %v2993_v9 = vpop.f32.mrb[59].mxu1 }
 0x255   : > { %v6146_v9 = vld [vmem:[%s6299_s26 + $0x7f8] ss:$36 sps:$4 sm:$0xff]  }
 0x256   : > { %5222 = vmatmul.mubr.bf16.gmra.mrb[164].mxu1 %v6132_v0 }
 0x257   : > { %3653 = vmatmul.mubr.bf16.gmra.mrb[100].mxu0 %v6131_v4  ;;  %5225 = vmatprep.mubr.bf16.mxu1 %v6135_v7 }
 0x258   : > { %3660 = vmatprep.mubr.bf16.mxu0 %v6133_v10  ;;  %v6150_v10 = vld [vmem:[%s6299_s26 + $0x770] ss:$36 sps:$4 sm:$0xff]  }
 0x259   : > { %v6901_v13 = vpop.f32.mrb[60].mxu1 }
 0x25a   : > { %v2998_v15 = vpop.f32.mrb[61].mxu1 }
 0x25b   : > { %v6904_v17 = vpop.f32.mrb[62].mxu1 }
 0x25c   : > { %v3001_v24 = vpop.f32.mrb[63].mxu1 }
 0x25e   : > { %5226 = vmatmul.mubr.bf16.gmra.mrb[168].mxu1 %v6137_v16 }
 0x25f   : > { %3661 = vmatmul.mubr.bf16.gmra.mrb[104].mxu0 %v6136_v20  ;;  %5229 = vmatprep.mubr.bf16.mxu1 %v6140_v21  ;;  %v6148_v20 = vld [vmem:[%s6299_s26 + $0x844] ss:$36 sps:$4 sm:$0xff]  }
 0x260   : > { %3668 = vmatprep.mubr.bf16.mxu0 %v6138_v25 }
 0x261   : > { %v6916_v31 = vpop.f32.mrb[64].mxu1 }
 0x262   : > { %v3454_v32 = vpop.f32.mrb[0].mxu0  ;;  %v3006_v33 = vpop.f32.mrb[65].mxu1 }
 0x263   : > { %v6921_v37 = vadd.f32 %v3454_v32, %v2588_v28  ;;  %v3456_v40 = vpop.f32.mrb[1].mxu0  ;;  %v6923_v41 = vpop.f32.mrb[66].mxu1  ;;  %v6152_v32 = vld [vmem:[%s6299_s26 + $0x7b8] ss:$36 sps:$4 sm:$0xff]   ;;  %v2607_v33 = vadd.f32 %v6912_v26, %v6682_v5  ;;  %v2612_v5 = vadd.f32 %v6912_v26, %v6687_v11 }
 0x264   : > { %v3457_v45 = vpop.f32.mrb[2].mxu0  ;;  %v3009_v46 = vpop.f32.mrb[67].mxu1 }
 0x265   : > { %v6928_v49 = vadd.f32 %v3457_v45, %v2591_v35  ;;  %v3459_v51 = vpop.f32.mrb[3].mxu0 }
 0x266   : > { %5230 = vmatmul.mubr.bf16.gmra.mrb[172].mxu1 %v6142_v34 }
 0x267   : > { %3669 = vmatmul.mubr.bf16.gmra.mrb[108].mxu0 %v6141_v6  ;;  %5233 = vmatprep.mubr.bf16.mxu1 %v6145_v43  ;;  %v6151_v6 = vld [vmem:[%s6299_s26 + $0x840] ss:$36 sps:$4 sm:$0xff]  }
 0x268   : > { %3676 = vmatprep.mubr.bf16.mxu0 %v6143_v50  ;;  %v6155_v43 = vld [vmem:[%s6299_s26 + $0x800] ss:$36 sps:$4 sm:$0xff]   ;;  %v6153_v50 = vld [vmem:[%s6299_s26 + $0x88c] ss:$36 sps:$4 sm:$0xff]  }
 0x269   : > { %v6932_v54 = vpop.f32.mrb[68].mxu1 }
 0x26a   : > { %v3462_v55 = vpop.f32.mrb[4].mxu0  ;;  %v3014_v56 = vpop.f32.mrb[69].mxu1 }
 0x26b   : > { %v6937_v0 = vadd.f32 %v3462_v55, %v2596_v52  ;;  %v3464_v4 = vpop.f32.mrb[5].mxu0  ;;  %v6939_v7 = vpop.f32.mrb[70].mxu1 }
 0x26c   : > { %v3465_v15 = vpop.f32.mrb[6].mxu0  ;;  %v3017_v16 = vpop.f32.mrb[71].mxu1 }
 0x26d   : > { %v6944_v57 = vadd.f32 %v3465_v15, %v2599_v62  ;;  %v3467_v21 = vpop.f32.mrb[7].mxu0  ;;  %v2615_v62 = vadd.f32 %v6912_v26, %v6690_v14  ;;  %v6156_v15 = vld [vmem:[%s6299_s26 + $0x888] ss:$36 sps:$4 sm:$0xff]   ;;  %v6160_v16 = vld [vmem:[%s6299_s26 + $0x890] ss:$36 sps:$4 sm:$0xff]   ;;  %v2620_v14 = vadd.f32 %v6912_v26, %v6695_v19  ;;  %v2628_v19 = vadd.f32 %v6912_v26, %v6703_v27 }
 0x26e   : > { %5234 = vmatmul.mubr.bf16.gmra.mrb[176].mxu1 %v6147_v58  ;;  %v6157_v58 = vld [vmem:[%s6299_s26 + $0x848] ss:$36 sps:$4 sm:$0xff]   ;;  %v2636_v27 = vadd.f32 %v6912_v26, %v6718_v36  ;;  %v2644_v36 = vadd.f32 %v6912_v26, %v6729_v44  ;;  %v5313_v44 = vadd.f32 %v6912_v26, %v6845_v59  ;;  %v5317_v59 = vadd.f32 %v6912_v26, %v6853_v8 }
 0x26f   : > { %3677 = vmatmul.mubr.bf16.gmra.mrb[112].mxu0 %v6146_v9  ;;  %5237 = vmatprep.mubr.bf16.mxu1 %v6150_v10  ;;  %v5321_v8 = vadd.f32 %v6912_v26, %v6861_v18  ;;  %v5325_v18 = vadd.f32 %v6912_v26, %v6869_v29  ;;  %v5329_v29 = vadd.f32 %v6912_v26, %v6877_v38 }
 0x270   : > { %3684 = vmatprep.mubr.bf16.mxu0 %v6148_v20  ;;  %v5333_v38 = vadd.f32 %v6912_v26, %v6885_v47  ;;  %v5337_v47 = vadd.f32 %v6912_v26, %v6893_v61  ;;  %v5341_v61 = vadd.f32 %v6912_v26, %v6901_v13  ;;  %v5345_v13 = vadd.f32 %v6912_v26, %v6916_v31 }
 0x271   : > { %v6948_v24 = vpop.f32.mrb[72].mxu1 }
 0x272   : > { %v3470_v25 = vpop.f32.mrb[8].mxu0  ;;  %v3022_v28 = vpop.f32.mrb[73].mxu1 }
 0x273   : > { %v6953_v34 = vadd.f32 %v3470_v25, %v2604_v60  ;;  %v3472_v35 = vpop.f32.mrb[9].mxu0  ;;  %v6955_v40 = vpop.f32.mrb[74].mxu1  ;;  %v6158_v60 = vld [vmem:[%s6299_s26 + $0x8d4] ss:$36 sps:$4 sm:$0xff]  }
 0x274   : > { %v3473_v45 = vpop.f32.mrb[10].mxu0  ;;  %v3025_v46 = vpop.f32.mrb[75].mxu1  ;;  %v6162_v35 = vld [vmem:[%s6299_s26 + $0x8d8] ss:$36 sps:$4 sm:$0xff]  }
 0x275   : > { %v6960_v2 = vadd.f32 %v3473_v45, %v2607_v33  ;;  %v3475_v51 = vpop.f32.mrb[11].mxu0 }
 0x276   : > { %5238 = vmatmul.mubr.bf16.gmra.mrb[180].mxu1 %v6152_v32 }
 0x277   : > { %3685 = vmatmul.mubr.bf16.gmra.mrb[116].mxu0 %v6151_v6  ;;  %5241 = vmatprep.mubr.bf16.mxu1 %v6155_v43  ;;  %v2623_v6 = vadd.f32 %v6912_v26, %v6698_v22 }
 0x278   : > { %3692 = vmatprep.mubr.bf16.mxu0 %v6153_v50  ;;  %v6161_v50 = vld [vmem:[%s6299_s26 + $0x8d0] ss:$36 sps:$4 sm:$0xff]   ;;  %s4446_s26 = sshll.u32 %s7371_s7, 2 }
 0x279   : > { %v6964_v52 = vpop.f32.mrb[76].mxu1  ;;  %s7140_s20 = scalar_lea.vmem %s7335_s3, %s4446_s26 }
 0x27a   : > { %v3478_v55 = vpop.f32.mrb[12].mxu0  ;;  %v3030_v56 = vpop.f32.mrb[77].mxu1 }
 0x27b   : > { %v6969_v4 = vadd.f32 %v3478_v55, %v2612_v5  ;;  %v3480_v9 = vpop.f32.mrb[13].mxu0  ;;  %v6971_v10 = vpop.f32.mrb[78].mxu1 }
 0x27c   : > { %v3481_v20 = vpop.f32.mrb[14].mxu0  ;;  %v3033_v21 = vpop.f32.mrb[79].mxu1  ;;  %v2631_v9 = vadd.f32 %v6912_v26, %v6706_v30  ;;  %v2639_v30 = vadd.f32 %v6912_v26, %v6721_v39  ;;  %v2647_v39 = vadd.f32 %v6912_v26, %v6735_v48  ;;  %v5315_v48 = vadd.f32 %v6912_v26, %v6848_v63 }
 0x27d   : > { %v6976_v11 = vadd.f32 %v3481_v20, %v2615_v62  ;;  %v3483_v25 = vpop.f32.mrb[15].mxu0  ;;  %v5319_v63 = vadd.f32 %v6912_v26, %v6856_v12  ;;  %v5323_v12 = vadd.f32 %v6912_v26, %v6864_v23  ;;  %v5327_v23 = vadd.f32 %v6912_v26, %v6872_v1 }
 0x27e   : > { %5242 = vmatmul.mubr.bf16.gmra.mrb[184].mxu1 %v6157_v58  ;;  %v5331_v1 = vadd.f32 %v6912_v26, %v6880_v42  ;;  %v5335_v42 = vadd.f32 %v6912_v26, %v6888_v53  ;;  %v5339_v53 = vadd.f32 %v6912_v26, %v6896_v3  ;;  %v5343_v3 = vadd.f32 %v6912_v26, %v6904_v17 }
 0x27f   : > { %3693 = vmatmul.mubr.bf16.gmra.mrb[120].mxu0 %v6156_v15  ;;  %5245 = vmatprep.mubr.bf16.mxu1 %v6160_v16  ;;  %v5347_v17 = vadd.f32 %v6912_v26, %v6923_v41 }
 0x280   : > { %3700 = vmatprep.mubr.bf16.mxu0 %v6158_v60 }
 0x281   : > { %v6980_v28 = vpop.f32.mrb[80].mxu1 }
 0x282   : > { %v3486_v32 = vpop.f32.mrb[16].mxu0  ;;  %v3038_v33 = vpop.f32.mrb[81].mxu1 }
 0x283   : > { %v6985_v43 = vadd.f32 %v3486_v32, %v2620_v14  ;;  %v3488_v45 = vpop.f32.mrb[17].mxu0  ;;  %v6987_v46 = vpop.f32.mrb[82].mxu1 }
 0x284   : > { %v3489_v51 = vpop.f32.mrb[18].mxu0  ;;  %v3041_v5 = vpop.f32.mrb[83].mxu1 }
 0x285   : > { %v6990_v55 = vadd.f32 %v3489_v51, %v2623_v6  ;;  %v3491_v56 = vpop.f32.mrb[19].mxu0 }
 0x286   : > { %5246 = vmatmul.mubr.bf16.gmra.mrb[188].mxu1 %v6162_v35 }
 0x287   : > { %3701 = vmatmul.mubr.bf16.gmra.mrb[124].mxu0 %v6161_v50 }
 0x289   : > { %v6994_v58 = vpop.f32.mrb[84].mxu1 }
 0x28a   : > { %v3494_v62 = vpop.f32.mrb[20].mxu0  ;;  %v3046_v22 = vpop.f32.mrb[85].mxu1 }
 0x28b   : > { %v6998_v15 = vadd.f32 %v3494_v62, %v2628_v19  ;;  %v3496_v16 = vpop.f32.mrb[21].mxu0  ;;  %v7000_v20 = vpop.f32.mrb[86].mxu1 }
 0x28c   : > { %v3497_v21 = vpop.f32.mrb[22].mxu0  ;;  %v3049_v60 = vpop.f32.mrb[87].mxu1 }
 0x28d   : > { %v7002_v25 = vadd.f32 %v3497_v21, %v2631_v9  ;;  %v3499_v14 = vpop.f32.mrb[23].mxu0 }
 0x291   : > { %v7006_v32 = vpop.f32.mrb[88].mxu1 }
 0x292   : > { %v3502_v33 = vpop.f32.mrb[24].mxu0  ;;  %v3054_v35 = vpop.f32.mrb[89].mxu1 }
 0x293   : > { %v7010_v6 = vadd.f32 %v3502_v33, %v2636_v27  ;;  %v3504_v45 = vpop.f32.mrb[25].mxu0  ;;  %v7012_v50 = vpop.f32.mrb[90].mxu1 }
 0x294   : > { %v3505_v51 = vpop.f32.mrb[26].mxu0  ;;  %v3057_v5 = vpop.f32.mrb[91].mxu1 }
 0x295   : > { %v7014_v56 = vadd.f32 %v3505_v51, %v2639_v30  ;;  %v3507_v19 = vpop.f32.mrb[27].mxu0 }
 0x299   : > { %v7018_v62 = vpop.f32.mrb[92].mxu1 }
 0x29a   : > { %v3510_v22 = vpop.f32.mrb[28].mxu0  ;;  %v3062_v9 = vpop.f32.mrb[93].mxu1 }
 0x29b   : > { %v7022_v16 = vadd.f32 %v3510_v22, %v2644_v36  ;;  %v3512_v21 = vpop.f32.mrb[29].mxu0  ;;  %v7024_v60 = vpop.f32.mrb[94].mxu1 }
 0x29c   : > { %v3513_v14 = vpop.f32.mrb[30].mxu0  ;;  %v3065_v27 = vpop.f32.mrb[95].mxu1 }
 0x29d   : > { %v7026_v33 = vadd.f32 %v3513_v14, %v2647_v39  ;;  %v3515_v35 = vpop.f32.mrb[31].mxu0 }
 0x2a1   : > { %v7030_v30 = vpop.f32.mrb[96].mxu1 }
 0x2a2   : > { %7336 = vst [vmem:[#allocation2_spill] sm:$0xff] %v7030_v30  ;;  %v3518_v45 = vpop.f32.mrb[32].mxu0  ;;  %v3070_v51 = vpop.f32.mrb[97].mxu1 }
 0x2a3   : > { %v7034_v5 = vadd.f32 %v5313_v44, %v3518_v45  ;;  %v3520_v19 = vpop.f32.mrb[33].mxu0  ;;  %v7036_v36 = vpop.f32.mrb[98].mxu1 }
 0x2a4   : > { %7337 = vst [vmem:[#allocation3_spill] sm:$0xff] %v7036_v36  ;;  %v3521_v22 = vpop.f32.mrb[34].mxu0  ;;  %v3073_v9 = vpop.f32.mrb[99].mxu1 }
 0x2a5   : > { %v7038_v39 = vadd.f32 %v5315_v48, %v3521_v22  ;;  %v3523_v21 = vpop.f32.mrb[35].mxu0 }
 0x2a9   : > { %v7042_v14 = vpop.f32.mrb[100].mxu1 }
 0x2aa   : > { %7338 = vst [vmem:[#allocation4_spill] sm:$0xff] %v7042_v14  ;;  %v3526_v27 = vpop.f32.mrb[36].mxu0  ;;  %v3078_v35 = vpop.f32.mrb[101].mxu1 }
 0x2ab   : > { %v7046_v44 = vadd.f32 %v5317_v59, %v3526_v27  ;;  %v3528_v45 = vpop.f32.mrb[37].mxu0  ;;  %v7048_v51 = vpop.f32.mrb[102].mxu1 }
 0x2ac   : > { %7339 = vst [vmem:[#allocation5_spill] sm:$0xff] %v7048_v51  ;;  %v3529_v19 = vpop.f32.mrb[38].mxu0  ;;  %v3081_v9 = vpop.f32.mrb[103].mxu1 }
 0x2ad   : > { %v7050_v48 = vadd.f32 %v5319_v63, %v3529_v19  ;;  %v3531_v22 = vpop.f32.mrb[39].mxu0 }
 0x2b1   : > { %v7054_v21 = vpop.f32.mrb[104].mxu1 }
 0x2b2   : > { %7340 = vst [vmem:[#allocation6_spill] sm:$0xff] %v7054_v21  ;;  %v3534_v14 = vpop.f32.mrb[40].mxu0  ;;  %v3086_v35 = vpop.f32.mrb[105].mxu1 }
 0x2b3   : > { %v7058_v59 = vadd.f32 %v5321_v8, %v3534_v14  ;;  %v3536_v27 = vpop.f32.mrb[41].mxu0  ;;  %v7060_v45 = vpop.f32.mrb[106].mxu1 }
 0x2b4   : > { %7341 = vst [vmem:[#allocation7_spill] sm:$0xff] %v7060_v45  ;;  %v3537_v51 = vpop.f32.mrb[42].mxu0  ;;  %v3089_v9 = vpop.f32.mrb[107].mxu1 }
 0x2b5   : > { %v7062_v63 = vadd.f32 %v5323_v12, %v3537_v51  ;;  %v3539_v19 = vpop.f32.mrb[43].mxu0 }
 0x2b9   : > { %v7066_v22 = vpop.f32.mrb[108].mxu1 }
 0x2ba   : > { %7342 = vst [vmem:[#allocation8_spill] sm:$0xff] %v7066_v22  ;;  %v3542_v21 = vpop.f32.mrb[44].mxu0  ;;  %v3094_v35 = vpop.f32.mrb[109].mxu1 }
 0x2bb   : > { %v7070_v14 = vadd.f32 %v5325_v18, %v3542_v21  ;;  %v3544_v8 = vpop.f32.mrb[45].mxu0  ;;  %v7072_v27 = vpop.f32.mrb[110].mxu1 }
 0x2bc   : > { %7343 = vst [vmem:[#allocation9_spill] sm:$0xff] %v7072_v27  ;;  %v3545_v45 = vpop.f32.mrb[46].mxu0  ;;  %v3097_v9 = vpop.f32.mrb[111].mxu1 }
 0x2bd   : > { %v7074_v51 = vadd.f32 %v5327_v23, %v3545_v45  ;;  %v3547_v12 = vpop.f32.mrb[47].mxu0 }
 0x2c1   : > { %v7078_v19 = vpop.f32.mrb[112].mxu1 }
 0x2c2   : > { %7344 = vst [vmem:[#allocation10_spill] sm:$0xff] %v7078_v19  ;;  %v3550_v22 = vpop.f32.mrb[48].mxu0  ;;  %v3102_v35 = vpop.f32.mrb[113].mxu1 }
 0x2c3   : > { %v7082_v21 = vadd.f32 %v5329_v29, %v3550_v22  ;;  %v3552_v18 = vpop.f32.mrb[49].mxu0  ;;  %v7084_v8 = vpop.f32.mrb[114].mxu1 }
 0x2c4   : > { %7345 = vst [vmem:[#allocation11_spill] sm:$0xff] %v7084_v8  ;;  %v3553_v27 = vpop.f32.mrb[50].mxu0  ;;  %v3105_v9 = vpop.f32.mrb[115].mxu1 }
 0x2c5   : > { %v7086_v45 = vadd.f32 %v5331_v1, %v3553_v27  ;;  %v3555_v23 = vpop.f32.mrb[51].mxu0 }
 0x2c9   : > { %v7090_v12 = vpop.f32.mrb[116].mxu1 }
 0x2ca   : > { %7346 = vst [vmem:[#allocation12_spill] sm:$0xff] %v7090_v12  ;;  %v3558_v19 = vpop.f32.mrb[52].mxu0  ;;  %v3110_v35 = vpop.f32.mrb[117].mxu1 }
 0x2cb   : > { %v7094_v22 = vadd.f32 %v5333_v38, %v3558_v19  ;;  %v3560_v29 = vpop.f32.mrb[53].mxu0  ;;  %v7096_v18 = vpop.f32.mrb[118].mxu1 }
 0x2cc   : > { %7347 = vst [vmem:[#allocation13_spill] sm:$0xff] %v7096_v18  ;;  %v3561_v8 = vpop.f32.mrb[54].mxu0  ;;  %v3113_v9 = vpop.f32.mrb[119].mxu1 }
 0x2cd   : > { %v7098_v27 = vadd.f32 %v5335_v42, %v3561_v8  ;;  %v3563_v1 = vpop.f32.mrb[55].mxu0 }
 0x2d1   : > { %v7102_v23 = vpop.f32.mrb[120].mxu1 }
 0x2d2   : > { %7348 = vst [vmem:[#allocation14_spill] sm:$0xff] %v7102_v23  ;;  %v3566_v12 = vpop.f32.mrb[56].mxu0  ;;  %v3118_v35 = vpop.f32.mrb[121].mxu1 }
 0x2d3   : > { %v7106_v19 = vadd.f32 %v5337_v47, %v3566_v12  ;;  %v3568_v38 = vpop.f32.mrb[57].mxu0  ;;  %v7108_v29 = vpop.f32.mrb[122].mxu1 }
 0x2d4   : > { %7349 = vst [vmem:[#allocation15_spill] sm:$0xff] %v7108_v29  ;;  %v3569_v18 = vpop.f32.mrb[58].mxu0  ;;  %v3121_v9 = vpop.f32.mrb[123].mxu1 }
 0x2d5   : > { %v7110_v8 = vadd.f32 %v5339_v53, %v3569_v18  ;;  %v3571_v42 = vpop.f32.mrb[59].mxu0 }
 0x2d7   : > { %7350 = vst [vmem:[#allocation16_spill] sm:$0xff] %v7110_v8 }
 0x2d9   : > { %v7114_v1 = vpop.f32.mrb[124].mxu1 }
 0x2da   : > { %7351 = vst [vmem:[#allocation17_spill] sm:$0xff] %v7114_v1  ;;  %v3574_v23 = vpop.f32.mrb[60].mxu0  ;;  %v3126_v35 = vpop.f32.mrb[125].mxu1 }
 0x2db   : > { %v7118_v12 = vadd.f32 %v5341_v61, %v3574_v23  ;;  %v3576_v47 = vpop.f32.mrb[61].mxu0  ;;  %v7120_v38 = vpop.f32.mrb[126].mxu1 }
 0x2dc   : > { %7352 = vst [vmem:[#allocation18_spill] sm:$0xff] %v7120_v38  ;;  %v3577_v9 = vpop.f32.mrb[62].mxu0  ;;  %v3129_v18 = vpop.f32.mrb[127].mxu1 }
 0x2dd   : > { %v7122_v53 = vadd.f32 %v5343_v3, %v3577_v9  ;;  %v3579_v42 = vpop.f32.mrb[63].mxu0 }
 0x2e1   : > { %v5187_v1 = vpop.f32.mrb[128].mxu1 }
 0x2e2   : > { %v3582_v29 = vpop.f32.mrb[64].mxu0  ;;  %v3752_v35 = vadd.f32 %v6937_v0, %v5187_v1  ;;  %v3743_v36 = vpop.f32.mrb[129].mxu1 }
 0x2e3   : > { %v7129_v23 = vadd.f32 %v5345_v13, %v3582_v29  ;;  %v3584_v61 = vpop.f32.mrb[65].mxu0  ;;  %v3744_v47 = vadd.f32 %v6921_v37, %v3743_v36  ;;  %v5188_v18 = vpop.f32.mrb[130].mxu1 }
 0x2e4   : > { %v3585_v3 = vpop.f32.mrb[66].mxu0  ;;  %v3755_v9 = vadd.f32 %v6944_v57, %v5188_v18  ;;  %v3746_v42 = vpop.f32.mrb[131].mxu1  ;;  %v4000_v1 = vmax.f32 %v3752_v35, 0.0  ;;  %v5349_v57 = vadd.f32 %v6912_v26, %v6932_v54  ;;  %v5351_v35 = vadd.f32 %v6912_v26, %v6939_v7 }
 0x2e5   : > { %v7134_v31 = vadd.f32 %v5347_v17, %v3585_v3  ;;  %v3587_v38 = vpop.f32.mrb[67].mxu0  ;;  %v3747_v0 = vadd.f32 %v6928_v49, %v3746_v42  ;;  %v3998_v8 = vmax.f32 %v3744_v47, 0.0 }
 0x2e6   : > { %v4001_v30 = vmax.f32 %v3755_v9, 0.0 }
 0x2e7   : > { %v3999_v37 = vmax.f32 %v3747_v0, 0.0 }
 0x2e8   : > { %v4946_v41 = vpack.c.bf16 %v4001_v30, %v4000_v1 }
 0x2e9   : > { %v4941_v36 = vpack.c.bf16 %v3999_v37, %v3998_v8  ;;  %v5191_v29 = vpop.f32.mrb[132].mxu1 }
 0x2ea   : > { %5098 = vst [vmem:[%s7140_s20 + $0x8] sm:$0xff] %v4946_v41   ;;  %v3590_v38 = vpop.f32.mrb[68].mxu0  ;;  %v3768_v49 = vadd.f32 %v6969_v4, %v5191_v29  ;;  %v3759_v13 = vpop.f32.mrb[133].mxu1 }
 0x2eb   : > { %4942 = vst [vmem:[%s7140_s20] sm:$0xff] %v4941_v36   ;;  %v7149_v17 = vadd.f32 %v5349_v57, %v3590_v38  ;;  %v3592_v61 = vpop.f32.mrb[69].mxu0  ;;  %v3760_v47 = vadd.f32 %v6953_v34, %v3759_v13  ;;  %v5192_v30 = vpop.f32.mrb[134].mxu1  ;;  %v5353_v34 = vadd.f32 %v6912_v26, %v6948_v24  ;;  %v5355_v38 = vadd.f32 %v6912_v26, %v6955_v40 }
 0x2ec   : > { %v3593_v18 = vpop.f32.mrb[70].mxu0  ;;  %v3771_v54 = vadd.f32 %v6976_v11, %v5192_v30  ;;  %v3762_v8 = vpop.f32.mrb[135].mxu1  ;;  %v4004_v42 = vmax.f32 %v3768_v49, 0.0 }
 0x2ed   : > { %v7153_v3 = vadd.f32 %v5351_v35, %v3593_v18  ;;  %v3595_v4 = vpop.f32.mrb[71].mxu0  ;;  %v3763_v9 = vadd.f32 %v6960_v2, %v3762_v8  ;;  %v4002_v0 = vmax.f32 %v3760_v47, 0.0 }
 0x2ee   : > { %v4005_v7 = vmax.f32 %v3771_v54, 0.0 }
 0x2ef   : > { %v4003_v1 = vmax.f32 %v3763_v9, 0.0 }
 0x2f0   : > { %v4956_v37 = vpack.c.bf16 %v4005_v7, %v4004_v42 }
 0x2f1   : > { %v4951_v41 = vpack.c.bf16 %v4003_v1, %v4002_v0  ;;  %v5195_v57 = vpop.f32.mrb[136].mxu1 }
 0x2f2   : > { %5100 = vst [vmem:[%s7140_s20 + $0x18] sm:$0xff] %v4956_v37   ;;  %v3598_v36 = vpop.f32.mrb[72].mxu0  ;;  %v3784_v11 = vadd.f32 %v6998_v15, %v5195_v57  ;;  %v3775_v29 = vpop.f32.mrb[137].mxu1  ;;  %v5359_v37 = vadd.f32 %v6912_v26, %v6971_v10 }
 0x2f3   : > { %5099 = vst [vmem:[%s7140_s20 + $0x10] sm:$0xff] %v4951_v41   ;;  %v7163_v2 = vadd.f32 %v5353_v34, %v3598_v36  ;;  %v3600_v49 = vpop.f32.mrb[73].mxu0  ;;  %v3776_v13 = vadd.f32 %v6985_v43, %v3775_v29  ;;  %v5196_v35 = vpop.f32.mrb[138].mxu1  ;;  %v5357_v43 = vadd.f32 %v6912_v26, %v6964_v52 }
 0x2f4   : > { %v3601_v61 = vpop.f32.mrb[74].mxu0  ;;  %v3787_v24 = vadd.f32 %v7002_v25, %v5196_v35  ;;  %v3778_v47 = vpop.f32.mrb[139].mxu1  ;;  %v4008_v54 = vmax.f32 %v3784_v11, 0.0 }
 0x2f5   : > { %v7167_v30 = vadd.f32 %v5355_v38, %v3601_v61  ;;  %v3603_v15 = vpop.f32.mrb[75].mxu0  ;;  %v3779_v18 = vadd.f32 %v6990_v55, %v3778_v47  ;;  %v4006_v8 = vmax.f32 %v3776_v13, 0.0 }
 0x2f6   : > { %v4009_v40 = vmax.f32 %v3787_v24, 0.0 }
 0x2f7   : > { %v4007_v4 = vmax.f32 %v3779_v18, 0.0 }
 0x2f8   : > { %v4966_v9 = vpack.c.bf16 %v4009_v40, %v4008_v54  ;;  %v5363_v54 = vadd.f32 %v6912_v26, %v6987_v46 }
 0x2f9   : > { %v4961_v42 = vpack.c.bf16 %v4007_v4, %v4006_v8  ;;  %v5199_v7 = vpop.f32.mrb[140].mxu1 }
 0x2fa   : > { %5102 = vst [vmem:[%s7140_s20 + $0x28] sm:$0xff] %v4966_v9   ;;  %v3606_v0 = vpop.f32.mrb[76].mxu0  ;;  %v3800_v25 = vadd.f32 %v7022_v16, %v5199_v7  ;;  %v3791_v1 = vpop.f32.mrb[141].mxu1 }
 0x2fb   : > { %5101 = vst [vmem:[%s7140_s20 + $0x20] sm:$0xff] %v4961_v42   ;;  %v7177_v55 = vadd.f32 %v5357_v43, %v3606_v0  ;;  %v3608_v34 = vpop.f32.mrb[77].mxu0  ;;  %v3792_v41 = vadd.f32 %v7010_v6, %v3791_v1  ;;  %v5200_v57 = vpop.f32.mrb[142].mxu1  ;;  %v5361_v6 = vadd.f32 %v6912_v26, %v6980_v28 }
 0x2fc   : > { %v3609_v36 = vpop.f32.mrb[78].mxu0  ;;  %v3803_v52 = vadd.f32 %v7026_v33, %v5200_v57  ;;  %v3794_v11 = vpop.f32.mrb[143].mxu1  ;;  %v4012_v49 = vmax.f32 %v3800_v25, 0.0 }
 0x2fd   : > { %v7181_v29 = vadd.f32 %v5359_v37, %v3609_v36  ;;  %v3611_v16 = vpop.f32.mrb[79].mxu0  ;;  %v3795_v38 = vadd.f32 %v7014_v56, %v3794_v11  ;;  %v4010_v13 = vmax.f32 %v3792_v41, 0.0 }
 0x2fe   : > { %v4013_v10 = vmax.f32 %v3803_v52, 0.0  ;;  %v5367_v52 = vadd.f32 %v6912_v26, %v7000_v20 }
 0x2ff   : > { %v4011_v35 = vmax.f32 %v3795_v38, 0.0 }
 0x300   : > { %v4976_v61 = vpack.c.bf16 %v4013_v10, %v4012_v49 }
 0x301   : > { %v4971_v24 = vpack.c.bf16 %v4011_v35, %v4010_v13  ;;  %v5203_v47 = vpop.f32.mrb[144].mxu1 }
 0x302   : > { %5104 = vst [vmem:[%s7140_s20 + $0x38] sm:$0xff] %v4976_v61   ;;  %v3614_v15 = vpop.f32.mrb[80].mxu0  ;;  %v3816_v33 = vadd.f32 %v7046_v44, %v5203_v47  ;;  %v3807_v18 = vpop.f32.mrb[145].mxu1 }
 0x303   : > { %5103 = vst [vmem:[%s7140_s20 + $0x30] sm:$0xff] %v4971_v24   ;;  %v7191_v56 = vadd.f32 %v5361_v6, %v3614_v15  ;;  %v3616_v40 = vpop.f32.mrb[81].mxu0  ;;  %v3808_v8 = vadd.f32 %v7034_v5, %v3807_v18  ;;  %v5204_v4 = vpop.f32.mrb[146].mxu1  ;;  %v5365_v5 = vadd.f32 %v6912_v26, %v6994_v58 }
 0x304   : > { %v3617_v9 = vpop.f32.mrb[82].mxu0  ;;  %v3819_v28 = vadd.f32 %v7050_v48, %v5204_v4  ;;  %v3810_v43 = vpop.f32.mrb[147].mxu1  ;;  %v4016_v0 = vmax.f32 %v3816_v33, 0.0  ;;  %v5371_v40 = vadd.f32 %v6912_v26, %v7012_v50 }
 0x305   : > { %v7195_v42 = vadd.f32 %v5363_v54, %v3617_v9  ;;  %v3619_v44 = vpop.f32.mrb[83].mxu0  ;;  %v3811_v7 = vadd.f32 %v7038_v39, %v3810_v43  ;;  %v4014_v25 = vmax.f32 %v3808_v8, 0.0 }
 0x306   : > { %v4017_v46 = vmax.f32 %v3819_v28, 0.0 }
 0x307   : > { %v4015_v1 = vmax.f32 %v3811_v7, 0.0 }
 0x308   : > { %v4986_v37 = vpack.c.bf16 %v4017_v46, %v4016_v0 }
 0x309   : > { %v4981_v34 = vpack.c.bf16 %v4015_v1, %v4014_v25  ;;  %v5207_v41 = vpop.f32.mrb[148].mxu1 }
 0x30a   : > { %5106 = vst [vmem:[%s7140_s20 + $0x48] sm:$0xff] %v4986_v37   ;;  %v3622_v57 = vpop.f32.mrb[84].mxu0  ;;  %v3832_v48 = vadd.f32 %v7070_v14, %v5207_v41  ;;  %v3823_v36 = vpop.f32.mrb[149].mxu1 }
 0x30b   : > { %5105 = vst [vmem:[%s7140_s20 + $0x40] sm:$0xff] %v4981_v34   ;;  %v7205_v39 = vadd.f32 %v5365_v5, %v3622_v57  ;;  %v3624_v11 = vpop.f32.mrb[85].mxu0  ;;  %v3824_v16 = vadd.f32 %v7058_v59, %v3823_v36  ;;  %v5208_v38 = vpop.f32.mrb[150].mxu1  ;;  %v5369_v59 = vadd.f32 %v6912_v26, %v7006_v32  ;;  %v5375_v57 = vadd.f32 %v6912_v26, %v7024_v60 }
 0x30c   : > { %v3625_v49 = vpop.f32.mrb[86].mxu0  ;;  %v3835_v58 = vadd.f32 %v7074_v51, %v5208_v38  ;;  %v3826_v10 = vpop.f32.mrb[151].mxu1  ;;  %v4020_v61 = vmax.f32 %v3832_v48, 0.0 }
 0x30d   : > { %v7209_v13 = vadd.f32 %v5367_v52, %v3625_v49  ;;  %v3627_v14 = vpop.f32.mrb[87].mxu0  ;;  %v3827_v35 = vadd.f32 %v7062_v63, %v3826_v10  ;;  %v4018_v6 = vmax.f32 %v3824_v16, 0.0  ;;  %v7353_v49 = vld [vmem:[#allocation16_spill] sm:$0xff] }
 0x30e   : > { %v4021_v20 = vmax.f32 %v3835_v58, 0.0 }
 0x30f   : > { %v4019_v24 = vmax.f32 %v3827_v35, 0.0 }
 0x310   : > { %v4996_v47 = vpack.c.bf16 %v4021_v20, %v4020_v61  ;;  %v7354_v20 = vld [vmem:[#allocation2_spill] sm:$0xff] }
 0x311   : > { %v4991_v15 = vpack.c.bf16 %v4019_v24, %v4018_v6  ;;  %v5211_v33 = vpop.f32.mrb[152].mxu1 }
 0x312   : > { %5108 = vst [vmem:[%s7140_s20 + $0x58] sm:$0xff] %v4996_v47   ;;  %v3630_v18 = vpop.f32.mrb[88].mxu0  ;;  %v3848_v51 = vadd.f32 %v7094_v22, %v5211_v33  ;;  %v3839_v54 = vpop.f32.mrb[153].mxu1 }
 0x313   : > { %5107 = vst [vmem:[%s7140_s20 + $0x50] sm:$0xff] %v4991_v15   ;;  %v7219_v63 = vadd.f32 %v5369_v59, %v3630_v18  ;;  %v3632_v8 = vpop.f32.mrb[89].mxu0  ;;  %v3840_v4 = vadd.f32 %v7082_v21, %v3839_v54  ;;  %v5212_v9 = vpop.f32.mrb[154].mxu1  ;;  %v5373_v21 = vadd.f32 %v6912_v26, %v7018_v62  ;;  %v7355_v15 = vld [vmem:[#allocation3_spill] sm:$0xff] }
 0x314   : > { %v3633_v28 = vpop.f32.mrb[90].mxu0  ;;  %v3851_v32 = vadd.f32 %v7098_v27, %v5212_v9  ;;  %v3842_v43 = vpop.f32.mrb[155].mxu1  ;;  %v4024_v0 = vmax.f32 %v3848_v51, 0.0  ;;  %v5379_v33 = vadd.f32 %v6912_v26, %v7355_v15 }
 0x315   : > { %v7223_v44 = vadd.f32 %v5371_v40, %v3633_v28  ;;  %v3635_v22 = vpop.f32.mrb[91].mxu0  ;;  %v3843_v7 = vadd.f32 %v7086_v45, %v3842_v43  ;;  %v4022_v46 = vmax.f32 %v3840_v4, 0.0 }
 0x316   : > { %v4025_v50 = vmax.f32 %v3851_v32, 0.0 }
 0x317   : > { %v4023_v25 = vmax.f32 %v3843_v7, 0.0 }
 0x318   : > { %v5006_v1 = vpack.c.bf16 %v4025_v50, %v4024_v0 }
 0x319   : > { %v5001_v37 = vpack.c.bf16 %v4023_v25, %v4022_v46  ;;  %v5215_v5 = vpop.f32.mrb[156].mxu1  ;;  %v7356_v46 = vld [vmem:[#allocation4_spill] sm:$0xff] }
 0x31a   : > { %5110 = vst [vmem:[%s7140_s20 + $0x68] sm:$0xff] %v5006_v1   ;;  %v3638_v34 = vpop.f32.mrb[92].mxu0  ;;  %v3864_v27 = vadd.f32 %v7118_v12, %v5215_v5  ;;  %v3855_v41 = vpop.f32.mrb[157].mxu1  ;;  %v7357_v5 = vld [vmem:[#allocation5_spill] sm:$0xff] }
 0x31b   : > { %5109 = vst [vmem:[%s7140_s20 + $0x60] sm:$0xff] %v5001_v37   ;;  %v7233_v45 = vadd.f32 %v5373_v21, %v3638_v34  ;;  %v3640_v48 = vpop.f32.mrb[93].mxu0  ;;  %v3856_v36 = vadd.f32 %v7106_v19, %v3855_v41  ;;  %v5216_v52 = vpop.f32.mrb[158].mxu1  ;;  %v5377_v19 = vadd.f32 %v6912_v26, %v7354_v20  ;;  %v5383_v34 = vadd.f32 %v6912_v26, %v7357_v5 }
 0x31c   : > { %v3641_v11 = vpop.f32.mrb[94].mxu0  ;;  %v3867_v62 = vadd.f32 %v7122_v53, %v5216_v52  ;;  %v3858_v16 = vpop.f32.mrb[159].mxu1  ;;  %v4028_v10 = vmax.f32 %v3864_v27, 0.0 }
 0x31d   : > { %v7237_v38 = vadd.f32 %v5375_v57, %v3641_v11  ;;  %v3643_v12 = vpop.f32.mrb[95].mxu0  ;;  %v3859_v58 = vadd.f32 %v7353_v49, %v3858_v16  ;;  %v4026_v14 = vmax.f32 %v3856_v36, 0.0 }
 0x31e   : > { %v4029_v60 = vmax.f32 %v3867_v62, 0.0 }
 0x31f   : > { %v4027_v35 = vmax.f32 %v3859_v58, 0.0 }
 0x320   : > { %v5016_v61 = vpack.c.bf16 %v4029_v60, %v4028_v10  ;;  %v7358_v60 = vld [vmem:[#allocation6_spill] sm:$0xff] }
 0x321   : > { %v5011_v6 = vpack.c.bf16 %v4027_v35, %v4026_v14  ;;  %v5219_v24 = vpop.f32.mrb[160].mxu1 }
 0x322   : > { %5112 = vst [vmem:[%s7140_s20 + $0x78] sm:$0xff] %v5016_v61   ;;  %v3646_v47 = vpop.f32.mrb[96].mxu0  ;;  %v3880_v53 = vadd.f32 %v7149_v17, %v5219_v24  ;;  %v3871_v59 = vpop.f32.mrb[161].mxu1 }
 0x323   : > { %5111 = vst [vmem:[%s7140_s20 + $0x70] sm:$0xff] %v5011_v6   ;;  %v7247_v18 = vadd.f32 %v5377_v19, %v3646_v47  ;;  %v3648_v51 = vpop.f32.mrb[97].mxu0  ;;  %v3872_v54 = vadd.f32 %v7129_v23, %v3871_v59  ;;  %v5220_v40 = vpop.f32.mrb[162].mxu1  ;;  %v5381_v23 = vadd.f32 %v6912_v26, %v7356_v46  ;;  %v7359_v19 = vld [vmem:[#allocation7_spill] sm:$0xff] }
 0x324   : > { %v3649_v8 = vpop.f32.mrb[98].mxu0  ;;  %v3883_v4 = vadd.f32 %v7153_v3, %v5220_v40  ;;  %v3874_v9 = vpop.f32.mrb[163].mxu1  ;;  %v4032_v43 = vmax.f32 %v3880_v53, 0.0  ;;  %v5387_v6 = vadd.f32 %v6912_v26, %v7359_v19 }
 0x325   : > { %v7251_v28 = vadd.f32 %v5379_v33, %v3649_v8  ;;  %v3651_v17 = vpop.f32.mrb[99].mxu0  ;;  %v3875_v32 = vadd.f32 %v7134_v31, %v3874_v9  ;;  %v4030_v7 = vmax.f32 %v3872_v54, 0.0 }
 0x326   : > { %v4033_v22 = vmax.f32 %v3883_v4, 0.0 }
 0x327   : > { %v4031_v0 = vmax.f32 %v3875_v32, 0.0  ;;  %v7360_v32 = vld [vmem:[#allocation8_spill] sm:$0xff] }
 0x328   : > { %v5026_v50 = vpack.c.bf16 %v4033_v22, %v4032_v43 }
 0x329   : > { %v5021_v25 = vpack.c.bf16 %v4031_v0, %v4030_v7  ;;  %v5223_v1 = vpop.f32.mrb[164].mxu1 }
 0x32a   : > { %5114 = vst [vmem:[%s7140_s20 + $0x88] sm:$0xff] %v5026_v50   ;;  %v3654_v21 = vpop.f32.mrb[100].mxu0  ;;  %v3896_v3 = vadd.f32 %v7177_v55, %v5223_v1  ;;  %v3887_v37 = vpop.f32.mrb[165].mxu1  ;;  %v7361_v50 = vld [vmem:[#allocation9_spill] sm:$0xff] }
 0x32b   : > { %5113 = vst [vmem:[%s7140_s20 + $0x80] sm:$0xff] %v5021_v25   ;;  %v7261_v31 = vadd.f32 %v5381_v23, %v3654_v21  ;;  %v3656_v27 = vpop.f32.mrb[101].mxu0  ;;  %v3888_v41 = vadd.f32 %v7163_v2, %v3887_v37  ;;  %v5224_v57 = vpop.f32.mrb[166].mxu1  ;;  %v5385_v2 = vadd.f32 %v6912_v26, %v7358_v60  ;;  %v5391_v46 = vadd.f32 %v6912_v26, %v7361_v50 }
 0x32c   : > { %v3657_v48 = vpop.f32.mrb[102].mxu0  ;;  %v3899_v36 = vadd.f32 %v7181_v29, %v5224_v57  ;;  %v3890_v52 = vpop.f32.mrb[167].mxu1  ;;  %v4036_v16 = vmax.f32 %v3896_v3, 0.0 }
 0x32d   : > { %v7265_v11 = vadd.f32 %v5383_v34, %v3657_v48  ;;  %v3659_v55 = vpop.f32.mrb[103].mxu0  ;;  %v3891_v62 = vadd.f32 %v7167_v30, %v3890_v52  ;;  %v4034_v49 = vmax.f32 %v3888_v41, 0.0 }
 0x32e   : > { %v4037_v12 = vmax.f32 %v3899_v36, 0.0  ;;  %v7362_v36 = vld [vmem:[#allocation10_spill] sm:$0xff] }
 0x32f   : > { %v4035_v58 = vmax.f32 %v3891_v62, 0.0 }
 0x330   : > { %v5036_v10 = vpack.c.bf16 %v4037_v12, %v4036_v16  ;;  %v7363_v12 = vld [vmem:[#allocation11_spill] sm:$0xff] }
 0x331   : > { %v5031_v14 = vpack.c.bf16 %v4035_v58, %v4034_v49  ;;  %v5227_v35 = vpop.f32.mrb[168].mxu1 }
 0x332   : > { %5116 = vst [vmem:[%s7140_s20 + $0x98] sm:$0xff] %v5036_v10   ;;  %v3662_v61 = vpop.f32.mrb[104].mxu0  ;;  %v3912_v29 = vadd.f32 %v7205_v39, %v5227_v35  ;;  %v3903_v20 = vpop.f32.mrb[169].mxu1 }
 0x333   : > { %5115 = vst [vmem:[%s7140_s20 + $0x90] sm:$0xff] %v5031_v14   ;;  %v7275_v30 = vadd.f32 %v5385_v2, %v3662_v61  ;;  %v3664_v24 = vpop.f32.mrb[105].mxu0  ;;  %v3904_v47 = vadd.f32 %v7191_v56, %v3903_v20  ;;  %v5228_v53 = vpop.f32.mrb[170].mxu1  ;;  %v5389_v56 = vadd.f32 %v6912_v26, %v7360_v32 }
 0x334   : > { %v3665_v59 = vpop.f32.mrb[106].mxu0  ;;  %v3915_v15 = vadd.f32 %v7209_v13, %v5228_v53  ;;  %v3906_v33 = vpop.f32.mrb[171].mxu1  ;;  %v4040_v40 = vmax.f32 %v3912_v29, 0.0 }
 0x335   : > { %v7279_v51 = vadd.f32 %v5387_v6, %v3665_v59  ;;  %v3667_v39 = vpop.f32.mrb[107].mxu0  ;;  %v3907_v54 = vadd.f32 %v7195_v42, %v3906_v33  ;;  %v4038_v4 = vmax.f32 %v3904_v47, 0.0  ;;  %v7364_v59 = vld [vmem:[#allocation12_spill] sm:$0xff] }
 0x336   : > { %v4041_v8 = vmax.f32 %v3915_v15, 0.0 }
 0x337   : > { %v4039_v9 = vmax.f32 %v3907_v54, 0.0 }
 0x338   : > { %v5046_v17 = vpack.c.bf16 %v4041_v8, %v4040_v40  ;;  %v7365_v40 = vld [vmem:[#allocation13_spill] sm:$0xff] }
 0x339   : > { %v5041_v43 = vpack.c.bf16 %v4039_v9, %v4038_v4  ;;  %v5231_v22 = vpop.f32.mrb[172].mxu1 }
 0x33a   : > { %5118 = vst [vmem:[%s7140_s20 + $0xa8] sm:$0xff] %v5046_v17   ;;  %v3670_v7 = vpop.f32.mrb[108].mxu0  ;;  %v3928_v13 = vadd.f32 %v7233_v45, %v5231_v22  ;;  %v3919_v0 = vpop.f32.mrb[173].mxu1 }
 0x33b   : > { %5117 = vst [vmem:[%s7140_s20 + $0xa0] sm:$0xff] %v5041_v43   ;;  %v5390_v42 = vadd.f32 %v5389_v56, %v3670_v7  ;;  %v3672_v23 = vpop.f32.mrb[109].mxu0  ;;  %v3920_v25 = vadd.f32 %v7219_v63, %v3919_v0  ;;  %v5232_v1 = vpop.f32.mrb[174].mxu1  ;;  %v7295_v63 = vld [vmem:[%s7334_s2] ss:$0 sm:$0xff] }
 0x33c   : > { %v3673_v21 = vpop.f32.mrb[110].mxu0  ;;  %v3931_v3 = vadd.f32 %v7237_v38, %v5232_v1  ;;  %v3922_v37 = vpop.f32.mrb[175].mxu1  ;;  %v4044_v27 = vmax.f32 %v3928_v13, 0.0  ;;  %v5393_v52 = vadd.f32 %v7295_v63, %v7362_v36  ;;  %v5395_v49 = vadd.f32 %v7295_v63, %v7363_v12 }
 0x33d   : > { %v5392_v5 = vadd.f32 %v5391_v46, %v3673_v21  ;;  %v3675_v34 = vpop.f32.mrb[111].mxu0  ;;  %v3923_v45 = vadd.f32 %v7223_v44, %v3922_v37  ;;  %v4042_v57 = vmax.f32 %v3920_v25, 0.0  ;;  %v5397_v15 = vadd.f32 %v7295_v63, %v7364_v59  ;;  %v7366_v25 = vld [vmem:[#allocation14_spill] sm:$0xff] }
 0x33e   : > { %v4045_v41 = vmax.f32 %v3931_v3, 0.0  ;;  %v5399_v8 = vadd.f32 %v7295_v63, %v7365_v40  ;;  %v5401_v1 = vadd.f32 %v7295_v63, %v7366_v25  ;;  %v7367_v34 = vld [vmem:[#allocation15_spill] sm:$0xff] }
 0x33f   : > { %v4043_v26 = vmax.f32 %v3923_v45, 0.0  ;;  %v5403_v45 = vadd.f32 %v7295_v63, %v7367_v34 }
 0x340   : > { %v5056_v48 = vpack.c.bf16 %v4045_v41, %v4044_v27 }
 0x341   : > { %v5051_v38 = vpack.c.bf16 %v4043_v26, %v4042_v57  ;;  %v5235_v55 = vpop.f32.mrb[176].mxu1 }
 0x342   : > { %5120 = vst [vmem:[%s7140_s20 + $0xb8] sm:$0xff] %v5056_v48   ;;  %v3678_v62 = vpop.f32.mrb[112].mxu0  ;;  %v3944_v16 = vadd.f32 %v7261_v31, %v5235_v55  ;;  %v3935_v44 = vpop.f32.mrb[177].mxu1 }
 0x343   : > { %5119 = vst [vmem:[%s7140_s20 + $0xb0] sm:$0xff] %v5051_v38   ;;  %v5394_v58 = vadd.f32 %v5393_v52, %v3678_v62  ;;  %v3680_v10 = vpop.f32.mrb[113].mxu0  ;;  %v3936_v60 = vadd.f32 %v7247_v18, %v3935_v44  ;;  %v5236_v2 = vpop.f32.mrb[178].mxu1 }
 0x344   : > { %v3681_v14 = vpop.f32.mrb[114].mxu0  ;;  %v3947_v35 = vadd.f32 %v7265_v11, %v5236_v2  ;;  %v3938_v61 = vpop.f32.mrb[179].mxu1  ;;  %v4048_v19 = vmax.f32 %v3944_v16, 0.0  ;;  %v7368_v10 = vld [vmem:[#allocation17_spill] sm:$0xff] }
 0x345   : > { %v5396_v29 = vadd.f32 %v5395_v49, %v3681_v14  ;;  %v3683_v20 = vpop.f32.mrb[115].mxu0  ;;  %v3939_v31 = vadd.f32 %v7251_v28, %v3938_v61  ;;  %v4046_v24 = vmax.f32 %v3936_v60, 0.0  ;;  %v5405_v60 = vadd.f32 %v7295_v63, %v7368_v10  ;;  %v7369_v61 = vld [vmem:[#allocation18_spill] sm:$0xff] }
 0x346   : > { %v4049_v6 = vmax.f32 %v3947_v35, 0.0  ;;  %v5407_v20 = vadd.f32 %v7295_v63, %v7369_v61 }
 0x347   : > { %v4047_v47 = vmax.f32 %v3939_v31, 0.0 }
 0x348   : > { %v5066_v53 = vpack.c.bf16 %v4049_v6, %v4048_v19 }
 0x349   : > { %v5061_v18 = vpack.c.bf16 %v4047_v47, %v4046_v24  ;;  %v5239_v33 = vpop.f32.mrb[180].mxu1 }
 0x34a   : > { %5122 = vst [vmem:[%s7140_s20 + $0xc8] sm:$0xff] %v5066_v53   ;;  %v3686_v39 = vpop.f32.mrb[116].mxu0  ;;  %v3960_v54 = vadd.f32 %v5390_v42, %v5239_v33  ;;  %v3951_v11 = vpop.f32.mrb[181].mxu1 }
 0x34b   : > { %5121 = vst [vmem:[%s7140_s20 + $0xc0] sm:$0xff] %v5061_v18   ;;  %v5398_v4 = vadd.f32 %v5397_v15, %v3686_v39  ;;  %v3688_v28 = vpop.f32.mrb[117].mxu0  ;;  %v3952_v9 = vadd.f32 %v7275_v30, %v3951_v11  ;;  %v5240_v17 = vpop.f32.mrb[182].mxu1 }
 0x34c   : > { %v3689_v32 = vpop.f32.mrb[118].mxu0  ;;  %v3963_v56 = vadd.f32 %v5392_v5, %v5240_v17  ;;  %v3954_v43 = vpop.f32.mrb[183].mxu1  ;;  %v4052_v0 = vmax.f32 %v3960_v54, 0.0 }
 0x34d   : > { %v5400_v22 = vadd.f32 %v5399_v8, %v3689_v32  ;;  %v3691_v7 = vpop.f32.mrb[119].mxu0  ;;  %v3955_v13 = vadd.f32 %v7279_v51, %v3954_v43  ;;  %v4050_v46 = vmax.f32 %v3952_v9, 0.0 }
 0x34e   : > { %v4053_v50 = vmax.f32 %v3963_v56, 0.0 }
 0x34f   : > { %v4051_v42 = vmax.f32 %v3955_v13, 0.0 }
 0x350   : > { %v5076_v23 = vpack.c.bf16 %v4053_v50, %v4052_v0 }
 0x351   : > { %v5071_v21 = vpack.c.bf16 %v4051_v42, %v4050_v46  ;;  %v5243_v30 = vpop.f32.mrb[184].mxu1 }
 0x352   : > { %5124 = vst [vmem:[%s7140_s20 + $0xd8] sm:$0xff] %v5076_v23   ;;  %v3694_v3 = vpop.f32.mrb[120].mxu0  ;;  %v3976_v37 = vadd.f32 %v5398_v4, %v5243_v30  ;;  %v3967_v5 = vpop.f32.mrb[185].mxu1 }
 0x353   : > { %5123 = vst [vmem:[%s7140_s20 + $0xd0] sm:$0xff] %v5071_v21   ;;  %v5402_v27 = vadd.f32 %v5401_v1, %v3694_v3  ;;  %v3696_v51 = vpop.f32.mrb[121].mxu0  ;;  %v3968_v41 = vadd.f32 %v5394_v58, %v3967_v5  ;;  %v5244_v57 = vpop.f32.mrb[186].mxu1 }
 0x354   : > { %v3697_v26 = vpop.f32.mrb[122].mxu0  ;;  %v3979_v48 = vadd.f32 %v5400_v22, %v5244_v57  ;;  %v3970_v36 = vpop.f32.mrb[187].mxu1  ;;  %v4056_v62 = vmax.f32 %v3976_v37, 0.0 }
 0x355   : > { %v5404_v52 = vadd.f32 %v5403_v45, %v3697_v26  ;;  %v3699_v38 = vpop.f32.mrb[123].mxu0  ;;  %v3971_v55 = vadd.f32 %v5396_v29, %v3970_v36  ;;  %v4054_v44 = vmax.f32 %v3968_v41, 0.0 }
 0x356   : > { %v4057_v16 = vmax.f32 %v3979_v48, 0.0 }
 0x357   : > { %v4055_v12 = vmax.f32 %v3971_v55, 0.0 }
 0x358   : > { %v5086_v49 = vpack.c.bf16 %v4057_v16, %v4056_v62 }
 0x359   : > { %v5081_v2 = vpack.c.bf16 %v4055_v12, %v4054_v44  ;;  %v5247_v14 = vpop.f32.mrb[188].mxu1 }
 0x35a   : > { %5126 = vst [vmem:[%s7140_s20 + $0xe8] sm:$0xff] %v5086_v49   ;;  %v3702_v58 = vpop.f32.mrb[124].mxu0  ;;  %v3983_v35 = vpop.f32.mrb[189].mxu1 }
 0x35b   : > { %5125 = vst [vmem:[%s7140_s20 + $0xe0] sm:$0xff] %v5081_v2   ;;  %v5406_v31 = vadd.f32 %v5405_v60, %v3702_v58  ;;  %v3704_v19 = vpop.f32.mrb[125].mxu0  ;;  %v3984_v29 = vadd.f32 %v5402_v27, %v3983_v35  ;;  %v5248_v6 = vpop.f32.mrb[190].mxu1 }
 0x35c   : > { %v3705_v24 = vpop.f32.mrb[126].mxu0  ;;  %v3986_v47 = vpop.f32.mrb[191].mxu1 }
 0x35d   : > { %v3992_v53 = vadd.f32 %v5406_v31, %v5247_v14  ;;  %v5408_v59 = vadd.f32 %v5407_v20, %v3705_v24  ;;  %v3707_v15 = vpop.f32.mrb[127].mxu0  ;;  %v3987_v18 = vadd.f32 %v5404_v52, %v3986_v47  ;;  %v4058_v33 = vmax.f32 %v3984_v29, 0.0 }
 0x35f   : > { %v3995_v39 = vadd.f32 %v5408_v59, %v5248_v6  ;;  %v4059_v54 = vmax.f32 %v3987_v18, 0.0  ;;  %v4060_v11 = vmax.f32 %v3992_v53, 0.0 }
 0x361   : > { %v4061_v40 = vmax.f32 %v3995_v39, 0.0  ;;  %v5091_v8 = vpack.c.bf16 %v4059_v54, %v4058_v33 }
 0x363   : > { %v5096_v63 = vpack.c.bf16 %v4061_v40, %v4060_v11  ;;  %5127 = vst [vmem:[%s7140_s20 + $0xf0] sm:$0xff] %v5091_v8  }
 0x365   : > { %5128 = vst [vmem:[%s7140_s20 + $0xf8] sm:$0xff] %v5096_v63  }
 0x366 PF: > { %s13_s12 = sadd.s32 1, %s6170_s12  }
 0x367   : > { %p10_p4 = scmp.ge.s32.totalorder %s13_s12, 4  }
 0x369   :  { %12 = sbr.rel (!%p10_p4) target bundleno = 1 (0x1), region = 62 }

// kernel: wavenet_forward.12
= control target key start
LH: loop header
LB: loop body
LE: loop exit
PB: predicated region body
PF: predicated region fallthrough
CT: control target
= control target key end

     0   :  { %s2614_s12 = smov 0   ;;  %s3036_s0 = inlined_call_operand.vmem [shape: bf16[256,1152], index: 0, kind: input, shape index: {}]   ;;  %s3037_s1 = inlined_call_operand.vmem [shape: bf16[1152,128], index: 1, kind: input, shape index: {}]   ;;  %s3038_s2 = inlined_call_operand.vmem [shape: f32[1,128], index: 2, kind: input, shape index: {}]   ;;  %s3039_s3 = inlined_call_operand.vmem [shape: bf16[256,128], index: 3, kind: output, shape index: {}]  }
   0x1 LB: > { %s1846_s13 = sadd.s32 4294967295, %s2592_s12   ;;  %p1850_p0 = scmp.ge.s32.totalorder %s2592_s12, 1  ;;  %s2592_s12 = sphi %s2614_s12, %s13_s12  }
   0x2   : > { %p139_p1 = scmp.lt.s32.totalorder %s2592_s12, 3 }
   0x4   : > { %p140_p2 = pnand %p1850_p0, %p139_p1 }
   0x5   : > { %v2410_v0 = vld [vmem:[%s3037_s1 + $0x40] sm:$0xff] (!%p140_p2)   ;;  %v2414_v4 = vld [vmem:[%s3037_s1 + $0x48] sm:$0xff] (!%p140_p2)   ;;  %v2418_v8 = vld [vmem:[%s3037_s1 + $0x50] sm:$0xff] (!%p140_p2)   ;;  %s1851_s19 = sshll.u32 (!%p140_p2), %s1846_s13, 4 }
   0x6   : > { %143 = sbr.rel (%p140_p2) target bundleno = 398 (0x18e), region = 32  ;;  %v2411_v1 = vld [vmem:[%s3037_s1 + $0xc0] sm:$0xff] (!%p140_p2)   ;;  %2081 = vmatprep.subr.bf16.mxu0 (!%p140_p2), %v2410_v0  ;;  %v2415_v5 = vld [vmem:[%s3037_s1 + $0xc8] sm:$0xff] (!%p140_p2)   ;;  %v2419_v9 = vld [vmem:[%s3037_s1 + $0xd0] sm:$0xff] (!%p140_p2)   ;;  %p165_p3 = scmp.lt.s32.totalorder (!%p140_p2), %s1851_s19, 31 }
   0x7   : > { %v2412_v2 = vld [vmem:[%s3037_s1] sm:$0xff] (!%p140_p2)   ;;  %2145 = vmatprep.subr.bf16.mxu1 (!%p140_p2), %v2411_v1  ;;  %v2416_v6 = vld [vmem:[%s3037_s1 + $0x8] sm:$0xff] (!%p140_p2)   ;;  %v2420_v10 = vld [vmem:[%s3037_s1 + $0x10] sm:$0xff] (!%p140_p2)  }
   0x8   : > { %v2413_v3 = vld [vmem:[%s3037_s1 + $0x80] sm:$0xff] (!%p140_p2)   ;;  %2082 = vmatpush3.bf16.msra.mxu0 (!%p140_p2), %v2412_v2  ;;  %v2417_v7 = vld [vmem:[%s3037_s1 + $0x88] sm:$0xff] (!%p140_p2)   ;;  %v2421_v11 = vld [vmem:[%s3037_s1 + $0x90] sm:$0xff] (!%p140_p2)  }
   0x9   : > { %2146 = vmatpush3.bf16.msra.mxu1 (!%p140_p2), %v2413_v3  ;;  %2083 = vmatprep.subr.bf16.mxu0 (!%p140_p2), %v2414_v4  ;;  %v2422_v12 = vld [vmem:[%s3037_s1 + $0x58] sm:$0xff] (!%p140_p2)   ;;  %v2426_v16 = vld [vmem:[%s3037_s1 + $0x60] sm:$0xff] (!%p140_p2)   ;;  %v2430_v20 = vld [vmem:[%s3037_s1 + $0x68] sm:$0xff] (!%p140_p2)  }
   0xa   : > { %2147 = vmatprep.subr.bf16.mxu1 (!%p140_p2), %v2415_v5  ;;  %v2423_v13 = vld [vmem:[%s3037_s1 + $0xd8] sm:$0xff] (!%p140_p2)   ;;  %v2427_v17 = vld [vmem:[%s3037_s1 + $0xe0] sm:$0xff] (!%p140_p2)   ;;  %v2431_v21 = vld [vmem:[%s3037_s1 + $0xe8] sm:$0xff] (!%p140_p2)  }
   0xb   : > { %v2424_v14 = vld [vmem:[%s3037_s1 + $0x18] sm:$0xff] (!%p140_p2)   ;;  %v2428_v18 = vld [vmem:[%s3037_s1 + $0x20] sm:$0xff] (!%p140_p2)   ;;  %v2432_v22 = vld [vmem:[%s3037_s1 + $0x28] sm:$0xff] (!%p140_p2)  }
   0xc   : > { %2084 = vmatpush3.bf16.msra.mxu0 (!%p140_p2), %v2416_v6  ;;  %v2425_v15 = vld [vmem:[%s3037_s1 + $0x98] sm:$0xff] (!%p140_p2)   ;;  %v2429_v19 = vld [vmem:[%s3037_s1 + $0xa0] sm:$0xff] (!%p140_p2)   ;;  %v2433_v23 = vld [vmem:[%s3037_s1 + $0xa8] sm:$0xff] (!%p140_p2)  }
   0xd   : > { %2148 = vmatpush3.bf16.msra.mxu1 %v2417_v7  ;;  %2085 = vmatprep.subr.bf16.mxu0 %v2418_v8  ;;  %s3041_s19 = smov (!%p165_p3, %s1851_s19), 31  ;;  %v2434_v24 = vld [vmem:[%s3037_s1 + $0x70] sm:$0xff]   ;;  %v2438_v28 = vld [vmem:[%s3037_s1 + $0x78] sm:$0xff]   ;;  %v2448_v36 = vld [vmem:[%s3037_s1 + $0x140] sm:$0xff]  }
   0xe   : > { %2149 = vmatprep.subr.bf16.mxu1 %v2419_v9  ;;  %v2435_v25 = vld [vmem:[%s3037_s1 + $0xf0] sm:$0xff]   ;;  %s2401_s16 = smul.u32 36, %s3041_s19  ;;  %v2439_v29 = vld [vmem:[%s3037_s1 + $0xf8] sm:$0xff]   ;;  %v2449_v37 = vld [vmem:[%s3037_s1 + $0x1c0] sm:$0xff]  }
   0xf   : > { %v2436_v26 = vld [vmem:[%s3037_s1 + $0x30] sm:$0xff]   ;;  %v2440_v30 = vld [vmem:[%s3037_s1 + $0x38] sm:$0xff]   ;;  %v2450_v38 = vld [vmem:[%s3037_s1 + $0x100] sm:$0xff]  }
  0x10   : > { %2086 = vmatpush3.bf16.msra.mxu0 %v2420_v10  ;;  %v2437_v27 = vld [vmem:[%s3037_s1 + $0xb0] sm:$0xff]   ;;  %s2720_s13 = scalar_lea.vmem %s3036_s0, %s2401_s16  ;;  %v2441_v31 = vld [vmem:[%s3037_s1 + $0xb8] sm:$0xff]   ;;  %v2451_v39 = vld [vmem:[%s3037_s1 + $0x180] sm:$0xff]  }
  0x11   : > { %2150 = vmatpush3.bf16.msra.mxu1 %v2421_v11  ;;  %2087 = vmatprep.subr.bf16.mxu0 %v2422_v12  ;;  %v2442_v32 = vld [vmem:[%s2720_s13] ss:$36 sps:$4 sm:$0xff]   ;;  %v2445_v34 = vld [vmem:[%s2720_s13 + $0x8] ss:$36 sps:$4 sm:$0xff]   ;;  %v2454_v41 = vld [vmem:[%s2720_s13 + $0x54] ss:$36 sps:$4 sm:$0xff]  }
  0x12   : > { %2151 = vmatprep.subr.bf16.mxu1 %v2423_v13  ;;  %v2444_v33 = vld [vmem:[%s2720_s13 + $0x4] ss:$36 sps:$4 sm:$0xff]   ;;  %v2447_v35 = vld [vmem:[%s2720_s13 + $0xc] ss:$36 sps:$4 sm:$0xff]   ;;  %v2462_v48 = vld [vmem:[%s2720_s13 + $0x94] ss:$36 sps:$4 sm:$0xff]  }
  0x13   : > { %1241 = vmatprep.mubr.bf16.mxu0 %v2444_v33  ;;  %1338 = vmatprep.mubr.bf16.mxu1 %v2447_v35  ;;  %v2452_v40 = vld [vmem:[%s2720_s13 + $0x4c] ss:$36 sps:$4 sm:$0xff]   ;;  %v2464_v49 = vld [vmem:[%s2720_s13 + $0x9c] ss:$36 sps:$4 sm:$0xff]   ;;  %v2474_v57 = vld [vmem:[%s2720_s13 + $0xe4] ss:$36 sps:$4 sm:$0xff]  }
  0x14   : > { %2088 = vmatpush3.bf16.msra.mxu0 %v2424_v14  ;;  %v2456_v42 = vld [vmem:[%s2720_s13 + $0x48] ss:$36 sps:$4 sm:$0xff]   ;;  %v2457_v43 = vld [vmem:[%s2720_s13 + $0x50] ss:$36 sps:$4 sm:$0xff]   ;;  %v2467_v51 = vld [vmem:[%s2720_s13 + $0x98] ss:$36 sps:$4 sm:$0xff]  }
  0x15   : > { %2152 = vmatpush3.bf16.msra.mxu1 %v2425_v15  ;;  %2089 = vmatprep.subr.bf16.mxu0 %v2426_v16  ;;  %v2458_v44 = vld [vmem:[%s3037_s1 + $0x148] sm:$0xff]   ;;  %v2466_v50 = vld [vmem:[%s2720_s13 + $0x90] ss:$36 sps:$4 sm:$0xff]   ;;  %v2472_v56 = vld [vmem:[%s2720_s13 + $0xdc] ss:$36 sps:$4 sm:$0xff]  }
  0x16   : > { %2153 = vmatprep.subr.bf16.mxu1 %v2427_v17  ;;  %v2459_v45 = vld [vmem:[%s3037_s1 + $0x1c8] sm:$0xff]   ;;  %v2468_v52 = vld [vmem:[%s3037_s1 + $0x150] sm:$0xff]   ;;  %v2476_v58 = vld [vmem:[%s2720_s13 + $0xd8] ss:$36 sps:$4 sm:$0xff]  }
  0x17   : > { %v2460_v46 = vld [vmem:[%s3037_s1 + $0x108] sm:$0xff]   ;;  %v2469_v53 = vld [vmem:[%s3037_s1 + $0x1d0] sm:$0xff]   ;;  %v2477_v59 = vld [vmem:[%s2720_s13 + $0xe0] ss:$36 sps:$4 sm:$0xff]  }
  0x18   : > { %2090 = vmatpush3.bf16.msra.mxu0 %v2428_v18  ;;  %v2461_v47 = vld [vmem:[%s3037_s1 + $0x188] sm:$0xff]   ;;  %v2470_v54 = vld [vmem:[%s3037_s1 + $0x110] sm:$0xff]   ;;  %v2478_v60 = vld [vmem:[%s3037_s1 + $0x158] sm:$0xff]  }
  0x19   : > { %2154 = vmatpush3.bf16.msra.mxu1 %v2429_v19  ;;  %2091 = vmatprep.subr.bf16.mxu0 %v2430_v20  ;;  %v2471_v55 = vld [vmem:[%s3037_s1 + $0x190] sm:$0xff]   ;;  %v2479_v61 = vld [vmem:[%s3037_s1 + $0x1d8] sm:$0xff]   ;;  %v2482_v0 = vld [vmem:[%s2720_s13 + $0x124] ss:$36 sps:$4 sm:$0xff]  }
  0x1a   : > { %2155 = vmatprep.subr.bf16.mxu1 %v2431_v21  ;;  %v2480_v62 = vld [vmem:[%s3037_s1 + $0x118] sm:$0xff]   ;;  %v2484_v1 = vld [vmem:[%s2720_s13 + $0x12c] ss:$36 sps:$4 sm:$0xff]   ;;  %v2486_v2 = vld [vmem:[%s2720_s13 + $0x120] ss:$36 sps:$4 sm:$0xff]  }
  0x1b   : > { %v2481_v63 = vld [vmem:[%s3037_s1 + $0x198] sm:$0xff]   ;;  %v2488_v3 = vld [vmem:[%s3037_s1 + $0x160] sm:$0xff]   ;;  %v2487_v4 = vld [vmem:[%s2720_s13 + $0x128] ss:$36 sps:$4 sm:$0xff]  }
  0x1c   : > { %2092 = vmatpush3.bf16.msra.mxu0 %v2432_v22  ;;  %v2489_v5 = vld [vmem:[%s3037_s1 + $0x1e0] sm:$0xff]   ;;  %v2492_v8 = vld [vmem:[%s2720_s13 + $0x16c] ss:$36 sps:$4 sm:$0xff]   ;;  %v2494_v9 = vld [vmem:[%s2720_s13 + $0x174] ss:$36 sps:$4 sm:$0xff]  }
  0x1d   : > { %2156 = vmatpush3.bf16.msra.mxu1 %v2433_v23  ;;  %2093 = vmatprep.subr.bf16.mxu0 %v2434_v24  ;;  %v2490_v6 = vld [vmem:[%s3037_s1 + $0x120] sm:$0xff]   ;;  %v2498_v10 = vld [vmem:[%s3037_s1 + $0x168] sm:$0xff]   ;;  %v2497_v15 = vld [vmem:[%s2720_s13 + $0x170] ss:$36 sps:$4 sm:$0xff]  }
  0x1e   : > { %2157 = vmatprep.subr.bf16.mxu1 %v2435_v25  ;;  %v2491_v7 = vld [vmem:[%s3037_s1 + $0x1a0] sm:$0xff]   ;;  %v2499_v11 = vld [vmem:[%s3037_s1 + $0x1e8] sm:$0xff]   ;;  %v2502_v16 = vld [vmem:[%s2720_s13 + $0x1b4] ss:$36 sps:$4 sm:$0xff]  }
  0x1f   : > { %v2496_v12 = vld [vmem:[%s2720_s13 + $0x168] ss:$36 sps:$4 sm:$0xff]   ;;  %v2504_v17 = vld [vmem:[%s2720_s13 + $0x1bc] ss:$36 sps:$4 sm:$0xff]   ;;  %v2508_v18 = vld [vmem:[%s3037_s1 + $0x170] sm:$0xff]  }
  0x20   : > { %2094 = vmatpush3.bf16.msra.mxu0 %v2436_v26  ;;  %v2500_v13 = vld [vmem:[%s3037_s1 + $0x128] sm:$0xff]   ;;  %v2509_v19 = vld [vmem:[%s3037_s1 + $0x1f0] sm:$0xff]   ;;  %v2507_v23 = vld [vmem:[%s2720_s13 + $0x1b8] ss:$36 sps:$4 sm:$0xff]  }
  0x21   : > { %2158 = vmatpush3.bf16.msra.mxu1 %v2437_v27  ;;  %2095 = vmatprep.subr.bf16.mxu0 %v2438_v28  ;;  %v2501_v14 = vld [vmem:[%s3037_s1 + $0x1a8] sm:$0xff]   ;;  %v2510_v20 = vld [vmem:[%s3037_s1 + $0x130] sm:$0xff]   ;;  %v2512_v24 = vld [vmem:[%s2720_s13 + $0x1fc] ss:$36 sps:$4 sm:$0xff]  }
  0x22   : > { %2159 = vmatprep.subr.bf16.mxu1 %v2439_v29  ;;  %v2511_v21 = vld [vmem:[%s3037_s1 + $0x1b0] sm:$0xff]   ;;  %v2514_v25 = vld [vmem:[%s2720_s13 + $0x204] ss:$36 sps:$4 sm:$0xff]   ;;  %v2518_v26 = vld [vmem:[%s3037_s1 + $0x178] sm:$0xff]  }
  0x23   : > { %v2506_v22 = vld [vmem:[%s2720_s13 + $0x1b0] ss:$36 sps:$4 sm:$0xff]   ;;  %v2519_v27 = vld [vmem:[%s3037_s1 + $0x1f8] sm:$0xff]  }
  0x24   : > { %2096 = vmatpush3.bf16.msra.mxu0 %v2440_v30  ;;  %v2520_v28 = vld [vmem:[%s3037_s1 + $0x138] sm:$0xff]   ;;  %v2522_v35 = vld [vmem:[%s2720_s13 + $0x10] ss:$36 sps:$4 sm:$0xff]  }
  0x25   : > { %2160 = vmatpush3.bf16.msra.mxu1 %v2441_v31  ;;  %2209 = vmatprep.subr.bf16.mxu0 %v2448_v36  ;;  %v2521_v29 = vld [vmem:[%s3037_s1 + $0x1b8] sm:$0xff]   ;;  %v2517_v31 = vld [vmem:[%s2720_s13 + $0x200] ss:$36 sps:$4 sm:$0xff]  }
  0x26   : > { %2273 = vmatprep.subr.bf16.mxu1 %v2449_v37  ;;  %v2516_v30 = vld [vmem:[%s2720_s13 + $0x1f8] ss:$36 sps:$4 sm:$0xff]  }
  0x27   : > { %1242 = vmatmul.mubr.bf16.vlgmr.msra.gmra.mrb[0].mxu0 %v2442_v32  ;;  %v2528_v32 = vld [vmem:[%s3037_s1 + $0x200] sm:$0xff]   ;;  %v2524_v33 = vld [vmem:[%s2720_s13 + $0x14] ss:$36 sps:$4 sm:$0xff]  }
  0x28   : > { %1339 = vmatmul.mubr.bf16.vlgmr.msra.gmra.mrb[0].mxu1 %v2445_v34  ;;  %2210 = vmatpush3.bf16.msra.mxu0 %v2450_v38  ;;  %v2527_v34 = vld [vmem:[%s2720_s13 + $0x1c] ss:$36 sps:$4 sm:$0xff]   ;;  %v2531_v38 = vld [vmem:[%s2720_s13 + $0x64] ss:$36 sps:$4 sm:$0xff]  }
  0x29   : > { %2274 = vmatpush3.bf16.msra.mxu1 %v2451_v39  ;;  %1249 = vmatprep.mubr.bf16.mxu0 %v2452_v40  ;;  %v2525_v36 = vld [vmem:[%s2720_s13 + $0x18] ss:$36 sps:$4 sm:$0xff]   ;;  %v2535_v39 = vld [vmem:[%s3037_s1 + $0x208] sm:$0xff]   ;;  %v2542_v40 = vld [vmem:[%s3037_s1 + $0x210] sm:$0xff]  }
  0x2a   : > { %1346 = vmatprep.mubr.bf16.mxu1 %v2454_v41  ;;  %2211 = vmatprep.subr.bf16.mxu0 %v2458_v44  ;;  %v2529_v37 = vld [vmem:[%s2720_s13 + $0x5c] ss:$36 sps:$4 sm:$0xff]   ;;  %v2538_v44 = vld [vmem:[%s2720_s13 + $0xac] ss:$36 sps:$4 sm:$0xff]  }
  0x2b   : > { %2275 = vmatprep.subr.bf16.mxu1 %v2459_v45  ;;  %v2533_v41 = vld [vmem:[%s2720_s13 + $0x58] ss:$36 sps:$4 sm:$0xff]  }
  0x2c   : > { %2212 = vmatpush3.bf16.msra.mxu0 %v2460_v46  ;;  %v2549_v45 = vld [vmem:[%s3037_s1 + $0x218] sm:$0xff]   ;;  %v2556_v46 = vld [vmem:[%s3037_s1 + $0x220] sm:$0xff]  }
  0x2d   : > { %2276 = vmatpush3.bf16.msra.mxu1 %v2461_v47  ;;  %2213 = vmatprep.subr.bf16.mxu0 %v2468_v52  ;;  %v2540_v47 = vld [vmem:[%s2720_s13 + $0xa0] ss:$36 sps:$4 sm:$0xff]   ;;  %v2547_v52 = vld [vmem:[%s2720_s13 + $0xe8] ss:$36 sps:$4 sm:$0xff]  }
  0x2e   : > { %2277 = vmatprep.subr.bf16.mxu1 %v2469_v53  ;;  %v2570_v53 = vld [vmem:[%s3037_s1 + $0x230] sm:$0xff]  }
  0x2f   : > { %1250 = vmatmul.mubr.bf16.gmra.mrb[4].mxu0 %v2456_v42  ;;  %v2534_v42 = vld [vmem:[%s2720_s13 + $0x60] ss:$36 sps:$4 sm:$0xff]  }
  0x30   : > { %1347 = vmatmul.mubr.bf16.gmra.mrb[4].mxu1 %v2457_v43  ;;  %1257 = vmatprep.mubr.bf16.mxu0 %v2462_v48  ;;  %v2536_v43 = vld [vmem:[%s2720_s13 + $0xa4] ss:$36 sps:$4 sm:$0xff]  }
  0x31   : > { %1354 = vmatprep.mubr.bf16.mxu1 %v2464_v49  ;;  %2214 = vmatpush3.bf16.msra.mxu0 %v2470_v54  ;;  %v2541_v48 = vld [vmem:[%s2720_s13 + $0xa8] ss:$36 sps:$4 sm:$0xff]   ;;  %v2548_v54 = vld [vmem:[%s2720_s13 + $0xf0] ss:$36 sps:$4 sm:$0xff]  }
  0x32   : > { %2278 = vmatpush3.bf16.msra.mxu1 %v2471_v55  ;;  %2215 = vmatprep.subr.bf16.mxu0 %v2478_v60  ;;  %v2543_v49 = vld [vmem:[%s2720_s13 + $0xec] ss:$36 sps:$4 sm:$0xff]   ;;  %v2550_v55 = vld [vmem:[%s2720_s13 + $0x134] ss:$36 sps:$4 sm:$0xff]   ;;  %v2557_v60 = vld [vmem:[%s2720_s13 + $0x17c] ss:$36 sps:$4 sm:$0xff]  }
  0x33   : > { %2279 = vmatprep.subr.bf16.mxu1 %v2479_v61  ;;  %v2559_v61 = vld [vmem:[%s2720_s13 + $0x184] ss:$36 sps:$4 sm:$0xff]  }
  0x35   : > { %2216 = vmatpush3.bf16.msra.mxu0 %v2480_v62  ;;  %v2561_v62 = vld [vmem:[%s2720_s13 + $0x178] ss:$36 sps:$4 sm:$0xff]  }
  0x36   : > { %2280 = vmatpush3.bf16.msra.mxu1 %v2481_v63  ;;  %2217 = vmatprep.subr.bf16.mxu0 %v2488_v3  ;;  %v2562_v63 = vld [vmem:[%s2720_s13 + $0x180] ss:$36 sps:$4 sm:$0xff]   ;;  %v2569_v3 = vld [vmem:[%s2720_s13 + $0x1c8] ss:$36 sps:$4 sm:$0xff]  }
  0x37   : > { %1258 = vmatmul.mubr.bf16.gmra.mrb[8].mxu0 %v2466_v50  ;;  %2281 = vmatprep.subr.bf16.mxu1 %v2489_v5  ;;  %v2545_v50 = vld [vmem:[%s2720_s13 + $0xf4] ss:$36 sps:$4 sm:$0xff]  }
  0x38   : > { %1355 = vmatmul.mubr.bf16.gmra.mrb[8].mxu1 %v2467_v51  ;;  %1265 = vmatprep.mubr.bf16.mxu0 %v2472_v56  ;;  %v2563_v51 = vld [vmem:[%s3037_s1 + $0x228] sm:$0xff]   ;;  %v2552_v56 = vld [vmem:[%s2720_s13 + $0x13c] ss:$36 sps:$4 sm:$0xff]   ;;  %v2573_v5 = vld [vmem:[%s2720_s13 + $0x214] ss:$36 sps:$4 sm:$0xff]  }
  0x39   : > { %1362 = vmatprep.mubr.bf16.mxu1 %v2474_v57  ;;  %2218 = vmatpush3.bf16.msra.mxu0 %v2490_v6  ;;  %v2577_v57 = vld [vmem:[%s3037_s1 + $0x238] sm:$0xff]   ;;  %v2575_v6 = vld [vmem:[%s2720_s13 + $0x208] ss:$36 sps:$4 sm:$0xff]  }
  0x3a   : > { %2282 = vmatpush3.bf16.msra.mxu1 %v2491_v7  ;;  %2219 = vmatprep.subr.bf16.mxu0 %v2498_v10  ;;  %v2576_v7 = vld [vmem:[%s2720_s13 + $0x210] ss:$36 sps:$4 sm:$0xff]   ;;  %v2580_v10 = vld [vmem:[%s2720_s13 + $0x68] ss:$36 sps:$4 sm:$0xff]  }
  0x3b   : > { %2283 = vmatprep.subr.bf16.mxu1 %v2499_v11  ;;  %v2581_v11 = vld [vmem:[%s2720_s13 + $0x188] ss:$36 sps:$4 sm:$0xff]  }
  0x3d   : > { %2220 = vmatpush3.bf16.msra.mxu0 %v2500_v13  ;;  %v2583_v13 = vld [vmem:[%s2720_s13 + $0x1d0] ss:$36 sps:$4 sm:$0xff]  }
  0x3e   : > { %2284 = vmatpush3.bf16.msra.mxu1 %v2501_v14  ;;  %2221 = vmatprep.subr.bf16.mxu0 %v2508_v18  ;;  %v2584_v14 = vld [vmem:[%s2720_s13 + $0xf8] ss:$36 sps:$4 sm:$0xff]   ;;  %v2923_v18 = vld [vmem:[%s3038_s2] ss:$0 sm:$0xff] }
  0x3f   : > { %1266 = vmatmul.mubr.bf16.gmra.mrb[12].mxu0 %v2476_v58  ;;  %2285 = vmatprep.subr.bf16.mxu1 %v2509_v19  ;;  %v2554_v58 = vld [vmem:[%s2720_s13 + $0x130] ss:$36 sps:$4 sm:$0xff]  }
  0x40   : > { %1363 = vmatmul.mubr.bf16.gmra.mrb[12].mxu1 %v2477_v59  ;;  %1273 = vmatprep.mubr.bf16.mxu0 %v2482_v0  ;;  %v2555_v59 = vld [vmem:[%s2720_s13 + $0x138] ss:$36 sps:$4 sm:$0xff]   ;;  %v2564_v0 = vld [vmem:[%s2720_s13 + $0x1c4] ss:$36 sps:$4 sm:$0xff]  }
  0x41   : > { %1370 = vmatprep.mubr.bf16.mxu1 %v2484_v1  ;;  %2222 = vmatpush3.bf16.msra.mxu0 %v2510_v20  ;;  %v2566_v1 = vld [vmem:[%s2720_s13 + $0x1cc] ss:$36 sps:$4 sm:$0xff]  }
  0x42   : > { %2286 = vmatpush3.bf16.msra.mxu1 %v2511_v21  ;;  %2223 = vmatprep.subr.bf16.mxu0 %v2518_v26 }
  0x43   : > { %2287 = vmatprep.subr.bf16.mxu1 %v2519_v27 }
  0x45   : > { %2224 = vmatpush3.bf16.msra.mxu0 %v2520_v28 }
  0x46   : > { %2288 = vmatpush3.bf16.msra.mxu1 %v2521_v29  ;;  %2353 = vmatprep.subr.bf16.mxu0 %v2528_v32 }
  0x47   : > { %1274 = vmatmul.mubr.bf16.gmra.mrb[16].mxu0 %v2486_v2  ;;  %2385 = vmatprep.subr.bf16.mxu1 %v2528_v32  ;;  %v2568_v2 = vld [vmem:[%s2720_s13 + $0x1c0] ss:$36 sps:$4 sm:$0xff]  }
  0x48   : > { %1371 = vmatmul.mubr.bf16.gmra.mrb[16].mxu1 %v2487_v4  ;;  %1281 = vmatprep.mubr.bf16.mxu0 %v2492_v8  ;;  %v2571_v4 = vld [vmem:[%s2720_s13 + $0x20c] ss:$36 sps:$4 sm:$0xff]   ;;  %v2578_v8 = vld [vmem:[%s2720_s13 + $0x20] ss:$36 sps:$4 sm:$0xff]  }
  0x49   : > { %1378 = vmatprep.mubr.bf16.mxu1 %v2494_v9  ;;  %v2579_v9 = vld [vmem:[%s2720_s13 + $0x140] ss:$36 sps:$4 sm:$0xff]  }
  0x4f   : > { %1282 = vmatmul.mubr.bf16.gmra.mrb[20].mxu0 %v2496_v12  ;;  %v2582_v12 = vld [vmem:[%s2720_s13 + $0xb0] ss:$36 sps:$4 sm:$0xff]  }
  0x50   : > { %1379 = vmatmul.mubr.bf16.gmra.mrb[20].mxu1 %v2497_v15  ;;  %1289 = vmatprep.mubr.bf16.mxu0 %v2502_v16  ;;  %v2585_v15 = vld [vmem:[%s2720_s13 + $0x218] ss:$36 sps:$4 sm:$0xff]   ;;  %s1854_s13 = sshll.u32 %s3041_s19, 2 }
  0x51   : > { %1386 = vmatprep.mubr.bf16.mxu1 %v2504_v17  ;;  %s3018_s20 = scalar_lea.vmem %s3039_s3, %s1854_s13 }
  0x57   : > { %1290 = vmatmul.mubr.bf16.gmra.mrb[24].mxu0 %v2506_v22 }
  0x58   : > { %1387 = vmatmul.mubr.bf16.gmra.mrb[24].mxu1 %v2507_v23  ;;  %1297 = vmatprep.mubr.bf16.mxu0 %v2512_v24 }
  0x59   : > { %1394 = vmatprep.mubr.bf16.mxu1 %v2514_v25 }
  0x5f   : > { %1298 = vmatmul.mubr.bf16.gmra.mrb[28].mxu0 %v2516_v30 }
  0x60   : > { %1395 = vmatmul.mubr.bf16.gmra.mrb[28].mxu1 %v2517_v31  ;;  %1435 = vmatprep.mubr.bf16.mxu0 %v2524_v33 }
  0x61   : > { %1532 = vmatprep.mubr.bf16.mxu1 %v2527_v34 }
  0x67   : > { %1436 = vmatmul.mubr.bf16.vlgmr.msra.gmra.mrb[32].mxu0 %v2522_v35 }
  0x68   : > { %1533 = vmatmul.mubr.bf16.vlgmr.msra.gmra.mrb[32].mxu1 %v2525_v36  ;;  %2354 = vmatpush3.bf16.msra.mxu0 %v2528_v32 }
  0x69   : > { %2393 = vmatpush3.bf16.msra.mxu1 %v2528_v32  ;;  %1443 = vmatprep.mubr.bf16.mxu0 %v2529_v37 }
  0x6a   : > { %1540 = vmatprep.mubr.bf16.mxu1 %v2531_v38  ;;  %2355 = vmatprep.subr.bf16.mxu0 %v2535_v39 }
  0x6b   : > { %2386 = vmatprep.subr.bf16.mxu1 %v2535_v39 }
  0x6c   : > { %2356 = vmatpush3.bf16.msra.mxu0 %v2535_v39 }
  0x6d   : > { %2394 = vmatpush3.bf16.msra.mxu1 %v2535_v39  ;;  %2357 = vmatprep.subr.bf16.mxu0 %v2542_v40 }
  0x6e   : > { %2387 = vmatprep.subr.bf16.mxu1 %v2542_v40 }
  0x6f   : > { %1444 = vmatmul.mubr.bf16.gmra.mrb[36].mxu0 %v2533_v41 }
  0x70   : > { %1541 = vmatmul.mubr.bf16.gmra.mrb[36].mxu1 %v2534_v42  ;;  %1451 = vmatprep.mubr.bf16.mxu0 %v2536_v43 }
  0x71   : > { %1548 = vmatprep.mubr.bf16.mxu1 %v2538_v44  ;;  %2358 = vmatpush3.bf16.msra.mxu0 %v2542_v40 }
  0x72   : > { %2395 = vmatpush3.bf16.msra.mxu1 %v2542_v40  ;;  %2359 = vmatprep.subr.bf16.mxu0 %v2549_v45 }
  0x73   : > { %2388 = vmatprep.subr.bf16.mxu1 %v2549_v45 }
  0x75   : > { %2360 = vmatpush3.bf16.msra.mxu0 %v2549_v45 }
  0x76   : > { %2396 = vmatpush3.bf16.msra.mxu1 %v2549_v45  ;;  %2361 = vmatprep.subr.bf16.mxu0 %v2556_v46 }
  0x77   : > { %1452 = vmatmul.mubr.bf16.gmra.mrb[40].mxu0 %v2540_v47  ;;  %2389 = vmatprep.subr.bf16.mxu1 %v2556_v46 }
  0x78   : > { %1549 = vmatmul.mubr.bf16.gmra.mrb[40].mxu1 %v2541_v48  ;;  %1459 = vmatprep.mubr.bf16.mxu0 %v2543_v49 }
  0x79   : > { %1556 = vmatprep.mubr.bf16.mxu1 %v2545_v50  ;;  %2362 = vmatpush3.bf16.msra.mxu0 %v2556_v46 }
  0x7a   : > { %2397 = vmatpush3.bf16.msra.mxu1 %v2556_v46  ;;  %2363 = vmatprep.subr.bf16.mxu0 %v2563_v51 }
  0x7b   : > { %2390 = vmatprep.subr.bf16.mxu1 %v2563_v51 }
  0x7d   : > { %2364 = vmatpush3.bf16.msra.mxu0 %v2563_v51 }
  0x7e   : > { %2398 = vmatpush3.bf16.msra.mxu1 %v2563_v51  ;;  %2365 = vmatprep.subr.bf16.mxu0 %v2570_v53 }
  0x7f   : > { %1460 = vmatmul.mubr.bf16.gmra.mrb[44].mxu0 %v2547_v52  ;;  %2391 = vmatprep.subr.bf16.mxu1 %v2570_v53 }
  0x80   : > { %1557 = vmatmul.mubr.bf16.gmra.mrb[44].mxu1 %v2548_v54  ;;  %1467 = vmatprep.mubr.bf16.mxu0 %v2550_v55 }
  0x81   : > { %1564 = vmatprep.mubr.bf16.mxu1 %v2552_v56  ;;  %2366 = vmatpush3.bf16.msra.mxu0 %v2570_v53 }
  0x82   : > { %2399 = vmatpush3.bf16.msra.mxu1 %v2570_v53  ;;  %2367 = vmatprep.subr.bf16.mxu0 %v2577_v57 }
  0x83   : > { %2392 = vmatprep.subr.bf16.mxu1 %v2577_v57 }
  0x85   : > { %2368 = vmatpush3.bf16.msra.mxu0 %v2577_v57 }
  0x86   : > { %2400 = vmatpush3.bf16.msra.mxu1 %v2577_v57 }
  0x87   : > { %1468 = vmatmul.mubr.bf16.gmra.mrb[48].mxu0 %v2554_v58 }
  0x88   : > { %1565 = vmatmul.mubr.bf16.gmra.mrb[48].mxu1 %v2555_v59  ;;  %1475 = vmatprep.mubr.bf16.mxu0 %v2557_v60 }
  0x89   : > { %1572 = vmatprep.mubr.bf16.mxu1 %v2559_v61 }
  0x8f   : > { %1476 = vmatmul.mubr.bf16.gmra.mrb[52].mxu0 %v2561_v62 }
  0x90   : > { %1573 = vmatmul.mubr.bf16.gmra.mrb[52].mxu1 %v2562_v63  ;;  %1483 = vmatprep.mubr.bf16.mxu0 %v2564_v0 }
  0x91   : > { %1580 = vmatprep.mubr.bf16.mxu1 %v2566_v1 }
  0x97   : > { %1484 = vmatmul.mubr.bf16.gmra.mrb[56].mxu0 %v2568_v2 }
  0x98   : > { %1581 = vmatmul.mubr.bf16.gmra.mrb[56].mxu1 %v2569_v3  ;;  %1491 = vmatprep.mubr.bf16.mxu0 %v2571_v4 }
  0x99   : > { %1588 = vmatprep.mubr.bf16.mxu1 %v2573_v5 }
  0x9f   : > { %1492 = vmatmul.mubr.bf16.gmra.mrb[60].mxu0 %v2575_v6 }
  0xa0   : > { %1589 = vmatmul.mubr.bf16.gmra.mrb[60].mxu1 %v2576_v7  ;;  %2369 = vmatprep.mubr.bf16.mxu0 %v2578_v8 }
  0xa1   : > { %2377 = vmatprep.mubr.bf16.mxu1 %v2579_v9 }
  0xa7   : > { %2370 = vmatmul.mubr.bf16.vlgmr.msra.gmra.mrb[64].mxu0 %v2580_v10 }
  0xa8   : > { %2378 = vmatmul.mubr.bf16.vlgmr.msra.gmra.mrb[64].mxu1 %v2581_v11  ;;  %2373 = vmatprep.mubr.bf16.mxu0 %v2582_v12 }
  0xa9   : > { %2381 = vmatprep.mubr.bf16.mxu1 %v2583_v13 }
  0xaf   : > { %2374 = vmatmul.mubr.bf16.gmra.mrb[68].mxu0 %v2584_v14 }
  0xb0   : > { %2382 = vmatmul.mubr.bf16.gmra.mrb[68].mxu1 %v2585_v15 }
  0xfa   : > { %v2097_v16 = vpop.f32.mrb[0].mxu0 }
  0xfb   : > { %v2161_v17 = vpop.f32.mrb[0].mxu1  ;;  %v2098_v19 = vpop.f32.mrb[1].mxu0 }
  0xfc   : > { %v2099_v20 = vadd.f32 %v2098_v19, %v2097_v16  ;;  %v2162_v21 = vpop.f32.mrb[1].mxu1  ;;  %v2100_v22 = vpop.f32.mrb[2].mxu0 }
  0xfd   : > { %v2163_v23 = vadd.f32 %v2162_v21, %v2161_v17  ;;  %v2164_v24 = vpop.f32.mrb[2].mxu1  ;;  %v2101_v25 = vpop.f32.mrb[3].mxu0 }
  0xfe   : > { %v1244_v26 = vadd.f32 %v2099_v20, %v2923_v18  ;;  %v2102_v27 = vadd.f32 %v2101_v25, %v2100_v22  ;;  %v2165_v28 = vpop.f32.mrb[3].mxu1 }
  0xff   : > { %v2166_v29 = vadd.f32 %v2165_v28, %v2164_v24 }
 0x100   : > { %v2926_v30 = vadd.f32 %v2163_v23, %v1244_v26  ;;  %v1247_v31 = vadd.f32 %v2102_v27, %v2923_v18 }
 0x102   : > { %v2929_v32 = vadd.f32 %v2166_v29, %v1247_v31  ;;  %v2103_v33 = vpop.f32.mrb[4].mxu0 }
 0x103   : > { %v2167_v34 = vpop.f32.mrb[4].mxu1  ;;  %v2104_v35 = vpop.f32.mrb[5].mxu0 }
 0x104   : > { %v2105_v36 = vadd.f32 %v2104_v35, %v2103_v33  ;;  %v2168_v37 = vpop.f32.mrb[5].mxu1  ;;  %v2106_v38 = vpop.f32.mrb[6].mxu0 }
 0x105   : > { %v2169_v39 = vadd.f32 %v2168_v37, %v2167_v34  ;;  %v2170_v40 = vpop.f32.mrb[6].mxu1  ;;  %v2107_v41 = vpop.f32.mrb[7].mxu0 }
 0x106   : > { %v1252_v42 = vadd.f32 %v2105_v36, %v2923_v18  ;;  %v2108_v43 = vadd.f32 %v2107_v41, %v2106_v38  ;;  %v2171_v44 = vpop.f32.mrb[7].mxu1 }
 0x107   : > { %v2172_v45 = vadd.f32 %v2171_v44, %v2170_v40 }
 0x108   : > { %v2932_v46 = vadd.f32 %v2169_v39, %v1252_v42  ;;  %v1255_v47 = vadd.f32 %v2108_v43, %v2923_v18 }
 0x10a   : > { %v2935_v48 = vadd.f32 %v2172_v45, %v1255_v47  ;;  %v2109_v49 = vpop.f32.mrb[8].mxu0 }
 0x10b   : > { %v2173_v50 = vpop.f32.mrb[8].mxu1  ;;  %v2110_v51 = vpop.f32.mrb[9].mxu0 }
 0x10c   : > { %v2111_v52 = vadd.f32 %v2110_v51, %v2109_v49  ;;  %v2174_v53 = vpop.f32.mrb[9].mxu1  ;;  %v2112_v54 = vpop.f32.mrb[10].mxu0 }
 0x10d   : > { %v2175_v55 = vadd.f32 %v2174_v53, %v2173_v50  ;;  %v2176_v56 = vpop.f32.mrb[10].mxu1  ;;  %v2113_v57 = vpop.f32.mrb[11].mxu0 }
 0x10e   : > { %v1260_v58 = vadd.f32 %v2111_v52, %v2923_v18  ;;  %v2114_v59 = vadd.f32 %v2113_v57, %v2112_v54  ;;  %v2177_v60 = vpop.f32.mrb[11].mxu1 }
 0x10f   : > { %v2178_v61 = vadd.f32 %v2177_v60, %v2176_v56 }
 0x110   : > { %v2938_v62 = vadd.f32 %v2175_v55, %v1260_v58  ;;  %v1263_v63 = vadd.f32 %v2114_v59, %v2923_v18 }
 0x112   : > { %v2941_v0 = vadd.f32 %v2178_v61, %v1263_v63  ;;  %v2115_v1 = vpop.f32.mrb[12].mxu0 }
 0x113   : > { %v2179_v2 = vpop.f32.mrb[12].mxu1  ;;  %v2116_v3 = vpop.f32.mrb[13].mxu0 }
 0x114   : > { %v2117_v4 = vadd.f32 %v2116_v3, %v2115_v1  ;;  %v2180_v5 = vpop.f32.mrb[13].mxu1  ;;  %v2118_v6 = vpop.f32.mrb[14].mxu0 }
 0x115   : > { %v2181_v7 = vadd.f32 %v2180_v5, %v2179_v2  ;;  %v2182_v8 = vpop.f32.mrb[14].mxu1  ;;  %v2119_v9 = vpop.f32.mrb[15].mxu0 }
 0x116   : > { %v1268_v10 = vadd.f32 %v2117_v4, %v2923_v18  ;;  %v2120_v11 = vadd.f32 %v2119_v9, %v2118_v6  ;;  %v2183_v12 = vpop.f32.mrb[15].mxu1 }
 0x117   : > { %v2184_v13 = vadd.f32 %v2183_v12, %v2182_v8 }
 0x118   : > { %v2944_v14 = vadd.f32 %v2181_v7, %v1268_v10  ;;  %v1271_v15 = vadd.f32 %v2120_v11, %v2923_v18 }
 0x11a   : > { %v2947_v16 = vadd.f32 %v2184_v13, %v1271_v15  ;;  %v2121_v17 = vpop.f32.mrb[16].mxu0 }
 0x11b   : > { %v2185_v19 = vpop.f32.mrb[16].mxu1  ;;  %v2122_v20 = vpop.f32.mrb[17].mxu0 }
 0x11c   : > { %v2123_v21 = vadd.f32 %v2122_v20, %v2121_v17  ;;  %v2186_v22 = vpop.f32.mrb[17].mxu1  ;;  %v2124_v23 = vpop.f32.mrb[18].mxu0 }
 0x11d   : > { %v2187_v24 = vadd.f32 %v2186_v22, %v2185_v19  ;;  %v2188_v25 = vpop.f32.mrb[18].mxu1  ;;  %v2125_v26 = vpop.f32.mrb[19].mxu0 }
 0x11e   : > { %v1276_v27 = vadd.f32 %v2123_v21, %v2923_v18  ;;  %v2126_v28 = vadd.f32 %v2125_v26, %v2124_v23  ;;  %v2189_v29 = vpop.f32.mrb[19].mxu1 }
 0x11f   : > { %v2190_v31 = vadd.f32 %v2189_v29, %v2188_v25 }
 0x120   : > { %v2950_v33 = vadd.f32 %v2187_v24, %v1276_v27  ;;  %v1279_v34 = vadd.f32 %v2126_v28, %v2923_v18 }
 0x122   : > { %v2953_v35 = vadd.f32 %v2190_v31, %v1279_v34  ;;  %v2127_v36 = vpop.f32.mrb[20].mxu0 }
 0x123   : > { %v2191_v37 = vpop.f32.mrb[20].mxu1  ;;  %v2128_v38 = vpop.f32.mrb[21].mxu0 }
 0x124   : > { %v2129_v39 = vadd.f32 %v2128_v38, %v2127_v36  ;;  %v2192_v40 = vpop.f32.mrb[21].mxu1  ;;  %v2130_v41 = vpop.f32.mrb[22].mxu0 }
 0x125   : > { %v2193_v42 = vadd.f32 %v2192_v40, %v2191_v37  ;;  %v2194_v43 = vpop.f32.mrb[22].mxu1  ;;  %v2131_v44 = vpop.f32.mrb[23].mxu0 }
 0x126   : > { %v1284_v45 = vadd.f32 %v2129_v39, %v2923_v18  ;;  %v2132_v47 = vadd.f32 %v2131_v44, %v2130_v41  ;;  %v2195_v49 = vpop.f32.mrb[23].mxu1 }
 0x127   : > { %v2196_v50 = vadd.f32 %v2195_v49, %v2194_v43 }
 0x128   : > { %v2956_v51 = vadd.f32 %v2193_v42, %v1284_v45  ;;  %v1287_v52 = vadd.f32 %v2132_v47, %v2923_v18 }
 0x12a   : > { %v2959_v53 = vadd.f32 %v2196_v50, %v1287_v52  ;;  %v2133_v54 = vpop.f32.mrb[24].mxu0 }
 0x12b   : > { %v2197_v55 = vpop.f32.mrb[24].mxu1  ;;  %v2134_v56 = vpop.f32.mrb[25].mxu0 }
 0x12c   : > { %v2135_v57 = vadd.f32 %v2134_v56, %v2133_v54  ;;  %v2198_v58 = vpop.f32.mrb[25].mxu1  ;;  %v2136_v59 = vpop.f32.mrb[26].mxu0 }
 0x12d   : > { %v2199_v60 = vadd.f32 %v2198_v58, %v2197_v55  ;;  %v2200_v61 = vpop.f32.mrb[26].mxu1  ;;  %v2137_v63 = vpop.f32.mrb[27].mxu0 }
 0x12e   : > { %v1292_v1 = vadd.f32 %v2135_v57, %v2923_v18  ;;  %v2138_v2 = vadd.f32 %v2137_v63, %v2136_v59  ;;  %v2201_v3 = vpop.f32.mrb[27].mxu1 }
 0x12f   : > { %v2202_v4 = vadd.f32 %v2201_v3, %v2200_v61 }
 0x130   : > { %v2962_v5 = vadd.f32 %v2199_v60, %v1292_v1  ;;  %v1295_v6 = vadd.f32 %v2138_v2, %v2923_v18 }
 0x132   : > { %v2965_v7 = vadd.f32 %v2202_v4, %v1295_v6  ;;  %v2139_v8 = vpop.f32.mrb[28].mxu0 }
 0x133   : > { %v2203_v9 = vpop.f32.mrb[28].mxu1  ;;  %v2140_v10 = vpop.f32.mrb[29].mxu0 }
 0x134   : > { %v2141_v11 = vadd.f32 %v2140_v10, %v2139_v8  ;;  %v2204_v12 = vpop.f32.mrb[29].mxu1  ;;  %v2142_v13 = vpop.f32.mrb[30].mxu0 }
 0x135   : > { %v2205_v15 = vadd.f32 %v2204_v12, %v2203_v9  ;;  %v2206_v17 = vpop.f32.mrb[30].mxu1  ;;  %v2143_v19 = vpop.f32.mrb[31].mxu0 }
 0x136   : > { %v1300_v20 = vadd.f32 %v2141_v11, %v2923_v18  ;;  %v2144_v21 = vadd.f32 %v2143_v19, %v2142_v13  ;;  %v2207_v22 = vpop.f32.mrb[31].mxu1 }
 0x137   : > { %v2208_v23 = vadd.f32 %v2207_v22, %v2206_v17 }
 0x138   : > { %v2968_v24 = vadd.f32 %v2205_v15, %v1300_v20  ;;  %v1303_v25 = vadd.f32 %v2144_v21, %v2923_v18 }
 0x13a   : > { %v2971_v26 = vadd.f32 %v2208_v23, %v1303_v25  ;;  %v2225_v27 = vpop.f32.mrb[32].mxu0 }
 0x13b   : > { %v2289_v28 = vpop.f32.mrb[32].mxu1  ;;  %v2226_v29 = vpop.f32.mrb[33].mxu0 }
 0x13c   : > { %v2227_v31 = vadd.f32 %v2226_v29, %v2225_v27  ;;  %v2290_v34 = vpop.f32.mrb[33].mxu1  ;;  %v2228_v36 = vpop.f32.mrb[34].mxu0 }
 0x13d   : > { %v2291_v37 = vadd.f32 %v2290_v34, %v2289_v28  ;;  %v2292_v38 = vpop.f32.mrb[34].mxu1  ;;  %v2229_v39 = vpop.f32.mrb[35].mxu0 }
 0x13e   : > { %v1438_v40 = vadd.f32 %v2227_v31, %v2926_v30  ;;  %v2230_v41 = vadd.f32 %v2229_v39, %v2228_v36  ;;  %v2293_v42 = vpop.f32.mrb[35].mxu1 }
 0x13f   : > { %v2294_v43 = vadd.f32 %v2293_v42, %v2292_v38 }
 0x140   : > { %v1441_v44 = vadd.f32 %v2230_v41, %v2929_v32  ;;  %v2975_v45 = vadd.f32 %v2291_v37, %v1438_v40 }
 0x142   : > { %v2231_v18 = vpop.f32.mrb[36].mxu0  ;;  %v2977_v47 = vadd.f32 %v2294_v43, %v1441_v44 }
 0x143   : > { %v2295_v49 = vpop.f32.mrb[36].mxu1  ;;  %v2232_v50 = vpop.f32.mrb[37].mxu0 }
 0x144   : > { %v2233_v52 = vadd.f32 %v2232_v50, %v2231_v18  ;;  %v2296_v54 = vpop.f32.mrb[37].mxu1  ;;  %v2234_v55 = vpop.f32.mrb[38].mxu0 }
 0x145   : > { %v2297_v56 = vadd.f32 %v2296_v54, %v2295_v49  ;;  %v2298_v57 = vpop.f32.mrb[38].mxu1  ;;  %v2235_v58 = vpop.f32.mrb[39].mxu0 }
 0x146   : > { %v1446_v30 = vadd.f32 %v2233_v52, %v2932_v46  ;;  %v2236_v59 = vadd.f32 %v2235_v58, %v2234_v55  ;;  %v2299_v60 = vpop.f32.mrb[39].mxu1 }
 0x147   : > { %v2300_v61 = vadd.f32 %v2299_v60, %v2298_v57 }
 0x148   : > { %v1449_v32 = vadd.f32 %v2236_v59, %v2935_v48  ;;  %v2981_v63 = vadd.f32 %v2297_v56, %v1446_v30 }
 0x14a   : > { %v2237_v1 = vpop.f32.mrb[40].mxu0  ;;  %v2983_v2 = vadd.f32 %v2300_v61, %v1449_v32 }
 0x14b   : > { %v2301_v3 = vpop.f32.mrb[40].mxu1  ;;  %v2238_v4 = vpop.f32.mrb[41].mxu0 }
 0x14c   : > { %v2239_v6 = vadd.f32 %v2238_v4, %v2237_v1  ;;  %v2302_v8 = vpop.f32.mrb[41].mxu1  ;;  %v2240_v9 = vpop.f32.mrb[42].mxu0 }
 0x14d   : > { %v2303_v10 = vadd.f32 %v2302_v8, %v2301_v3  ;;  %v2304_v11 = vpop.f32.mrb[42].mxu1  ;;  %v2241_v12 = vpop.f32.mrb[43].mxu0 }
 0x14e   : > { %v1454_v46 = vadd.f32 %v2239_v6, %v2938_v62  ;;  %v2242_v13 = vadd.f32 %v2241_v12, %v2240_v9  ;;  %v2305_v15 = vpop.f32.mrb[43].mxu1 }
 0x14f   : > { %v2306_v17 = vadd.f32 %v2305_v15, %v2304_v11 }
 0x150   : > { %v1457_v48 = vadd.f32 %v2242_v13, %v2941_v0  ;;  %v2987_v19 = vadd.f32 %v2303_v10, %v1454_v46 }
 0x152   : > { %v2243_v20 = vpop.f32.mrb[44].mxu0  ;;  %v2989_v21 = vadd.f32 %v2306_v17, %v1457_v48 }
 0x153   : > { %v2307_v22 = vpop.f32.mrb[44].mxu1  ;;  %v2244_v23 = vpop.f32.mrb[45].mxu0 }
 0x154   : > { %v2245_v25 = vadd.f32 %v2244_v23, %v2243_v20  ;;  %v2308_v27 = vpop.f32.mrb[45].mxu1  ;;  %v2246_v28 = vpop.f32.mrb[46].mxu0 }
 0x155   : > { %v2309_v29 = vadd.f32 %v2308_v27, %v2307_v22  ;;  %v2310_v31 = vpop.f32.mrb[46].mxu1  ;;  %v2247_v34 = vpop.f32.mrb[47].mxu0 }
 0x156   : > { %v1462_v62 = vadd.f32 %v2245_v25, %v2944_v14  ;;  %v2248_v36 = vadd.f32 %v2247_v34, %v2246_v28  ;;  %v2311_v37 = vpop.f32.mrb[47].mxu1 }
 0x157   : > { %v2312_v38 = vadd.f32 %v2311_v37, %v2310_v31 }
 0x158   : > { %v1465_v0 = vadd.f32 %v2248_v36, %v2947_v16  ;;  %v2993_v39 = vadd.f32 %v2309_v29, %v1462_v62 }
 0x15a   : > { %v2249_v40 = vpop.f32.mrb[48].mxu0  ;;  %v2995_v41 = vadd.f32 %v2312_v38, %v1465_v0 }
 0x15b   : > { %v2313_v42 = vpop.f32.mrb[48].mxu1  ;;  %v2250_v43 = vpop.f32.mrb[49].mxu0 }
 0x15c   : > { %v2251_v44 = vadd.f32 %v2250_v43, %v2249_v40  ;;  %v2314_v18 = vpop.f32.mrb[49].mxu1  ;;  %v2252_v49 = vpop.f32.mrb[50].mxu0 }
 0x15d   : > { %v2315_v50 = vadd.f32 %v2314_v18, %v2313_v42  ;;  %v2316_v52 = vpop.f32.mrb[50].mxu1  ;;  %v2253_v54 = vpop.f32.mrb[51].mxu0 }
 0x15e   : > { %v1470_v14 = vadd.f32 %v2251_v44, %v2950_v33  ;;  %v2254_v55 = vadd.f32 %v2253_v54, %v2252_v49  ;;  %v2317_v56 = vpop.f32.mrb[51].mxu1 }
 0x15f   : > { %v2318_v57 = vadd.f32 %v2317_v56, %v2316_v52 }
 0x160   : > { %v1473_v16 = vadd.f32 %v2254_v55, %v2953_v35  ;;  %v1567_v58 = vadd.f32 %v2315_v50, %v1470_v14 }
 0x162   : > { %v2255_v30 = vpop.f32.mrb[52].mxu0  ;;  %v2999_v59 = vadd.f32 %v2318_v57, %v1473_v16 }
 0x163   : > { %v2319_v60 = vpop.f32.mrb[52].mxu1  ;;  %v2256_v61 = vpop.f32.mrb[53].mxu0 }
 0x164   : > { %v2257_v32 = vadd.f32 %v2256_v61, %v2255_v30  ;;  %v2320_v1 = vpop.f32.mrb[53].mxu1  ;;  %v2258_v3 = vpop.f32.mrb[54].mxu0 }
 0x165   : > { %v2321_v4 = vadd.f32 %v2320_v1, %v2319_v60  ;;  %v2322_v6 = vpop.f32.mrb[54].mxu1  ;;  %v2259_v8 = vpop.f32.mrb[55].mxu0 }
 0x166   : > { %v1478_v9 = vadd.f32 %v2257_v32, %v2956_v51  ;;  %v2260_v33 = vadd.f32 %v2259_v8, %v2258_v3  ;;  %v2323_v10 = vpop.f32.mrb[55].mxu1 }
 0x167   : > { %v2324_v11 = vadd.f32 %v2323_v10, %v2322_v6 }
 0x168   : > { %v1481_v12 = vadd.f32 %v2260_v33, %v2959_v53  ;;  %v1575_v35 = vadd.f32 %v2321_v4, %v1478_v9 }
 0x16a   : > { %v2261_v46 = vpop.f32.mrb[56].mxu0  ;;  %v1578_v13 = vadd.f32 %v2324_v11, %v1481_v12 }
 0x16b   : > { %v2325_v15 = vpop.f32.mrb[56].mxu1  ;;  %v2262_v17 = vpop.f32.mrb[57].mxu0 }
 0x16c   : > { %v2263_v48 = vadd.f32 %v2262_v17, %v2261_v46  ;;  %v2326_v20 = vpop.f32.mrb[57].mxu1  ;;  %v2264_v22 = vpop.f32.mrb[58].mxu0 }
 0x16d   : > { %v2327_v23 = vadd.f32 %v2326_v20, %v2325_v15  ;;  %v2328_v25 = vpop.f32.mrb[58].mxu1  ;;  %v2265_v27 = vpop.f32.mrb[59].mxu0 }
 0x16e   : > { %v1486_v28 = vadd.f32 %v2263_v48, %v2962_v5  ;;  %v2266_v29 = vadd.f32 %v2265_v27, %v2264_v22  ;;  %v2329_v51 = vpop.f32.mrb[59].mxu1 }
 0x16f   : > { %v2330_v31 = vadd.f32 %v2329_v51, %v2328_v25 }
 0x170   : > { %v1489_v34 = vadd.f32 %v2266_v29, %v2965_v7  ;;  %v1583_v62 = vadd.f32 %v2327_v23, %v1486_v28 }
 0x172   : > { %v2267_v53 = vpop.f32.mrb[60].mxu0  ;;  %v3005_v36 = vadd.f32 %v2330_v31, %v1489_v34 }
 0x173   : > { %v2331_v37 = vpop.f32.mrb[60].mxu1  ;;  %v2268_v38 = vpop.f32.mrb[61].mxu0 }
 0x174   : > { %v2269_v0 = vadd.f32 %v2268_v38, %v2267_v53  ;;  %v2332_v40 = vpop.f32.mrb[61].mxu1  ;;  %v2270_v42 = vpop.f32.mrb[62].mxu0 }
 0x175   : > { %v2333_v43 = vadd.f32 %v2332_v40, %v2331_v37  ;;  %v2334_v44 = vpop.f32.mrb[62].mxu1  ;;  %v2271_v18 = vpop.f32.mrb[63].mxu0 }
 0x176   : > { %v1494_v49 = vadd.f32 %v2269_v0, %v2968_v24  ;;  %v2272_v5 = vadd.f32 %v2271_v18, %v2270_v42  ;;  %v2335_v50 = vpop.f32.mrb[63].mxu1 }
 0x177   : > { %v2336_v52 = vadd.f32 %v2335_v50, %v2334_v44 }
 0x178   : > { %v1497_v7 = vadd.f32 %v2272_v5, %v2971_v26  ;;  %v1591_v54 = vadd.f32 %v2333_v43, %v1494_v49 }
 0x17a   : > { %v2371_v14 = vpop.f32.mrb[64].mxu0  ;;  %v1594_v55 = vadd.f32 %v2336_v52, %v1497_v7 }
 0x17b   : > { %v1640_v56 = vadd.f32 %v2371_v14, %v2981_v63  ;;  %v2379_v57 = vpop.f32.mrb[64].mxu1  ;;  %v1631_v16 = vpop.f32.mrb[65].mxu0 }
 0x17c   : > { %v1672_v30 = vadd.f32 %v2379_v57, %v1575_v35  ;;  %v1632_v60 = vadd.f32 %v1631_v16, %v2975_v45  ;;  %v1663_v61 = vpop.f32.mrb[65].mxu1  ;;  %v2372_v32 = vpop.f32.mrb[66].mxu0 }
 0x17d   : > { %v1664_v1 = vadd.f32 %v1663_v61, %v1567_v58  ;;  %v1643_v24 = vadd.f32 %v2372_v32, %v2983_v2  ;;  %v2380_v3 = vpop.f32.mrb[66].mxu1  ;;  %v1634_v4 = vpop.f32.mrb[67].mxu0  ;;  %v1696_v9 = vmax.f32 %v1640_v56, 0.0 }
 0x17e   : > { %v1675_v6 = vadd.f32 %v2380_v3, %v1578_v13  ;;  %v1635_v26 = vadd.f32 %v1634_v4, %v2977_v47  ;;  %v1666_v8 = vpop.f32.mrb[67].mxu1  ;;  %v1704_v10 = vmax.f32 %v1672_v30, 0.0  ;;  %v1694_v11 = vmax.f32 %v1632_v60, 0.0 }
 0x17f   : > { %v1697_v33 = vmax.f32 %v1643_v24, 0.0  ;;  %v1667_v63 = vadd.f32 %v1666_v8, %v2999_v59  ;;  %v1702_v58 = vmax.f32 %v1664_v1, 0.0 }
 0x180   : > { %v1705_v45 = vmax.f32 %v1675_v6, 0.0  ;;  %v1695_v2 = vmax.f32 %v1635_v26, 0.0 }
 0x181   : > { %v2042_v12 = vpack.c.bf16 %v1697_v33, %v1696_v9  ;;  %v1703_v47 = vmax.f32 %v1667_v63, 0.0 }
 0x182   : > { %v2062_v35 = vpack.c.bf16 %v1705_v45, %v1704_v10  ;;  %v2037_v46 = vpack.c.bf16 %v1695_v2, %v1694_v11  ;;  %v2375_v13 = vpop.f32.mrb[68].mxu0 }
 0x183   : > { %2074 = vst [vmem:[%s3018_s20 + $0x8] sm:$0xff] %v2042_v12   ;;  %v2057_v59 = vpack.c.bf16 %v1703_v47, %v1702_v58  ;;  %v1656_v15 = vadd.f32 %v2375_v13, %v2993_v39  ;;  %v2383_v17 = vpop.f32.mrb[68].mxu1  ;;  %v1647_v48 = vpop.f32.mrb[69].mxu0 }
 0x184   : > { %2078 = vst [vmem:[%s3018_s20 + $0x28] sm:$0xff] %v2062_v35   ;;  %2038 = vst [vmem:[%s3018_s20] sm:$0xff] %v2037_v46   ;;  %v1688_v20 = vadd.f32 %v2383_v17, %v1591_v54  ;;  %v1648_v22 = vadd.f32 %v1647_v48, %v2987_v19  ;;  %v1679_v23 = vpop.f32.mrb[69].mxu1  ;;  %v2376_v25 = vpop.f32.mrb[70].mxu0 }
 0x185   : > { %2077 = vst [vmem:[%s3018_s20 + $0x20] sm:$0xff] %v2057_v59   ;;  %v1680_v27 = vadd.f32 %v1679_v23, %v1583_v62  ;;  %v1659_v28 = vadd.f32 %v2376_v25, %v2995_v41  ;;  %v2384_v29 = vpop.f32.mrb[70].mxu1  ;;  %v1650_v51 = vpop.f32.mrb[71].mxu0  ;;  %v1700_v53 = vmax.f32 %v1656_v15, 0.0 }
 0x186   : > { %v1691_v31 = vadd.f32 %v2384_v29, %v1594_v55  ;;  %v1651_v34 = vadd.f32 %v1650_v51, %v2989_v21  ;;  %v1682_v39 = vpop.f32.mrb[71].mxu1  ;;  %v1708_v38 = vmax.f32 %v1688_v20, 0.0  ;;  %v1698_v0 = vmax.f32 %v1648_v22, 0.0 }
 0x187   : > { %v1701_v37 = vmax.f32 %v1659_v28, 0.0  ;;  %v1683_v19 = vadd.f32 %v1682_v39, %v3005_v36  ;;  %v1706_v42 = vmax.f32 %v1680_v27, 0.0 }
 0x188   : > { %v1709_v40 = vmax.f32 %v1691_v31, 0.0  ;;  %v1699_v62 = vmax.f32 %v1651_v34, 0.0 }
 0x189   : > { %v2052_v41 = vpack.c.bf16 %v1701_v37, %v1700_v53  ;;  %v1707_v43 = vmax.f32 %v1683_v19, 0.0 }
 0x18a   : > { %v2072_v44 = vpack.c.bf16 %v1709_v40, %v1708_v38  ;;  %v2047_v18 = vpack.c.bf16 %v1699_v62, %v1698_v0 }
 0x18b   : > { %2076 = vst [vmem:[%s3018_s20 + $0x18] sm:$0xff] %v2052_v41   ;;  %v2067_v49 = vpack.c.bf16 %v1707_v43, %v1706_v42 }
 0x18c   : > { %2080 = vst [vmem:[%s3018_s20 + $0x38] sm:$0xff] %v2072_v44   ;;  %2075 = vst [vmem:[%s3018_s20 + $0x10] sm:$0xff] %v2047_v18  }
 0x18d   : > { %2079 = vst [vmem:[%s3018_s20 + $0x30] sm:$0xff] %v2067_v49  }
 0x18e PF: > { %s13_s12 = sadd.s32 1, %s2592_s12  }
 0x18f   : > { %p10_p4 = scmp.ge.s32.totalorder %s13_s12, 4  }
 0x191   :  { %12 = sbr.rel (!%p10_p4) target bundleno = 1 (0x1), region = 62 }

// kernel: wavenet_forward.13
= control target key start
LH: loop header
LB: loop body
LE: loop exit
PB: predicated region body
PF: predicated region fallthrough
CT: control target
= control target key end

     0   :  { %s1596_s12 = smov 0   ;;  %s1858_s0 = inlined_call_operand.vmem [shape: bf16[64,1152], index: 0, kind: input, shape index: {}]   ;;  %s1859_s1 = inlined_call_operand.vmem [shape: bf16[1152,128], index: 1, kind: input, shape index: {}]   ;;  %s1860_s2 = inlined_call_operand.vmem [shape: f32[1,128], index: 2, kind: input, shape index: {}]   ;;  %s1861_s3 = inlined_call_operand.vmem [shape: bf16[64,128], index: 3, kind: output, shape index: {}]  }
   0x1 LB: > { %s1198_s13 = sadd.s32 4294967295, %s1574_s12   ;;  %p1202_p0 = scmp.ge.s32.totalorder %s1574_s12, 1  ;;  %s1574_s12 = sphi %s1596_s12, %s13_s12  }
   0x2   : > { %p139_p1 = scmp.lt.s32.totalorder %s1574_s12, 3 }
   0x4   : > { %p140_p2 = pnand %p1202_p0, %p139_p1 }
   0x5   : > { %v1470_v0 = vld [vmem:[%s1859_s1 + $0x40] sm:$0xff] (!%p140_p2)   ;;  %v1474_v4 = vld [vmem:[%s1859_s1 + $0x48] sm:$0xff] (!%p140_p2)   ;;  %v1478_v8 = vld [vmem:[%s1859_s1 + $0x50] sm:$0xff] (!%p140_p2)   ;;  %s1203_s17 = sshll.u32 (!%p140_p2), %s1198_s13, 2 }
   0x6   : > { %143 = sbr.rel (%p140_p2) target bundleno = 324 (0x144), region = 32  ;;  %v1471_v1 = vld [vmem:[%s1859_s1] sm:$0xff] (!%p140_p2)   ;;  %1319 = vmatprep.subr.bf16.mxu0 (!%p140_p2), %v1470_v0  ;;  %v1475_v5 = vld [vmem:[%s1859_s1 + $0x8] sm:$0xff] (!%p140_p2)   ;;  %v1479_v9 = vld [vmem:[%s1859_s1 + $0x10] sm:$0xff] (!%p140_p2)   ;;  %p165_p3 = scmp.lt.s32.totalorder (!%p140_p2), %s1203_s17, 7 }
   0x7   : > { %v1472_v2 = vld [vmem:[%s1859_s1 + $0xc0] sm:$0xff] (!%p140_p2)   ;;  %1320 = vmatpush3.bf16.msra.mxu0 (!%p140_p2), %v1471_v1  ;;  %v1476_v6 = vld [vmem:[%s1859_s1 + $0xc8] sm:$0xff] (!%p140_p2)   ;;  %v1480_v10 = vld [vmem:[%s1859_s1 + $0xd0] sm:$0xff] (!%p140_p2)  }
   0x8   : > { %v1473_v3 = vld [vmem:[%s1859_s1 + $0x80] sm:$0xff] (!%p140_p2)   ;;  %1347 = vmatprep.subr.bf16.mxu1 (!%p140_p2), %v1472_v2  ;;  %1321 = vmatprep.subr.bf16.mxu0 (!%p140_p2), %v1474_v4  ;;  %v1477_v7 = vld [vmem:[%s1859_s1 + $0x88] sm:$0xff] (!%p140_p2)   ;;  %v1481_v11 = vld [vmem:[%s1859_s1 + $0x90] sm:$0xff] (!%p140_p2)  }
   0x9   : > { %1348 = vmatpush3.bf16.msra.mxu1 (!%p140_p2), %v1473_v3  ;;  %v1482_v12 = vld [vmem:[%s1859_s1 + $0x58] sm:$0xff] (!%p140_p2)   ;;  %v1486_v16 = vld [vmem:[%s1859_s1 + $0x60] sm:$0xff] (!%p140_p2)   ;;  %v1490_v20 = vld [vmem:[%s1859_s1 + $0x68] sm:$0xff] (!%p140_p2)  }
   0xa   : > { %1349 = vmatprep.subr.bf16.mxu1 (!%p140_p2), %v1476_v6  ;;  %v1483_v13 = vld [vmem:[%s1859_s1 + $0x18] sm:$0xff] (!%p140_p2)   ;;  %v1487_v17 = vld [vmem:[%s1859_s1 + $0x20] sm:$0xff] (!%p140_p2)   ;;  %v1491_v21 = vld [vmem:[%s1859_s1 + $0x28] sm:$0xff] (!%p140_p2)  }
   0xb   : > { %1322 = vmatpush3.bf16.msra.mxu0 (!%p140_p2), %v1475_v5  ;;  %v1484_v14 = vld [vmem:[%s1859_s1 + $0xd8] sm:$0xff] (!%p140_p2)   ;;  %v1488_v18 = vld [vmem:[%s1859_s1 + $0xe0] sm:$0xff] (!%p140_p2)   ;;  %v1492_v22 = vld [vmem:[%s1859_s1 + $0xe8] sm:$0xff] (!%p140_p2)  }
   0xc   : > { %1323 = vmatprep.subr.bf16.mxu0 (!%p140_p2), %v1478_v8  ;;  %v1485_v15 = vld [vmem:[%s1859_s1 + $0x98] sm:$0xff] (!%p140_p2)   ;;  %v1489_v19 = vld [vmem:[%s1859_s1 + $0xa0] sm:$0xff] (!%p140_p2)   ;;  %v1493_v23 = vld [vmem:[%s1859_s1 + $0xa8] sm:$0xff] (!%p140_p2)  }
   0xd   : > { %1350 = vmatpush3.bf16.msra.mxu1 %v1477_v7  ;;  %s1863_s17 = smov (!%p165_p3, %s1203_s17), 7  ;;  %v1494_v24 = vld [vmem:[%s1859_s1 + $0x70] sm:$0xff]   ;;  %v1498_v28 = vld [vmem:[%s1859_s1 + $0x78] sm:$0xff]   ;;  %v1505_v34 = vld [vmem:[%s1859_s1 + $0x140] sm:$0xff]  }
   0xe   : > { %1351 = vmatprep.subr.bf16.mxu1 %v1480_v10  ;;  %s1461_s14 = smul.u32 36, %s1863_s17  ;;  %v1495_v25 = vld [vmem:[%s1859_s1 + $0x30] sm:$0xff]   ;;  %v1499_v29 = vld [vmem:[%s1859_s1 + $0x38] sm:$0xff]   ;;  %v1509_v37 = vld [vmem:[%s1859_s1 + $0x100] sm:$0xff]  }
   0xf   : > { %1324 = vmatpush3.bf16.msra.mxu0 %v1479_v9  ;;  %v1496_v26 = vld [vmem:[%s1859_s1 + $0xf0] sm:$0xff]   ;;  %v1500_v30 = vld [vmem:[%s1859_s1 + $0xf8] sm:$0xff]   ;;  %v1510_v38 = vld [vmem:[%s1859_s1 + $0x1c0] sm:$0xff]  }
  0x10   : > { %1325 = vmatprep.subr.bf16.mxu0 %v1482_v12  ;;  %v1497_v27 = vld [vmem:[%s1859_s1 + $0xb0] sm:$0xff]   ;;  %s1699_s13 = scalar_lea.vmem %s1858_s0, %s1461_s14  ;;  %v1504_v33 = vld [vmem:[%s1859_s1 + $0xb8] sm:$0xff]   ;;  %v1511_v39 = vld [vmem:[%s1859_s1 + $0x180] sm:$0xff]  }
  0x11   : > { %1352 = vmatpush3.bf16.msra.mxu1 %v1481_v11  ;;  %v1501_v31 = vld [vmem:[%s1699_s13] ss:$36 sps:$4 sm:$0xff]   ;;  %v1506_v35 = vld [vmem:[%s1699_s13 + $0x8] ss:$36 sps:$4 sm:$0xff]   ;;  %v1516_v44 = vld [vmem:[%s1859_s1 + $0x150] sm:$0xff]  }
  0x12   : > { %1353 = vmatprep.subr.bf16.mxu1 %v1484_v14  ;;  %v1503_v32 = vld [vmem:[%s1699_s13 + $0x4] ss:$36 sps:$4 sm:$0xff]   ;;  %v1508_v36 = vld [vmem:[%s1699_s13 + $0xc] ss:$36 sps:$4 sm:$0xff]   ;;  %v1520_v48 = vld [vmem:[%s1859_s1 + $0x158] sm:$0xff]  }
  0x13   : > { %1326 = vmatpush3.bf16.msra.mxu0 %v1483_v13  ;;  %905 = vmatprep.mubr.bf16.mxu0 %v1503_v32  ;;  %v1512_v40 = vld [vmem:[%s1859_s1 + $0x148] sm:$0xff]   ;;  %v1517_v45 = vld [vmem:[%s1859_s1 + $0x110] sm:$0xff]   ;;  %v1521_v49 = vld [vmem:[%s1859_s1 + $0x118] sm:$0xff]  }
  0x14   : > { %1327 = vmatprep.subr.bf16.mxu0 %v1486_v16  ;;  %954 = vmatprep.mubr.bf16.mxu1 %v1508_v36  ;;  %v1513_v41 = vld [vmem:[%s1859_s1 + $0x108] sm:$0xff]   ;;  %v1518_v46 = vld [vmem:[%s1859_s1 + $0x1d0] sm:$0xff]   ;;  %v1522_v50 = vld [vmem:[%s1859_s1 + $0x1d8] sm:$0xff]  }
  0x15   : > { %1354 = vmatpush3.bf16.msra.mxu1 %v1485_v15  ;;  %v1514_v42 = vld [vmem:[%s1859_s1 + $0x1c8] sm:$0xff]   ;;  %v1519_v47 = vld [vmem:[%s1859_s1 + $0x190] sm:$0xff]   ;;  %v1523_v51 = vld [vmem:[%s1859_s1 + $0x198] sm:$0xff]  }
  0x16   : > { %1355 = vmatprep.subr.bf16.mxu1 %v1488_v18  ;;  %v1515_v43 = vld [vmem:[%s1859_s1 + $0x188] sm:$0xff]   ;;  %v1524_v52 = vld [vmem:[%s1859_s1 + $0x160] sm:$0xff]   ;;  %v1534_v61 = vld [vmem:[%s1699_s13 + $0x54] ss:$36 sps:$4 sm:$0xff]  }
  0x17   : > { %1328 = vmatpush3.bf16.msra.mxu0 %v1487_v17  ;;  %v1525_v53 = vld [vmem:[%s1859_s1 + $0x120] sm:$0xff]   ;;  %v1528_v56 = vld [vmem:[%s1859_s1 + $0x168] sm:$0xff]   ;;  %v1537_v63 = vld [vmem:[%s1699_s13 + $0x50] ss:$36 sps:$4 sm:$0xff]  }
  0x18   : > { %1329 = vmatprep.subr.bf16.mxu0 %v1490_v20  ;;  %v1526_v54 = vld [vmem:[%s1859_s1 + $0x1e0] sm:$0xff]   ;;  %v1529_v57 = vld [vmem:[%s1699_s13 + $0x4c] ss:$36 sps:$4 sm:$0xff]   ;;  %v1542_v4 = vld [vmem:[%s1859_s1 + $0x178] sm:$0xff]  }
  0x19   : > { %1356 = vmatpush3.bf16.msra.mxu1 %v1489_v19  ;;  %v1527_v55 = vld [vmem:[%s1859_s1 + $0x1a0] sm:$0xff]   ;;  %v1531_v58 = vld [vmem:[%s1859_s1 + $0x128] sm:$0xff]   ;;  %v1538_v0 = vld [vmem:[%s1859_s1 + $0x170] sm:$0xff]  }
  0x1a   : > { %1357 = vmatprep.subr.bf16.mxu1 %v1492_v22  ;;  %v1532_v59 = vld [vmem:[%s1699_s13 + $0x48] ss:$36 sps:$4 sm:$0xff]   ;;  %v1539_v1 = vld [vmem:[%s1859_s1 + $0x130] sm:$0xff]   ;;  %v1543_v5 = vld [vmem:[%s1859_s1 + $0x138] sm:$0xff]  }
  0x1b   : > { %1330 = vmatpush3.bf16.msra.mxu0 %v1491_v21  ;;  %v1533_v60 = vld [vmem:[%s1859_s1 + $0x1e8] sm:$0xff]   ;;  %v1540_v2 = vld [vmem:[%s1859_s1 + $0x1f0] sm:$0xff]   ;;  %v1544_v6 = vld [vmem:[%s1859_s1 + $0x1f8] sm:$0xff]  }
  0x1c   : > { %1331 = vmatprep.subr.bf16.mxu0 %v1494_v24  ;;  %v1536_v62 = vld [vmem:[%s1859_s1 + $0x1a8] sm:$0xff]   ;;  %v1541_v3 = vld [vmem:[%s1859_s1 + $0x1b0] sm:$0xff]   ;;  %v1548_v9 = vld [vmem:[%s1859_s1 + $0x1b8] sm:$0xff]  }
  0x1d   : > { %1358 = vmatpush3.bf16.msra.mxu1 %v1493_v23  ;;  %v1545_v7 = vld [vmem:[%s1699_s13 + $0x10] ss:$36 sps:$4 sm:$0xff]   ;;  %v1549_v10 = vld [vmem:[%s1859_s1 + $0x200] sm:$0xff]   ;;  %v1550_v11 = vld [vmem:[%s1699_s13 + $0x18] ss:$36 sps:$4 sm:$0xff]  }
  0x1e   : > { %1359 = vmatprep.subr.bf16.mxu1 %v1496_v26  ;;  %v1547_v8 = vld [vmem:[%s1699_s13 + $0x14] ss:$36 sps:$4 sm:$0xff]   ;;  %v1552_v12 = vld [vmem:[%s1699_s13 + $0x1c] ss:$36 sps:$4 sm:$0xff]   ;;  %v1553_v13 = vld [vmem:[%s1859_s1 + $0x208] sm:$0xff]  }
  0x1f   : > { %1332 = vmatpush3.bf16.msra.mxu0 %v1495_v25  ;;  %v1554_v14 = vld [vmem:[%s1699_s13 + $0x5c] ss:$36 sps:$4 sm:$0xff]   ;;  %v1557_v16 = vld [vmem:[%s1859_s1 + $0x210] sm:$0xff]   ;;  %v1558_v17 = vld [vmem:[%s1699_s13 + $0x64] ss:$36 sps:$4 sm:$0xff]  }
  0x20   : > { %1333 = vmatprep.subr.bf16.mxu0 %v1498_v28  ;;  %v1556_v15 = vld [vmem:[%s1699_s13 + $0x58] ss:$36 sps:$4 sm:$0xff]   ;;  %v1560_v18 = vld [vmem:[%s1699_s13 + $0x60] ss:$36 sps:$4 sm:$0xff]   ;;  %v1563_v22 = vld [vmem:[%s1859_s1 + $0x228] sm:$0xff]  }
  0x21   : > { %1360 = vmatpush3.bf16.msra.mxu1 %v1497_v27  ;;  %v1561_v19 = vld [vmem:[%s1859_s1 + $0x218] sm:$0xff]   ;;  %v1562_v20 = vld [vmem:[%s1859_s1 + $0x220] sm:$0xff]   ;;  %v1564_v23 = vld [vmem:[%s1859_s1 + $0x230] sm:$0xff]  }
  0x22   : > { %1361 = vmatprep.subr.bf16.mxu1 %v1500_v30  ;;  %v1566_v21 = vld [vmem:[%s1699_s13 + $0x20] ss:$36 sps:$4 sm:$0xff]   ;;  %v1565_v24 = vld [vmem:[%s1859_s1 + $0x238] sm:$0xff]   ;;  %v1567_v25 = vld [vmem:[%s1699_s13 + $0x68] ss:$36 sps:$4 sm:$0xff]   ;;  %s1206_s13 = sshll.u32 %s1863_s17, 2 }
  0x23   : > { %1334 = vmatpush3.bf16.msra.mxu0 %v1499_v29  ;;  %v1207_v27 = vld [vmem:[%s1860_s2] ss:$0 sm:$0xff]  ;;  %s175_s20 = scalar_lea.vmem %s1861_s3, %s1206_s13 }
  0x24   : > { %1375 = vmatprep.subr.bf16.mxu0 %v1505_v34 }
  0x25   : > { %1362 = vmatpush3.bf16.msra.mxu1 %v1504_v33 }
  0x26   : > { %906 = vmatmul.mubr.bf16.vlgmr.msra.gmra.mrb[0].mxu0 %v1501_v31  ;;  %1403 = vmatprep.subr.bf16.mxu1 %v1510_v38 }
  0x27   : > { %1376 = vmatpush3.bf16.msra.mxu0 %v1509_v37  ;;  %913 = vmatprep.mubr.bf16.mxu0 %v1529_v57 }
  0x28   : > { %955 = vmatmul.mubr.bf16.vlgmr.msra.gmra.mrb[0].mxu1 %v1506_v35  ;;  %1377 = vmatprep.subr.bf16.mxu0 %v1512_v40 }
  0x29   : > { %1404 = vmatpush3.bf16.msra.mxu1 %v1511_v39  ;;  %962 = vmatprep.mubr.bf16.mxu1 %v1534_v61 }
  0x2a   : > { %1405 = vmatprep.subr.bf16.mxu1 %v1514_v42 }
  0x2b   : > { %1378 = vmatpush3.bf16.msra.mxu0 %v1513_v41 }
  0x2c   : > { %1379 = vmatprep.subr.bf16.mxu0 %v1516_v44 }
  0x2d   : > { %1406 = vmatpush3.bf16.msra.mxu1 %v1515_v43 }
  0x2e   : > { %1407 = vmatprep.subr.bf16.mxu1 %v1518_v46  ;;  %914 = vmatmul.mubr.bf16.gmra.mrb[4].mxu0 %v1532_v59 }
  0x2f   : > { %1380 = vmatpush3.bf16.msra.mxu0 %v1517_v45  ;;  %1003 = vmatprep.mubr.bf16.mxu0 %v1547_v8 }
  0x30   : > { %1381 = vmatprep.subr.bf16.mxu0 %v1520_v48  ;;  %963 = vmatmul.mubr.bf16.gmra.mrb[4].mxu1 %v1537_v63 }
  0x31   : > { %1408 = vmatpush3.bf16.msra.mxu1 %v1519_v47  ;;  %1052 = vmatprep.mubr.bf16.mxu1 %v1552_v12 }
  0x32   : > { %1409 = vmatprep.subr.bf16.mxu1 %v1522_v50 }
  0x33   : > { %1382 = vmatpush3.bf16.msra.mxu0 %v1521_v49 }
  0x34   : > { %1383 = vmatprep.subr.bf16.mxu0 %v1524_v52 }
  0x35   : > { %1410 = vmatpush3.bf16.msra.mxu1 %v1523_v51 }
  0x36   : > { %1411 = vmatprep.subr.bf16.mxu1 %v1526_v54 }
  0x37   : > { %1384 = vmatpush3.bf16.msra.mxu0 %v1525_v53 }
  0x38   : > { %1385 = vmatprep.subr.bf16.mxu0 %v1528_v56 }
  0x39   : > { %1412 = vmatpush3.bf16.msra.mxu1 %v1527_v55 }
  0x3a   : > { %1413 = vmatprep.subr.bf16.mxu1 %v1533_v60 }
  0x3b   : > { %1386 = vmatpush3.bf16.msra.mxu0 %v1531_v58 }
  0x3c   : > { %1387 = vmatprep.subr.bf16.mxu0 %v1538_v0 }
  0x3d   : > { %1414 = vmatpush3.bf16.msra.mxu1 %v1536_v62 }
  0x3e   : > { %1415 = vmatprep.subr.bf16.mxu1 %v1540_v2 }
  0x3f   : > { %1388 = vmatpush3.bf16.msra.mxu0 %v1539_v1 }
  0x40   : > { %1389 = vmatprep.subr.bf16.mxu0 %v1542_v4 }
  0x41   : > { %1416 = vmatpush3.bf16.msra.mxu1 %v1541_v3 }
  0x42   : > { %1417 = vmatprep.subr.bf16.mxu1 %v1544_v6 }
  0x43   : > { %1390 = vmatpush3.bf16.msra.mxu0 %v1543_v5 }
  0x44   : > { %1441 = vmatprep.subr.bf16.mxu0 %v1549_v10 }
  0x45   : > { %1418 = vmatpush3.bf16.msra.mxu1 %v1548_v9 }
  0x46   : > { %1004 = vmatmul.mubr.bf16.vlgmr.msra.gmra.mrb[8].mxu0 %v1545_v7 }
  0x47   : > { %1442 = vmatpush3.bf16.msra.mxu0 %v1549_v10  ;;  %1011 = vmatprep.mubr.bf16.mxu0 %v1554_v14 }
  0x48   : > { %1053 = vmatmul.mubr.bf16.vlgmr.msra.gmra.mrb[8].mxu1 %v1550_v11  ;;  %1443 = vmatprep.subr.bf16.mxu0 %v1553_v13 }
  0x49   : > { %1060 = vmatprep.mubr.bf16.mxu1 %v1558_v17 }
  0x4b   : > { %1444 = vmatpush3.bf16.msra.mxu0 %v1553_v13 }
  0x4c   : > { %1445 = vmatprep.subr.bf16.mxu0 %v1557_v16 }
  0x4e   : > { %1012 = vmatmul.mubr.bf16.gmra.mrb[12].mxu0 %v1556_v15 }
  0x4f   : > { %1446 = vmatpush3.bf16.msra.mxu0 %v1557_v16  ;;  %1457 = vmatprep.mubr.bf16.mxu0 %v1566_v21 }
  0x50   : > { %1061 = vmatmul.mubr.bf16.gmra.mrb[12].mxu1 %v1560_v18  ;;  %1447 = vmatprep.subr.bf16.mxu0 %v1561_v19 }
  0x53   : > { %1448 = vmatpush3.bf16.msra.mxu0 %v1561_v19 }
  0x54   : > { %1449 = vmatprep.subr.bf16.mxu0 %v1562_v20 }
  0x57   : > { %1450 = vmatpush3.bf16.msra.mxu0 %v1562_v20 }
  0x58   : > { %1451 = vmatprep.subr.bf16.mxu0 %v1563_v22 }
  0x5b   : > { %1452 = vmatpush3.bf16.msra.mxu0 %v1563_v22 }
  0x5c   : > { %1453 = vmatprep.subr.bf16.mxu0 %v1564_v23 }
  0x5f   : > { %1454 = vmatpush3.bf16.msra.mxu0 %v1564_v23 }
  0x60   : > { %1455 = vmatprep.subr.bf16.mxu0 %v1565_v24 }
  0x63   : > { %1456 = vmatpush3.bf16.msra.mxu0 %v1565_v24 }
  0x66   : > { %1458 = vmatmul.mubr.bf16.vlgmr.msra.gmra.mrb[16].mxu0 %v1567_v25 }
  0xf9   : > { %v1335_v26 = vpop.f32.mrb[0].mxu0 }
  0xfa   : > { %v1336_v28 = vpop.f32.mrb[1].mxu0 }
  0xfb   : > { %v1337_v29 = vadd.f32 %v1336_v28, %v1335_v26  ;;  %v1338_v30 = vpop.f32.mrb[2].mxu0  ;;  %v1363_v31 = vpop.f32.mrb[0].mxu1 }
  0xfc   : > { %v1339_v32 = vpop.f32.mrb[3].mxu0  ;;  %v1364_v35 = vpop.f32.mrb[1].mxu1 }
  0xfd   : > { %v908_v33 = vadd.f32 %v1337_v29, %v1207_v27  ;;  %v1340_v34 = vadd.f32 %v1339_v32, %v1338_v30  ;;  %v1365_v36 = vadd.f32 %v1364_v35, %v1363_v31  ;;  %v1366_v37 = vpop.f32.mrb[2].mxu1 }
  0xfe   : > { %v1367_v39 = vpop.f32.mrb[3].mxu1 }
  0xff   : > { %v911_v38 = vadd.f32 %v1340_v34, %v1207_v27  ;;  %v957_v40 = vadd.f32 %v1365_v36, %v908_v33  ;;  %v1368_v41 = vadd.f32 %v1367_v39, %v1366_v37 }
 0x101   : > { %v960_v42 = vadd.f32 %v1368_v41, %v911_v38  ;;  %v1341_v43 = vpop.f32.mrb[4].mxu0 }
 0x102   : > { %v1342_v44 = vpop.f32.mrb[5].mxu0 }
 0x103   : > { %v1343_v45 = vadd.f32 %v1342_v44, %v1341_v43  ;;  %v1344_v46 = vpop.f32.mrb[6].mxu0  ;;  %v1369_v47 = vpop.f32.mrb[4].mxu1 }
 0x104   : > { %v1345_v48 = vpop.f32.mrb[7].mxu0  ;;  %v1370_v51 = vpop.f32.mrb[5].mxu1 }
 0x105   : > { %v916_v49 = vadd.f32 %v1343_v45, %v1207_v27  ;;  %v1346_v50 = vadd.f32 %v1345_v48, %v1344_v46  ;;  %v1371_v52 = vadd.f32 %v1370_v51, %v1369_v47  ;;  %v1372_v53 = vpop.f32.mrb[6].mxu1 }
 0x106   : > { %v1373_v55 = vpop.f32.mrb[7].mxu1 }
 0x107   : > { %v919_v54 = vadd.f32 %v1346_v50, %v1207_v27  ;;  %v965_v56 = vadd.f32 %v1371_v52, %v916_v49  ;;  %v1374_v57 = vadd.f32 %v1373_v55, %v1372_v53 }
 0x109   : > { %v968_v58 = vadd.f32 %v1374_v57, %v919_v54 }
 0x119   : > { %v1391_v59 = vpop.f32.mrb[8].mxu0 }
 0x11a   : > { %v1392_v60 = vpop.f32.mrb[9].mxu0 }
 0x11b   : > { %v1393_v61 = vadd.f32 %v1392_v60, %v1391_v59  ;;  %v1394_v62 = vpop.f32.mrb[10].mxu0  ;;  %v1419_v63 = vpop.f32.mrb[8].mxu1 }
 0x11c   : > { %v1395_v0 = vpop.f32.mrb[11].mxu0  ;;  %v1420_v3 = vpop.f32.mrb[9].mxu1 }
 0x11d   : > { %v1006_v1 = vadd.f32 %v1393_v61, %v957_v40  ;;  %v1396_v2 = vadd.f32 %v1395_v0, %v1394_v62  ;;  %v1421_v4 = vadd.f32 %v1420_v3, %v1419_v63  ;;  %v1422_v5 = vpop.f32.mrb[10].mxu1 }
 0x11e   : > { %v1423_v7 = vpop.f32.mrb[11].mxu1 }
 0x11f   : > { %v1009_v6 = vadd.f32 %v1396_v2, %v960_v42  ;;  %v1424_v8 = vadd.f32 %v1423_v7, %v1422_v5  ;;  %v1055_v9 = vadd.f32 %v1421_v4, %v1006_v1 }
 0x121   : > { %v1397_v10 = vpop.f32.mrb[12].mxu0  ;;  %v1058_v12 = vadd.f32 %v1424_v8, %v1009_v6 }
 0x122   : > { %v1398_v11 = vpop.f32.mrb[13].mxu0 }
 0x123   : > { %v1399_v13 = vadd.f32 %v1398_v11, %v1397_v10  ;;  %v1400_v14 = vpop.f32.mrb[14].mxu0  ;;  %v1425_v15 = vpop.f32.mrb[12].mxu1 }
 0x124   : > { %v1401_v16 = vpop.f32.mrb[15].mxu0  ;;  %v1426_v19 = vpop.f32.mrb[13].mxu1 }
 0x125   : > { %v1014_v17 = vadd.f32 %v1399_v13, %v965_v56  ;;  %v1402_v18 = vadd.f32 %v1401_v16, %v1400_v14  ;;  %v1427_v20 = vadd.f32 %v1426_v19, %v1425_v15  ;;  %v1428_v21 = vpop.f32.mrb[14].mxu1 }
 0x126   : > { %v1429_v23 = vpop.f32.mrb[15].mxu1 }
 0x127   : > { %v1017_v22 = vadd.f32 %v1402_v18, %v968_v58  ;;  %v1430_v24 = vadd.f32 %v1429_v23, %v1428_v21  ;;  %v1063_v25 = vadd.f32 %v1427_v20, %v1014_v17 }
 0x129   : > { %v1066_v26 = vadd.f32 %v1430_v24, %v1017_v22 }
 0x139   : > { %v1459_v27 = vpop.f32.mrb[16].mxu0 }
 0x13a   : > { %v1112_v28 = vadd.f32 %v1459_v27, %v1063_v25  ;;  %v1103_v29 = vpop.f32.mrb[17].mxu0 }
 0x13b   : > { %v1104_v30 = vadd.f32 %v1103_v29, %v1055_v9  ;;  %v1460_v31 = vpop.f32.mrb[18].mxu0 }
 0x13c   : > { %v1115_v32 = vadd.f32 %v1460_v31, %v1066_v26  ;;  %v1106_v33 = vpop.f32.mrb[19].mxu0  ;;  %v1120_v35 = vmax.f32 %v1112_v28, 0.0 }
 0x13d   : > { %v1107_v34 = vadd.f32 %v1106_v33, %v1058_v12  ;;  %v1118_v37 = vmax.f32 %v1104_v30, 0.0 }
 0x13e   : > { %v1121_v36 = vmax.f32 %v1115_v32, 0.0 }
 0x13f   : > { %v1119_v38 = vmax.f32 %v1107_v34, 0.0 }
 0x140   : > { %v1316_v39 = vpack.c.bf16 %v1121_v36, %v1120_v35 }
 0x141   : > { %v1311_v40 = vpack.c.bf16 %v1119_v38, %v1118_v37 }
 0x142   : > { %1318 = vst [vmem:[%s175_s20 + $0x8] sm:$0xff] %v1316_v39  }
 0x143   : > { %1312 = vst [vmem:[%s175_s20] sm:$0xff] %v1311_v40  }
 0x144 PF: > { %s13_s12 = sadd.s32 1, %s1574_s12  }
 0x145   : > { %p10_p4 = scmp.ge.s32.totalorder %s13_s12, 4  }
 0x147   :  { %12 = sbr.rel (!%p10_p4) target bundleno = 1 (0x1), region = 62 }

// kernel: wavenet_forward.14
= control target key start
LH: loop header
LB: loop body
LE: loop exit
PB: predicated region body
PF: predicated region fallthrough
CT: control target
= control target key end

     0   :  { %s612_s12 = smov 0   ;;  %s695_s0 = inlined_call_operand.vmem [shape: bf16[128,144], index: 0, kind: input, shape index: {}]   ;;  %s696_s1 = inlined_call_operand.vmem [shape: bf16[144,16], index: 1, kind: input, shape index: {}]   ;;  %s697_s2 = inlined_call_operand.vmem [shape: f32[1,16], index: 2, kind: input, shape index: {}]   ;;  %s698_s3 = inlined_call_operand.vmem [shape: bf16[128,16], index: 3, kind: output, shape index: {}]  }
   0x1 LB: > { %s484_s13 = sadd.s32 4294967295, %s589_s12   ;;  %p488_p0 = scmp.ge.s32.totalorder %s589_s12, 1  ;;  %s589_s12 = sphi %s612_s12, %s13_s12  }
   0x2   : > { %p139_p1 = scmp.lt.s32.totalorder %s589_s12, 3 }
   0x4   : > { %p140_p2 = pnand %p488_p0, %p139_p1 }
   0x5   : > { %v562_v0 = vld [vmem:[%s696_s1] sm:$0xff] (!%p140_p2)   ;;  %v591_v1 = vmov (!%p140_p2), 0   ;;  %s489_s16 = sshll.u32 (!%p140_p2), %s484_s13, 3  ;;  %v563_v2 = vld [vmem:[%s696_s1 + $0x8] sm:$0xff] (!%p140_p2)   ;;  %v564_v3 = vld [vmem:[%s696_s1 + $0x10] sm:$0xff] (!%p140_p2)   ;;  %vm301_vm0 = vcmask (!%p140_p2), 130048  }
   0x6   : > { %143 = sbr.rel (%p140_p2) target bundleno = 271 (0x10f), region = 32  ;;  %314 = vmatprep.subr.bf16.mxu0 (!%p140_p2), %v591_v1  ;;  %535 = vmatprep.subr.bf16.mxu1 (!%p140_p2), %v591_v1  ;;  %p165_p3 = scmp.lt.s32.totalorder (!%p140_p2), %s489_s16, 15  ;;  %v565_v4 = vld [vmem:[%s696_s1 + $0x18] sm:$0xff] (!%p140_p2)   ;;  %v566_v7 = vld [vmem:[%s696_s1 + $0x20] sm:$0xff] (!%p140_p2)   ;;  %v567_v8 = vld [vmem:[%s696_s1 + $0x28] sm:$0xff] (!%p140_p2)   ;;  %vm419_vm1 = vcmask (!%p140_p2), 125952  }
   0x7   : > { %315 = vmatpush1.bf16.msra.mxu0 (!%p140_p2), %v562_v0  ;;  %544 = vmatpush1.bf16.msra.mxu1 (!%p140_p2), %v562_v0  ;;  %v568_v9 = vld [vmem:[%s696_s1 + $0x30] sm:$0xff] (!%p140_p2)   ;;  %v569_v10 = vld [vmem:[%s696_s1 + $0x38] sm:$0xff] (!%p140_p2)   ;;  %v570_v11 = vld [vmem:[%s696_s1 + $0x40] sm:$0xff] (!%p140_p2)  }
   0x8   : > { %316 = vmatprep.subr.bf16.mxu0 (!%p140_p2), %v591_v1  ;;  %536 = vmatprep.subr.bf16.mxu1 (!%p140_p2), %v591_v1  ;;  %v494_v18 = vld [vmem:[%s697_s2] ss:$0 sm:$0xff] (!%p140_p2) }
   0xb   : > { %317 = vmatpush1.bf16.msra.mxu0 (!%p140_p2), %v563_v2  ;;  %545 = vmatpush1.bf16.msra.mxu1 (!%p140_p2), %v563_v2 }
   0xc   : > { %318 = vmatprep.subr.bf16.mxu0 (!%p140_p2), %v591_v1  ;;  %537 = vmatprep.subr.bf16.mxu1 (!%p140_p2), %v591_v1 }
   0xd   : > { %s700_s16 = smov (!%p165_p3, %s489_s16), 15 }
   0xe   : > { %s526_s21 = sshll.u32 %s700_s16, 3  ;;  %s493_s13 = sshll.u32 %s700_s16, 2 }
   0xf   : > { %s635_s24 = scalar_lea.vmem %s695_s0, %s526_s21  ;;  %319 = vmatpush1.bf16.msra.mxu0 %v564_v3  ;;  %546 = vmatpush1.bf16.msra.mxu1 %v564_v3  ;;  %s674_s17 = scalar_lea.vmem %s698_s3, %s493_s13 }
  0x10   : > { %v573_v5 = vld [vmem:[%s635_s24 + $0x4] ss:$8 sps:$4 sm:$0xff]   ;;  %320 = vmatprep.subr.bf16.mxu0 %v591_v1  ;;  %538 = vmatprep.subr.bf16.mxu1 %v591_v1  ;;  %v571_v12 = vld [vmem:[%s635_s24] ss:$8 sps:$4 sm:$0xff]   ;;  %v577_v14 = vld [vmem:[%s635_s24 + $0x14] ss:$8 sps:$4 sm:$0xff]  }
  0x11   : > { %v576_v6 = vld [vmem:[%s635_s24 + $0x24] ss:$8 sps:$4 sm:$0xff]   ;;  %512 = vmatprep.mubr.msk.bf16.mxu0 %vm301_vm0, %v573_v5  ;;  %v574_v13 = vld [vmem:[%s635_s24 + $0x20] ss:$8 sps:$4 sm:$0xff]   ;;  %v579_v15 = vld [vmem:[%s635_s24 + $0x34] ss:$8 sps:$4 sm:$0xff]  }
  0x12   : > { %514 = vmatprep.mubr.msk.bf16.mxu1 %vm301_vm0, %v576_v6  ;;  %v581_v16 = vld [vmem:[%s635_s24 + $0x10] ss:$8 sps:$4 sm:$0xff]  }
  0x13   : > { %321 = vmatpush1.bf16.msra.mxu0 %v565_v4  ;;  %547 = vmatpush1.bf16.msra.mxu1 %v565_v4  ;;  %v582_v17 = vld [vmem:[%s635_s24 + $0x30] ss:$8 sps:$4 sm:$0xff]  }
  0x14   : > { %322 = vmatprep.subr.bf16.mxu0 %v591_v1  ;;  %539 = vmatprep.subr.bf16.mxu1 %v591_v1 }
  0x17   : > { %323 = vmatpush1.bf16.msra.mxu0 %v566_v7  ;;  %548 = vmatpush1.bf16.msra.mxu1 %v566_v7 }
  0x18   : > { %324 = vmatprep.subr.bf16.mxu0 %v591_v1  ;;  %540 = vmatprep.subr.bf16.mxu1 %v591_v1 }
  0x1b   : > { %325 = vmatpush1.bf16.msra.mxu0 %v567_v8  ;;  %549 = vmatpush1.bf16.msra.mxu1 %v567_v8 }
  0x1c   : > { %326 = vmatprep.subr.bf16.mxu0 %v591_v1  ;;  %541 = vmatprep.subr.bf16.mxu1 %v591_v1 }
  0x1f   : > { %327 = vmatpush1.bf16.msra.mxu0 %v568_v9  ;;  %550 = vmatpush1.bf16.msra.mxu1 %v568_v9 }
  0x20   : > { %328 = vmatprep.subr.bf16.mxu0 %v591_v1  ;;  %542 = vmatprep.subr.bf16.mxu1 %v591_v1 }
  0x23   : > { %329 = vmatpush1.bf16.msra.mxu0 %v569_v10  ;;  %551 = vmatpush1.bf16.msra.mxu1 %v569_v10 }
  0x24   : > { %330 = vmatprep.subr.bf16.mxu0 %v591_v1  ;;  %543 = vmatprep.subr.bf16.mxu1 %v591_v1 }
  0x27   : > { %331 = vmatpush1.bf16.msra.mxu0 %v570_v11  ;;  %552 = vmatpush1.bf16.msra.mxu1 %v570_v11 }
  0x2a   : > { %347 = vmatmul.mubr.bf16.vlgmr.msra.gmra.mrb[0].mxu0 %v571_v12  ;;  %363 = vmatmul.mubr.bf16.vlgmr.msra.gmra.mrb[0].mxu1 %v574_v13 }
  0x2b   : > { %513 = vmatprep.mubr.msk.bf16.mxu0 %vm301_vm0, %v577_v14  ;;  %515 = vmatprep.mubr.msk.bf16.mxu1 %vm301_vm0, %v579_v15 }
  0x32   : > { %355 = vmatmul.mubr.bf16.gmra.mrb[4].mxu0 %v581_v16  ;;  %371 = vmatmul.mubr.bf16.gmra.mrb[4].mxu1 %v582_v17 }
  0xfd   : > { %v348_v19 = vpop.f32.mrb[0].mxu0  ;;  %v364_v20 = vpop.f32.mrb[0].mxu1 }
  0xfe   : > { %v349_v21 = vadd.f32 %v494_v18, %v348_v19  ;;  %v365_v22 = vadd.f32 %v494_v18, %v364_v20  ;;  %v350_v23 = vpop.f32.mrb[1].mxu0  ;;  %v366_v24 = vpop.f32.mrb[1].mxu1 }
  0xff   : > { %v351_v25 = vpop.f32.mrb[2].mxu0  ;;  %v367_v26 = vpop.f32.mrb[2].mxu1 }
 0x100   : > { %v379_v27 = vmax.f32 %v349_v21, 0.0  ;;  %v383_v28 = vmax.f32 %v365_v22, 0.0  ;;  %v352_v29 = vadd.f32 %v494_v18, %v351_v25  ;;  %v368_v30 = vadd.f32 %v494_v18, %v367_v26  ;;  %v353_v31 = vpop.f32.mrb[3].mxu0  ;;  %v369_v32 = vpop.f32.mrb[3].mxu1 }
 0x102   : > { %v527_v33 = vpack.c.bf16 %v379_v27, %v379_v27  ;;  %v531_v34 = vpack.c.bf16 %v383_v28, %v383_v28  ;;  %v380_v35 = vmax.f32 %v352_v29, 0.0  ;;  %v384_v36 = vmax.f32 %v368_v30, 0.0 }
 0x104   : > { %420 = vst.msk [vmem:[%s674_s17] sm:$0xf] %vm419_vm1, %v527_v33  ;;  %424 = vst.msk [vmem:[%s674_s17 + $0x10] sm:$0xf] %vm419_vm1, %v531_v34  ;;  %v528_v37 = vpack.c.bf16 %v380_v35, %v380_v35  ;;  %v532_v38 = vpack.c.bf16 %v384_v36, %v384_v36 }
 0x105   : > { %v356_v39 = vpop.f32.mrb[4].mxu0  ;;  %v372_v40 = vpop.f32.mrb[4].mxu1 }
 0x106   : > { %421 = vst.msk [vmem:[%s674_s17 + $0x4] sm:$0xf] %vm419_vm1, %v528_v37  ;;  %425 = vst.msk [vmem:[%s674_s17 + $0x14] sm:$0xf] %vm419_vm1, %v532_v38  ;;  %v357_v41 = vadd.f32 %v494_v18, %v356_v39  ;;  %v373_v42 = vadd.f32 %v494_v18, %v372_v40  ;;  %v358_v43 = vpop.f32.mrb[5].mxu0  ;;  %v374_v44 = vpop.f32.mrb[5].mxu1 }
 0x107   : > { %v359_v45 = vpop.f32.mrb[6].mxu0  ;;  %v375_v46 = vpop.f32.mrb[6].mxu1 }
 0x108   : > { %v381_v47 = vmax.f32 %v357_v41, 0.0  ;;  %v385_v48 = vmax.f32 %v373_v42, 0.0  ;;  %v360_v49 = vadd.f32 %v494_v18, %v359_v45  ;;  %v376_v50 = vadd.f32 %v494_v18, %v375_v46  ;;  %v361_v51 = vpop.f32.mrb[7].mxu0  ;;  %v377_v52 = vpop.f32.mrb[7].mxu1 }
 0x10a   : > { %v529_v53 = vpack.c.bf16 %v381_v47, %v381_v47  ;;  %v533_v54 = vpack.c.bf16 %v385_v48, %v385_v48  ;;  %v382_v55 = vmax.f32 %v360_v49, 0.0  ;;  %v386_v56 = vmax.f32 %v376_v50, 0.0 }
 0x10c   : > { %422 = vst.msk [vmem:[%s674_s17 + $0x8] sm:$0xf] %vm419_vm1, %v529_v53  ;;  %426 = vst.msk [vmem:[%s674_s17 + $0x18] sm:$0xf] %vm419_vm1, %v533_v54  ;;  %v530_v57 = vpack.c.bf16 %v382_v55, %v382_v55  ;;  %v534_v58 = vpack.c.bf16 %v386_v56, %v386_v56 }
 0x10e   : > { %423 = vst.msk [vmem:[%s674_s17 + $0xc] sm:$0xf] %vm419_vm1, %v530_v57  ;;  %427 = vst.msk [vmem:[%s674_s17 + $0x1c] sm:$0xf] %vm419_vm1, %v534_v58 }
 0x10f PF: > { %s13_s12 = sadd.s32 1, %s589_s12  }
 0x110   : > { %p10_p4 = scmp.ge.s32.totalorder %s13_s12, 4  }
 0x112   :  { %12 = sbr.rel (!%p10_p4) target bundleno = 1 (0x1), region = 62 }

// kernel: wavenet_forward.15
= control target key start
LH: loop header
LB: loop body
LE: loop exit
PB: predicated region body
PF: predicated region fallthrough
CT: control target
= control target key end

     0   :  { %s462_s12 = smov 0   ;;  %s513_s0 = inlined_call_operand.vmem [shape: bf16[32,144], index: 0, kind: input, shape index: {}]   ;;  %s514_s1 = inlined_call_operand.vmem [shape: bf16[144,16], index: 1, kind: input, shape index: {}]   ;;  %s515_s2 = inlined_call_operand.vmem [shape: f32[1,16], index: 2, kind: input, shape index: {}]   ;;  %s516_s3 = inlined_call_operand.vmem [shape: bf16[32,16], index: 3, kind: output, shape index: {}]  }
   0x1 LB: > { %s382_s13 = sadd.s32 4294967295, %s439_s12   ;;  %p386_p0 = scmp.ge.s32.totalorder %s439_s12, 1  ;;  %s439_s12 = sphi %s462_s12, %s13_s12  }
   0x2   : > { %p139_p1 = scmp.lt.s32.totalorder %s439_s12, 3 }
   0x4   : > { %p140_p2 = pnand %p386_p0, %p139_p1 }
   0x5   : > { %v421_v0 = vld [vmem:[%s514_s1] sm:$0xff] (!%p140_p2)   ;;  %v441_v1 = vmov (!%p140_p2), 0   ;;  %s387_s16 = sshll.u32 (!%p140_p2), %s382_s13, 1  ;;  %v422_v2 = vld [vmem:[%s514_s1 + $0x8] sm:$0xff] (!%p140_p2)   ;;  %v423_v3 = vld [vmem:[%s514_s1 + $0x10] sm:$0xff] (!%p140_p2)   ;;  %vm268_vm0 = vcmask (!%p140_p2), 130048  }
   0x6   : > { %143 = sbr.rel (%p140_p2) target bundleno = 263 (0x107), region = 32  ;;  %272 = vmatprep.subr.bf16.mxu0 (!%p140_p2), %v441_v1  ;;  %p165_p3 = scmp.lt.s32.totalorder (!%p140_p2), %s387_s16, 3  ;;  %v424_v4 = vld [vmem:[%s514_s1 + $0x18] sm:$0xff] (!%p140_p2)   ;;  %v425_v6 = vld [vmem:[%s514_s1 + $0x20] sm:$0xff] (!%p140_p2)   ;;  %v426_v7 = vld [vmem:[%s514_s1 + $0x28] sm:$0xff] (!%p140_p2)   ;;  %vm323_vm1 = vcmask (!%p140_p2), 125952  }
   0x7   : > { %273 = vmatpush1.bf16.msra.mxu0 (!%p140_p2), %v421_v0  ;;  %v427_v8 = vld [vmem:[%s514_s1 + $0x30] sm:$0xff] (!%p140_p2)   ;;  %v428_v9 = vld [vmem:[%s514_s1 + $0x38] sm:$0xff] (!%p140_p2)   ;;  %v429_v10 = vld [vmem:[%s514_s1 + $0x40] sm:$0xff] (!%p140_p2)  }
   0x8   : > { %274 = vmatprep.subr.bf16.mxu0 (!%p140_p2), %v441_v1  ;;  %v392_v12 = vld [vmem:[%s515_s2] ss:$0 sm:$0xff] (!%p140_p2) }
   0xb   : > { %275 = vmatpush1.bf16.msra.mxu0 (!%p140_p2), %v422_v2 }
   0xc   : > { %276 = vmatprep.subr.bf16.mxu0 (!%p140_p2), %v441_v1 }
   0xd   : > { %s518_s16 = smov (!%p165_p3, %s387_s16), 3 }
   0xe   : > { %s409_s21 = sshll.u32 %s518_s16, 3  ;;  %s391_s13 = sshll.u32 %s518_s16, 2 }
   0xf   : > { %s169_s24 = scalar_lea.vmem %s513_s0, %s409_s21  ;;  %277 = vmatpush1.bf16.msra.mxu0 %v423_v3  ;;  %s175_s17 = scalar_lea.vmem %s516_s3, %s391_s13 }
  0x10   : > { %v432_v5 = vld [vmem:[%s169_s24 + $0x4] ss:$8 sps:$4 sm:$0xff]   ;;  %278 = vmatprep.subr.bf16.mxu0 %v441_v1  ;;  %v430_v11 = vld [vmem:[%s169_s24] ss:$8 sps:$4 sm:$0xff]  }
  0x11   : > { %404 = vmatprep.mubr.msk.bf16.mxu0 %vm268_vm0, %v432_v5 }
  0x13   : > { %279 = vmatpush1.bf16.msra.mxu0 %v424_v4 }
  0x14   : > { %280 = vmatprep.subr.bf16.mxu0 %v441_v1 }
  0x17   : > { %281 = vmatpush1.bf16.msra.mxu0 %v425_v6 }
  0x18   : > { %282 = vmatprep.subr.bf16.mxu0 %v441_v1 }
  0x1b   : > { %283 = vmatpush1.bf16.msra.mxu0 %v426_v7 }
  0x1c   : > { %284 = vmatprep.subr.bf16.mxu0 %v441_v1 }
  0x1f   : > { %285 = vmatpush1.bf16.msra.mxu0 %v427_v8 }
  0x20   : > { %286 = vmatprep.subr.bf16.mxu0 %v441_v1 }
  0x23   : > { %287 = vmatpush1.bf16.msra.mxu0 %v428_v9 }
  0x24   : > { %288 = vmatprep.subr.bf16.mxu0 %v441_v1 }
  0x27   : > { %289 = vmatpush1.bf16.msra.mxu0 %v429_v10 }
  0x2a   : > { %305 = vmatmul.mubr.bf16.vlgmr.msra.gmra.mrb[0].mxu0 %v430_v11 }
  0xfd   : > { %v306_v13 = vpop.f32.mrb[0].mxu0 }
  0xfe   : > { %v307_v14 = vadd.f32 %v392_v12, %v306_v13  ;;  %v308_v15 = vpop.f32.mrb[1].mxu0 }
  0xff   : > { %v309_v16 = vpop.f32.mrb[2].mxu0 }
 0x100   : > { %v313_v17 = vmax.f32 %v307_v14, 0.0  ;;  %v310_v18 = vadd.f32 %v392_v12, %v309_v16  ;;  %v311_v19 = vpop.f32.mrb[3].mxu0 }
 0x102   : > { %v410_v20 = vpack.c.bf16 %v313_v17, %v313_v17  ;;  %v314_v21 = vmax.f32 %v310_v18, 0.0 }
 0x104   : > { %324 = vst.msk [vmem:[%s175_s17] sm:$0xf] %vm323_vm1, %v410_v20  ;;  %v411_v22 = vpack.c.bf16 %v314_v21, %v314_v21 }
 0x106   : > { %325 = vst.msk [vmem:[%s175_s17 + $0x4] sm:$0xf] %vm323_vm1, %v411_v22 }
 0x107 PF: > { %s13_s12 = sadd.s32 1, %s439_s12  }
 0x108   : > { %p10_p4 = scmp.ge.s32.totalorder %s13_s12, 4  }
 0x10a   :  { %12 = sbr.rel (!%p10_p4) target bundleno = 1 (0x1), region = 62 }

// kernel: wavenet_forward.16
= control target key start
LH: loop header
LB: loop body
LE: loop exit
PB: predicated region body
PF: predicated region fallthrough
CT: control target
= control target key end

     0   :  { %v178_v0 = vmov 0   ;;  %vm101_vm0 = vcmask 130048   ;;  %vm147_vm1 = vcmask 125952   ;;  %s235_s1 = inlined_call_operand.vmem [shape: bf16[144,16], index: 1, kind: input, shape index: {}]   ;;  %s236_s0 = inlined_call_operand.vmem [shape: bf16[8,144], index: 0, kind: input, shape index: {}]   ;;  %s237_s2 = inlined_call_operand.vmem [shape: f32[1,16], index: 2, kind: input, shape index: {}]   ;;  %s238_s3 = inlined_call_operand.vmem [shape: bf16[8,16], index: 3, kind: output, shape index: {}]  }
   0x1   :  { %105 = vmatprep.subr.bf16.mxu0 %v178_v0  ;;  %v167_v1 = vld [vmem:[%s235_s1] sm:$0xff]   ;;  %v168_v2 = vld [vmem:[%s235_s1 + $0x8] sm:$0xff]   ;;  %v169_v3 = vld [vmem:[%s235_s1 + $0x10] sm:$0xff]  }
   0x2   :  { %106 = vmatpush1.bf16.msra.mxu0 %v167_v1  ;;  %v15_v4 = vld [vmem:[%s236_s0] sm:$0xff]  ;;  %v170_v5 = vld [vmem:[%s235_s1 + $0x18] sm:$0xff]   ;;  %v172_v8 = vld [vmem:[%s235_s1 + $0x28] sm:$0xff]  }
   0x3   :  { %107 = vmatprep.subr.bf16.mxu0 %v178_v0  ;;  %v155_v6 = vcombine.high %v15_v4, %v15_v4  ;;  %v171_v7 = vld [vmem:[%s235_s1 + $0x20] sm:$0xff]   ;;  %v173_v9 = vld [vmem:[%s235_s1 + $0x30] sm:$0xff]   ;;  %v174_v10 = vld [vmem:[%s235_s1 + $0x38] sm:$0xff]   ;;  %v154_v12 = vcombine.low %v15_v4, %v15_v4 }
   0x4   :  { %v175_v11 = vld [vmem:[%s235_s1 + $0x40] sm:$0xff]  }
   0x5   :  { %165 = vmatprep.mubr.msk.bf16.mxu0 %vm101_vm0, %v155_v6  ;;  %v153_v13 = vld [vmem:[%s237_s2] ss:$0 sm:$0xff] }
   0x6   :  { %108 = vmatpush1.bf16.msra.mxu0 %v168_v2 }
   0x7   :  { %109 = vmatprep.subr.bf16.mxu0 %v178_v0 }
   0xa   :  { %110 = vmatpush1.bf16.msra.mxu0 %v169_v3 }
   0xb   :  { %111 = vmatprep.subr.bf16.mxu0 %v178_v0 }
   0xe   :  { %112 = vmatpush1.bf16.msra.mxu0 %v170_v5 }
   0xf   :  { %113 = vmatprep.subr.bf16.mxu0 %v178_v0 }
  0x12   :  { %114 = vmatpush1.bf16.msra.mxu0 %v171_v7 }
  0x13   :  { %115 = vmatprep.subr.bf16.mxu0 %v178_v0 }
  0x16   :  { %116 = vmatpush1.bf16.msra.mxu0 %v172_v8 }
  0x17   :  { %117 = vmatprep.subr.bf16.mxu0 %v178_v0 }
  0x1a   :  { %118 = vmatpush1.bf16.msra.mxu0 %v173_v9 }
  0x1b   :  { %119 = vmatprep.subr.bf16.mxu0 %v178_v0 }
  0x1e   :  { %120 = vmatpush1.bf16.msra.mxu0 %v174_v10 }
  0x1f   :  { %121 = vmatprep.subr.bf16.mxu0 %v178_v0 }
  0x22   :  { %122 = vmatpush1.bf16.msra.mxu0 %v175_v11 }
  0x25   :  { %138 = vmatmul.mubr.bf16.vlgmr.msra.gmra.mrb[0].mxu0 %v154_v12 }
  0xf8   :  { %v139_v14 = vpop.f32.mrb[0].mxu0 }
  0xf9   :  { %v140_v15 = vadd.f32 %v153_v13, %v139_v14  ;;  %v141_v16 = vpop.f32.mrb[1].mxu0 }
  0xfa   :  { %v142_v17 = vpop.f32.mrb[2].mxu0 }
  0xfb   :  { %v145_v18 = vmax.f32 %v140_v15, 0.0  ;;  %v143_v19 = vpop.f32.mrb[3].mxu0 }
  0xfd   :  { %v146_v20 = vpack.c.bf16 %v145_v18, %v145_v18 }
  0xff   :  { %148 = vst.msk [vmem:[%s238_s3] sm:$0xf] %vm147_vm1, %v146_v20 }

// kernel: wavenet_forward.17
= control target key start
LH: loop header
LB: loop body
LE: loop exit
PB: predicated region body
PF: predicated region fallthrough
CT: control target
= control target key end

     0   :  { %v353_v1 = vmov 0   ;;  %v66_v4 = vlaneseq  ;;  %v354_v7 = vmov 1966171168   ;;  %s459_s0 = inlined_call_operand.vmem [shape: bf16[2,144], index: 0, kind: input, shape index: {}]   ;;  %s460_s1 = inlined_call_operand.vmem [shape: f32[2,3], index: 1, kind: input, shape index: {}]   ;;  %s461_s2 = inlined_call_operand.vmem [shape: bf16[144,16], index: 2, kind: input, shape index: {}]   ;;  %s462_s3 = inlined_call_operand.vmem [shape: f32[1,16], index: 3, kind: input, shape index: {}]   ;;  %s463_s4 = inlined_call_operand.vmem [shape: bf16[16,18], index: 4, kind: input, shape index: {}]   ;;  %s464_s5 = inlined_call_operand.vmem [shape: f32[3,18], index: 5, kind: input, shape index: {}]   ;;  %s465_s6 = inlined_call_operand.vmem [shape: f32[1,18], index: 6, kind: input, shape index: {}]   ;;  %s466_s7 = inlined_call_operand.hbm [shape: f32[2,18], index: 7, kind: output, shape index: {}]  }
   0x1   :  { %v319_v0 = vld [vmem:[%s461_s2] sm:$0xff]   ;;  %136 = vmatprep.subr.bf16.mxu0 %v353_v1  ;;  %315 = vset.pattern.permute.xlu0 %v353_v1  ;;  %v320_v2 = vld [vmem:[%s461_s2 + $0x8] sm:$0xff]   ;;  %v321_v3 = vld [vmem:[%s461_s2 + $0x10] sm:$0xff]   ;;  %v64_v8 = vunpack.c.l.s4 %v354_v7 }
   0x2   :  { %137 = vmatpush1.bf16.msra.mxu0 %v319_v0  ;;  %v286_v5 = vld.sshfl [vmem:[%s459_s0] sm:$0x11 pattern:$0x75316420]  ;;  %v322_v6 = vld [vmem:[%s461_s2 + $0x18] sm:$0xff]   ;;  %v67_v9 = vshrl.u32 %v66_v4, 7 }
   0x3   :  { %138 = vmatprep.subr.bf16.mxu0 %v353_v1 }
   0x6   :  { %139 = vmatpush1.bf16.msra.mxu0 %v320_v2 }
   0x7   :  { %140 = vmatprep.subr.bf16.mxu0 %v353_v1 }
   0xa   :  { %141 = vmatpush1.bf16.msra.mxu0 %v321_v3 }
   0xb   :  { %142 = vmatprep.subr.bf16.mxu0 %v353_v1 }
   0xc   :  { %12 = vsyncpa [#allocation3], 0  ;;  %v62_v10 = vcombine.high %v286_v5, %v286_v5  ;;  %v65_v11 = vunpack.c.0.s8 %v64_v8  ;;  %v323_v12 = vld [vmem:[%s461_s2 + $0x20] sm:$0xff]   ;;  %vm132_vm0 = vcmask 130048   ;;  %v324_v15 = vld [vmem:[%s461_s2 + $0x28] sm:$0xff]   ;;  %v355_v21 = vmov 0.0  }
   0xd   :  { %v325_v16 = vld [vmem:[%s461_s2 + $0x30] sm:$0xff]   ;;  %v326_v17 = vld [vmem:[%s461_s2 + $0x38] sm:$0xff]   ;;  %v327_v18 = vld [vmem:[%s461_s2 + $0x40] sm:$0xff]   ;;  %302 = vmatprep.subr.bf16.mxu1 %v355_v21  ;;  %vm356_vm1 = vmmov 0   ;;  %v357_v23 = vmov 2   ;;  %v358_v24 = vmov 1  }
   0xe   :  { %143 = vmatpush1.bf16.msra.mxu0 %v322_v6  ;;  %v68_v13 = vsub.s32 %v65_v11, %v67_v9  ;;  %v328_v20 = vld [vmem:[%s463_s4] sm:$0xff]   ;;  %304 = vmatprep.mubr.msk.bf16.mxu1 %vm356_vm1, %v355_v21  ;;  %v189_v34 = vsub.s32 0, %v67_v9  ;;  %v247_v35 = vsub.s32 1, %v67_v9  ;;  %v257_v37 = vsub.s32 2, %v67_v9 }
   0xf   :  { %144 = vmatprep.subr.bf16.mxu0 %v353_v1  ;;  %303 = vmatpush3.bf16.msra.mxu1 %v328_v20  ;;  %v180_v22 = vld [vmem:[%s460_s1] sm:$0x3]  ;;  %vm269_vm2 = vcmask 140288  }
  0x10   :  { %v76_v14 = vrot.slane %v62_v10, %v68_v13  ;;  %v69_v19 = vrot.slane %v286_v5, %v68_v13  ;;  %184 = vperm.xlu0 %315, %v180_v22   ;;  %317 = vset.pattern.permute.xlu1 %v357_v23  ;;  %v285_v25 = vld [vmem:[%s462_s3] ss:$0 sm:$0xff] }
  0x11   :  { %252 = vperm.xlu1 %317, %v180_v22   ;;  %v181_v36 = vld [vmem:[%s464_s5] sm:$0x7]  ;;  %s359_s5 = smov [#allocation2]  }
  0x12   :  { %145 = vmatpush1.bf16.msra.mxu0 %v323_v12  ;;  %296 = vmatprep.mubr.msk.bf16.mxu0 %vm132_vm0, %v76_v14  ;;  %v190_v38 = vrot.slane %v181_v36, %v189_v34  ;;  %v248_v39 = vrot.slane %v181_v36, %v247_v35  ;;  %v258_v41 = vrot.slane %v181_v36, %v257_v37  ;;  %v299_v52 = vld [vmem:[%s465_s6] ss:$0 sm:$0xff]  ;;  %s277_s26 = sshll.u32 %s359_s5, 4  ;;  %s278_s26 = int_to_ptr.vmem [resolvable:$true] %s277_s26 }
  0x13   :  { %146 = vmatprep.subr.bf16.mxu0 %v353_v1  ;;  %s329_s27 = scalar_lea.vmem %s278_s26, 32  ;;  %p334_p1 = scmp.lt.s32.totalorder %s278_s26, %s278_s26 }
  0x14   :  { %316 = vset.pattern.permute.xlu0 %v358_v24  ;;  %p330_p0 = scmp.ne.s32.totalorder %s278_s26, %s329_s27  ;;  %p335_p2 = scmp.lt.s32.totalorder %s329_s27, %s329_s27 }
  0x15   :  { %242 = vperm.xlu0 %316, %v180_v22  }
  0x16   :  { %147 = vmatpush1.bf16.msra.mxu0 %v324_v15  ;;  %p336_p3 = por %p335_p2, %p334_p1 }
  0x17   :  { %148 = vmatprep.subr.bf16.mxu0 %v353_v1 }
  0x18   :  { %p337_p4 = pnand %p336_p3, %p330_p0 }
  0x19   :  { %318 = vset.pattern.permute.xlu0 %v357_v23 }
  0x1a   :  { %149 = vmatpush1.bf16.msra.mxu0 %v325_v16 }
  0x1b   :  { %150 = vmatprep.subr.bf16.mxu0 %v353_v1 }
  0x1e   :  { %151 = vmatpush1.bf16.msra.mxu0 %v326_v17 }
  0x1f   :  { %152 = vmatprep.subr.bf16.mxu0 %v353_v1 }
  0x22   :  { %153 = vmatpush1.bf16.msra.mxu0 %v327_v18 }
  0x25   :  { %169 = vmatmul.mubr.bf16.vlgmr.msra.gmra.mrb[0].mxu0 %v69_v19 }
  0x8f   :  { %v185_v33 = vpop.permute.xlu0 %184 }
  0x90   :  { %v253_v42 = vpop.permute.xlu1 %252  ;;  %v191_v43 = vmul.f32 %v190_v38, %v185_v33 }
  0x91   :  { %v259_v48 = vmul.f32 %v258_v41, %v253_v42 }
  0x94   :  { %v243_v40 = vpop.permute.xlu0 %242 }
  0x95   :  { %v249_v44 = vmul.f32 %v248_v39, %v243_v40 }
  0xf8   :  { %v170_v26 = vpop.f32.mrb[0].mxu0 }
  0xf9   :  { %v171_v27 = vadd.f32 %v285_v25, %v170_v26  ;;  %v172_v28 = vpop.f32.mrb[1].mxu0 }
  0xfa   :  { %v173_v29 = vpop.f32.mrb[2].mxu0 }
  0xfb   :  { %v176_v30 = vmax.f32 %v171_v27, 0.0  ;;  %v174_v31 = vpop.f32.mrb[3].mxu0 }
  0xfd   :  { %v177_v32 = vpack.c.bf16 %v176_v30, %v176_v30 }
  0xff   :  { %305 = vmatmul.mubr.msk.bf16.vlgmr.msra.gmra.mrb[0].mxu1 %vm132_vm0, %v177_v32 }
 0x1d2   :  { %v235_v45 = vpop.f32.mrb[0].mxu1 }
 0x1d3   :  { %v236_v46 = vadd.f32 %v235_v45, %v191_v43  ;;  %v306_v47 = vpop.f32.mrb[1].mxu1 }
 0x1d4   :  { %v238_v49 = vpop.f32.mrb[2].mxu1 }
 0x1d5   :  { %v250_v50 = vadd.f32 %v249_v44, %v236_v46  ;;  %v307_v51 = vpop.f32.mrb[3].mxu1 }
 0x1d7   :  { %v260_v53 = vadd.f32 %v259_v48, %v250_v50 }
 0x1d9   :  { %v268_v54 = vadd.f32 %v299_v52, %v260_v53 }
 0x1db   :  { %270 = vst.msk [vmem:[#allocation2] sm:$0x3] %vm269_vm2, %v268_v54 }
 0x1dc   :  { %340 = shalt.err (!%p337_p4)
}
 0x1dd   :  { %s341_s30 = scalar_lea.hbm %s466_s7, 32 }
 0x1de   :  { %p342_p5 = scmp.ne.s32.totalorder %s466_s7, %s341_s30  ;;  %p345_p6 = scmp.lt.u32.totalorder %s341_s30, %s466_s7 }
 0x1e0   :  { %p347_p7 = pnand %p345_p6, %p342_p5 }
 0x1e2   :  { %350 = shalt.err (!%p347_p7)
}
 0x1e3   :  { %280 = dma.vmem_to_hbm [thread:$0]  %s278_s26, 32, %s466_s7, [#allocation3]  }
 0x1e4   :  { %351 = dma.done.wait [#allocation3], 32  }
 0x1e5   :  { %352 = vsyncadd [#allocation3], 4294967264 }
 0x1e6   :  { %284 = vsyncpa [#allocation3], 1 }

</bundles_post_ra>
